<compile_context>
chip_gen: v7x
topology: tpu7x:2x2x1
jax: 0.10.0
libtpu: 0.0.40
codegen_flags: <defaults>
</compile_context>

<pallas_src>
import functools

import numpy as np

import jax
import jax.numpy as jnp
from jax.experimental import pallas as pl
from jax.experimental.pallas import tpu as pltpu

# ---------------------------------------------------------------------------
# Config (synthetic, deterministic)
# ---------------------------------------------------------------------------
NYU40_NUM_CLASSES = 40
ORI_BIN_NUM = 6
CENTER_BIN_NUM = 64                       # 2 * 64 == 128 == fc6 input size
FEAT_DIM = 2048                           # resnet feature dim used by ODN
GEO_DIM = 64                              # geometry pair feature dim
HEAD_IN = FEAT_DIM + NYU40_NUM_CLASSES    # 2088
HEAD_N = 2 * CENTER_BIN_NUM + 128 + 2     # fc4 | fc7 | fc2 packed = 258 (no pad)
TAIL_N = 128                              # fc6 | fc8 packed, padded to 128

# misc vector layout (biases + dequant scales), 128-aligned slots, f32
OFF_RES_B = 0                             # [2048]
OFF_RES_S = 2048                          # [2048]
OFF_REL_B = 4096                          # [2048]
OFF_HEAD_B = 6144                         # [258]  (slot padded to 384)
OFF_HEAD_S = 6528                         # [258]  (slot padded to 384)
OFF_TAIL_B = 6912                         # [128]
MISC_LEN = 7040

_VMEM_SPEC = pl.BlockSpec(memory_space=pltpu.MemorySpace.VMEM)
_CPARAMS = pltpu.CompilerParams(vmem_limit_bytes=16 * 1024 * 1024)


# ---------------------------------------------------------------------------
# Fused Pallas kernel
# ---------------------------------------------------------------------------
def _odn_fused_kernel(
    in_flat,                              # static (closed over via partial)
    xt_ref, geo_ref, avg_ref,
    res_w_ref, rel_w_ref, head_w_ref, tail_w_ref,
    misc_ref,
    out_ref,
):
    """Backbone stand-in + relnet stand-in + merged ODN head, all in VMEM.

    Output slab column layout (f32, lane-dense):
        [  0:128] dist_full  (fc4, raw)
        [128:131] size       (fc6)
        [131:143] orientation(fc8)
        [256:258] offset     (fc2)
    """
    f32 = jnp.float32
    bf16 = jnp.bfloat16

    x = xt_ref[:, 0:in_flat]                                  # [P, in_flat] bf16
    tgt = xt_ref[:, in_flat:in_flat + NYU40_NUM_CLASSES]      # [P, 40]      bf16

    res_b = misc_ref[:, OFF_RES_B:OFF_RES_B + FEAT_DIM]       # [1, 2048]
    res_s = misc_ref[:, OFF_RES_S:OFF_RES_S + FEAT_DIM]
    rel_b = misc_ref[:, OFF_REL_B:OFF_REL_B + FEAT_DIM]
    head_b = misc_ref[:, OFF_HEAD_B:OFF_HEAD_B + HEAD_N]      # [1, 258]
    head_s = misc_ref[:, OFF_HEAD_S:OFF_HEAD_S + HEAD_N]
    tail_b = misc_ref[:, OFF_TAIL_B:OFF_TAIL_B + TAIL_N]      # [1, 128]

    # --- ResNet-34 stand-in: one MXU matmul (+ dequant scale) + ReLU -> [P,2048]
    a_feat = jnp.maximum(
        jnp.dot(x, res_w_ref[...].astype(bf16), preferred_element_type=f32)
        * res_s + res_b,
        0.0,
    )

    # --- RelationNet stand-in: project pair geometry features, then per-object
    #     segment-mean as an f32 matmul with the precomputed averaging matrix
    #     (kept f32 end-to-end; no bf16 round-trip of the pair features).
    pair_feat = jnp.maximum(
        jnp.dot(geo_ref[...], rel_w_ref[...], preferred_element_type=f32)
        + rel_b,
        0.0,
    )                                                          # [NP, 2048] f32
    r_feat = jnp.dot(avg_ref[...], pair_feat,
                     preferred_element_type=f32)               # [P, 2048]  f32

    # a_r = (a_features + r_features) ++ target
    art = jnp.concatenate([(a_feat + r_feat).astype(bf16), tgt], axis=1)  # [P,2088]

    # --- merged head projection: fc4 (cols 0:128) | fc7 (128:256) | fc2 (256:258)
    head = (
        jnp.dot(art, head_w_ref[...].astype(bf16), preferred_element_type=f32)
        * head_s + head_b
    )                                                          # [P, 258]

    # --- merged tail: fc6|fc8 block-diagonal on relu([fc4_out | fc7_out]).
    #     Dropout(p=0.5) is identity in eval mode.
    hid = jnp.maximum(head[:, 0:256], 0.0).astype(bf16)        # [P, 256]
    tail = (
        jnp.dot(hid, tail_w_ref[...], preferred_element_type=f32) + tail_b
    )                                                          # [P, 128]

    out_ref[:, 0:128] = head[:, 0:128]        # dist_full (raw fc4)
    out_ref[:, 128:256] = tail                # size | orientation | zero pad
    out_ref[:, 256:258] = head[:, 256:258]    # offset (fc2)


# ---------------------------------------------------------------------------
# Generation-aware weight storage format
# ---------------------------------------------------------------------------
def _pick_weight_format():
    """int8 on v5e/v6e (bandwidth halving), fp8(e4m3) on v7x, bf16 fallback."""
    try:
        kind = jax.devices()[0].device_kind.lower()
    except Exception:
        return "bf16"
    if "v7" in kind or "7x" in kind:
        return "fp8"
    if ("v5 lite" in kind) or ("v5e" in kind) or ("v6" in kind):
        return "int8"
    return "bf16"


def _quantize(w, fmt):
    """Per-output-channel symmetric quant; dequant = q.astype(f32) * scale."""
    if fmt == "int8":
        amax = jnp.max(jnp.abs(w), axis=0, keepdims=True)
        scale = jnp.maximum(amax, 1e-12) / 127.0
        q = jnp.clip(jnp.round(w / scale), -127.0, 127.0).astype(jnp.int8)
        return q, scale.astype(jnp.float32)
    if fmt == "fp8":
        amax = jnp.max(jnp.abs(w), axis=0, keepdims=True)
        scale = jnp.maximum(amax, 1e-12) / 448.0        # e4m3 max finite
        q = (w / scale).astype(jnp.float8_e4m3fn)
        return q, scale.astype(jnp.float32)
    # bf16 fallback: identity scale
    return w.astype(jnp.bfloat16), jnp.ones((1, w.shape[1]), jnp.float32)


# ---------------------------------------------------------------------------
# Parameter init (matches the module's init: Linear.weight ~ N(0, 0.01), bias=0)
# then packing into the merged layouts used by the kernel.
# ---------------------------------------------------------------------------
def init_params(key, in_flat_dim, weight_format="auto"):
    if weight_format == "auto":
        weight_format = _pick_weight_format()

    keys = jax.random.split(key, 7)

    def lin(k, fin, fout):
        w = jax.random.normal(k, (fin, fout), jnp.float32) * 0.01
        b = jnp.zeros((fout,), jnp.float32)
        return w, b

    # stand-in backbones (deterministic; see TODO(synk) in header)
    res_w, res_b = lin(keys[0], in_flat_dim, FEAT_DIM)
    rel_w, rel_b = lin(keys[1], GEO_DIM, FEAT_DIM)
    # ODN head linears in original layout (fc1/fc3/fc5 dead code -> omitted)
    fc2_w, fc2_b = lin(keys[2], HEAD_IN, 2)
    fc4_w, fc4_b = lin(keys[3], HEAD_IN, 2 * CENTER_BIN_NUM)
    fc6_w, fc6_b = lin(keys[4], 2 * CENTER_BIN_NUM, 3)
    fc7_w, fc7_b = lin(keys[5], HEAD_IN, 128)
    fc8_w, fc8_b = lin(keys[6], 128, 2 * ORI_BIN_NUM)

    # --- merged head: cols 0:128 fc4 | 128:256 fc7 | 256:258 fc2 (no zero pad)
    head_w = jnp.concatenate([fc4_w, fc7_w, fc2_w], axis=1)        # [2088, 258]
    head_b = jnp.concatenate([fc4_b, fc7_b, fc2_b])                # [258]

    # --- merged tail (block-diagonal): rows 0:128 -> fc6 (cols 0:3),
    #     rows 128:256 -> fc8 (cols 3:15)
    tail_w = jnp.zeros((256, TAIL_N), jnp.float32)
    tail_w = tail_w.at[0:128, 0:3].set(fc6_w)
    tail_w = tail_w.at[128:256, 3:15].set(fc8_w)
    tail_b = jnp.zeros((TAIL_N,), jnp.float32)
    tail_b = tail_b.at[0:3].set(fc6_b)
    tail_b = tail_b.at[3:15].set(fc8_b)

    # --- narrow storage for the two dominant weight streams
    res_q, res_s = _quantize(res_w, weight_format)
    head_q, head_s = _quantize(head_w, weight_format)

    # --- single misc vector: biases + dequant scales (one DMA, lane-aligned)
    misc = jnp.zeros((1, MISC_LEN), jnp.float32)
    misc = misc.at[0, OFF_RES_B:OFF_RES_B + FEAT_DIM].set(res_b)
    misc = misc.at[0, OFF_RES_S:OFF_RES_S + FEAT_DIM].set(res_s[0])
    misc = misc.at[0, OFF_REL_B:OFF_REL_B + FEAT_DIM].set(rel_b)
    misc = misc.at[0, OFF_HEAD_B:OFF_HEAD_B + HEAD_N].set(head_b)
    misc = misc.at[0, OFF_HEAD_S:OFF_HEAD_S + HEAD_N].set(head_s[0])
    misc = misc.at[0, OFF_TAIL_B:OFF_TAIL_B + TAIL_N].set(tail_b)

    return {
        "res_w": res_q,                                # int8 / fp8 / bf16
        "rel_w": rel_w.astype(jnp.bfloat16),           # small, keep bf16
        "head_w": head_q,                              # int8 / fp8 / bf16
        "tail_w": tail_w.astype(jnp.bfloat16),         # small, keep bf16
        "misc": misc,
        "weight_format": weight_format,
    }


# ---------------------------------------------------------------------------
# Segment-mean matrix (replaces the per-object Python mean loop)
# ---------------------------------------------------------------------------
def _build_avg_matrix(pair_counts, num_pairs):
    p = len(pair_counts) - 1
    m = np.zeros((p, num_pairs), np.float32)
    for i in range(p):
        s, e = int(pair_counts[i]), int(pair_counts[i + 1])
        if e > s:                                   # zero-pair guard (no NaN)
            m[i, s:e] = 1.0 / float(e - s)
    return jnp.asarray(m)


# ---------------------------------------------------------------------------
# Forward
# ---------------------------------------------------------------------------
def odn_forward(params, x, geometry_features, split, pair_counts, target):
    """x: [P, C, H, W] (NCHW), geometry_features: [num_pairs, 64], target: [P, 40]."""
    del split  # per-object ranges come from pair_counts (static) for the stand-in
    P = x.shape[0]
    num_pairs = geometry_features.shape[0]
    in_flat = int(np.prod(x.shape[1:]))

    # activations shipped as bf16; x|target merged into one slab (fewer DMAs)
    xt = jnp.concatenate(
        [x.reshape(P, -1), target], axis=1).astype(jnp.bfloat16)   # [P, in_flat+40]
    geo = geometry_features.astype(jnp.bfloat16)
    avg_mat = _build_avg_matrix(pair_counts, num_pairs)            # [P, num_pairs] f32

    args = (
        xt, geo, avg_mat,
        params["res_w"], params["rel_w"], params["head_w"], params["tail_w"],
        params["misc"],
    )

    flops = 2 * (
        P * in_flat * FEAT_DIM            # backbone stand-in
        + num_pairs * GEO_DIM * FEAT_DIM  # relnet projection
        + P * num_pairs * FEAT_DIM        # segment mean
        + P * HEAD_IN * HEAD_N            # merged head (fc4|fc7|fc2)
        + P * 256 * TAIL_N                # merged tail (fc6|fc8)
    )
    bytes_accessed = sum(int(a.size) * a.dtype.itemsize for a in args) \
        + P * HEAD_N * 4

    kernel = functools.partial(_odn_fused_kernel, in_flat)
    out = pl.pallas_call(
        kernel,
        out_shape=jax.ShapeDtypeStruct((P, HEAD_N), jnp.float32),
        in_specs=[_VMEM_SPEC] * len(args),
        out_specs=_VMEM_SPEC,
        compiler_params=_CPARAMS,
        cost_estimate=pl.CostEstimate(
            flops=flops, transcendentals=0, bytes_accessed=bytes_accessed),
    )(*args)

    # --- glue: slice the lane-dense output slab / reshape as in the original
    dist_full = out[:, 0:128]
    size = out[:, 128:131]
    orient = out[:, 131:143]
    offset = out[:, 256:258]

    distance = dist_full.reshape(-1, CENTER_BIN_NUM, 2)
    distance_cls = distance[:, :, 0]
    distance_reg = distance[:, :, 0]   # original code takes channel 0 for both (replicated)
    orientation = orient.reshape(-1, ORI_BIN_NUM, 2)
    orientation_cls = orientation[:, :, 0]
    orientation_reg = orientation[:, :, 1]
    return size, orientation_reg, orientation_cls, distance_reg, distance_cls, offset


# ---------------------------------------------------------------------------
# Main
# ---------------------------------------------------------------------------
if __name__ == "__main__":
    key = jax.random.PRNGKey(0)
    k_x, k_g, k_p = jax.random.split(key, 3)

    P, C, H, W = 4, 4, 16, 16
    NUM_PAIRS = 8

    x = jax.random.normal(k_x, (P, C, H, W), jnp.float32)
    geometry_features = jax.random.normal(k_g, (NUM_PAIRS, GEO_DIM), jnp.float32)
    split = [[0, 2], [2, 4]]                       # unused by the stand-in relnet
    pair_counts = [0, 2, 4, 6, 8]                  # per-object pair ranges (static)
    target = jax.nn.one_hot(
        jnp.array([3, 7, 12, 39], jnp.int32), NYU40_NUM_CLASSES, dtype=jnp.float32
    )

    params = init_params(k_p, C * H * W)

    outs = odn_forward(params, x, geometry_features, split, pair_counts, target)
    outs = jax.block_until_ready(outs)

    size, ori_reg, ori_cls, dist_reg, dist_cls, offset = outs
    assert size.shape == (P, 3)
    assert ori_reg.shape == (P, ORI_BIN_NUM)
    assert ori_cls.shape == (P, ORI_BIN_NUM)
    assert dist_reg.shape == (P, CENTER_BIN_NUM)
    assert dist_cls.shape == (P, CENTER_BIN_NUM)
    assert offset.shape == (P, 2)
    assert not bool(jnp.any(jnp.isnan(jnp.concatenate(
        [size, ori_reg, ori_cls, dist_reg, dist_cls, offset], axis=1))))
    print("KERNEL_OK")
</pallas_src>

<mosaic_0001>
module attributes {stable_mosaic.version = 11 : i64} {
  func.func @_odn_fused_kernel(%arg0: memref<4x1064xbf16, #tpu.memory_space<vmem>>, %arg1: memref<8x64xbf16, #tpu.memory_space<vmem>>, %arg2: memref<4x8xf32, #tpu.memory_space<vmem>>, %arg3: memref<1024x2048xbf16, #tpu.memory_space<vmem>>, %arg4: memref<64x2048xbf16, #tpu.memory_space<vmem>>, %arg5: memref<2088x258xbf16, #tpu.memory_space<vmem>>, %arg6: memref<256x128xbf16, #tpu.memory_space<vmem>>, %arg7: memref<1x7040xf32, #tpu.memory_space<vmem>>, %arg8: memref<4x258xf32, #tpu.memory_space<vmem>>) attributes {dimension_semantics = [], scalar_prefetch = 0 : i64, scratch_operands = 0 : i64, tpu.core_type = #tpu.core_type<tc>} {
    %c0 = arith.constant 0 : index
    %c0_0 = arith.constant 0 : index
    %0 = vector.load %arg0[%c0, %c0_0] : memref<4x1064xbf16, #tpu.memory_space<vmem>>, vector<4x1024xbf16>
    %c0_1 = arith.constant 0 : index
    %c1024 = arith.constant 1024 : index
    %1 = vector.load %arg0[%c0_1, %c1024] : memref<4x1064xbf16, #tpu.memory_space<vmem>>, vector<4x40xbf16>
    %c0_2 = arith.constant 0 : index
    %c0_3 = arith.constant 0 : index
    %2 = vector.load %arg7[%c0_2, %c0_3] : memref<1x7040xf32, #tpu.memory_space<vmem>>, vector<1x2048xf32>
    %c0_4 = arith.constant 0 : index
    %c2048 = arith.constant 2048 : index
    %3 = vector.load %arg7[%c0_4, %c2048] : memref<1x7040xf32, #tpu.memory_space<vmem>>, vector<1x2048xf32>
    %c0_5 = arith.constant 0 : index
    %c4096 = arith.constant 4096 : index
    %4 = vector.load %arg7[%c0_5, %c4096] : memref<1x7040xf32, #tpu.memory_space<vmem>>, vector<1x2048xf32>
    %c0_6 = arith.constant 0 : index
    %c6144 = arith.constant 6144 : index
    %5 = vector.load %arg7[%c0_6, %c6144] : memref<1x7040xf32, #tpu.memory_space<vmem>>, vector<1x258xf32>
    %c0_7 = arith.constant 0 : index
    %c6528 = arith.constant 6528 : index
    %6 = vector.load %arg7[%c0_7, %c6528] : memref<1x7040xf32, #tpu.memory_space<vmem>>, vector<1x258xf32>
    %c0_8 = arith.constant 0 : index
    %c6912 = arith.constant 6912 : index
    %7 = vector.load %arg7[%c0_8, %c6912] : memref<1x7040xf32, #tpu.memory_space<vmem>>, vector<1x128xf32>
    %c0_9 = arith.constant 0 : index
    %c0_10 = arith.constant 0 : index
    %8 = vector.load %arg3[%c0_9, %c0_10] : memref<1024x2048xbf16, #tpu.memory_space<vmem>>, vector<1024x2048xbf16>
    %cst = arith.constant dense<0.000000e+00> : vector<4x2048xf32>
    %9 = tpu.matmul %0, %8, %cst {dimension_numbers = #tpu.dot_dimension_numbers<[1], [0], [0], [1], [0, 0, 1, 1], [], []>} : vector<4x1024xbf16>, vector<1024x2048xbf16>, vector<4x2048xf32> -> vector<4x2048xf32>
    %10 = vector.broadcast %3 : vector<1x2048xf32> to vector<4x2048xf32>
    %11 = arith.mulf %9, %10 : vector<4x2048xf32>
    %12 = vector.broadcast %2 : vector<1x2048xf32> to vector<4x2048xf32>
    %13 = arith.addf %11, %12 : vector<4x2048xf32>
    %cst_11 = arith.constant 0.000000e+00 : f32
    %14 = vector.broadcast %cst_11 : f32 to vector<4x2048xf32>
    %15 = arith.maximumf %13, %14 : vector<4x2048xf32>
    %c0_12 = arith.constant 0 : index
    %c0_13 = arith.constant 0 : index
    %16 = vector.load %arg1[%c0_12, %c0_13] : memref<8x64xbf16, #tpu.memory_space<vmem>>, vector<8x64xbf16>
    %c0_14 = arith.constant 0 : index
    %c0_15 = arith.constant 0 : index
    %17 = vector.load %arg4[%c0_14, %c0_15] : memref<64x2048xbf16, #tpu.memory_space<vmem>>, vector<64x2048xbf16>
    %cst_16 = arith.constant dense<0.000000e+00> : vector<8x2048xf32>
    %18 = tpu.matmul %16, %17, %cst_16 {dimension_numbers = #tpu.dot_dimension_numbers<[1], [0], [0], [1], [0, 0, 1, 1], [], []>} : vector<8x64xbf16>, vector<64x2048xbf16>, vector<8x2048xf32> -> vector<8x2048xf32>
    %19 = vector.broadcast %4 : vector<1x2048xf32> to vector<8x2048xf32>
    %20 = arith.addf %18, %19 : vector<8x2048xf32>
    %cst_17 = arith.constant 0.000000e+00 : f32
    %21 = vector.broadcast %cst_17 : f32 to vector<8x2048xf32>
    %22 = arith.maximumf %20, %21 : vector<8x2048xf32>
    %c0_18 = arith.constant 0 : index
    %c0_19 = arith.constant 0 : index
    %23 = vector.load %arg2[%c0_18, %c0_19] : memref<4x8xf32, #tpu.memory_space<vmem>>, vector<4x8xf32>
    %cst_20 = arith.constant dense<0.000000e+00> : vector<4x2048xf32>
    %24 = tpu.matmul %23, %22, %cst_20 {dimension_numbers = #tpu.dot_dimension_numbers<[1], [0], [0], [1], [0, 0, 1, 1], [], []>} : vector<4x8xf32>, vector<8x2048xf32>, vector<4x2048xf32> -> vector<4x2048xf32>
    %25 = arith.addf %15, %24 : vector<4x2048xf32>
    %26 = arith.truncf %25 : vector<4x2048xf32> to vector<4x2048xbf16>
    %27 = tpu.concatenate %26, %1 in 1 : vector<4x2048xbf16>, vector<4x40xbf16> -> vector<4x2088xbf16>
    %c0_21 = arith.constant 0 : index
    %c0_22 = arith.constant 0 : index
    %28 = vector.load %arg5[%c0_21, %c0_22] : memref<2088x258xbf16, #tpu.memory_space<vmem>>, vector<2088x258xbf16>
    %cst_23 = arith.constant dense<0.000000e+00> : vector<4x258xf32>
    %29 = tpu.matmul %27, %28, %cst_23 {dimension_numbers = #tpu.dot_dimension_numbers<[1], [0], [0], [1], [0, 0, 1, 1], [], []>} : vector<4x2088xbf16>, vector<2088x258xbf16>, vector<4x258xf32> -> vector<4x258xf32>
    %30 = vector.broadcast %6 : vector<1x258xf32> to vector<4x258xf32>
    %31 = arith.mulf %29, %30 : vector<4x258xf32>
    %32 = vector.broadcast %5 : vector<1x258xf32> to vector<4x258xf32>
    %33 = arith.addf %31, %32 : vector<4x258xf32>
    %34 = vector.extract_strided_slice %33 {offsets = [0, 0], sizes = [4, 256], strides = [1, 1]} : vector<4x258xf32> to vector<4x256xf32>
    %cst_24 = arith.constant 0.000000e+00 : f32
    %35 = vector.broadcast %cst_24 : f32 to vector<4x256xf32>
    %36 = arith.maximumf %34, %35 : vector<4x256xf32>
    %37 = arith.truncf %36 : vector<4x256xf32> to vector<4x256xbf16>
    %c0_25 = arith.constant 0 : index
    %c0_26 = arith.constant 0 : index
    %38 = vector.load %arg6[%c0_25, %c0_26] : memref<256x128xbf16, #tpu.memory_space<vmem>>, vector<256x128xbf16>
    %cst_27 = arith.constant dense<0.000000e+00> : vector<4x128xf32>
    %39 = tpu.matmul %37, %38, %cst_27 {dimension_numbers = #tpu.dot_dimension_numbers<[1], [0], [0], [1], [0, 0, 1, 1], [], []>} : vector<4x256xbf16>, vector<256x128xbf16>, vector<4x128xf32> -> vector<4x128xf32>
    %40 = vector.broadcast %7 : vector<1x128xf32> to vector<4x128xf32>
    %41 = arith.addf %39, %40 : vector<4x128xf32>
    %42 = vector.extract_strided_slice %33 {offsets = [0, 0], sizes = [4, 128], strides = [1, 1]} : vector<4x258xf32> to vector<4x128xf32>
    %c0_28 = arith.constant 0 : index
    %c0_29 = arith.constant 0 : index
    %43 = vector.load %arg8[%c0_28, %c0_29] : memref<4x258xf32, #tpu.memory_space<vmem>>, vector<4x128xf32>
    tpu.vector_store %arg8[%c0_28, %c0_29], %42 {strides = array<i32>} : memref<4x258xf32, #tpu.memory_space<vmem>>, vector<4x128xf32>,
    %c0_30 = arith.constant 0 : index
    %c128 = arith.constant 128 : index
    %44 = vector.load %arg8[%c0_30, %c128] : memref<4x258xf32, #tpu.memory_space<vmem>>, vector<4x128xf32>
    tpu.vector_store %arg8[%c0_30, %c128], %41 {strides = array<i32>} : memref<4x258xf32, #tpu.memory_space<vmem>>, vector<4x128xf32>,
    %45 = vector.extract_strided_slice %33 {offsets = [0, 256], sizes = [4, 2], strides = [1, 1]} : vector<4x258xf32> to vector<4x2xf32>
    %c0_31 = arith.constant 0 : index
    %c256 = arith.constant 256 : index
    %46 = vector.load %arg8[%c0_31, %c256] : memref<4x258xf32, #tpu.memory_space<vmem>>, vector<4x2xf32>
    tpu.vector_store %arg8[%c0_31, %c256], %45 {strides = array<i32>} : memref<4x258xf32, #tpu.memory_space<vmem>>, vector<4x2xf32>,
    return
  }
}

</mosaic_0001>

<bundles_post_ra>
// kernel: tpu_custom_call.1
= control target key start
LH: loop header
LB: loop body
LE: loop exit
PB: predicated region body
PF: predicated region fallthrough
CT: control target
= control target key end

     0   :  { %13 = vsyncpa [#allocation3], 0  ;;  %s17228_s0 = inlined_call_operand.vmem [shape: bf16[4,1064], index: 0, kind: input, shape index: {}]   ;;  %s17229_s1 = inlined_call_operand.vmem [shape: bf16[8,64], index: 1, kind: input, shape index: {}]   ;;  %s17230_s2 = inlined_call_operand.vmem [shape: f32[4,8], index: 2, kind: input, shape index: {}]   ;;  %s17231_s3 = inlined_call_operand.hbm [shape: bf16[1024,2048], index: 3, kind: input, shape index: {}]   ;;  %s17232_s4 = inlined_call_operand.vmem [shape: bf16[64,2048], index: 4, kind: input, shape index: {}]   ;;  %s17233_s5 = inlined_call_operand.vmem [shape: bf16[2088,258], index: 5, kind: input, shape index: {}]   ;;  %s17234_s6 = inlined_call_operand.vmem [shape: bf16[256,128], index: 6, kind: input, shape index: {}]   ;;  %s17235_s7 = inlined_call_operand.vmem [shape: f32[1,7040], index: 7, kind: input, shape index: {}]   ;;  %s17236_s8 = inlined_call_operand.hbm [shape: f32[4,258], index: 8, kind: output, shape index: {}]  }
   0x1   :  { %14 = vsyncpa [#allocation4], 0  ;;  %s15230_s27 = smov [#allocation2]   ;;  %s15182_s9 = scalar_lea.hbm %s17231_s3, 131072 }
   0x2   :  { %s26_s28 = sshll.u32 %s15230_s27, 4  ;;  %p15183_p0 = scmp.ne.s32.totalorder %s17231_s3, %s15182_s9  ;;  %s27_s28 = int_to_ptr.vmem [resolvable:$true] %s26_s28 }
   0x3   :  { %p15186_p1 = scmp.lt.u32.totalorder %s15182_s9, %s17231_s3 }
   0x5   :  { %p15188_p2 = pnand %p15186_p1, %p15183_p0 }
   0x7   :  { %15191 = shalt.err (!%p15188_p2)
}
   0x8   :  { %s15192_s14 = scalar_lea.vmem %s27_s28, 131072  ;;  %p15197_p4 = scmp.lt.s32.totalorder %s27_s28, %s27_s28 }
   0x9   :  { %p15193_p3 = scmp.ne.s32.totalorder %s27_s28, %s15192_s14  ;;  %p15198_p5 = scmp.lt.s32.totalorder %s15192_s14, %s15192_s14 }
   0xb   :  { %p15199_p6 = por %p15198_p5, %p15197_p4 }
   0xd   :  { %p15200_p7 = pnand %p15199_p6, %p15193_p3 }
   0xf   :  { %15203 = shalt.err (!%p15200_p7)
}
  0x10   :  { %s15231_s15 = smov 1024   ;;  %s15232_s16 = smov 64  }
  0x11   :  { %32 = dma.hbm_to_vmem [thread:$0]  %s17231_s3, 131072, %s27_s28, [#allocation3], %s15231_s15, %s15231_s15, %s15232_s16  }
  0x12   :  { %15226 = dma.done.wait [#allocation3], 131072  }
  0x13   :  { %15227 = vsyncadd [#allocation3], 4294836224  ;;  %v57_v0 = vld [vmem:[#allocation2] sm:$0xff]  ;;  %v15233_v32 = vmov 1983009808   ;;  %v1087_v34 = vlaneseq  ;;  %vm8236_vm0 = vcmask 523264  }
  0x14   :  { %v65_v1 = vld [vmem:[#allocation2 + $0x40] sm:$0xff]  ;;  %v1085_v33 = vunpack.c.l.s4 %v15233_v32  ;;  %vm8585_vm1 = vcmask 64512   ;;  %vm11803_vm2 = vcmask 1043456   ;;  %vm15236_vm3 = vmmov 0   ;;  %s15237_s12 = smov [#allocation5]  }
  0x15   :  { %v569_v2 = vld [vmem:[#allocation2 + $0x1000] sm:$0xff]  ;;  %v12778_v3 = vcombine.high %v57_v0, %v65_v1  ;;  %v12777_v5 = vcombine.low %v57_v0, %v65_v1  ;;  %v15295_v44 = vshrl.u32 %v1087_v34, 7  ;;  %v15312_v0 = vld [vmem:[%s17228_s0 + $0x8] sm:$0xff]  ;;  %vm11799_vm4 = vcmask 326656   ;;  %s12768_s13 = sshll.u32 %s15237_s12, 4  ;;  %s12769_s13 = int_to_ptr.vmem [resolvable:$true] %s12768_s13 }
  0x16   :  { %v577_v4 = vld [vmem:[#allocation2 + $0x1040] sm:$0xff]  ;;  %v1086_v43 = vunpack.c.0.s8 %v1085_v33  ;;  %vm12760_vm5 = vcmask 11264   ;;  %s15204_s14 = scalar_lea.vmem %s12769_s13, 192  ;;  %p15209_p9 = scmp.lt.s32.totalorder %s12769_s13, %s12769_s13 }
  0x17   :  { %v73_v6 = vld [vmem:[#allocation2 + $0x80] sm:$0xff]  ;;  %v13290_v8 = vcombine.high %v569_v2, %v577_v4  ;;  %v13289_v9 = vcombine.low %v569_v2, %v577_v4  ;;  %6245 = vmatprep.subr.bf16.mxu1 %v12778_v3  ;;  %p15205_p8 = scmp.ne.s32.totalorder %s12769_s13, %s15204_s14  ;;  %p15210_p10 = scmp.lt.s32.totalorder %s15204_s14, %s15204_s14 }
  0x18   :  { %v81_v7 = vld [vmem:[#allocation2 + $0xc0] sm:$0xff]  ;;  %6246 = vmatpush1.bf16.msra.mxu1 %v12777_v5  ;;  %v15298_v53 = vsub.s32 %v1086_v43, %v15295_v44 }
  0x19   :  { %v12794_v10 = vcombine.high %v73_v6, %v81_v7  ;;  %v585_v11 = vld [vmem:[#allocation2 + $0x1080] sm:$0xff]  ;;  %6327 = vmatprep.subr.bf16.mxu0 %v13290_v8  ;;  %v12793_v18 = vcombine.low %v73_v6, %v81_v7  ;;  %p15211_p11 = por %p15210_p10, %p15209_p9 }
  0x1a   :  { %v593_v12 = vld [vmem:[#allocation2 + $0x10c0] sm:$0xff]  ;;  %6328 = vmatpush1.bf16.msra.mxu0 %v13289_v9  ;;  %v15316_v3 = vrot.slane %v15312_v0, %v15298_v53 }
  0x1b   :  { %v89_v13 = vld [vmem:[#allocation2 + $0x100] sm:$0xff]  ;;  %v13306_v14 = vcombine.high %v585_v11, %v593_v12  ;;  %6247 = vmatprep.subr.bf16.mxu1 %v12794_v10  ;;  %v13305_v19 = vcombine.low %v585_v11, %v593_v12  ;;  %p15212_p12 = pnand %p15211_p11, %p15205_p8 }
  0x1c   :  { %v97_v15 = vld [vmem:[#allocation2 + $0x140] sm:$0xff]  ;;  %6248 = vmatpush1.bf16.msra.mxu1 %v12793_v18  ;;  %v15324_v8 = vcombine.high %v15316_v3, %v15316_v3 }
  0x1d   :  { %v601_v16 = vld [vmem:[#allocation2 + $0x1100] sm:$0xff]  ;;  %v12810_v20 = vcombine.high %v89_v13, %v97_v15  ;;  %6329 = vmatprep.subr.bf16.mxu0 %v13306_v14  ;;  %v12809_v26 = vcombine.low %v89_v13, %v97_v15 }
  0x1e   :  { %v609_v17 = vld [vmem:[#allocation2 + $0x1140] sm:$0xff]  ;;  %6330 = vmatpush1.bf16.msra.mxu0 %v13305_v19  ;;  %6359 = vmatprep.mubr.bf16.mxu0 %v15324_v8 }
  0x1f   :  { %v13322_v21 = vcombine.high %v601_v16, %v609_v17  ;;  %v105_v22 = vld [vmem:[#allocation2 + $0x180] sm:$0xff]  ;;  %6249 = vmatprep.subr.bf16.mxu1 %v12810_v20  ;;  %v13321_v27 = vcombine.low %v601_v16, %v609_v17 }
  0x20   :  { %v113_v23 = vld [vmem:[#allocation2 + $0x1c0] sm:$0xff]  ;;  %6250 = vmatpush1.bf16.msra.mxu1 %v12809_v26 }
  0x21   :  { %v617_v24 = vld [vmem:[#allocation2 + $0x1180] sm:$0xff]  ;;  %v12826_v28 = vcombine.high %v105_v22, %v113_v23  ;;  %6331 = vmatprep.subr.bf16.mxu0 %v13322_v21  ;;  %v12825_v37 = vcombine.low %v105_v22, %v113_v23 }
  0x22   :  { %v625_v25 = vld [vmem:[#allocation2 + $0x11c0] sm:$0xff]  ;;  %6332 = vmatpush1.bf16.msra.mxu0 %v13321_v27 }
  0x23   :  { %v13338_v29 = vcombine.high %v617_v24, %v625_v25  ;;  %v121_v30 = vld [vmem:[#allocation2 + $0x200] sm:$0xff]  ;;  %6251 = vmatprep.subr.bf16.mxu1 %v12826_v28  ;;  %v13337_v38 = vcombine.low %v617_v24, %v625_v25 }
  0x24   :  { %v129_v31 = vld [vmem:[#allocation2 + $0x240] sm:$0xff]  ;;  %6252 = vmatpush1.bf16.msra.mxu1 %v12825_v37 }
  0x25   :  { %v633_v35 = vld [vmem:[#allocation2 + $0x1200] sm:$0xff]  ;;  %v12842_v39 = vcombine.high %v121_v30, %v129_v31  ;;  %6333 = vmatprep.subr.bf16.mxu0 %v13338_v29  ;;  %v12841_v47 = vcombine.low %v121_v30, %v129_v31 }
  0x26   :  { %v641_v36 = vld [vmem:[#allocation2 + $0x1240] sm:$0xff]  ;;  %6334 = vmatpush1.bf16.msra.mxu0 %v13337_v38 }
  0x27   :  { %v13354_v40 = vcombine.high %v633_v35, %v641_v36  ;;  %v137_v41 = vld [vmem:[#allocation2 + $0x280] sm:$0xff]  ;;  %6253 = vmatprep.subr.bf16.mxu1 %v12842_v39  ;;  %v13353_v48 = vcombine.low %v633_v35, %v641_v36 }
  0x28   :  { %v145_v42 = vld [vmem:[#allocation2 + $0x2c0] sm:$0xff]  ;;  %6254 = vmatpush1.bf16.msra.mxu1 %v12841_v47 }
  0x29   :  { %v649_v45 = vld [vmem:[#allocation2 + $0x1280] sm:$0xff]  ;;  %v12858_v49 = vcombine.high %v137_v41, %v145_v42  ;;  %6335 = vmatprep.subr.bf16.mxu0 %v13354_v40  ;;  %v12857_v56 = vcombine.low %v137_v41, %v145_v42 }
  0x2a   :  { %v657_v46 = vld [vmem:[#allocation2 + $0x12c0] sm:$0xff]  ;;  %6336 = vmatpush1.bf16.msra.mxu0 %v13353_v48 }
  0x2b   :  { %v13370_v50 = vcombine.high %v649_v45, %v657_v46  ;;  %v153_v51 = vld [vmem:[#allocation2 + $0x300] sm:$0xff]  ;;  %6255 = vmatprep.subr.bf16.mxu1 %v12858_v49  ;;  %v13369_v57 = vcombine.low %v649_v45, %v657_v46 }
  0x2c   :  { %v161_v52 = vld [vmem:[#allocation2 + $0x340] sm:$0xff]  ;;  %6256 = vmatpush1.bf16.msra.mxu1 %v12857_v56 }
  0x2d   :  { %v665_v54 = vld [vmem:[#allocation2 + $0x1300] sm:$0xff]  ;;  %v12874_v58 = vcombine.high %v153_v51, %v161_v52  ;;  %6337 = vmatprep.subr.bf16.mxu0 %v13370_v50  ;;  %v12873_v4 = vcombine.low %v153_v51, %v161_v52 }
  0x2e   :  { %v673_v55 = vld [vmem:[#allocation2 + $0x1340] sm:$0xff]  ;;  %6338 = vmatpush1.bf16.msra.mxu0 %v13369_v57 }
  0x2f   :  { %v15303_v59 = vld [vmem:[%s17228_s0] sm:$0xff]  ;;  %v13386_v60 = vcombine.high %v665_v54, %v673_v55  ;;  %6257 = vmatprep.subr.bf16.mxu1 %v12874_v58  ;;  %v13385_v6 = vcombine.low %v665_v54, %v673_v55 }
  0x30   :  { %v169_v61 = vld [vmem:[#allocation2 + $0x380] sm:$0xff]  ;;  %v15307_v63 = vrot.slane %v15303_v59, %v15298_v53  ;;  %6258 = vmatpush1.bf16.msra.mxu1 %v12873_v4 }
  0x31   :  { %v177_v62 = vld [vmem:[#allocation2 + $0x3c0] sm:$0xff]  ;;  %6339 = vmatprep.subr.bf16.mxu0 %v13386_v60 }
  0x32   :  { %v681_v1 = vld [vmem:[#allocation2 + $0x1380] sm:$0xff]  ;;  %v15320_v5 = vcombine.high %v15307_v63, %v15307_v63  ;;  %v12890_v7 = vcombine.high %v169_v61, %v177_v62  ;;  %v12889_v14 = vcombine.low %v169_v61, %v177_v62  ;;  %6340 = vmatpush1.bf16.msra.mxu0 %v13385_v6 }
  0x33   :  { %v689_v2 = vld [vmem:[#allocation2 + $0x13c0] sm:$0xff] }
  0x34   :  { %v13402_v9 = vcombine.high %v681_v1, %v689_v2  ;;  %v185_v10 = vld [vmem:[#allocation2 + $0x400] sm:$0xff]  ;;  %6277 = vmatprep.mubr.bf16.mxu1 %v15320_v5  ;;  %6259 = vmatprep.subr.bf16.mxu1 %v12890_v7  ;;  %v13401_v15 = vcombine.low %v681_v1, %v689_v2 }
  0x35   :  { %v193_v11 = vld [vmem:[#allocation2 + $0x440] sm:$0xff]  ;;  %6260 = vmatpush1.bf16.msra.mxu1 %v12889_v14 }
  0x36   :  { %v697_v12 = vld [vmem:[#allocation2 + $0x1400] sm:$0xff]  ;;  %v12906_v16 = vcombine.high %v185_v10, %v193_v11  ;;  %6341 = vmatprep.subr.bf16.mxu0 %v13402_v9  ;;  %v12905_v22 = vcombine.low %v185_v10, %v193_v11 }
  0x37   :  { %v705_v13 = vld [vmem:[#allocation2 + $0x1440] sm:$0xff]  ;;  %6342 = vmatpush1.bf16.msra.mxu0 %v13401_v15 }
  0x38   :  { %v13418_v17 = vcombine.high %v697_v12, %v705_v13  ;;  %v201_v18 = vld [vmem:[#allocation2 + $0x480] sm:$0xff]  ;;  %6261 = vmatprep.subr.bf16.mxu1 %v12906_v16  ;;  %v13417_v23 = vcombine.low %v697_v12, %v705_v13 }
  0x39   :  { %v209_v19 = vld [vmem:[#allocation2 + $0x4c0] sm:$0xff]  ;;  %6262 = vmatpush1.bf16.msra.mxu1 %v12905_v22 }
  0x3a   :  { %v713_v20 = vld [vmem:[#allocation2 + $0x1480] sm:$0xff]  ;;  %v12922_v24 = vcombine.high %v201_v18, %v209_v19  ;;  %6343 = vmatprep.subr.bf16.mxu0 %v13418_v17  ;;  %v12921_v30 = vcombine.low %v201_v18, %v209_v19 }
  0x3b   :  { %v721_v21 = vld [vmem:[#allocation2 + $0x14c0] sm:$0xff]  ;;  %6344 = vmatpush1.bf16.msra.mxu0 %v13417_v23  ;;  %v1100_v23 = vcombine.high %v15312_v0, %v15312_v0 }
  0x3c   :  { %v13434_v25 = vcombine.high %v713_v20, %v721_v21  ;;  %v217_v26 = vld [vmem:[#allocation2 + $0x500] sm:$0xff]  ;;  %6263 = vmatprep.subr.bf16.mxu1 %v12922_v24  ;;  %v13433_v31 = vcombine.low %v713_v20, %v721_v21  ;;  %v1083_v20 = vcombine.high %v15303_v59, %v15303_v59 }
  0x3d   :  { %v225_v27 = vld [vmem:[#allocation2 + $0x540] sm:$0xff]  ;;  %6264 = vmatpush1.bf16.msra.mxu1 %v12921_v30 }
  0x3e   :  { %v729_v28 = vld [vmem:[#allocation2 + $0x1500] sm:$0xff]  ;;  %v12938_v32 = vcombine.high %v217_v26, %v225_v27  ;;  %6345 = vmatprep.subr.bf16.mxu0 %v13434_v25  ;;  %v12937_v38 = vcombine.low %v217_v26, %v225_v27  ;;  %v15333_v30 = vrot.slane %v1083_v20, %v15298_v53 }
  0x3f   :  { %v737_v29 = vld [vmem:[#allocation2 + $0x1540] sm:$0xff]  ;;  %6346 = vmatpush1.bf16.msra.mxu0 %v13433_v31 }
  0x40   :  { %v13450_v33 = vcombine.high %v729_v28, %v737_v29  ;;  %v233_v34 = vld [vmem:[#allocation2 + $0x580] sm:$0xff]  ;;  %6265 = vmatprep.subr.bf16.mxu1 %v12938_v32  ;;  %v13449_v39 = vcombine.low %v729_v28, %v737_v29  ;;  %v15336_v32 = vrot.slane %v1100_v23, %v15298_v53 }
  0x41   :  { %v241_v35 = vld [vmem:[#allocation2 + $0x5c0] sm:$0xff]  ;;  %6266 = vmatpush1.bf16.msra.mxu1 %v12937_v38 }
  0x42   :  { %v745_v36 = vld [vmem:[#allocation2 + $0x1580] sm:$0xff]  ;;  %v12954_v40 = vcombine.high %v233_v34, %v241_v35  ;;  %6347 = vmatprep.subr.bf16.mxu0 %v13450_v33  ;;  %v12953_v47 = vcombine.low %v233_v34, %v241_v35  ;;  %v15345_v53 = vcombine.high %v15336_v32, %v15336_v32 }
  0x43   :  { %v753_v37 = vld [vmem:[#allocation2 + $0x15c0] sm:$0xff]  ;;  %6348 = vmatpush1.bf16.msra.mxu0 %v13449_v39 }
  0x44   :  { %v13466_v41 = vcombine.high %v745_v36, %v753_v37  ;;  %v249_v42 = vld [vmem:[#allocation2 + $0x600] sm:$0xff]  ;;  %6267 = vmatprep.subr.bf16.mxu1 %v12954_v40  ;;  %v13465_v48 = vcombine.low %v745_v36, %v753_v37  ;;  %v15340_v40 = vcombine.high %v15333_v30, %v15333_v30 }
  0x45   :  { %v257_v43 = vld [vmem:[#allocation2 + $0x640] sm:$0xff]  ;;  %6268 = vmatpush1.bf16.msra.mxu1 %v12953_v47 }
  0x46   :  { %v761_v45 = vld [vmem:[#allocation2 + $0x1600] sm:$0xff]  ;;  %v12970_v49 = vcombine.high %v249_v42, %v257_v43  ;;  %6349 = vmatprep.subr.bf16.mxu0 %v13466_v41  ;;  %v12969_v56 = vcombine.low %v249_v42, %v257_v43 }
  0x47   :  { %v769_v46 = vld [vmem:[#allocation2 + $0x1640] sm:$0xff]  ;;  %6350 = vmatpush1.bf16.msra.mxu0 %v13465_v48 }
  0x48   :  { %v13482_v50 = vcombine.high %v761_v45, %v769_v46  ;;  %v265_v51 = vld [vmem:[#allocation2 + $0x680] sm:$0xff]  ;;  %6269 = vmatprep.subr.bf16.mxu1 %v12970_v49  ;;  %v13481_v57 = vcombine.low %v761_v45, %v769_v46 }
  0x49   :  { %v273_v52 = vld [vmem:[#allocation2 + $0x6c0] sm:$0xff]  ;;  %6270 = vmatpush1.bf16.msra.mxu1 %v12969_v56 }
  0x4a   :  { %v777_v54 = vld [vmem:[#allocation2 + $0x1680] sm:$0xff]  ;;  %v12986_v58 = vcombine.high %v265_v51, %v273_v52  ;;  %6351 = vmatprep.subr.bf16.mxu0 %v13482_v50  ;;  %v12985_v4 = vcombine.low %v265_v51, %v273_v52 }
  0x4b   :  { %v785_v55 = vld [vmem:[#allocation2 + $0x16c0] sm:$0xff]  ;;  %6352 = vmatpush1.bf16.msra.mxu0 %v13481_v57 }
  0x4c   :  { %v13498_v60 = vcombine.high %v777_v54, %v785_v55  ;;  %v281_v61 = vld [vmem:[#allocation2 + $0x700] sm:$0xff]  ;;  %6271 = vmatprep.subr.bf16.mxu1 %v12986_v58  ;;  %v13497_v6 = vcombine.low %v777_v54, %v785_v55 }
  0x4d   :  { %v289_v62 = vld [vmem:[#allocation2 + $0x740] sm:$0xff]  ;;  %6272 = vmatpush1.bf16.msra.mxu1 %v12985_v4 }
  0x4e   :  { %v793_v1 = vld [vmem:[#allocation2 + $0x1700] sm:$0xff]  ;;  %v13002_v7 = vcombine.high %v281_v61, %v289_v62  ;;  %6353 = vmatprep.subr.bf16.mxu0 %v13498_v60  ;;  %v13001_v14 = vcombine.low %v281_v61, %v289_v62 }
  0x4f   :  { %v801_v2 = vld [vmem:[#allocation2 + $0x1740] sm:$0xff]  ;;  %6354 = vmatpush1.bf16.msra.mxu0 %v13497_v6 }
  0x50   :  { %v13514_v9 = vcombine.high %v793_v1, %v801_v2  ;;  %v297_v10 = vld [vmem:[#allocation2 + $0x780] sm:$0xff]  ;;  %6273 = vmatprep.subr.bf16.mxu1 %v13002_v7  ;;  %v13513_v15 = vcombine.low %v793_v1, %v801_v2 }
  0x51   :  { %v305_v11 = vld [vmem:[#allocation2 + $0x7c0] sm:$0xff]  ;;  %6274 = vmatpush1.bf16.msra.mxu1 %v13001_v14 }
  0x52   :  { %v809_v12 = vld [vmem:[#allocation2 + $0x1780] sm:$0xff]  ;;  %v13018_v16 = vcombine.high %v297_v10, %v305_v11  ;;  %6355 = vmatprep.subr.bf16.mxu0 %v13514_v9  ;;  %v13017_v24 = vcombine.low %v297_v10, %v305_v11 }
  0x53   :  { %v817_v13 = vld [vmem:[#allocation2 + $0x17c0] sm:$0xff]  ;;  %6356 = vmatpush1.bf16.msra.mxu0 %v13513_v15 }
  0x54   :  { %v13530_v17 = vcombine.high %v809_v12, %v817_v13  ;;  %v313_v18 = vld [vmem:[#allocation2 + $0x800] sm:$0xff]  ;;  %6275 = vmatprep.subr.bf16.mxu1 %v13018_v16  ;;  %v13529_v25 = vcombine.low %v809_v12, %v817_v13 }
  0x55   :  { %v321_v19 = vld [vmem:[#allocation2 + $0x840] sm:$0xff]  ;;  %6276 = vmatpush1.bf16.msra.mxu1 %v13017_v24 }
  0x56   :  { %v825_v21 = vld [vmem:[#allocation2 + $0x1800] sm:$0xff]  ;;  %v13034_v26 = vcombine.high %v313_v18, %v321_v19  ;;  %6357 = vmatprep.subr.bf16.mxu0 %v13530_v17  ;;  %v13033_v0 = vcombine.low %v313_v18, %v321_v19 }
  0x57   :  { %v833_v22 = vld [vmem:[#allocation2 + $0x1840] sm:$0xff]  ;;  %6358 = vmatpush1.bf16.msra.mxu0 %v13529_v25 }
  0x58   :  { %v13546_v27 = vcombine.high %v825_v21, %v833_v22  ;;  %v329_v28 = vld [vmem:[#allocation2 + $0x880] sm:$0xff]  ;;  %6286 = vmatprep.subr.bf16.mxu1 %v13034_v26  ;;  %v13545_v33 = vcombine.low %v825_v21, %v833_v22  ;;  %6278 = vmatmul.mubr.bf16.vlgmr.msra.gmra.mrb[0].mxu1 %v15307_v63 }
  0x59   :  { %v337_v29 = vld [vmem:[#allocation2 + $0x8c0] sm:$0xff]  ;;  %6287 = vmatpush1.bf16.msra.mxu1 %v13033_v0  ;;  %6318 = vmatprep.mubr.bf16.mxu1 %v15340_v40 }
  0x5a   :  { %v841_v31 = vld [vmem:[#allocation2 + $0x1880] sm:$0xff]  ;;  %v13050_v34 = vcombine.high %v329_v28, %v337_v29  ;;  %6368 = vmatprep.subr.bf16.mxu0 %v13546_v27  ;;  %6360 = vmatmul.mubr.bf16.vlgmr.msra.gmra.mrb[0].mxu0 %v15316_v3  ;;  %v13049_v41 = vcombine.low %v329_v28, %v337_v29 }
  0x5b   :  { %v849_v59 = vld [vmem:[#allocation2 + $0x18c0] sm:$0xff]  ;;  %6369 = vmatpush1.bf16.msra.mxu0 %v13545_v33  ;;  %6400 = vmatprep.mubr.bf16.mxu0 %v15345_v53 }
  0x5c   :  { %v345_v35 = vld [vmem:[#allocation2 + $0x900] sm:$0xff]  ;;  %v13562_v38 = vcombine.high %v841_v31, %v849_v59  ;;  %6288 = vmatprep.subr.bf16.mxu1 %v13050_v34  ;;  %v13561_v42 = vcombine.low %v841_v31, %v849_v59 }
  0x5d   :  { %v353_v36 = vld [vmem:[#allocation2 + $0x940] sm:$0xff]  ;;  %6289 = vmatpush1.bf16.msra.mxu1 %v13049_v41 }
  0x5e   :  { %v857_v37 = vld [vmem:[#allocation2 + $0x1900] sm:$0xff]  ;;  %v13066_v43 = vcombine.high %v345_v35, %v353_v36  ;;  %6370 = vmatprep.subr.bf16.mxu0 %v13562_v38  ;;  %v13065_v50 = vcombine.low %v345_v35, %v353_v36 }
  0x5f   :  { %v865_v39 = vld [vmem:[#allocation2 + $0x1940] sm:$0xff]  ;;  %6371 = vmatpush1.bf16.msra.mxu0 %v13561_v42 }
  0x60   :  { %v361_v45 = vld [vmem:[#allocation2 + $0x980] sm:$0xff]  ;;  %v13578_v48 = vcombine.high %v857_v37, %v865_v39  ;;  %6290 = vmatprep.subr.bf16.mxu1 %v13066_v43  ;;  %v13577_v51 = vcombine.low %v857_v37, %v865_v39 }
  0x61   :  { %v369_v46 = vld [vmem:[#allocation2 + $0x9c0] sm:$0xff]  ;;  %6291 = vmatpush1.bf16.msra.mxu1 %v13065_v50 }
  0x62   :  { %v873_v47 = vld [vmem:[#allocation2 + $0x1980] sm:$0xff]  ;;  %v13082_v52 = vcombine.high %v361_v45, %v369_v46  ;;  %6372 = vmatprep.subr.bf16.mxu0 %v13578_v48  ;;  %v13081_v60 = vcombine.low %v361_v45, %v369_v46 }
  0x63   :  { %v881_v49 = vld [vmem:[#allocation2 + $0x19c0] sm:$0xff]  ;;  %6373 = vmatpush1.bf16.msra.mxu0 %v13577_v51 }
  0x64   :  { %v377_v54 = vld [vmem:[#allocation2 + $0xa00] sm:$0xff]  ;;  %v13594_v57 = vcombine.high %v873_v47, %v881_v49  ;;  %6292 = vmatprep.subr.bf16.mxu1 %v13082_v52  ;;  %v13593_v61 = vcombine.low %v873_v47, %v881_v49 }
  0x65   :  { %v385_v55 = vld [vmem:[#allocation2 + $0xa40] sm:$0xff]  ;;  %6293 = vmatpush1.bf16.msra.mxu1 %v13081_v60 }
  0x66   :  { %v889_v56 = vld [vmem:[#allocation2 + $0x1a00] sm:$0xff]  ;;  %v13098_v62 = vcombine.high %v377_v54, %v385_v55  ;;  %6374 = vmatprep.subr.bf16.mxu0 %v13594_v57  ;;  %v13097_v9 = vcombine.low %v377_v54, %v385_v55 }
  0x67   :  { %v897_v58 = vld [vmem:[#allocation2 + $0x1a40] sm:$0xff]  ;;  %6375 = vmatpush1.bf16.msra.mxu0 %v13593_v61 }
  0x68   :  { %v393_v1 = vld [vmem:[#allocation2 + $0xa80] sm:$0xff]  ;;  %v13610_v6 = vcombine.high %v889_v56, %v897_v58  ;;  %6294 = vmatprep.subr.bf16.mxu1 %v13098_v62  ;;  %v13609_v10 = vcombine.low %v889_v56, %v897_v58 }
  0x69   :  { %v401_v2 = vld [vmem:[#allocation2 + $0xac0] sm:$0xff]  ;;  %6295 = vmatpush1.bf16.msra.mxu1 %v13097_v9 }
  0x6a   :  { %v905_v4 = vld [vmem:[#allocation2 + $0x1a80] sm:$0xff]  ;;  %v13114_v11 = vcombine.high %v393_v1, %v401_v2  ;;  %6376 = vmatprep.subr.bf16.mxu0 %v13610_v6  ;;  %v13113_v17 = vcombine.low %v393_v1, %v401_v2 }
  0x6b   :  { %v913_v7 = vld [vmem:[#allocation2 + $0x1ac0] sm:$0xff]  ;;  %6377 = vmatpush1.bf16.msra.mxu0 %v13609_v10 }
  0x6c   :  { %v409_v12 = vld [vmem:[#allocation2 + $0xb00] sm:$0xff]  ;;  %v13626_v15 = vcombine.high %v905_v4, %v913_v7  ;;  %6296 = vmatprep.subr.bf16.mxu1 %v13114_v11  ;;  %v13625_v18 = vcombine.low %v905_v4, %v913_v7 }
  0x6d   :  { %v417_v13 = vld [vmem:[#allocation2 + $0xb40] sm:$0xff]  ;;  %6297 = vmatpush1.bf16.msra.mxu1 %v13113_v17 }
  0x6e   :  { %v921_v14 = vld [vmem:[#allocation2 + $0x1b00] sm:$0xff]  ;;  %v13130_v19 = vcombine.high %v409_v12, %v417_v13  ;;  %6378 = vmatprep.subr.bf16.mxu0 %v13626_v15  ;;  %v13129_v25 = vcombine.low %v409_v12, %v417_v13 }
  0x6f   :  { %v929_v16 = vld [vmem:[#allocation2 + $0x1b40] sm:$0xff]  ;;  %6379 = vmatpush1.bf16.msra.mxu0 %v13625_v18 }
  0x70   :  { %v425_v20 = vld [vmem:[#allocation2 + $0xb80] sm:$0xff]  ;;  %v13642_v23 = vcombine.high %v921_v14, %v929_v16  ;;  %6298 = vmatprep.subr.bf16.mxu1 %v13130_v19  ;;  %v13641_v26 = vcombine.low %v921_v14, %v929_v16 }
  0x71   :  { %v433_v21 = vld [vmem:[#allocation2 + $0xbc0] sm:$0xff]  ;;  %6299 = vmatpush1.bf16.msra.mxu1 %v13129_v25 }
  0x72   :  { %v937_v22 = vld [vmem:[#allocation2 + $0x1b80] sm:$0xff]  ;;  %v13146_v27 = vcombine.high %v425_v20, %v433_v21  ;;  %6380 = vmatprep.subr.bf16.mxu0 %v13642_v23  ;;  %v13145_v33 = vcombine.low %v425_v20, %v433_v21 }
  0x73   :  { %v945_v24 = vld [vmem:[#allocation2 + $0x1bc0] sm:$0xff]  ;;  %6381 = vmatpush1.bf16.msra.mxu0 %v13641_v26 }
  0x74   :  { %v441_v28 = vld [vmem:[#allocation2 + $0xc00] sm:$0xff]  ;;  %v13658_v59 = vcombine.high %v937_v22, %v945_v24  ;;  %6300 = vmatprep.subr.bf16.mxu1 %v13146_v27  ;;  %v13657_v34 = vcombine.low %v937_v22, %v945_v24 }
  0x75   :  { %v449_v29 = vld [vmem:[#allocation2 + $0xc40] sm:$0xff]  ;;  %6301 = vmatpush1.bf16.msra.mxu1 %v13145_v33 }
  0x76   :  { %v953_v31 = vld [vmem:[#allocation2 + $0x1c00] sm:$0xff]  ;;  %v13162_v35 = vcombine.high %v441_v28, %v449_v29  ;;  %6382 = vmatprep.subr.bf16.mxu0 %v13658_v59  ;;  %v13161_v42 = vcombine.low %v441_v28, %v449_v29 }
  0x77   :  { %v961_v0 = vld [vmem:[#allocation2 + $0x1c40] sm:$0xff]  ;;  %6383 = vmatpush1.bf16.msra.mxu0 %v13657_v34 }
  0x78   :  { %v457_v36 = vld [vmem:[#allocation2 + $0xc80] sm:$0xff]  ;;  %v13674_v39 = vcombine.high %v953_v31, %v961_v0  ;;  %6302 = vmatprep.subr.bf16.mxu1 %v13162_v35  ;;  %v13673_v43 = vcombine.low %v953_v31, %v961_v0 }
  0x79   :  { %v465_v37 = vld [vmem:[#allocation2 + $0xcc0] sm:$0xff]  ;;  %6303 = vmatpush1.bf16.msra.mxu1 %v13161_v42  ;;  %v67_v42 = vld [vmem:[#allocation2 + $0x50] sm:$0xff] }
  0x7a   :  { %v969_v38 = vld [vmem:[#allocation2 + $0x1c80] sm:$0xff]  ;;  %v13178_v45 = vcombine.high %v457_v36, %v465_v37  ;;  %6384 = vmatprep.subr.bf16.mxu0 %v13674_v39  ;;  %v13177_v51 = vcombine.low %v457_v36, %v465_v37  ;;  %v58_v37 = vld [vmem:[#allocation2 + $0x8] sm:$0xff]  ;;  %v59_v39 = vld [vmem:[#allocation2 + $0x10] sm:$0xff] }
  0x7b   :  { %v977_v41 = vld [vmem:[#allocation2 + $0x1cc0] sm:$0xff]  ;;  %6385 = vmatpush1.bf16.msra.mxu0 %v13673_v43 }
  0x7c   :  { %v473_v46 = vld [vmem:[#allocation2 + $0xd00] sm:$0xff]  ;;  %v13690_v49 = vcombine.high %v969_v38, %v977_v41  ;;  %6304 = vmatprep.subr.bf16.mxu1 %v13178_v45  ;;  %v13689_v52 = vcombine.low %v969_v38, %v977_v41  ;;  %v66_v38 = vld [vmem:[#allocation2 + $0x48] sm:$0xff] }
  0x7d   :  { %v481_v47 = vld [vmem:[#allocation2 + $0xd40] sm:$0xff]  ;;  %6305 = vmatpush1.bf16.msra.mxu1 %v13177_v51  ;;  %v83_v51 = vld [vmem:[#allocation2 + $0xd0] sm:$0xff] }
  0x7e   :  { %v985_v48 = vld [vmem:[#allocation2 + $0x1d00] sm:$0xff]  ;;  %v13194_v54 = vcombine.high %v473_v46, %v481_v47  ;;  %6386 = vmatprep.subr.bf16.mxu0 %v13690_v49  ;;  %v13193_v61 = vcombine.low %v473_v46, %v481_v47  ;;  %v12780_v46 = vcombine.high %v58_v37, %v66_v38  ;;  %v74_v47 = vld [vmem:[#allocation2 + $0x88] sm:$0xff]  ;;  %v75_v49 = vld [vmem:[#allocation2 + $0x90] sm:$0xff] }
  0x7f   :  { %v993_v50 = vld [vmem:[#allocation2 + $0x1d40] sm:$0xff]  ;;  %6387 = vmatpush1.bf16.msra.mxu0 %v13689_v52  ;;  %v12779_v52 = vcombine.low %v58_v37, %v66_v38  ;;  %v170_v38 = vld [vmem:[#allocation2 + $0x388] sm:$0xff] }
  0x80   :  { %v489_v55 = vld [vmem:[#allocation2 + $0xd80] sm:$0xff]  ;;  %v13706_v58 = vcombine.high %v985_v48, %v993_v50  ;;  %6306 = vmatprep.subr.bf16.mxu1 %v13194_v54  ;;  %v13705_v62 = vcombine.low %v985_v48, %v993_v50  ;;  %v82_v48 = vld [vmem:[#allocation2 + $0xc8] sm:$0xff]  ;;  %v12782_v50 = vcombine.high %v59_v39, %v67_v42  ;;  %v12781_v54 = vcombine.low %v59_v39, %v67_v42 }
  0x81   :  { %v497_v56 = vld [vmem:[#allocation2 + $0xdc0] sm:$0xff]  ;;  %6307 = vmatpush1.bf16.msra.mxu1 %v13193_v61  ;;  %v99_v61 = vld [vmem:[#allocation2 + $0x150] sm:$0xff]  ;;  %v178_v39 = vld [vmem:[#allocation2 + $0x3c8] sm:$0xff] }
  0x82   :  { %v1001_v57 = vld [vmem:[#allocation2 + $0x1d80] sm:$0xff]  ;;  %v13210_v1 = vcombine.high %v489_v55, %v497_v56  ;;  %6388 = vmatprep.subr.bf16.mxu0 %v13706_v58  ;;  %v13209_v10 = vcombine.low %v489_v55, %v497_v56  ;;  %v12796_v55 = vcombine.high %v74_v47, %v82_v48  ;;  %v90_v56 = vld [vmem:[#allocation2 + $0x108] sm:$0xff]  ;;  %v91_v58 = vld [vmem:[#allocation2 + $0x110] sm:$0xff] }
  0x83   :  { %v1009_v60 = vld [vmem:[#allocation2 + $0x1dc0] sm:$0xff]  ;;  %6389 = vmatpush1.bf16.msra.mxu0 %v13705_v62  ;;  %v12795_v62 = vcombine.low %v74_v47, %v82_v48  ;;  %v12892_v47 = vcombine.high %v170_v38, %v178_v39  ;;  %v186_v48 = vld [vmem:[#allocation2 + $0x408] sm:$0xff] }
  0x84   :  { %v505_v2 = vld [vmem:[#allocation2 + $0xe00] sm:$0xff]  ;;  %v13722_v7 = vcombine.high %v1001_v57, %v1009_v60  ;;  %6308 = vmatprep.subr.bf16.mxu1 %v13210_v1  ;;  %v13721_v11 = vcombine.low %v1001_v57, %v1009_v60  ;;  %v98_v57 = vld [vmem:[#allocation2 + $0x148] sm:$0xff]  ;;  %v12798_v60 = vcombine.high %v75_v49, %v83_v51  ;;  %v12797_v1 = vcombine.low %v75_v49, %v83_v51 }
  0x85   :  { %v513_v4 = vld [vmem:[#allocation2 + $0xe40] sm:$0xff]  ;;  %6309 = vmatpush1.bf16.msra.mxu1 %v13209_v10  ;;  %v115_v10 = vld [vmem:[#allocation2 + $0x1d0] sm:$0xff]  ;;  %v194_v49 = vld [vmem:[#allocation2 + $0x448] sm:$0xff] }
  0x86   :  { %v1017_v6 = vld [vmem:[#allocation2 + $0x1e00] sm:$0xff]  ;;  %v13226_v12 = vcombine.high %v505_v2, %v513_v4  ;;  %6390 = vmatprep.subr.bf16.mxu0 %v13722_v7  ;;  %v13225_v18 = vcombine.low %v505_v2, %v513_v4  ;;  %v12812_v2 = vcombine.high %v90_v56, %v98_v57  ;;  %v106_v4 = vld [vmem:[#allocation2 + $0x188] sm:$0xff]  ;;  %v107_v7 = vld [vmem:[#allocation2 + $0x190] sm:$0xff] }
  0x87   :  { %v1025_v9 = vld [vmem:[#allocation2 + $0x1e40] sm:$0xff]  ;;  %6391 = vmatpush1.bf16.msra.mxu0 %v13721_v11  ;;  %v12811_v11 = vcombine.low %v90_v56, %v98_v57  ;;  %v12908_v56 = vcombine.high %v186_v48, %v194_v49  ;;  %v202_v57 = vld [vmem:[#allocation2 + $0x488] sm:$0xff] }
  0x88   :  { %v521_v13 = vld [vmem:[#allocation2 + $0xe80] sm:$0xff]  ;;  %v13738_v16 = vcombine.high %v1017_v6, %v1025_v9  ;;  %6310 = vmatprep.subr.bf16.mxu1 %v13226_v12  ;;  %v13737_v19 = vcombine.low %v1017_v6, %v1025_v9  ;;  %v114_v6 = vld [vmem:[#allocation2 + $0x1c8] sm:$0xff]  ;;  %v12814_v9 = vcombine.high %v91_v58, %v99_v61  ;;  %v12813_v12 = vcombine.low %v91_v58, %v99_v61 }
  0x89   :  { %v529_v14 = vld [vmem:[#allocation2 + $0xec0] sm:$0xff]  ;;  %6311 = vmatpush1.bf16.msra.mxu1 %v13225_v18  ;;  %v131_v18 = vld [vmem:[#allocation2 + $0x250] sm:$0xff]  ;;  %v210_v58 = vld [vmem:[#allocation2 + $0x4c8] sm:$0xff] }
  0x8a   :  { %v1033_v15 = vld [vmem:[#allocation2 + $0x1e80] sm:$0xff]  ;;  %v13242_v20 = vcombine.high %v521_v13, %v529_v14  ;;  %6392 = vmatprep.subr.bf16.mxu0 %v13738_v16  ;;  %v13241_v26 = vcombine.low %v521_v13, %v529_v14  ;;  %v12828_v13 = vcombine.high %v106_v4, %v114_v6  ;;  %v122_v14 = vld [vmem:[#allocation2 + $0x208] sm:$0xff]  ;;  %v123_v16 = vld [vmem:[#allocation2 + $0x210] sm:$0xff] }
  0x8b   :  { %v1041_v17 = vld [vmem:[#allocation2 + $0x1ec0] sm:$0xff]  ;;  %6393 = vmatpush1.bf16.msra.mxu0 %v13737_v19  ;;  %v12827_v19 = vcombine.low %v106_v4, %v114_v6  ;;  %v12924_v4 = vcombine.high %v202_v57, %v210_v58  ;;  %v218_v6 = vld [vmem:[#allocation2 + $0x508] sm:$0xff] }
  0x8c   :  { %v537_v21 = vld [vmem:[#allocation2 + $0xf00] sm:$0xff]  ;;  %v13754_v24 = vcombine.high %v1033_v15, %v1041_v17  ;;  %6312 = vmatprep.subr.bf16.mxu1 %v13242_v20  ;;  %v13753_v27 = vcombine.low %v1033_v15, %v1041_v17  ;;  %v130_v15 = vld [vmem:[#allocation2 + $0x248] sm:$0xff]  ;;  %v12830_v17 = vcombine.high %v107_v7, %v115_v10  ;;  %v12829_v20 = vcombine.low %v107_v7, %v115_v10 }
  0x8d   :  { %v545_v22 = vld [vmem:[#allocation2 + $0xf40] sm:$0xff]  ;;  %6313 = vmatpush1.bf16.msra.mxu1 %v13241_v26  ;;  %v147_v26 = vld [vmem:[#allocation2 + $0x2d0] sm:$0xff]  ;;  %v226_v7 = vld [vmem:[#allocation2 + $0x548] sm:$0xff] }
  0x8e   :  { %v1049_v23 = vld [vmem:[#allocation2 + $0x1f00] sm:$0xff]  ;;  %v13258_v28 = vcombine.high %v537_v21, %v545_v22  ;;  %6394 = vmatprep.subr.bf16.mxu0 %v13754_v24  ;;  %v13257_v34 = vcombine.low %v537_v21, %v545_v22  ;;  %v12844_v21 = vcombine.high %v122_v14, %v130_v15  ;;  %v138_v22 = vld [vmem:[#allocation2 + $0x288] sm:$0xff]  ;;  %v139_v24 = vld [vmem:[#allocation2 + $0x290] sm:$0xff] }
  0x8f   :  { %v1057_v25 = vld [vmem:[#allocation2 + $0x1f40] sm:$0xff]  ;;  %6395 = vmatpush1.bf16.msra.mxu0 %v13753_v27  ;;  %v12843_v27 = vcombine.low %v122_v14, %v130_v15  ;;  %v12940_v14 = vcombine.high %v218_v6, %v226_v7  ;;  %v234_v15 = vld [vmem:[#allocation2 + $0x588] sm:$0xff] }
  0x90   :  { %v553_v29 = vld [vmem:[#allocation2 + $0xf80] sm:$0xff]  ;;  %v13770_v0 = vcombine.high %v1049_v23, %v1057_v25  ;;  %6314 = vmatprep.subr.bf16.mxu1 %v13258_v28  ;;  %v13769_v35 = vcombine.low %v1049_v23, %v1057_v25  ;;  %v146_v23 = vld [vmem:[#allocation2 + $0x2c8] sm:$0xff]  ;;  %v12846_v25 = vcombine.high %v123_v16, %v131_v18  ;;  %v12845_v28 = vcombine.low %v123_v16, %v131_v18 }
  0x91   :  { %v561_v31 = vld [vmem:[#allocation2 + $0xfc0] sm:$0xff]  ;;  %6315 = vmatpush1.bf16.msra.mxu1 %v13257_v34  ;;  %v163_v34 = vld [vmem:[#allocation2 + $0x350] sm:$0xff]  ;;  %v242_v16 = vld [vmem:[#allocation2 + $0x5c8] sm:$0xff] }
  0x92   :  { %v1065_v59 = vld [vmem:[#allocation2 + $0x1f80] sm:$0xff]  ;;  %v13274_v36 = vcombine.high %v553_v29, %v561_v31  ;;  %6396 = vmatprep.subr.bf16.mxu0 %v13770_v0  ;;  %v13273_v43 = vcombine.low %v553_v29, %v561_v31  ;;  %v12860_v29 = vcombine.high %v138_v22, %v146_v23  ;;  %v154_v31 = vld [vmem:[#allocation2 + $0x308] sm:$0xff]  ;;  %v155_v0 = vld [vmem:[#allocation2 + $0x310] sm:$0xff] }
  0x93   :  { %v1073_v33 = vld [vmem:[#allocation2 + $0x1fc0] sm:$0xff]  ;;  %6397 = vmatpush1.bf16.msra.mxu0 %v13769_v35  ;;  %v12859_v35 = vcombine.low %v138_v22, %v146_v23  ;;  %v12878_v42 = vcombine.high %v155_v0, %v163_v34  ;;  %v12956_v22 = vcombine.high %v234_v15, %v242_v16  ;;  %v250_v23 = vld [vmem:[#allocation2 + $0x608] sm:$0xff] }
  0x94   :  { %v13786_v41 = vcombine.high %v1065_v59, %v1073_v33  ;;  %6316 = vmatprep.subr.bf16.mxu1 %v13274_v36  ;;  %v13785_v45 = vcombine.low %v1065_v59, %v1073_v33  ;;  %v162_v59 = vld [vmem:[#allocation2 + $0x348] sm:$0xff]  ;;  %v12862_v33 = vcombine.high %v139_v24, %v147_v26  ;;  %v12861_v36 = vcombine.low %v139_v24, %v147_v26 }
  0x95   :  { %6317 = vmatpush1.bf16.msra.mxu1 %v13273_v43  ;;  %v12876_v37 = vcombine.high %v154_v31, %v162_v59  ;;  %v179_v43 = vld [vmem:[#allocation2 + $0x3d0] sm:$0xff]  ;;  %v258_v24 = vld [vmem:[#allocation2 + $0x648] sm:$0xff] }
  0x96   :  { %6398 = vmatprep.subr.bf16.mxu0 %v13786_v41  ;;  %6409 = vmatprep.subr.bf16.mxu1 %v12780_v46  ;;  %v171_v41 = vld [vmem:[#allocation2 + $0x390] sm:$0xff]  ;;  %v12877_v46 = vcombine.low %v155_v0, %v163_v34  ;;  %v274_v0 = vld [vmem:[#allocation2 + $0x6c8] sm:$0xff] }
  0x97   :  { %6399 = vmatpush1.bf16.msra.mxu0 %v13785_v45  ;;  %v12875_v45 = vcombine.low %v154_v31, %v162_v59  ;;  %v12894_v51 = vcombine.high %v171_v41, %v179_v43  ;;  %v12972_v31 = vcombine.high %v250_v23, %v258_v24  ;;  %v266_v59 = vld [vmem:[#allocation2 + $0x688] sm:$0xff] }
  0x98   :  { %6573 = vmatprep.subr.bf16.mxu0 %v12782_v50  ;;  %6319 = vmatmul.mubr.bf16.vlgmr.msra.gmra.mrb[0].mxu1 %v15333_v30  ;;  %v187_v50 = vld [vmem:[#allocation2 + $0x410] sm:$0xff] }
  0x99   :  { %6410 = vmatpush1.bf16.msra.mxu1 %v12779_v52  ;;  %6441 = vmatprep.mubr.bf16.mxu1 %v15320_v5  ;;  %v195_v52 = vld [vmem:[#allocation2 + $0x450] sm:$0xff] }
  0x9a   :  { %6401 = vmatmul.mubr.bf16.vlgmr.msra.gmra.mrb[0].mxu0 %v15336_v32  ;;  %6411 = vmatprep.subr.bf16.mxu1 %v12796_v55  ;;  %v12893_v55 = vcombine.low %v171_v41, %v179_v43  ;;  %v12910_v61 = vcombine.high %v187_v50, %v195_v52  ;;  %v290_v41 = vld [vmem:[#allocation2 + $0x748] sm:$0xff] }
  0x9b   :  { %6574 = vmatpush1.bf16.msra.mxu0 %v12781_v54  ;;  %6605 = vmatprep.mubr.bf16.mxu0 %v15320_v5  ;;  %v12891_v54 = vcombine.low %v170_v38, %v178_v39  ;;  %v12988_v38 = vcombine.high %v266_v59, %v274_v0  ;;  %v282_v39 = vld [vmem:[#allocation2 + $0x708] sm:$0xff] }
  0x9c   :  { %6575 = vmatprep.subr.bf16.mxu0 %v12798_v60  ;;  %v203_v60 = vld [vmem:[#allocation2 + $0x490] sm:$0xff] }
  0x9d   :  { %6412 = vmatpush1.bf16.msra.mxu1 %v12795_v62  ;;  %v211_v62 = vld [vmem:[#allocation2 + $0x4d0] sm:$0xff] }
  0x9e   :  { %6413 = vmatprep.subr.bf16.mxu1 %v12812_v2  ;;  %v12909_v2 = vcombine.low %v187_v50, %v195_v52  ;;  %v12926_v10 = vcombine.high %v203_v60, %v211_v62  ;;  %v306_v50 = vld [vmem:[#allocation2 + $0x7c8] sm:$0xff] }
  0x9f   :  { %6576 = vmatpush1.bf16.msra.mxu0 %v12797_v1  ;;  %v12907_v1 = vcombine.low %v186_v48, %v194_v49  ;;  %v13004_v48 = vcombine.high %v282_v39, %v290_v41  ;;  %v298_v49 = vld [vmem:[#allocation2 + $0x788] sm:$0xff] }
  0xa0   :  { %6577 = vmatprep.subr.bf16.mxu0 %v12814_v9  ;;  %v219_v9 = vld [vmem:[#allocation2 + $0x510] sm:$0xff] }
  0xa1   :  { %6414 = vmatpush1.bf16.msra.mxu1 %v12811_v11  ;;  %v227_v11 = vld [vmem:[#allocation2 + $0x550] sm:$0xff] }
  0xa2   :  { %6415 = vmatprep.subr.bf16.mxu1 %v12828_v13  ;;  %v12925_v13 = vcombine.low %v203_v60, %v211_v62  ;;  %v12942_v18 = vcombine.high %v219_v9, %v227_v11  ;;  %v322_v60 = vld [vmem:[#allocation2 + $0x848] sm:$0xff] }
  0xa3   :  { %6578 = vmatpush1.bf16.msra.mxu0 %v12813_v12  ;;  %v12923_v12 = vcombine.low %v202_v57, %v210_v58  ;;  %v13020_v57 = vcombine.high %v298_v49, %v306_v50  ;;  %v314_v58 = vld [vmem:[#allocation2 + $0x808] sm:$0xff] }
  0xa4   :  { %6579 = vmatprep.subr.bf16.mxu0 %v12830_v17  ;;  %v235_v17 = vld [vmem:[#allocation2 + $0x590] sm:$0xff] }
  0xa5   :  { %6416 = vmatpush1.bf16.msra.mxu1 %v12827_v19  ;;  %v243_v19 = vld [vmem:[#allocation2 + $0x5d0] sm:$0xff] }
  0xa6   :  { %6417 = vmatprep.subr.bf16.mxu1 %v12844_v21  ;;  %v12941_v21 = vcombine.low %v219_v9, %v227_v11  ;;  %v12958_v26 = vcombine.high %v235_v17, %v243_v19  ;;  %v338_v9 = vld [vmem:[#allocation2 + $0x8c8] sm:$0xff] }
  0xa7   :  { %6580 = vmatpush1.bf16.msra.mxu0 %v12829_v20  ;;  %v12939_v20 = vcombine.low %v218_v6, %v226_v7  ;;  %v13036_v6 = vcombine.high %v314_v58, %v322_v60  ;;  %v330_v7 = vld [vmem:[#allocation2 + $0x888] sm:$0xff] }
  0xa8   :  { %6581 = vmatprep.subr.bf16.mxu0 %v12846_v25  ;;  %v251_v25 = vld [vmem:[#allocation2 + $0x610] sm:$0xff] }
  0xa9   :  { %6418 = vmatpush1.bf16.msra.mxu1 %v12843_v27  ;;  %v259_v27 = vld [vmem:[#allocation2 + $0x650] sm:$0xff] }
  0xaa   :  { %6419 = vmatprep.subr.bf16.mxu1 %v12860_v29  ;;  %v12957_v29 = vcombine.low %v235_v17, %v243_v19  ;;  %v12974_v34 = vcombine.high %v251_v25, %v259_v27  ;;  %v354_v17 = vld [vmem:[#allocation2 + $0x948] sm:$0xff] }
  0xab   :  { %6582 = vmatpush1.bf16.msra.mxu0 %v12845_v28  ;;  %v12955_v28 = vcombine.low %v234_v15, %v242_v16  ;;  %v13052_v15 = vcombine.high %v330_v7, %v338_v9  ;;  %v346_v16 = vld [vmem:[#allocation2 + $0x908] sm:$0xff] }
  0xac   :  { %6583 = vmatprep.subr.bf16.mxu0 %v12862_v33  ;;  %v267_v33 = vld [vmem:[#allocation2 + $0x690] sm:$0xff] }
  0xad   :  { %6420 = vmatpush1.bf16.msra.mxu1 %v12859_v35  ;;  %v275_v35 = vld [vmem:[#allocation2 + $0x6d0] sm:$0xff] }
  0xae   :  { %6421 = vmatprep.subr.bf16.mxu1 %v12876_v37  ;;  %v12973_v37 = vcombine.low %v251_v25, %v259_v27  ;;  %v12990_v43 = vcombine.high %v267_v33, %v275_v35  ;;  %v370_v25 = vld [vmem:[#allocation2 + $0x9c8] sm:$0xff] }
  0xaf   :  { %6584 = vmatpush1.bf16.msra.mxu0 %v12861_v36  ;;  %v12971_v36 = vcombine.low %v250_v23, %v258_v24  ;;  %v13068_v23 = vcombine.high %v346_v16, %v354_v17  ;;  %v362_v24 = vld [vmem:[#allocation2 + $0x988] sm:$0xff] }
  0xb0   :  { %6585 = vmatprep.subr.bf16.mxu0 %v12878_v42  ;;  %v283_v42 = vld [vmem:[#allocation2 + $0x710] sm:$0xff] }
  0xb1   :  { %6422 = vmatpush1.bf16.msra.mxu1 %v12875_v45  ;;  %v291_v45 = vld [vmem:[#allocation2 + $0x750] sm:$0xff] }
  0xb2   :  { %6423 = vmatprep.subr.bf16.mxu1 %v12892_v47  ;;  %v12989_v47 = vcombine.low %v267_v33, %v275_v35  ;;  %v13006_v52 = vcombine.high %v283_v42, %v291_v45  ;;  %v386_v33 = vld [vmem:[#allocation2 + $0xa48] sm:$0xff] }
  0xb3   :  { %6586 = vmatpush1.bf16.msra.mxu0 %v12877_v46  ;;  %v12987_v46 = vcombine.low %v266_v59, %v274_v0  ;;  %v13084_v59 = vcombine.high %v362_v24, %v370_v25  ;;  %v378_v0 = vld [vmem:[#allocation2 + $0xa08] sm:$0xff] }
  0xb4   :  { %6587 = vmatprep.subr.bf16.mxu0 %v12894_v51  ;;  %v299_v51 = vld [vmem:[#allocation2 + $0x790] sm:$0xff] }
  0xb5   :  { %6424 = vmatpush1.bf16.msra.mxu1 %v12891_v54  ;;  %v307_v54 = vld [vmem:[#allocation2 + $0x7d0] sm:$0xff] }
  0xb6   :  { %6425 = vmatprep.subr.bf16.mxu1 %v12908_v56  ;;  %v13005_v56 = vcombine.low %v283_v42, %v291_v45  ;;  %v13022_v62 = vcombine.high %v299_v51, %v307_v54  ;;  %v402_v42 = vld [vmem:[#allocation2 + $0xac8] sm:$0xff] }
  0xb7   :  { %6588 = vmatpush1.bf16.msra.mxu0 %v12893_v55  ;;  %v13003_v55 = vcombine.low %v282_v39, %v290_v41  ;;  %v13100_v39 = vcombine.high %v378_v0, %v386_v33  ;;  %v394_v41 = vld [vmem:[#allocation2 + $0xa88] sm:$0xff] }
  0xb8   :  { %6589 = vmatprep.subr.bf16.mxu0 %v12910_v61  ;;  %v315_v61 = vld [vmem:[#allocation2 + $0x810] sm:$0xff] }
  0xb9   :  { %6426 = vmatpush1.bf16.msra.mxu1 %v12907_v1  ;;  %v323_v1 = vld [vmem:[#allocation2 + $0x850] sm:$0xff] }
  0xba   :  { %6427 = vmatprep.subr.bf16.mxu1 %v12924_v4  ;;  %v13021_v4 = vcombine.low %v299_v51, %v307_v54  ;;  %v13038_v11 = vcombine.high %v315_v61, %v323_v1  ;;  %v418_v51 = vld [vmem:[#allocation2 + $0xb48] sm:$0xff] }
  0xbb   :  { %6590 = vmatpush1.bf16.msra.mxu0 %v12909_v2  ;;  %v13019_v2 = vcombine.low %v298_v49, %v306_v50  ;;  %v13116_v49 = vcombine.high %v394_v41, %v402_v42  ;;  %v410_v50 = vld [vmem:[#allocation2 + $0xb08] sm:$0xff] }
  0xbc   :  { %6591 = vmatprep.subr.bf16.mxu0 %v12926_v10  ;;  %v331_v10 = vld [vmem:[#allocation2 + $0x890] sm:$0xff] }
  0xbd   :  { %6428 = vmatpush1.bf16.msra.mxu1 %v12923_v12  ;;  %v339_v12 = vld [vmem:[#allocation2 + $0x8d0] sm:$0xff] }
  0xbe   :  { %6429 = vmatprep.subr.bf16.mxu1 %v12940_v14  ;;  %v13037_v14 = vcombine.low %v315_v61, %v323_v1  ;;  %v13054_v19 = vcombine.high %v331_v10, %v339_v12  ;;  %v434_v61 = vld [vmem:[#allocation2 + $0xbc8] sm:$0xff]  ;;  %v427_v1 = vld [vmem:[#allocation2 + $0xb90] sm:$0xff] }
  0xbf   :  { %6592 = vmatpush1.bf16.msra.mxu0 %v12925_v13  ;;  %v13035_v13 = vcombine.low %v314_v58, %v322_v60  ;;  %v13132_v58 = vcombine.high %v410_v50, %v418_v51  ;;  %v426_v60 = vld [vmem:[#allocation2 + $0xb88] sm:$0xff] }
  0xc0   :  { %6593 = vmatprep.subr.bf16.mxu0 %v12942_v18  ;;  %v347_v18 = vld [vmem:[#allocation2 + $0x910] sm:$0xff] }
  0xc1   :  { %6430 = vmatpush1.bf16.msra.mxu1 %v12939_v20  ;;  %v355_v20 = vld [vmem:[#allocation2 + $0x950] sm:$0xff] }
  0xc2   :  { %6431 = vmatprep.subr.bf16.mxu1 %v12956_v22  ;;  %v13053_v22 = vcombine.low %v331_v10, %v339_v12  ;;  %v13070_v27 = vcombine.high %v347_v18, %v355_v20  ;;  %v450_v10 = vld [vmem:[#allocation2 + $0xc48] sm:$0xff]  ;;  %v443_v12 = vld [vmem:[#allocation2 + $0xc10] sm:$0xff] }
  0xc3   :  { %6594 = vmatpush1.bf16.msra.mxu0 %v12941_v21  ;;  %v13051_v21 = vcombine.low %v330_v7, %v338_v9  ;;  %v13148_v7 = vcombine.high %v426_v60, %v434_v61  ;;  %v442_v9 = vld [vmem:[#allocation2 + $0xc08] sm:$0xff] }
  0xc4   :  { %6595 = vmatprep.subr.bf16.mxu0 %v12958_v26  ;;  %v363_v26 = vld [vmem:[#allocation2 + $0x990] sm:$0xff] }
  0xc5   :  { %6432 = vmatpush1.bf16.msra.mxu1 %v12955_v28  ;;  %v371_v28 = vld [vmem:[#allocation2 + $0x9d0] sm:$0xff] }
  0xc6   :  { %6433 = vmatprep.subr.bf16.mxu1 %v12972_v31  ;;  %v13069_v31 = vcombine.low %v347_v18, %v355_v20  ;;  %v13086_v35 = vcombine.high %v363_v26, %v371_v28  ;;  %v466_v18 = vld [vmem:[#allocation2 + $0xcc8] sm:$0xff] }
  0xc7   :  { %6596 = vmatpush1.bf16.msra.mxu0 %v12957_v29  ;;  %v13067_v29 = vcombine.low %v346_v16, %v354_v17  ;;  %v13164_v16 = vcombine.high %v442_v9, %v450_v10  ;;  %v458_v17 = vld [vmem:[#allocation2 + $0xc88] sm:$0xff] }
  0xc8   :  { %6597 = vmatprep.subr.bf16.mxu0 %v12974_v34  ;;  %v379_v34 = vld [vmem:[#allocation2 + $0xa10] sm:$0xff] }
  0xc9   :  { %6434 = vmatpush1.bf16.msra.mxu1 %v12971_v36  ;;  %v387_v36 = vld [vmem:[#allocation2 + $0xa50] sm:$0xff] }
  0xca   :  { %6435 = vmatprep.subr.bf16.mxu1 %v12988_v38  ;;  %v13085_v38 = vcombine.low %v363_v26, %v371_v28  ;;  %v13102_v45 = vcombine.high %v379_v34, %v387_v36  ;;  %v482_v26 = vld [vmem:[#allocation2 + $0xd48] sm:$0xff] }
  0xcb   :  { %6598 = vmatpush1.bf16.msra.mxu0 %v12973_v37  ;;  %v13083_v37 = vcombine.low %v362_v24, %v370_v25  ;;  %v13180_v24 = vcombine.high %v458_v17, %v466_v18  ;;  %v474_v25 = vld [vmem:[#allocation2 + $0xd08] sm:$0xff] }
  0xcc   :  { %6599 = vmatprep.subr.bf16.mxu0 %v12990_v43  ;;  %v395_v43 = vld [vmem:[#allocation2 + $0xa90] sm:$0xff] }
  0xcd   :  { %6436 = vmatpush1.bf16.msra.mxu1 %v12987_v46  ;;  %v403_v46 = vld [vmem:[#allocation2 + $0xad0] sm:$0xff] }
  0xce   :  { %6437 = vmatprep.subr.bf16.mxu1 %v13004_v48  ;;  %v13101_v48 = vcombine.low %v379_v34, %v387_v36  ;;  %v13118_v54 = vcombine.high %v395_v43, %v403_v46  ;;  %v498_v34 = vld [vmem:[#allocation2 + $0xdc8] sm:$0xff] }
  0xcf   :  { %6600 = vmatpush1.bf16.msra.mxu0 %v12989_v47  ;;  %v13099_v47 = vcombine.low %v378_v0, %v386_v33  ;;  %v13196_v0 = vcombine.high %v474_v25, %v482_v26  ;;  %v490_v33 = vld [vmem:[#allocation2 + $0xd88] sm:$0xff] }
  0xd0   :  { %6601 = vmatprep.subr.bf16.mxu0 %v13006_v52  ;;  %v411_v52 = vld [vmem:[#allocation2 + $0xb10] sm:$0xff] }
  0xd1   :  { %6438 = vmatpush1.bf16.msra.mxu1 %v13003_v55  ;;  %v419_v55 = vld [vmem:[#allocation2 + $0xb50] sm:$0xff] }
  0xd2   :  { %6439 = vmatprep.subr.bf16.mxu1 %v13020_v57  ;;  %v13117_v57 = vcombine.low %v395_v43, %v403_v46  ;;  %v514_v43 = vld [vmem:[#allocation2 + $0xe48] sm:$0xff] }
  0xd3   :  { %6602 = vmatpush1.bf16.msra.mxu0 %v13005_v56  ;;  %v13115_v56 = vcombine.low %v394_v41, %v402_v42  ;;  %v13212_v41 = vcombine.high %v490_v33, %v498_v34  ;;  %v506_v42 = vld [vmem:[#allocation2 + $0xe08] sm:$0xff] }
  0xd4   :  { %6603 = vmatprep.subr.bf16.mxu0 %v13022_v62  ;;  %v13134_v62 = vcombine.high %v411_v52, %v419_v55 }
  0xd5   :  { %6440 = vmatpush1.bf16.msra.mxu1 %v13019_v2  ;;  %v435_v2 = vld [vmem:[#allocation2 + $0xbd0] sm:$0xff] }
  0xd6   :  { %6450 = vmatprep.subr.bf16.mxu1 %v13036_v6  ;;  %v13133_v6 = vcombine.low %v411_v52, %v419_v55  ;;  %v530_v52 = vld [vmem:[#allocation2 + $0xec8] sm:$0xff] }
  0xd7   :  { %6604 = vmatpush1.bf16.msra.mxu0 %v13021_v4  ;;  %v13131_v4 = vcombine.low %v410_v50, %v418_v51  ;;  %v13228_v50 = vcombine.high %v506_v42, %v514_v43  ;;  %v522_v51 = vld [vmem:[#allocation2 + $0xe88] sm:$0xff] }
  0xd8   :  { %6614 = vmatprep.subr.bf16.mxu0 %v13038_v11  ;;  %6442 = vmatmul.mubr.bf16.vlgmr.msra.gmra.mrb[4].mxu1 %v15307_v63  ;;  %v13150_v11 = vcombine.high %v427_v1, %v435_v2 }
  0xd9   :  { %6451 = vmatpush1.bf16.msra.mxu1 %v13035_v13  ;;  %6482 = vmatprep.mubr.bf16.mxu1 %v15340_v40  ;;  %v451_v13 = vld [vmem:[#allocation2 + $0xc50] sm:$0xff] }
  0xda   :  { %6606 = vmatmul.mubr.bf16.vlgmr.msra.gmra.mrb[4].mxu0 %v15307_v63  ;;  %6452 = vmatprep.subr.bf16.mxu1 %v13052_v15  ;;  %v13149_v15 = vcombine.low %v427_v1, %v435_v2  ;;  %v13166_v20 = vcombine.high %v443_v12, %v451_v13  ;;  %v539_v1 = vld [vmem:[#allocation2 + $0xf10] sm:$0xff] }
  0xdb   :  { %6615 = vmatpush1.bf16.msra.mxu0 %v13037_v14  ;;  %6646 = vmatprep.mubr.bf16.mxu0 %v15340_v40  ;;  %v13147_v14 = vcombine.low %v426_v60, %v434_v61  ;;  %v13244_v60 = vcombine.high %v522_v51, %v530_v52  ;;  %v538_v61 = vld [vmem:[#allocation2 + $0xf08] sm:$0xff] }
  0xdc   :  { %6616 = vmatprep.subr.bf16.mxu0 %v13054_v19  ;;  %v459_v19 = vld [vmem:[#allocation2 + $0xc90] sm:$0xff] }
  0xdd   :  { %6453 = vmatpush1.bf16.msra.mxu1 %v13051_v21  ;;  %v467_v21 = vld [vmem:[#allocation2 + $0xcd0] sm:$0xff] }
  0xde   :  { %6454 = vmatprep.subr.bf16.mxu1 %v13068_v23  ;;  %v13165_v23 = vcombine.low %v443_v12, %v451_v13  ;;  %v13182_v28 = vcombine.high %v459_v19, %v467_v21  ;;  %v555_v12 = vld [vmem:[#allocation2 + $0xf90] sm:$0xff] }
  0xdf   :  { %6617 = vmatpush1.bf16.msra.mxu0 %v13053_v22  ;;  %v13163_v22 = vcombine.low %v442_v9, %v450_v10  ;;  %v554_v10 = vld [vmem:[#allocation2 + $0xf88] sm:$0xff] }
  0xe0   :  { %6618 = vmatprep.subr.bf16.mxu0 %v13070_v27  ;;  %v475_v27 = vld [vmem:[#allocation2 + $0xd10] sm:$0xff] }
  0xe1   :  { %6455 = vmatpush1.bf16.msra.mxu1 %v13067_v29  ;;  %v483_v29 = vld [vmem:[#allocation2 + $0xd50] sm:$0xff] }
  0xe2   :  { %6456 = vmatprep.subr.bf16.mxu1 %v13084_v59  ;;  %v13181_v59 = vcombine.low %v459_v19, %v467_v21  ;;  %v13198_v36 = vcombine.high %v475_v27, %v483_v29  ;;  %v578_v19 = vld [vmem:[#allocation2 + $0x1048] sm:$0xff] }
  0xe3   :  { %6619 = vmatpush1.bf16.msra.mxu0 %v13069_v31  ;;  %v13179_v31 = vcombine.low %v458_v17, %v466_v18  ;;  %v570_v18 = vld [vmem:[#allocation2 + $0x1008] sm:$0xff] }
  0xe4   :  { %6620 = vmatprep.subr.bf16.mxu0 %v13086_v35  ;;  %v491_v35 = vld [vmem:[#allocation2 + $0xd90] sm:$0xff] }
  0xe5   :  { %6457 = vmatpush1.bf16.msra.mxu1 %v13083_v37  ;;  %v499_v37 = vld [vmem:[#allocation2 + $0xdd0] sm:$0xff] }
  0xe6   :  { %6458 = vmatprep.subr.bf16.mxu1 %v13100_v39  ;;  %v13197_v39 = vcombine.low %v475_v27, %v483_v29  ;;  %v13214_v46 = vcombine.high %v491_v35, %v499_v37  ;;  %v594_v27 = vld [vmem:[#allocation2 + $0x10c8] sm:$0xff] }
  0xe7   :  { %6621 = vmatpush1.bf16.msra.mxu0 %v13085_v38  ;;  %v13195_v38 = vcombine.low %v474_v25, %v482_v26  ;;  %v13292_v25 = vcombine.high %v570_v18, %v578_v19  ;;  %v586_v26 = vld [vmem:[#allocation2 + $0x1088] sm:$0xff] }
  0xe8   :  { %6622 = vmatprep.subr.bf16.mxu0 %v13102_v45  ;;  %v507_v45 = vld [vmem:[#allocation2 + $0xe10] sm:$0xff] }
  0xe9   :  { %6459 = vmatpush1.bf16.msra.mxu1 %v13099_v47  ;;  %v515_v47 = vld [vmem:[#allocation2 + $0xe50] sm:$0xff] }
  0xea   :  { %6460 = vmatprep.subr.bf16.mxu1 %v13116_v49  ;;  %v13213_v49 = vcombine.low %v491_v35, %v499_v37  ;;  %v13230_v55 = vcombine.high %v507_v45, %v515_v47  ;;  %v610_v35 = vld [vmem:[#allocation2 + $0x1148] sm:$0xff] }
  0xeb   :  { %6623 = vmatpush1.bf16.msra.mxu0 %v13101_v48  ;;  %v13211_v48 = vcombine.low %v490_v33, %v498_v34  ;;  %v13308_v33 = vcombine.high %v586_v26, %v594_v27  ;;  %v602_v34 = vld [vmem:[#allocation2 + $0x1108] sm:$0xff] }
  0xec   :  { %6624 = vmatprep.subr.bf16.mxu0 %v13118_v54  ;;  %v523_v54 = vld [vmem:[#allocation2 + $0xe90] sm:$0xff] }
  0xed   :  { %6461 = vmatpush1.bf16.msra.mxu1 %v13115_v56  ;;  %v531_v56 = vld [vmem:[#allocation2 + $0xed0] sm:$0xff] }
  0xee   :  { %6462 = vmatprep.subr.bf16.mxu1 %v13132_v58  ;;  %v13229_v58 = vcombine.low %v507_v45, %v515_v47  ;;  %v13246_v2 = vcombine.high %v523_v54, %v531_v56  ;;  %v626_v45 = vld [vmem:[#allocation2 + $0x11c8] sm:$0xff] }
  0xef   :  { %6625 = vmatpush1.bf16.msra.mxu0 %v13117_v57  ;;  %v13227_v57 = vcombine.low %v506_v42, %v514_v43  ;;  %v13324_v42 = vcombine.high %v602_v34, %v610_v35  ;;  %v618_v43 = vld [vmem:[#allocation2 + $0x1188] sm:$0xff] }
  0xf0   :  { %6626 = vmatprep.subr.bf16.mxu0 %v13134_v62  ;;  %v546_v62 = vld [vmem:[#allocation2 + $0xf48] sm:$0xff] }
  0xf1   :  { %6463 = vmatpush1.bf16.msra.mxu1 %v13131_v4  ;;  %v547_v4 = vld [vmem:[#allocation2 + $0xf50] sm:$0xff]  ;;  %v13260_v9 = vcombine.high %v538_v61, %v546_v62 }
  0xf2   :  { %6464 = vmatprep.subr.bf16.mxu1 %v13148_v7  ;;  %v13245_v7 = vcombine.low %v523_v54, %v531_v56  ;;  %v13262_v13 = vcombine.high %v539_v1, %v547_v4  ;;  %v642_v54 = vld [vmem:[#allocation2 + $0x1248] sm:$0xff] }
  0xf3   :  { %6627 = vmatpush1.bf16.msra.mxu0 %v13133_v6  ;;  %v13243_v6 = vcombine.low %v522_v51, %v530_v52  ;;  %v13340_v51 = vcombine.high %v618_v43, %v626_v45  ;;  %v634_v52 = vld [vmem:[#allocation2 + $0x1208] sm:$0xff] }
  0xf4   :  { %6628 = vmatprep.subr.bf16.mxu0 %v13150_v11  ;;  %v562_v11 = vld [vmem:[#allocation2 + $0xfc8] sm:$0xff] }
  0xf5   :  { %6465 = vmatpush1.bf16.msra.mxu1 %v13147_v14  ;;  %v563_v14 = vld [vmem:[#allocation2 + $0xfd0] sm:$0xff]  ;;  %v13276_v17 = vcombine.high %v554_v10, %v562_v11 }
  0xf6   :  { %6466 = vmatprep.subr.bf16.mxu1 %v13164_v16  ;;  %v13261_v16 = vcombine.low %v539_v1, %v547_v4  ;;  %v13278_v21 = vcombine.high %v555_v12, %v563_v14  ;;  %v658_v1 = vld [vmem:[#allocation2 + $0x12c8] sm:$0xff] }
  0xf7   :  { %6629 = vmatpush1.bf16.msra.mxu0 %v13149_v15  ;;  %v13259_v15 = vcombine.low %v538_v61, %v546_v62  ;;  %v13356_v61 = vcombine.high %v634_v52, %v642_v54  ;;  %v650_v62 = vld [vmem:[#allocation2 + $0x1288] sm:$0xff] }
  0xf8   :  { %6630 = vmatprep.subr.bf16.mxu0 %v13166_v20  ;;  %v571_v20 = vld [vmem:[#allocation2 + $0x1010] sm:$0xff] }
  0xf9   :  { %6467 = vmatpush1.bf16.msra.mxu1 %v13163_v22  ;;  %v579_v22 = vld [vmem:[#allocation2 + $0x1050] sm:$0xff] }
  0xfa   :  { %6468 = vmatprep.subr.bf16.mxu1 %v13180_v24  ;;  %v13277_v24 = vcombine.low %v555_v12, %v563_v14  ;;  %v13294_v29 = vcombine.high %v571_v20, %v579_v22  ;;  %v674_v12 = vld [vmem:[#allocation2 + $0x1348] sm:$0xff] }
  0xfb   :  { %6631 = vmatpush1.bf16.msra.mxu0 %v13165_v23  ;;  %v13275_v23 = vcombine.low %v554_v10, %v562_v11  ;;  %v13372_v10 = vcombine.high %v650_v62, %v658_v1  ;;  %v666_v11 = vld [vmem:[#allocation2 + $0x1308] sm:$0xff] }
  0xfc   :  { %6632 = vmatprep.subr.bf16.mxu0 %v13182_v28  ;;  %v587_v28 = vld [vmem:[#allocation2 + $0x1090] sm:$0xff] }
  0xfd   :  { %6469 = vmatpush1.bf16.msra.mxu1 %v13179_v31  ;;  %v595_v31 = vld [vmem:[#allocation2 + $0x10d0] sm:$0xff] }
  0xfe   :  { %6470 = vmatprep.subr.bf16.mxu1 %v13196_v0  ;;  %v13293_v0 = vcombine.low %v571_v20, %v579_v22  ;;  %v13310_v37 = vcombine.high %v587_v28, %v595_v31  ;;  %v690_v20 = vld [vmem:[#allocation2 + $0x13c8] sm:$0xff] }
  0xff   :  { %6633 = vmatpush1.bf16.msra.mxu0 %v13181_v59  ;;  %v13291_v59 = vcombine.low %v570_v18, %v578_v19  ;;  %v13388_v18 = vcombine.high %v666_v11, %v674_v12  ;;  %v682_v19 = vld [vmem:[#allocation2 + $0x1388] sm:$0xff] }
 0x100   :  { %6634 = vmatprep.subr.bf16.mxu0 %v13198_v36  ;;  %v603_v36 = vld [vmem:[#allocation2 + $0x1110] sm:$0xff] }
 0x101   :  { %6471 = vmatpush1.bf16.msra.mxu1 %v13195_v38  ;;  %v611_v38 = vld [vmem:[#allocation2 + $0x1150] sm:$0xff] }
 0x102   :  { %6472 = vmatprep.subr.bf16.mxu1 %v13212_v41  ;;  %v13309_v41 = vcombine.low %v587_v28, %v595_v31  ;;  %v13326_v47 = vcombine.high %v603_v36, %v611_v38  ;;  %v706_v28 = vld [vmem:[#allocation2 + $0x1448] sm:$0xff] }
 0x103   :  { %6635 = vmatpush1.bf16.msra.mxu0 %v13197_v39  ;;  %v13307_v39 = vcombine.low %v586_v26, %v594_v27  ;;  %v13404_v26 = vcombine.high %v682_v19, %v690_v20  ;;  %v698_v27 = vld [vmem:[#allocation2 + $0x1408] sm:$0xff] }
 0x104   :  { %6636 = vmatprep.subr.bf16.mxu0 %v13214_v46  ;;  %v619_v46 = vld [vmem:[#allocation2 + $0x1190] sm:$0xff] }
 0x105   :  { %6473 = vmatpush1.bf16.msra.mxu1 %v13211_v48  ;;  %v627_v48 = vld [vmem:[#allocation2 + $0x11d0] sm:$0xff] }
 0x106   :  { %6474 = vmatprep.subr.bf16.mxu1 %v13228_v50  ;;  %v13325_v50 = vcombine.low %v603_v36, %v611_v38  ;;  %v13342_v56 = vcombine.high %v619_v46, %v627_v48  ;;  %v722_v36 = vld [vmem:[#allocation2 + $0x14c8] sm:$0xff] }
 0x107   :  { %6637 = vmatpush1.bf16.msra.mxu0 %v13213_v49  ;;  %v13323_v49 = vcombine.low %v602_v34, %v610_v35  ;;  %v13420_v34 = vcombine.high %v698_v27, %v706_v28  ;;  %v714_v35 = vld [vmem:[#allocation2 + $0x1488] sm:$0xff] }
 0x108   :  { %6638 = vmatprep.subr.bf16.mxu0 %v13230_v55  ;;  %v635_v55 = vld [vmem:[#allocation2 + $0x1210] sm:$0xff] }
 0x109   :  { %6475 = vmatpush1.bf16.msra.mxu1 %v13227_v57  ;;  %v643_v57 = vld [vmem:[#allocation2 + $0x1250] sm:$0xff] }
 0x10a   :  { %6476 = vmatprep.subr.bf16.mxu1 %v13244_v60  ;;  %v13341_v60 = vcombine.low %v619_v46, %v627_v48  ;;  %v13358_v4 = vcombine.high %v635_v55, %v643_v57  ;;  %v738_v46 = vld [vmem:[#allocation2 + $0x1548] sm:$0xff] }
 0x10b   :  { %6639 = vmatpush1.bf16.msra.mxu0 %v13229_v58  ;;  %v13339_v58 = vcombine.low %v618_v43, %v626_v45  ;;  %v13436_v43 = vcombine.high %v714_v35, %v722_v36  ;;  %v730_v45 = vld [vmem:[#allocation2 + $0x1508] sm:$0xff] }
 0x10c   :  { %6640 = vmatprep.subr.bf16.mxu0 %v13246_v2  ;;  %v651_v2 = vld [vmem:[#allocation2 + $0x1290] sm:$0xff] }
 0x10d   :  { %6477 = vmatpush1.bf16.msra.mxu1 %v13243_v6  ;;  %v659_v6 = vld [vmem:[#allocation2 + $0x12d0] sm:$0xff] }
 0x10e   :  { %6478 = vmatprep.subr.bf16.mxu1 %v13260_v9  ;;  %v13357_v9 = vcombine.low %v635_v55, %v643_v57  ;;  %v13374_v14 = vcombine.high %v651_v2, %v659_v6  ;;  %v754_v55 = vld [vmem:[#allocation2 + $0x15c8] sm:$0xff] }
 0x10f   :  { %6641 = vmatpush1.bf16.msra.mxu0 %v13245_v7  ;;  %v13355_v7 = vcombine.low %v634_v52, %v642_v54  ;;  %v13452_v52 = vcombine.high %v730_v45, %v738_v46  ;;  %v746_v54 = vld [vmem:[#allocation2 + $0x1588] sm:$0xff] }
 0x110   :  { %6642 = vmatprep.subr.bf16.mxu0 %v13262_v13  ;;  %v667_v13 = vld [vmem:[#allocation2 + $0x1310] sm:$0xff] }
 0x111   :  { %6479 = vmatpush1.bf16.msra.mxu1 %v13259_v15  ;;  %v675_v15 = vld [vmem:[#allocation2 + $0x1350] sm:$0xff] }
 0x112   :  { %6480 = vmatprep.subr.bf16.mxu1 %v13276_v17  ;;  %v13373_v17 = vcombine.low %v651_v2, %v659_v6  ;;  %v13390_v22 = vcombine.high %v667_v13, %v675_v15  ;;  %v770_v2 = vld [vmem:[#allocation2 + $0x1648] sm:$0xff] }
 0x113   :  { %6643 = vmatpush1.bf16.msra.mxu0 %v13261_v16  ;;  %v13371_v16 = vcombine.low %v650_v62, %v658_v1  ;;  %v13468_v62 = vcombine.high %v746_v54, %v754_v55  ;;  %v762_v1 = vld [vmem:[#allocation2 + $0x1608] sm:$0xff] }
 0x114   :  { %6644 = vmatprep.subr.bf16.mxu0 %v13278_v21  ;;  %v683_v21 = vld [vmem:[#allocation2 + $0x1390] sm:$0xff] }
 0x115   :  { %6481 = vmatpush1.bf16.msra.mxu1 %v13275_v23  ;;  %v691_v23 = vld [vmem:[#allocation2 + $0x13d0] sm:$0xff] }
 0x116   :  { %6491 = vmatprep.subr.bf16.mxu1 %v13292_v25  ;;  %v13389_v25 = vcombine.low %v667_v13, %v675_v15  ;;  %v13406_v31 = vcombine.high %v683_v21, %v691_v23  ;;  %v786_v13 = vld [vmem:[#allocation2 + $0x16c8] sm:$0xff] }
 0x117   :  { %6645 = vmatpush1.bf16.msra.mxu0 %v13277_v24  ;;  %v13387_v24 = vcombine.low %v666_v11, %v674_v12  ;;  %v13484_v11 = vcombine.high %v762_v1, %v770_v2  ;;  %v778_v12 = vld [vmem:[#allocation2 + $0x1688] sm:$0xff] }
 0x118   :  { %6655 = vmatprep.subr.bf16.mxu0 %v13294_v29  ;;  %6483 = vmatmul.mubr.bf16.vlgmr.msra.gmra.mrb[4].mxu1 %v15333_v30  ;;  %v699_v29 = vld [vmem:[#allocation2 + $0x1410] sm:$0xff] }
 0x119   :  { %6492 = vmatpush1.bf16.msra.mxu1 %v13291_v59  ;;  %6523 = vmatprep.mubr.bf16.mxu1 %v15324_v8  ;;  %v707_v59 = vld [vmem:[#allocation2 + $0x1450] sm:$0xff] }
 0x11a   :  { %6647 = vmatmul.mubr.bf16.vlgmr.msra.gmra.mrb[4].mxu0 %v15333_v30  ;;  %6493 = vmatprep.subr.bf16.mxu1 %v13308_v33  ;;  %v13405_v33 = vcombine.low %v683_v21, %v691_v23  ;;  %v13422_v38 = vcombine.high %v699_v29, %v707_v59  ;;  %v802_v21 = vld [vmem:[#allocation2 + $0x1748] sm:$0xff] }
 0x11b   :  { %6656 = vmatpush1.bf16.msra.mxu0 %v13293_v0  ;;  %6687 = vmatprep.mubr.bf16.mxu0 %v15324_v8  ;;  %v13403_v0 = vcombine.low %v682_v19, %v690_v20  ;;  %v13500_v19 = vcombine.high %v778_v12, %v786_v13  ;;  %v794_v20 = vld [vmem:[#allocation2 + $0x1708] sm:$0xff] }
 0x11c   :  { %6657 = vmatprep.subr.bf16.mxu0 %v13310_v37  ;;  %v715_v37 = vld [vmem:[#allocation2 + $0x1490] sm:$0xff] }
 0x11d   :  { %6494 = vmatpush1.bf16.msra.mxu1 %v13307_v39  ;;  %v723_v39 = vld [vmem:[#allocation2 + $0x14d0] sm:$0xff] }
 0x11e   :  { %6495 = vmatprep.subr.bf16.mxu1 %v13324_v42  ;;  %v13421_v42 = vcombine.low %v699_v29, %v707_v59  ;;  %v13438_v48 = vcombine.high %v715_v37, %v723_v39  ;;  %v818_v29 = vld [vmem:[#allocation2 + $0x17c8] sm:$0xff] }
 0x11f   :  { %6658 = vmatpush1.bf16.msra.mxu0 %v13309_v41  ;;  %v13419_v41 = vcombine.low %v698_v27, %v706_v28  ;;  %v13516_v27 = vcombine.high %v794_v20, %v802_v21  ;;  %v810_v28 = vld [vmem:[#allocation2 + $0x1788] sm:$0xff] }
 0x120   :  { %6659 = vmatprep.subr.bf16.mxu0 %v13326_v47  ;;  %v731_v47 = vld [vmem:[#allocation2 + $0x1510] sm:$0xff] }
 0x121   :  { %6496 = vmatpush1.bf16.msra.mxu1 %v13323_v49  ;;  %v739_v49 = vld [vmem:[#allocation2 + $0x1550] sm:$0xff] }
 0x122   :  { %6497 = vmatprep.subr.bf16.mxu1 %v13340_v51  ;;  %v13437_v51 = vcombine.low %v715_v37, %v723_v39  ;;  %v13454_v57 = vcombine.high %v731_v47, %v739_v49  ;;  %v834_v37 = vld [vmem:[#allocation2 + $0x1848] sm:$0xff] }
 0x123   :  { %6660 = vmatpush1.bf16.msra.mxu0 %v13325_v50  ;;  %v13435_v50 = vcombine.low %v714_v35, %v722_v36  ;;  %v13532_v35 = vcombine.high %v810_v28, %v818_v29  ;;  %v826_v36 = vld [vmem:[#allocation2 + $0x1808] sm:$0xff] }
 0x124   :  { %6661 = vmatprep.subr.bf16.mxu0 %v13342_v56  ;;  %v747_v56 = vld [vmem:[#allocation2 + $0x1590] sm:$0xff] }
 0x125   :  { %6498 = vmatpush1.bf16.msra.mxu1 %v13339_v58  ;;  %v755_v58 = vld [vmem:[#allocation2 + $0x15d0] sm:$0xff] }
 0x126   :  { %6499 = vmatprep.subr.bf16.mxu1 %v13356_v61  ;;  %v13453_v61 = vcombine.low %v731_v47, %v739_v49  ;;  %v13470_v6 = vcombine.high %v747_v56, %v755_v58  ;;  %v850_v47 = vld [vmem:[#allocation2 + $0x18c8] sm:$0xff] }
 0x127   :  { %6662 = vmatpush1.bf16.msra.mxu0 %v13341_v60  ;;  %v13451_v60 = vcombine.low %v730_v45, %v738_v46  ;;  %v13548_v45 = vcombine.high %v826_v36, %v834_v37  ;;  %v842_v46 = vld [vmem:[#allocation2 + $0x1888] sm:$0xff] }
 0x128   :  { %6663 = vmatprep.subr.bf16.mxu0 %v13358_v4  ;;  %v763_v4 = vld [vmem:[#allocation2 + $0x1610] sm:$0xff] }
 0x129   :  { %6500 = vmatpush1.bf16.msra.mxu1 %v13355_v7  ;;  %v771_v7 = vld [vmem:[#allocation2 + $0x1650] sm:$0xff] }
 0x12a   :  { %6501 = vmatprep.subr.bf16.mxu1 %v13372_v10  ;;  %v13469_v10 = vcombine.low %v747_v56, %v755_v58  ;;  %v13486_v15 = vcombine.high %v763_v4, %v771_v7  ;;  %v866_v56 = vld [vmem:[#allocation2 + $0x1948] sm:$0xff] }
 0x12b   :  { %6664 = vmatpush1.bf16.msra.mxu0 %v13357_v9  ;;  %v13467_v9 = vcombine.low %v746_v54, %v754_v55  ;;  %v13564_v54 = vcombine.high %v842_v46, %v850_v47  ;;  %v858_v55 = vld [vmem:[#allocation2 + $0x1908] sm:$0xff] }
 0x12c   :  { %6665 = vmatprep.subr.bf16.mxu0 %v13374_v14  ;;  %v779_v14 = vld [vmem:[#allocation2 + $0x1690] sm:$0xff] }
 0x12d   :  { %6502 = vmatpush1.bf16.msra.mxu1 %v13371_v16  ;;  %v787_v16 = vld [vmem:[#allocation2 + $0x16d0] sm:$0xff] }
 0x12e   :  { %6503 = vmatprep.subr.bf16.mxu1 %v13388_v18  ;;  %v13485_v18 = vcombine.low %v763_v4, %v771_v7  ;;  %v13502_v23 = vcombine.high %v779_v14, %v787_v16  ;;  %v882_v4 = vld [vmem:[#allocation2 + $0x19c8] sm:$0xff] }
 0x12f   :  { %6666 = vmatpush1.bf16.msra.mxu0 %v13373_v17  ;;  %v13483_v17 = vcombine.low %v762_v1, %v770_v2  ;;  %v13580_v1 = vcombine.high %v858_v55, %v866_v56  ;;  %v874_v2 = vld [vmem:[#allocation2 + $0x1988] sm:$0xff] }
 0x130   :  { %6667 = vmatprep.subr.bf16.mxu0 %v13390_v22  ;;  %v795_v22 = vld [vmem:[#allocation2 + $0x1710] sm:$0xff] }
 0x131   :  { %6504 = vmatpush1.bf16.msra.mxu1 %v13387_v24  ;;  %v803_v24 = vld [vmem:[#allocation2 + $0x1750] sm:$0xff] }
 0x132   :  { %6505 = vmatprep.subr.bf16.mxu1 %v13404_v26  ;;  %v13501_v26 = vcombine.low %v779_v14, %v787_v16  ;;  %v13518_v59 = vcombine.high %v795_v22, %v803_v24  ;;  %v898_v14 = vld [vmem:[#allocation2 + $0x1a48] sm:$0xff] }
 0x133   :  { %6668 = vmatpush1.bf16.msra.mxu0 %v13389_v25  ;;  %v13499_v25 = vcombine.low %v778_v12, %v786_v13  ;;  %v13596_v12 = vcombine.high %v874_v2, %v882_v4  ;;  %v890_v13 = vld [vmem:[#allocation2 + $0x1a08] sm:$0xff] }
 0x134   :  { %6669 = vmatprep.subr.bf16.mxu0 %v13406_v31  ;;  %v811_v31 = vld [vmem:[#allocation2 + $0x1790] sm:$0xff] }
 0x135   :  { %6506 = vmatpush1.bf16.msra.mxu1 %v13403_v0  ;;  %v819_v0 = vld [vmem:[#allocation2 + $0x17d0] sm:$0xff] }
 0x136   :  { %6507 = vmatprep.subr.bf16.mxu1 %v13420_v34  ;;  %v13517_v34 = vcombine.low %v795_v22, %v803_v24  ;;  %v13534_v39 = vcombine.high %v811_v31, %v819_v0  ;;  %v914_v22 = vld [vmem:[#allocation2 + $0x1ac8] sm:$0xff] }
 0x137   :  { %6670 = vmatpush1.bf16.msra.mxu0 %v13405_v33  ;;  %v13515_v33 = vcombine.low %v794_v20, %v802_v21  ;;  %v13612_v20 = vcombine.high %v890_v13, %v898_v14  ;;  %v906_v21 = vld [vmem:[#allocation2 + $0x1a88] sm:$0xff] }
 0x138   :  { %6671 = vmatprep.subr.bf16.mxu0 %v13422_v38  ;;  %v827_v38 = vld [vmem:[#allocation2 + $0x1810] sm:$0xff] }
 0x139   :  { %6508 = vmatpush1.bf16.msra.mxu1 %v13419_v41  ;;  %v835_v41 = vld [vmem:[#allocation2 + $0x1850] sm:$0xff] }
 0x13a   :  { %6509 = vmatprep.subr.bf16.mxu1 %v13436_v43  ;;  %v13533_v43 = vcombine.low %v811_v31, %v819_v0  ;;  %v13550_v49 = vcombine.high %v827_v38, %v835_v41  ;;  %v930_v31 = vld [vmem:[#allocation2 + $0x1b48] sm:$0xff] }
 0x13b   :  { %6672 = vmatpush1.bf16.msra.mxu0 %v13421_v42  ;;  %v13531_v42 = vcombine.low %v810_v28, %v818_v29  ;;  %v13628_v28 = vcombine.high %v906_v21, %v914_v22  ;;  %v922_v29 = vld [vmem:[#allocation2 + $0x1b08] sm:$0xff] }
 0x13c   :  { %6673 = vmatprep.subr.bf16.mxu0 %v13438_v48  ;;  %v843_v48 = vld [vmem:[#allocation2 + $0x1890] sm:$0xff] }
 0x13d   :  { %6510 = vmatpush1.bf16.msra.mxu1 %v13435_v50  ;;  %v851_v50 = vld [vmem:[#allocation2 + $0x18d0] sm:$0xff] }
 0x13e   :  { %6511 = vmatprep.subr.bf16.mxu1 %v13452_v52  ;;  %v13549_v52 = vcombine.low %v827_v38, %v835_v41  ;;  %v13566_v58 = vcombine.high %v843_v48, %v851_v50  ;;  %v946_v41 = vld [vmem:[#allocation2 + $0x1bc8] sm:$0xff] }
 0x13f   :  { %6674 = vmatpush1.bf16.msra.mxu0 %v13437_v51  ;;  %v13547_v51 = vcombine.low %v826_v36, %v834_v37  ;;  %v13644_v36 = vcombine.high %v922_v29, %v930_v31  ;;  %v938_v37 = vld [vmem:[#allocation2 + $0x1b88] sm:$0xff] }
 0x140   :  { %6675 = vmatprep.subr.bf16.mxu0 %v13454_v57  ;;  %v859_v57 = vld [vmem:[#allocation2 + $0x1910] sm:$0xff] }
 0x141   :  { %6512 = vmatpush1.bf16.msra.mxu1 %v13451_v60  ;;  %v867_v60 = vld [vmem:[#allocation2 + $0x1950] sm:$0xff] }
 0x142   :  { %6513 = vmatprep.subr.bf16.mxu1 %v13468_v62  ;;  %v13565_v62 = vcombine.low %v843_v48, %v851_v50  ;;  %v13582_v7 = vcombine.high %v859_v57, %v867_v60  ;;  %v13643_v50 = vcombine.low %v922_v29, %v930_v31 }
 0x143   :  { %6676 = vmatpush1.bf16.msra.mxu0 %v13453_v61  ;;  %v13563_v61 = vcombine.low %v842_v46, %v850_v47  ;;  %v947_v46 = vld [vmem:[#allocation2 + $0x1bd0] sm:$0xff] }
 0x144   :  { %6677 = vmatprep.subr.bf16.mxu0 %v13470_v6  ;;  %v875_v6 = vld [vmem:[#allocation2 + $0x1990] sm:$0xff] }
 0x145   :  { %6514 = vmatpush1.bf16.msra.mxu1 %v13467_v9  ;;  %v883_v9 = vld [vmem:[#allocation2 + $0x19d0] sm:$0xff] }
 0x146   :  { %6515 = vmatprep.subr.bf16.mxu1 %v13484_v11  ;;  %v13581_v11 = vcombine.low %v859_v57, %v867_v60  ;;  %v13598_v16 = vcombine.high %v875_v6, %v883_v9  ;;  %v954_v60 = vld [vmem:[#allocation2 + $0x1c08] sm:$0xff] }
 0x147   :  { %6678 = vmatpush1.bf16.msra.mxu0 %v13469_v10  ;;  %v13579_v10 = vcombine.low %v858_v55, %v866_v56  ;;  %v13660_v56 = vcombine.high %v938_v37, %v946_v41 }
 0x148   :  { %6679 = vmatprep.subr.bf16.mxu0 %v13486_v15  ;;  %v891_v15 = vld [vmem:[#allocation2 + $0x1a10] sm:$0xff] }
 0x149   :  { %6516 = vmatpush1.bf16.msra.mxu1 %v13483_v17  ;;  %v899_v17 = vld [vmem:[#allocation2 + $0x1a50] sm:$0xff] }
 0x14a   :  { %6517 = vmatprep.subr.bf16.mxu1 %v13500_v19  ;;  %v13597_v19 = vcombine.low %v875_v6, %v883_v9  ;;  %v13614_v24 = vcombine.high %v891_v15, %v899_v17  ;;  %v970_v9 = vld [vmem:[#allocation2 + $0x1c88] sm:$0xff] }
 0x14b   :  { %6680 = vmatpush1.bf16.msra.mxu0 %v13485_v18  ;;  %v13595_v18 = vcombine.low %v874_v2, %v882_v4  ;;  %v13659_v2 = vcombine.low %v938_v37, %v946_v41 }
 0x14c   :  { %6681 = vmatprep.subr.bf16.mxu0 %v13502_v23  ;;  %v907_v23 = vld [vmem:[#allocation2 + $0x1a90] sm:$0xff] }
 0x14d   :  { %6518 = vmatpush1.bf16.msra.mxu1 %v13499_v25  ;;  %v915_v25 = vld [vmem:[#allocation2 + $0x1ad0] sm:$0xff] }
 0x14e   :  { %6519 = vmatprep.subr.bf16.mxu1 %v13516_v27  ;;  %v13613_v27 = vcombine.low %v891_v15, %v899_v17  ;;  %v13630_v0 = vcombine.high %v907_v23, %v915_v25  ;;  %v986_v17 = vld [vmem:[#allocation2 + $0x1d08] sm:$0xff] }
 0x14f   :  { %6682 = vmatpush1.bf16.msra.mxu0 %v13501_v26  ;;  %v13611_v26 = vcombine.low %v890_v13, %v898_v14 }
 0x150   :  { %6683 = vmatprep.subr.bf16.mxu0 %v13518_v59  ;;  %v923_v59 = vld [vmem:[#allocation2 + $0x1b10] sm:$0xff] }
 0x151   :  { %6520 = vmatpush1.bf16.msra.mxu1 %v13515_v33  ;;  %v931_v33 = vld [vmem:[#allocation2 + $0x1b50] sm:$0xff] }
 0x152   :  { %6521 = vmatprep.subr.bf16.mxu1 %v13532_v35  ;;  %v13629_v35 = vcombine.low %v907_v23, %v915_v25  ;;  %v13645_v55 = vcombine.low %v923_v59, %v931_v33  ;;  %v1002_v25 = vld [vmem:[#allocation2 + $0x1d88] sm:$0xff] }
 0x153   :  { %6684 = vmatpush1.bf16.msra.mxu0 %v13517_v34  ;;  %v13627_v34 = vcombine.low %v906_v21, %v914_v22 }
 0x154   :  { %6685 = vmatprep.subr.bf16.mxu0 %v13534_v39  ;;  %v13646_v39 = vcombine.high %v923_v59, %v931_v33  ;;  %v1018_v33 = vld [vmem:[#allocation2 + $0x1e08] sm:$0xff] }
 0x155   :  { %6522 = vmatpush1.bf16.msra.mxu1 %v13531_v42 }
 0x156   :  { %6532 = vmatprep.subr.bf16.mxu1 %v13548_v45  ;;  %v939_v45 = vld [vmem:[#allocation2 + $0x1b90] sm:$0xff] }
 0x157   :  { %6686 = vmatpush1.bf16.msra.mxu0 %v13533_v43  ;;  %v13661_v4 = vcombine.low %v939_v45, %v947_v46 }
 0x158   :  { %6696 = vmatprep.subr.bf16.mxu0 %v13550_v49  ;;  %6524 = vmatmul.mubr.bf16.vlgmr.msra.gmra.mrb[4].mxu1 %v15316_v3 }
 0x159   :  { %6533 = vmatpush1.bf16.msra.mxu1 %v13547_v51  ;;  %6564 = vmatprep.mubr.bf16.mxu1 %v15345_v53 }
 0x15a   :  { %6688 = vmatmul.mubr.bf16.vlgmr.msra.gmra.mrb[4].mxu0 %v15316_v3  ;;  %6534 = vmatprep.subr.bf16.mxu1 %v13564_v54 }
 0x15b   :  { %6697 = vmatpush1.bf16.msra.mxu0 %v13549_v52  ;;  %6728 = vmatprep.mubr.bf16.mxu0 %v15345_v53 }
 0x15c   :  { %6698 = vmatprep.subr.bf16.mxu0 %v13566_v58  ;;  %v13662_v58 = vcombine.high %v939_v45, %v947_v46  ;;  %v1035_v45 = vld [vmem:[#allocation2 + $0x1e90] sm:$0xff] }
 0x15d   :  { %6535 = vmatpush1.bf16.msra.mxu1 %v13563_v61  ;;  %v962_v61 = vld [vmem:[#allocation2 + $0x1c48] sm:$0xff]  ;;  %v1043_v46 = vld [vmem:[#allocation2 + $0x1ed0] sm:$0xff] }
 0x15e   :  { %6536 = vmatprep.subr.bf16.mxu1 %v13580_v1  ;;  %v963_v1 = vld [vmem:[#allocation2 + $0x1c50] sm:$0xff]  ;;  %v13676_v6 = vcombine.high %v954_v60, %v962_v61  ;;  %v13675_v13 = vcombine.low %v954_v60, %v962_v61  ;;  %v13757_v60 = vcombine.low %v1035_v45, %v1043_v46 }
 0x15f   :  { %6699 = vmatpush1.bf16.msra.mxu0 %v13565_v62  ;;  %v955_v62 = vld [vmem:[#allocation2 + $0x1c10] sm:$0xff] }
 0x160   :  { %6700 = vmatprep.subr.bf16.mxu0 %v13582_v7  ;;  %v13678_v7 = vcombine.high %v955_v62, %v963_v1  ;;  %v13677_v14 = vcombine.low %v955_v62, %v963_v1  ;;  %v1066_v1 = vld [vmem:[#allocation2 + $0x1f88] sm:$0xff] }
 0x161   :  { %6537 = vmatpush1.bf16.msra.mxu1 %v13579_v10  ;;  %v978_v10 = vld [vmem:[#allocation2 + $0x1cc8] sm:$0xff] }
 0x162   :  { %6538 = vmatprep.subr.bf16.mxu1 %v13596_v12  ;;  %v979_v12 = vld [vmem:[#allocation2 + $0x1cd0] sm:$0xff]  ;;  %v13692_v15 = vcombine.high %v970_v9, %v978_v10  ;;  %v13691_v21 = vcombine.low %v970_v9, %v978_v10 }
 0x163   :  { %6701 = vmatpush1.bf16.msra.mxu0 %v13581_v11  ;;  %v971_v11 = vld [vmem:[#allocation2 + $0x1c90] sm:$0xff] }
 0x164   :  { %6702 = vmatprep.subr.bf16.mxu0 %v13598_v16  ;;  %v13694_v16 = vcombine.high %v971_v11, %v979_v12  ;;  %v13693_v22 = vcombine.low %v971_v11, %v979_v12  ;;  %v60_v12 = vld [vmem:[#allocation2 + $0x18] sm:$0xff] }
 0x165   :  { %6539 = vmatpush1.bf16.msra.mxu1 %v13595_v18  ;;  %v994_v18 = vld [vmem:[#allocation2 + $0x1d48] sm:$0xff] }
 0x166   :  { %6540 = vmatprep.subr.bf16.mxu1 %v13612_v20  ;;  %v995_v20 = vld [vmem:[#allocation2 + $0x1d50] sm:$0xff]  ;;  %v13708_v23 = vcombine.high %v986_v17, %v994_v18  ;;  %v13707_v29 = vcombine.low %v986_v17, %v994_v18 }
 0x167   :  { %6703 = vmatpush1.bf16.msra.mxu0 %v13597_v19  ;;  %v987_v19 = vld [vmem:[#allocation2 + $0x1d10] sm:$0xff] }
 0x168   :  { %6704 = vmatprep.subr.bf16.mxu0 %v13614_v24  ;;  %v13710_v24 = vcombine.high %v987_v19, %v995_v20  ;;  %v13709_v31 = vcombine.low %v987_v19, %v995_v20  ;;  %v76_v20 = vld [vmem:[#allocation2 + $0x98] sm:$0xff] }
 0x169   :  { %6541 = vmatpush1.bf16.msra.mxu1 %v13611_v26  ;;  %v1010_v26 = vld [vmem:[#allocation2 + $0x1dc8] sm:$0xff] }
 0x16a   :  { %6542 = vmatprep.subr.bf16.mxu1 %v13628_v28  ;;  %v1011_v28 = vld [vmem:[#allocation2 + $0x1dd0] sm:$0xff]  ;;  %v13724_v59 = vcombine.high %v1002_v25, %v1010_v26  ;;  %v13723_v37 = vcombine.low %v1002_v25, %v1010_v26 }
 0x16b   :  { %6705 = vmatpush1.bf16.msra.mxu0 %v13613_v27  ;;  %v6320_v38 = vpop.f32.mrb[0].mxu1  ;;  %v1003_v27 = vld [vmem:[#allocation2 + $0x1d90] sm:$0xff] }
 0x16c   :  { %6706 = vmatprep.subr.bf16.mxu0 %v13630_v0  ;;  %v6322_v43 = vpop.f32.mrb[1].mxu1  ;;  %v13726_v0 = vcombine.high %v1003_v27, %v1011_v28 }
 0x16d   :  { %v6402_v42 = vpop.f32.mrb[0].mxu0  ;;  %v6324_v49 = vpop.f32.mrb[2].mxu1  ;;  %6543 = vmatpush1.bf16.msra.mxu1 %v13627_v34  ;;  %v1026_v34 = vld [vmem:[#allocation2 + $0x1e48] sm:$0xff] }
 0x16e   :  { %v15366_v47 = vadd.f32 %v6402_v42, %v6320_v38  ;;  %v6404_v48 = vpop.f32.mrb[1].mxu0  ;;  %v6325_v54 = vpop.f32.mrb[3].mxu1  ;;  %6544 = vmatprep.subr.bf16.mxu1 %v13644_v36  ;;  %v1027_v36 = vld [vmem:[#allocation2 + $0x1e50] sm:$0xff]  ;;  %v13725_v38 = vcombine.low %v1003_v27, %v1011_v28  ;;  %v1034_v42 = vld [vmem:[#allocation2 + $0x1e88] sm:$0xff]  ;;  %v92_v28 = vld [vmem:[#allocation2 + $0x118] sm:$0xff] }
 0x16f   :  { %v15368_v51 = vadd.f32 %v6404_v48, %v6322_v43  ;;  %v6406_v52 = vpop.f32.mrb[2].mxu0  ;;  %6707 = vmatpush1.bf16.msra.mxu0 %v13629_v35  ;;  %v1019_v35 = vld [vmem:[#allocation2 + $0x1e10] sm:$0xff]  ;;  %v1042_v43 = vld [vmem:[#allocation2 + $0x1ec8] sm:$0xff]  ;;  %v13739_v48 = vcombine.low %v1018_v33, %v1026_v34 }
 0x170   :  { %v6407_v57 = vpop.f32.mrb[3].mxu0  ;;  %6708 = vmatprep.subr.bf16.mxu0 %v13646_v39  ;;  %v13740_v39 = vcombine.high %v1018_v33, %v1026_v34  ;;  %v13742_v41 = vcombine.high %v1019_v35, %v1027_v36  ;;  %v13741_v49 = vcombine.low %v1019_v35, %v1027_v36  ;;  %v13758_v52 = vcombine.high %v1035_v45, %v1043_v46  ;;  %v1050_v54 = vld [vmem:[#allocation2 + $0x1f08] sm:$0xff]  ;;  %v108_v36 = vld [vmem:[#allocation2 + $0x198] sm:$0xff] }
 0x171   :  { %6545 = vmatpush1.bf16.msra.mxu1 %v13643_v50  ;;  %v13756_v50 = vcombine.high %v1034_v42, %v1042_v43  ;;  %v1059_v57 = vld [vmem:[#allocation2 + $0x1f50] sm:$0xff]  ;;  %v124_v46 = vld [vmem:[#allocation2 + $0x218] sm:$0xff] }
 0x172   :  { %6546 = vmatprep.subr.bf16.mxu1 %v13660_v56  ;;  %v1051_v56 = vld [vmem:[#allocation2 + $0x1f10] sm:$0xff] }
 0x173   :  { %6709 = vmatpush1.bf16.msra.mxu0 %v13645_v55  ;;  %v1058_v55 = vld [vmem:[#allocation2 + $0x1f48] sm:$0xff]  ;;  %v13774_v62 = vcombine.high %v1051_v56, %v1059_v57  ;;  %v13773_v9 = vcombine.low %v1051_v56, %v1059_v57  ;;  %v140_v57 = vld [vmem:[#allocation2 + $0x298] sm:$0xff] }
 0x174   :  { %6710 = vmatprep.subr.bf16.mxu0 %v13662_v58  ;;  %v13755_v58 = vcombine.low %v1034_v42, %v1042_v43  ;;  %v13772_v61 = vcombine.high %v1050_v54, %v1058_v55 }
 0x175   :  { %6547 = vmatpush1.bf16.msra.mxu1 %v13659_v2  ;;  %v1074_v2 = vld [vmem:[#allocation2 + $0x1fc8] sm:$0xff] }
 0x176   :  { %6548 = vmatprep.subr.bf16.mxu1 %v13676_v6  ;;  %v1075_v6 = vld [vmem:[#allocation2 + $0x1fd0] sm:$0xff]  ;;  %v13788_v10 = vcombine.high %v1066_v1, %v1074_v2 }
 0x177   :  { %6711 = vmatpush1.bf16.msra.mxu0 %v13661_v4  ;;  %v1067_v4 = vld [vmem:[#allocation2 + $0x1f90] sm:$0xff] }
 0x178   :  { %6712 = vmatprep.subr.bf16.mxu0 %v13678_v7  ;;  %v13771_v7 = vcombine.low %v1050_v54, %v1058_v55  ;;  %v13790_v11 = vcombine.high %v1067_v4, %v1075_v6  ;;  %v13789_v17 = vcombine.low %v1067_v4, %v1075_v6  ;;  %v156_v6 = vld [vmem:[#allocation2 + $0x318] sm:$0xff] }
 0x179   :  { %6549 = vmatpush1.bf16.msra.mxu1 %v13675_v13  ;;  %v68_v13 = vld [vmem:[#allocation2 + $0x58] sm:$0xff] }
 0x17a   :  { %6550 = vmatprep.subr.bf16.mxu1 %v13692_v15  ;;  %v69_v15 = vld [vmem:[#allocation2 + $0x60] sm:$0xff]  ;;  %v12784_v18 = vcombine.high %v60_v12, %v68_v13 }
 0x17b   :  { %6713 = vmatpush1.bf16.msra.mxu0 %v13677_v14  ;;  %v61_v14 = vld [vmem:[#allocation2 + $0x20] sm:$0xff] }
 0x17c   :  { %6714 = vmatprep.subr.bf16.mxu0 %v13694_v16  ;;  %v13787_v16 = vcombine.low %v1066_v1, %v1074_v2  ;;  %v12786_v19 = vcombine.high %v61_v14, %v69_v15  ;;  %v12785_v25 = vcombine.low %v61_v14, %v69_v15  ;;  %v172_v15 = vld [vmem:[#allocation2 + $0x398] sm:$0xff] }
 0x17d   :  { %6551 = vmatpush1.bf16.msra.mxu1 %v13691_v21  ;;  %v84_v21 = vld [vmem:[#allocation2 + $0xd8] sm:$0xff] }
 0x17e   :  { %6552 = vmatprep.subr.bf16.mxu1 %v13708_v23  ;;  %v85_v23 = vld [vmem:[#allocation2 + $0xe0] sm:$0xff]  ;;  %v12800_v26 = vcombine.high %v76_v20, %v84_v21 }
 0x17f   :  { %6715 = vmatpush1.bf16.msra.mxu0 %v13693_v22  ;;  %v77_v22 = vld [vmem:[#allocation2 + $0xa0] sm:$0xff] }
 0x180   :  { %6716 = vmatprep.subr.bf16.mxu0 %v13710_v24  ;;  %v12783_v24 = vcombine.low %v60_v12, %v68_v13  ;;  %v12802_v27 = vcombine.high %v77_v22, %v85_v23  ;;  %v12801_v33 = vcombine.low %v77_v22, %v85_v23  ;;  %v188_v23 = vld [vmem:[#allocation2 + $0x418] sm:$0xff] }
 0x181   :  { %6553 = vmatpush1.bf16.msra.mxu1 %v13707_v29  ;;  %v100_v29 = vld [vmem:[#allocation2 + $0x158] sm:$0xff] }
 0x182   :  { %6554 = vmatprep.subr.bf16.mxu1 %v13724_v59  ;;  %v101_v59 = vld [vmem:[#allocation2 + $0x160] sm:$0xff]  ;;  %v12816_v34 = vcombine.high %v92_v28, %v100_v29 }
 0x183   :  { %6717 = vmatpush1.bf16.msra.mxu0 %v13709_v31  ;;  %v93_v31 = vld [vmem:[#allocation2 + $0x120] sm:$0xff] }
 0x184   :  { %6718 = vmatprep.subr.bf16.mxu0 %v13726_v0  ;;  %v12799_v0 = vcombine.low %v76_v20, %v84_v21  ;;  %v12818_v35 = vcombine.high %v93_v31, %v101_v59  ;;  %v12817_v42 = vcombine.low %v93_v31, %v101_v59  ;;  %v204_v59 = vld [vmem:[#allocation2 + $0x498] sm:$0xff] }
 0x185   :  { %6555 = vmatpush1.bf16.msra.mxu1 %v13723_v37  ;;  %v116_v37 = vld [vmem:[#allocation2 + $0x1d8] sm:$0xff] }
 0x186   :  { %6556 = vmatprep.subr.bf16.mxu1 %v13740_v39  ;;  %v117_v39 = vld [vmem:[#allocation2 + $0x1e0] sm:$0xff]  ;;  %v12832_v43 = vcombine.high %v108_v36, %v116_v37 }
 0x187   :  { %6719 = vmatpush1.bf16.msra.mxu0 %v13725_v38  ;;  %v109_v38 = vld [vmem:[#allocation2 + $0x1a0] sm:$0xff] }
 0x188   :  { %6720 = vmatprep.subr.bf16.mxu0 %v13742_v41  ;;  %v12815_v41 = vcombine.low %v92_v28, %v100_v29  ;;  %v12834_v45 = vcombine.high %v109_v38, %v117_v39  ;;  %v12833_v54 = vcombine.low %v109_v38, %v117_v39  ;;  %v220_v39 = vld [vmem:[#allocation2 + $0x518] sm:$0xff] }
 0x189   :  { %6557 = vmatpush1.bf16.msra.mxu1 %v13739_v48  ;;  %v132_v48 = vld [vmem:[#allocation2 + $0x258] sm:$0xff] }
 0x18a   :  { %6558 = vmatprep.subr.bf16.mxu1 %v13756_v50  ;;  %v133_v50 = vld [vmem:[#allocation2 + $0x260] sm:$0xff]  ;;  %v12848_v55 = vcombine.high %v124_v46, %v132_v48 }
 0x18b   :  { %6721 = vmatpush1.bf16.msra.mxu0 %v13741_v49  ;;  %v125_v49 = vld [vmem:[#allocation2 + $0x220] sm:$0xff] }
 0x18c   :  { %6722 = vmatprep.subr.bf16.mxu0 %v13758_v52  ;;  %v12831_v52 = vcombine.low %v108_v36, %v116_v37  ;;  %v12850_v56 = vcombine.high %v125_v49, %v133_v50  ;;  %v12849_v1 = vcombine.low %v125_v49, %v133_v50  ;;  %v236_v50 = vld [vmem:[#allocation2 + $0x598] sm:$0xff] }
 0x18d   :  { %6559 = vmatpush1.bf16.msra.mxu1 %v13755_v58  ;;  %v148_v58 = vld [vmem:[#allocation2 + $0x2d8] sm:$0xff] }
 0x18e   :  { %6560 = vmatprep.subr.bf16.mxu1 %v13772_v61  ;;  %v149_v61 = vld [vmem:[#allocation2 + $0x2e0] sm:$0xff]  ;;  %v12864_v2 = vcombine.high %v140_v57, %v148_v58 }
 0x18f   :  { %6723 = vmatpush1.bf16.msra.mxu0 %v13757_v60  ;;  %v141_v60 = vld [vmem:[#allocation2 + $0x2a0] sm:$0xff] }
 0x190   :  { %6724 = vmatprep.subr.bf16.mxu0 %v13774_v62  ;;  %v12847_v62 = vcombine.low %v124_v46, %v132_v48  ;;  %v12866_v4 = vcombine.high %v141_v60, %v149_v61  ;;  %v12865_v12 = vcombine.low %v141_v60, %v149_v61  ;;  %v252_v61 = vld [vmem:[#allocation2 + $0x618] sm:$0xff] }
 0x191   :  { %6561 = vmatpush1.bf16.msra.mxu1 %v13771_v7  ;;  %v164_v7 = vld [vmem:[#allocation2 + $0x358] sm:$0xff] }
 0x192   :  { %6562 = vmatprep.subr.bf16.mxu1 %v13788_v10  ;;  %v165_v10 = vld [vmem:[#allocation2 + $0x360] sm:$0xff]  ;;  %v12880_v13 = vcombine.high %v156_v6, %v164_v7 }
 0x193   :  { %6725 = vmatpush1.bf16.msra.mxu0 %v13773_v9  ;;  %v157_v9 = vld [vmem:[#allocation2 + $0x320] sm:$0xff] }
 0x194   :  { %6726 = vmatprep.subr.bf16.mxu0 %v13790_v11  ;;  %v12863_v11 = vcombine.low %v140_v57, %v148_v58  ;;  %v12882_v14 = vcombine.high %v157_v9, %v165_v10  ;;  %v12881_v20 = vcombine.low %v157_v9, %v165_v10  ;;  %v268_v10 = vld [vmem:[#allocation2 + $0x698] sm:$0xff] }
 0x195   :  { %6563 = vmatpush1.bf16.msra.mxu1 %v13787_v16  ;;  %v180_v16 = vld [vmem:[#allocation2 + $0x3d8] sm:$0xff] }
 0x196   :  { %6737 = vmatprep.subr.bf16.mxu1 %v12784_v18  ;;  %v181_v18 = vld [vmem:[#allocation2 + $0x3e0] sm:$0xff]  ;;  %v12896_v21 = vcombine.high %v172_v15, %v180_v16 }
 0x197   :  { %6727 = vmatpush1.bf16.msra.mxu0 %v13789_v17  ;;  %v173_v17 = vld [vmem:[#allocation2 + $0x3a0] sm:$0xff] }
 0x198   :  { %6901 = vmatprep.subr.bf16.mxu0 %v12786_v19  ;;  %6565 = vmatmul.mubr.bf16.vlgmr.msra.gmra.mrb[4].mxu1 %v15336_v32  ;;  %v12879_v19 = vcombine.low %v156_v6, %v164_v7  ;;  %v12898_v22 = vcombine.high %v173_v17, %v181_v18  ;;  %v12897_v28 = vcombine.low %v173_v17, %v181_v18  ;;  %v284_v18 = vld [vmem:[#allocation2 + $0x718] sm:$0xff] }
 0x199   :  { %6738 = vmatpush1.bf16.msra.mxu1 %v12783_v24  ;;  %6769 = vmatprep.mubr.bf16.mxu1 %v15320_v5  ;;  %v196_v24 = vld [vmem:[#allocation2 + $0x458] sm:$0xff] }
 0x19a   :  { %6729 = vmatmul.mubr.bf16.vlgmr.msra.gmra.mrb[4].mxu0 %v15336_v32  ;;  %6739 = vmatprep.subr.bf16.mxu1 %v12800_v26  ;;  %v197_v26 = vld [vmem:[#allocation2 + $0x460] sm:$0xff]  ;;  %v12912_v29 = vcombine.high %v188_v23, %v196_v24 }
 0x19b   :  { %6902 = vmatpush1.bf16.msra.mxu0 %v12785_v25  ;;  %6933 = vmatprep.mubr.bf16.mxu0 %v15320_v5  ;;  %v189_v25 = vld [vmem:[#allocation2 + $0x420] sm:$0xff] }
 0x19c   :  { %6903 = vmatprep.subr.bf16.mxu0 %v12802_v27  ;;  %v12895_v27 = vcombine.low %v172_v15, %v180_v16  ;;  %v12914_v31 = vcombine.high %v189_v25, %v197_v26  ;;  %v12913_v36 = vcombine.low %v189_v25, %v197_v26  ;;  %v300_v26 = vld [vmem:[#allocation2 + $0x798] sm:$0xff] }
 0x19d   :  { %6740 = vmatpush1.bf16.msra.mxu1 %v12799_v0  ;;  %v212_v0 = vld [vmem:[#allocation2 + $0x4d8] sm:$0xff] }
 0x19e   :  { %6741 = vmatprep.subr.bf16.mxu1 %v12816_v34  ;;  %v213_v34 = vld [vmem:[#allocation2 + $0x4e0] sm:$0xff]  ;;  %v12928_v37 = vcombine.high %v204_v59, %v212_v0 }
 0x19f   :  { %6904 = vmatpush1.bf16.msra.mxu0 %v12801_v33  ;;  %v205_v33 = vld [vmem:[#allocation2 + $0x4a0] sm:$0xff] }
 0x1a0   :  { %6905 = vmatprep.subr.bf16.mxu0 %v12818_v35  ;;  %v12911_v35 = vcombine.low %v188_v23, %v196_v24  ;;  %v12930_v38 = vcombine.high %v205_v33, %v213_v34  ;;  %v12929_v46 = vcombine.low %v205_v33, %v213_v34  ;;  %v316_v34 = vld [vmem:[#allocation2 + $0x818] sm:$0xff] }
 0x1a1   :  { %6742 = vmatpush1.bf16.msra.mxu1 %v12815_v41  ;;  %v228_v41 = vld [vmem:[#allocation2 + $0x558] sm:$0xff] }
 0x1a2   :  { %6743 = vmatprep.subr.bf16.mxu1 %v12832_v43  ;;  %v229_v43 = vld [vmem:[#allocation2 + $0x560] sm:$0xff]  ;;  %v12944_v48 = vcombine.high %v220_v39, %v228_v41 }
 0x1a3   :  { %6906 = vmatpush1.bf16.msra.mxu0 %v12817_v42  ;;  %v221_v42 = vld [vmem:[#allocation2 + $0x520] sm:$0xff] }
 0x1a4   :  { %6907 = vmatprep.subr.bf16.mxu0 %v12834_v45  ;;  %v12927_v45 = vcombine.low %v204_v59, %v212_v0  ;;  %v12946_v49 = vcombine.high %v221_v42, %v229_v43  ;;  %v12945_v57 = vcombine.low %v221_v42, %v229_v43  ;;  %v332_v43 = vld [vmem:[#allocation2 + $0x898] sm:$0xff] }
 0x1a5   :  { %6744 = vmatpush1.bf16.msra.mxu1 %v12831_v52  ;;  %v244_v52 = vld [vmem:[#allocation2 + $0x5d8] sm:$0xff] }
 0x1a6   :  { %6745 = vmatprep.subr.bf16.mxu1 %v12848_v55  ;;  %v245_v55 = vld [vmem:[#allocation2 + $0x5e0] sm:$0xff]  ;;  %v12960_v58 = vcombine.high %v236_v50, %v244_v52 }
 0x1a7   :  { %6908 = vmatpush1.bf16.msra.mxu0 %v12833_v54  ;;  %v237_v54 = vld [vmem:[#allocation2 + $0x5a0] sm:$0xff] }
 0x1a8   :  { %6909 = vmatprep.subr.bf16.mxu0 %v12850_v56  ;;  %v12943_v56 = vcombine.low %v220_v39, %v228_v41  ;;  %v12962_v60 = vcombine.high %v237_v54, %v245_v55  ;;  %v12961_v6 = vcombine.low %v237_v54, %v245_v55  ;;  %v348_v55 = vld [vmem:[#allocation2 + $0x918] sm:$0xff] }
 0x1a9   :  { %6746 = vmatpush1.bf16.msra.mxu1 %v12847_v62  ;;  %v260_v62 = vld [vmem:[#allocation2 + $0x658] sm:$0xff] }
 0x1aa   :  { %6747 = vmatprep.subr.bf16.mxu1 %v12864_v2  ;;  %v261_v2 = vld [vmem:[#allocation2 + $0x660] sm:$0xff]  ;;  %v12976_v7 = vcombine.high %v252_v61, %v260_v62 }
 0x1ab   :  { %6910 = vmatpush1.bf16.msra.mxu0 %v12849_v1  ;;  %v253_v1 = vld [vmem:[#allocation2 + $0x620] sm:$0xff] }
 0x1ac   :  { %6911 = vmatprep.subr.bf16.mxu0 %v12866_v4  ;;  %v12959_v4 = vcombine.low %v236_v50, %v244_v52  ;;  %v12978_v9 = vcombine.high %v253_v1, %v261_v2  ;;  %v12977_v15 = vcombine.low %v253_v1, %v261_v2  ;;  %v364_v2 = vld [vmem:[#allocation2 + $0x998] sm:$0xff] }
 0x1ad   :  { %6748 = vmatpush1.bf16.msra.mxu1 %v12863_v11  ;;  %v276_v11 = vld [vmem:[#allocation2 + $0x6d8] sm:$0xff] }
 0x1ae   :  { %6749 = vmatprep.subr.bf16.mxu1 %v12880_v13  ;;  %v277_v13 = vld [vmem:[#allocation2 + $0x6e0] sm:$0xff]  ;;  %v12992_v16 = vcombine.high %v268_v10, %v276_v11 }
 0x1af   :  { %6912 = vmatpush1.bf16.msra.mxu0 %v12865_v12  ;;  %v269_v12 = vld [vmem:[#allocation2 + $0x6a0] sm:$0xff] }
 0x1b0   :  { %6913 = vmatprep.subr.bf16.mxu0 %v12882_v14  ;;  %v12975_v14 = vcombine.low %v252_v61, %v260_v62  ;;  %v12994_v17 = vcombine.high %v269_v12, %v277_v13  ;;  %v12993_v23 = vcombine.low %v269_v12, %v277_v13  ;;  %v380_v13 = vld [vmem:[#allocation2 + $0xa18] sm:$0xff] }
 0x1b1   :  { %6750 = vmatpush1.bf16.msra.mxu1 %v12879_v19  ;;  %v292_v19 = vld [vmem:[#allocation2 + $0x758] sm:$0xff] }
 0x1b2   :  { %6751 = vmatprep.subr.bf16.mxu1 %v12896_v21  ;;  %v293_v21 = vld [vmem:[#allocation2 + $0x760] sm:$0xff]  ;;  %v13008_v24 = vcombine.high %v284_v18, %v292_v19 }
 0x1b3   :  { %6914 = vmatpush1.bf16.msra.mxu0 %v12881_v20  ;;  %v285_v20 = vld [vmem:[#allocation2 + $0x720] sm:$0xff] }
 0x1b4   :  { %6915 = vmatprep.subr.bf16.mxu0 %v12898_v22  ;;  %v12991_v22 = vcombine.low %v268_v10, %v276_v11  ;;  %v13010_v25 = vcombine.high %v285_v20, %v293_v21  ;;  %v13009_v59 = vcombine.low %v285_v20, %v293_v21  ;;  %v396_v21 = vld [vmem:[#allocation2 + $0xa98] sm:$0xff] }
 0x1b5   :  { %6752 = vmatpush1.bf16.msra.mxu1 %v12895_v27  ;;  %v308_v27 = vld [vmem:[#allocation2 + $0x7d8] sm:$0xff] }
 0x1b6   :  { %6753 = vmatprep.subr.bf16.mxu1 %v12912_v29  ;;  %v309_v29 = vld [vmem:[#allocation2 + $0x7e0] sm:$0xff]  ;;  %v13024_v0 = vcombine.high %v300_v26, %v308_v27 }
 0x1b7   :  { %6916 = vmatpush1.bf16.msra.mxu0 %v12897_v28  ;;  %v301_v28 = vld [vmem:[#allocation2 + $0x7a0] sm:$0xff] }
 0x1b8   :  { %6917 = vmatprep.subr.bf16.mxu0 %v12914_v31  ;;  %v13007_v31 = vcombine.low %v284_v18, %v292_v19  ;;  %v13026_v33 = vcombine.high %v301_v28, %v309_v29  ;;  %v13025_v39 = vcombine.low %v301_v28, %v309_v29  ;;  %v412_v29 = vld [vmem:[#allocation2 + $0xb18] sm:$0xff] }
 0x1b9   :  { %6754 = vmatpush1.bf16.msra.mxu1 %v12911_v35  ;;  %v324_v35 = vld [vmem:[#allocation2 + $0x858] sm:$0xff] }
 0x1ba   :  { %6755 = vmatprep.subr.bf16.mxu1 %v12928_v37  ;;  %v325_v37 = vld [vmem:[#allocation2 + $0x860] sm:$0xff]  ;;  %v13040_v41 = vcombine.high %v316_v34, %v324_v35 }
 0x1bb   :  { %6918 = vmatpush1.bf16.msra.mxu0 %v12913_v36  ;;  %v317_v36 = vld [vmem:[#allocation2 + $0x820] sm:$0xff] }
 0x1bc   :  { %6919 = vmatprep.subr.bf16.mxu0 %v12930_v38  ;;  %v13023_v38 = vcombine.low %v300_v26, %v308_v27  ;;  %v13042_v42 = vcombine.high %v317_v36, %v325_v37  ;;  %v13041_v50 = vcombine.low %v317_v36, %v325_v37  ;;  %v428_v37 = vld [vmem:[#allocation2 + $0xb98] sm:$0xff] }
 0x1bd   :  { %6756 = vmatpush1.bf16.msra.mxu1 %v12927_v45  ;;  %v340_v45 = vld [vmem:[#allocation2 + $0x8d8] sm:$0xff] }
 0x1be   :  { %6757 = vmatprep.subr.bf16.mxu1 %v12944_v48  ;;  %v341_v48 = vld [vmem:[#allocation2 + $0x8e0] sm:$0xff]  ;;  %v13056_v52 = vcombine.high %v332_v43, %v340_v45 }
 0x1bf   :  { %6920 = vmatpush1.bf16.msra.mxu0 %v12929_v46  ;;  %v333_v46 = vld [vmem:[#allocation2 + $0x8a0] sm:$0xff] }
 0x1c0   :  { %6921 = vmatprep.subr.bf16.mxu0 %v12946_v49  ;;  %v13039_v49 = vcombine.low %v316_v34, %v324_v35  ;;  %v13058_v54 = vcombine.high %v333_v46, %v341_v48  ;;  %v13057_v61 = vcombine.low %v333_v46, %v341_v48  ;;  %v444_v48 = vld [vmem:[#allocation2 + $0xc18] sm:$0xff] }
 0x1c1   :  { %6758 = vmatpush1.bf16.msra.mxu1 %v12943_v56  ;;  %v356_v56 = vld [vmem:[#allocation2 + $0x958] sm:$0xff] }
 0x1c2   :  { %6759 = vmatprep.subr.bf16.mxu1 %v12960_v58  ;;  %v357_v58 = vld [vmem:[#allocation2 + $0x960] sm:$0xff]  ;;  %v13072_v62 = vcombine.high %v348_v55, %v356_v56 }
 0x1c3   :  { %6922 = vmatpush1.bf16.msra.mxu0 %v12945_v57  ;;  %v349_v57 = vld [vmem:[#allocation2 + $0x920] sm:$0xff] }
 0x1c4   :  { %6923 = vmatprep.subr.bf16.mxu0 %v12962_v60  ;;  %v13055_v60 = vcombine.low %v332_v43, %v340_v45  ;;  %v13074_v1 = vcombine.high %v349_v57, %v357_v58  ;;  %v13073_v10 = vcombine.low %v349_v57, %v357_v58  ;;  %v460_v58 = vld [vmem:[#allocation2 + $0xc98] sm:$0xff] }
 0x1c5   :  { %6760 = vmatpush1.bf16.msra.mxu1 %v12959_v4  ;;  %v372_v4 = vld [vmem:[#allocation2 + $0x9d8] sm:$0xff] }
 0x1c6   :  { %6761 = vmatprep.subr.bf16.mxu1 %v12976_v7  ;;  %v373_v7 = vld [vmem:[#allocation2 + $0x9e0] sm:$0xff]  ;;  %v13088_v11 = vcombine.high %v364_v2, %v372_v4 }
 0x1c7   :  { %6924 = vmatpush1.bf16.msra.mxu0 %v12961_v6  ;;  %v365_v6 = vld [vmem:[#allocation2 + $0x9a0] sm:$0xff] }
 0x1c8   :  { %6925 = vmatprep.subr.bf16.mxu0 %v12978_v9  ;;  %v13071_v9 = vcombine.low %v348_v55, %v356_v56  ;;  %v13090_v12 = vcombine.high %v365_v6, %v373_v7  ;;  %v13089_v18 = vcombine.low %v365_v6, %v373_v7  ;;  %v476_v7 = vld [vmem:[#allocation2 + $0xd18] sm:$0xff] }
 0x1c9   :  { %6762 = vmatpush1.bf16.msra.mxu1 %v12975_v14  ;;  %v388_v14 = vld [vmem:[#allocation2 + $0xa58] sm:$0xff] }
 0x1ca   :  { %6763 = vmatprep.subr.bf16.mxu1 %v12992_v16  ;;  %v389_v16 = vld [vmem:[#allocation2 + $0xa60] sm:$0xff]  ;;  %v13104_v19 = vcombine.high %v380_v13, %v388_v14 }
 0x1cb   :  { %6926 = vmatpush1.bf16.msra.mxu0 %v12977_v15  ;;  %v381_v15 = vld [vmem:[#allocation2 + $0xa20] sm:$0xff] }
 0x1cc   :  { %6927 = vmatprep.subr.bf16.mxu0 %v12994_v17  ;;  %v13087_v17 = vcombine.low %v364_v2, %v372_v4  ;;  %v13106_v20 = vcombine.high %v381_v15, %v389_v16  ;;  %v13105_v26 = vcombine.low %v381_v15, %v389_v16  ;;  %v492_v16 = vld [vmem:[#allocation2 + $0xd98] sm:$0xff] }
 0x1cd   :  { %6764 = vmatpush1.bf16.msra.mxu1 %v12991_v22  ;;  %v404_v22 = vld [vmem:[#allocation2 + $0xad8] sm:$0xff] }
 0x1ce   :  { %6765 = vmatprep.subr.bf16.mxu1 %v13008_v24  ;;  %v405_v24 = vld [vmem:[#allocation2 + $0xae0] sm:$0xff]  ;;  %v13120_v27 = vcombine.high %v396_v21, %v404_v22 }
 0x1cf   :  { %6928 = vmatpush1.bf16.msra.mxu0 %v12993_v23  ;;  %v397_v23 = vld [vmem:[#allocation2 + $0xaa0] sm:$0xff] }
 0x1d0   :  { %6929 = vmatprep.subr.bf16.mxu0 %v13010_v25  ;;  %v13103_v25 = vcombine.low %v380_v13, %v388_v14  ;;  %v13122_v28 = vcombine.high %v397_v23, %v405_v24  ;;  %v13121_v34 = vcombine.low %v397_v23, %v405_v24  ;;  %v508_v24 = vld [vmem:[#allocation2 + $0xe18] sm:$0xff] }
 0x1d1   :  { %6766 = vmatpush1.bf16.msra.mxu1 %v13007_v31  ;;  %v420_v31 = vld [vmem:[#allocation2 + $0xb58] sm:$0xff] }
 0x1d2   :  { %6767 = vmatprep.subr.bf16.mxu1 %v13024_v0  ;;  %v421_v0 = vld [vmem:[#allocation2 + $0xb60] sm:$0xff]  ;;  %v13136_v35 = vcombine.high %v412_v29, %v420_v31 }
 0x1d3   :  { %6930 = vmatpush1.bf16.msra.mxu0 %v13009_v59  ;;  %v413_v59 = vld [vmem:[#allocation2 + $0xb20] sm:$0xff] }
 0x1d4   :  { %6931 = vmatprep.subr.bf16.mxu0 %v13026_v33  ;;  %v13119_v33 = vcombine.low %v396_v21, %v404_v22  ;;  %v13138_v36 = vcombine.high %v413_v59, %v421_v0  ;;  %v13137_v43 = vcombine.low %v413_v59, %v421_v0  ;;  %v524_v0 = vld [vmem:[#allocation2 + $0xe98] sm:$0xff] }
 0x1d5   :  { %6768 = vmatpush1.bf16.msra.mxu1 %v13023_v38  ;;  %v436_v38 = vld [vmem:[#allocation2 + $0xbd8] sm:$0xff] }
 0x1d6   :  { %6778 = vmatprep.subr.bf16.mxu1 %v13040_v41  ;;  %v437_v41 = vld [vmem:[#allocation2 + $0xbe0] sm:$0xff]  ;;  %v13152_v45 = vcombine.high %v428_v37, %v436_v38 }
 0x1d7   :  { %6932 = vmatpush1.bf16.msra.mxu0 %v13025_v39  ;;  %v429_v39 = vld [vmem:[#allocation2 + $0xba0] sm:$0xff] }
 0x1d8   :  { %6942 = vmatprep.subr.bf16.mxu0 %v13042_v42  ;;  %6770 = vmatmul.mubr.bf16.vlgmr.msra.gmra.mrb[8].mxu1 %v15307_v63  ;;  %v13135_v42 = vcombine.low %v412_v29, %v420_v31  ;;  %v13154_v46 = vcombine.high %v429_v39, %v437_v41  ;;  %v13153_v55 = vcombine.low %v429_v39, %v437_v41  ;;  %v540_v41 = vld [vmem:[#allocation2 + $0xf18] sm:$0xff] }
 0x1d9   :  { %6779 = vmatpush1.bf16.msra.mxu1 %v13039_v49  ;;  %6810 = vmatprep.mubr.bf16.mxu1 %v15340_v40  ;;  %v452_v49 = vld [vmem:[#allocation2 + $0xc58] sm:$0xff] }
 0x1da   :  { %6934 = vmatmul.mubr.bf16.vlgmr.msra.gmra.mrb[8].mxu0 %v15307_v63  ;;  %6780 = vmatprep.subr.bf16.mxu1 %v13056_v52  ;;  %v453_v52 = vld [vmem:[#allocation2 + $0xc60] sm:$0xff]  ;;  %v13168_v56 = vcombine.high %v444_v48, %v452_v49 }
 0x1db   :  { %6943 = vmatpush1.bf16.msra.mxu0 %v13041_v50  ;;  %6974 = vmatprep.mubr.bf16.mxu0 %v15340_v40  ;;  %v445_v50 = vld [vmem:[#allocation2 + $0xc20] sm:$0xff] }
 0x1dc   :  { %6944 = vmatprep.subr.bf16.mxu0 %v13058_v54  ;;  %v13151_v54 = vcombine.low %v428_v37, %v436_v38  ;;  %v13170_v57 = vcombine.high %v445_v50, %v453_v52  ;;  %v13169_v2 = vcombine.low %v445_v50, %v453_v52  ;;  %v556_v52 = vld [vmem:[#allocation2 + $0xf98] sm:$0xff] }
 0x1dd   :  { %6781 = vmatpush1.bf16.msra.mxu1 %v13055_v60  ;;  %v468_v60 = vld [vmem:[#allocation2 + $0xcd8] sm:$0xff] }
 0x1de   :  { %6782 = vmatprep.subr.bf16.mxu1 %v13072_v62  ;;  %v469_v62 = vld [vmem:[#allocation2 + $0xce0] sm:$0xff]  ;;  %v13184_v4 = vcombine.high %v460_v58, %v468_v60 }
 0x1df   :  { %6945 = vmatpush1.bf16.msra.mxu0 %v13057_v61  ;;  %v461_v61 = vld [vmem:[#allocation2 + $0xca0] sm:$0xff] }
 0x1e0   :  { %6946 = vmatprep.subr.bf16.mxu0 %v13074_v1  ;;  %v13167_v1 = vcombine.low %v444_v48, %v452_v49  ;;  %v13186_v6 = vcombine.high %v461_v61, %v469_v62  ;;  %v13185_v13 = vcombine.low %v461_v61, %v469_v62  ;;  %v572_v62 = vld [vmem:[#allocation2 + $0x1018] sm:$0xff] }
 0x1e1   :  { %6783 = vmatpush1.bf16.msra.mxu1 %v13071_v9  ;;  %v484_v9 = vld [vmem:[#allocation2 + $0xd58] sm:$0xff] }
 0x1e2   :  { %6784 = vmatprep.subr.bf16.mxu1 %v13088_v11  ;;  %v485_v11 = vld [vmem:[#allocation2 + $0xd60] sm:$0xff]  ;;  %v13200_v14 = vcombine.high %v476_v7, %v484_v9 }
 0x1e3   :  { %6947 = vmatpush1.bf16.msra.mxu0 %v13073_v10  ;;  %v477_v10 = vld [vmem:[#allocation2 + $0xd20] sm:$0xff] }
 0x1e4   :  { %6948 = vmatprep.subr.bf16.mxu0 %v13090_v12  ;;  %v13183_v12 = vcombine.low %v460_v58, %v468_v60  ;;  %v13202_v15 = vcombine.high %v477_v10, %v485_v11  ;;  %v13201_v21 = vcombine.low %v477_v10, %v485_v11  ;;  %v588_v11 = vld [vmem:[#allocation2 + $0x1098] sm:$0xff] }
 0x1e5   :  { %6785 = vmatpush1.bf16.msra.mxu1 %v13087_v17  ;;  %v500_v17 = vld [vmem:[#allocation2 + $0xdd8] sm:$0xff] }
 0x1e6   :  { %6786 = vmatprep.subr.bf16.mxu1 %v13104_v19  ;;  %v501_v19 = vld [vmem:[#allocation2 + $0xde0] sm:$0xff]  ;;  %v13216_v22 = vcombine.high %v492_v16, %v500_v17 }
 0x1e7   :  { %6949 = vmatpush1.bf16.msra.mxu0 %v13089_v18  ;;  %v493_v18 = vld [vmem:[#allocation2 + $0xda0] sm:$0xff] }
 0x1e8   :  { %6950 = vmatprep.subr.bf16.mxu0 %v13106_v20  ;;  %v13199_v20 = vcombine.low %v476_v7, %v484_v9  ;;  %v13218_v23 = vcombine.high %v493_v18, %v501_v19  ;;  %v13217_v29 = vcombine.low %v493_v18, %v501_v19  ;;  %v604_v19 = vld [vmem:[#allocation2 + $0x1118] sm:$0xff] }
 0x1e9   :  { %6787 = vmatpush1.bf16.msra.mxu1 %v13103_v25  ;;  %v516_v25 = vld [vmem:[#allocation2 + $0xe58] sm:$0xff] }
 0x1ea   :  { %6788 = vmatprep.subr.bf16.mxu1 %v13120_v27  ;;  %v517_v27 = vld [vmem:[#allocation2 + $0xe60] sm:$0xff]  ;;  %v13232_v31 = vcombine.high %v508_v24, %v516_v25 }
 0x1eb   :  { %6951 = vmatpush1.bf16.msra.mxu0 %v13105_v26  ;;  %v509_v26 = vld [vmem:[#allocation2 + $0xe20] sm:$0xff] }
 0x1ec   :  { %6952 = vmatprep.subr.bf16.mxu0 %v13122_v28  ;;  %v13215_v28 = vcombine.low %v492_v16, %v500_v17  ;;  %v13234_v59 = vcombine.high %v509_v26, %v517_v27  ;;  %v13233_v37 = vcombine.low %v509_v26, %v517_v27  ;;  %v620_v27 = vld [vmem:[#allocation2 + $0x1198] sm:$0xff] }
 0x1ed   :  { %6789 = vmatpush1.bf16.msra.mxu1 %v13119_v33  ;;  %v532_v33 = vld [vmem:[#allocation2 + $0xed8] sm:$0xff] }
 0x1ee   :  { %6790 = vmatprep.subr.bf16.mxu1 %v13136_v35  ;;  %v533_v35 = vld [vmem:[#allocation2 + $0xee0] sm:$0xff]  ;;  %v13248_v38 = vcombine.high %v524_v0, %v532_v33 }
 0x1ef   :  { %6953 = vmatpush1.bf16.msra.mxu0 %v13121_v34  ;;  %v525_v34 = vld [vmem:[#allocation2 + $0xea0] sm:$0xff] }
 0x1f0   :  { %6954 = vmatprep.subr.bf16.mxu0 %v13138_v36  ;;  %v13231_v36 = vcombine.low %v508_v24, %v516_v25  ;;  %v13250_v39 = vcombine.high %v525_v34, %v533_v35  ;;  %v13249_v48 = vcombine.low %v525_v34, %v533_v35  ;;  %v636_v35 = vld [vmem:[#allocation2 + $0x1218] sm:$0xff] }
 0x1f1   :  { %6791 = vmatpush1.bf16.msra.mxu1 %v13135_v42  ;;  %v548_v42 = vld [vmem:[#allocation2 + $0xf58] sm:$0xff] }
 0x1f2   :  { %6792 = vmatprep.subr.bf16.mxu1 %v13152_v45  ;;  %v549_v45 = vld [vmem:[#allocation2 + $0xf60] sm:$0xff]  ;;  %v13264_v49 = vcombine.high %v540_v41, %v548_v42 }
 0x1f3   :  { %6955 = vmatpush1.bf16.msra.mxu0 %v13137_v43  ;;  %v541_v43 = vld [vmem:[#allocation2 + $0xf20] sm:$0xff] }
 0x1f4   :  { %6956 = vmatprep.subr.bf16.mxu0 %v13154_v46  ;;  %v13247_v46 = vcombine.low %v524_v0, %v532_v33  ;;  %v13266_v50 = vcombine.high %v541_v43, %v549_v45  ;;  %v13265_v58 = vcombine.low %v541_v43, %v549_v45  ;;  %v652_v45 = vld [vmem:[#allocation2 + $0x1298] sm:$0xff] }
 0x1f5   :  { %6793 = vmatpush1.bf16.msra.mxu1 %v13151_v54  ;;  %v564_v54 = vld [vmem:[#allocation2 + $0xfd8] sm:$0xff] }
 0x1f6   :  { %6794 = vmatprep.subr.bf16.mxu1 %v13168_v56  ;;  %v565_v56 = vld [vmem:[#allocation2 + $0xfe0] sm:$0xff]  ;;  %v13280_v60 = vcombine.high %v556_v52, %v564_v54 }
 0x1f7   :  { %6957 = vmatpush1.bf16.msra.mxu0 %v13153_v55  ;;  %v557_v55 = vld [vmem:[#allocation2 + $0xfa0] sm:$0xff] }
 0x1f8   :  { %6958 = vmatprep.subr.bf16.mxu0 %v13170_v57  ;;  %v13263_v57 = vcombine.low %v540_v41, %v548_v42  ;;  %v13282_v61 = vcombine.high %v557_v55, %v565_v56  ;;  %v13281_v7 = vcombine.low %v557_v55, %v565_v56  ;;  %v668_v56 = vld [vmem:[#allocation2 + $0x1318] sm:$0xff] }
 0x1f9   :  { %6795 = vmatpush1.bf16.msra.mxu1 %v13167_v1  ;;  %v580_v1 = vld [vmem:[#allocation2 + $0x1058] sm:$0xff] }
 0x1fa   :  { %6796 = vmatprep.subr.bf16.mxu1 %v13184_v4  ;;  %v581_v4 = vld [vmem:[#allocation2 + $0x1060] sm:$0xff]  ;;  %v13296_v9 = vcombine.high %v572_v62, %v580_v1 }
 0x1fb   :  { %6959 = vmatpush1.bf16.msra.mxu0 %v13169_v2  ;;  %v573_v2 = vld [vmem:[#allocation2 + $0x1020] sm:$0xff] }
 0x1fc   :  { %6960 = vmatprep.subr.bf16.mxu0 %v13186_v6  ;;  %v13279_v6 = vcombine.low %v556_v52, %v564_v54  ;;  %v13298_v10 = vcombine.high %v573_v2, %v581_v4  ;;  %v13297_v16 = vcombine.low %v573_v2, %v581_v4  ;;  %v684_v4 = vld [vmem:[#allocation2 + $0x1398] sm:$0xff] }
 0x1fd   :  { %6797 = vmatpush1.bf16.msra.mxu1 %v13183_v12  ;;  %v596_v12 = vld [vmem:[#allocation2 + $0x10d8] sm:$0xff] }
 0x1fe   :  { %6798 = vmatprep.subr.bf16.mxu1 %v13200_v14  ;;  %v597_v14 = vld [vmem:[#allocation2 + $0x10e0] sm:$0xff]  ;;  %v13312_v17 = vcombine.high %v588_v11, %v596_v12 }
 0x1ff   :  { %6961 = vmatpush1.bf16.msra.mxu0 %v13185_v13  ;;  %v589_v13 = vld [vmem:[#allocation2 + $0x10a0] sm:$0xff] }
 0x200   :  { %6962 = vmatprep.subr.bf16.mxu0 %v13202_v15  ;;  %v13295_v15 = vcombine.low %v572_v62, %v580_v1  ;;  %v13314_v18 = vcombine.high %v589_v13, %v597_v14  ;;  %v13313_v24 = vcombine.low %v589_v13, %v597_v14  ;;  %v700_v14 = vld [vmem:[#allocation2 + $0x1418] sm:$0xff] }
 0x201   :  { %6799 = vmatpush1.bf16.msra.mxu1 %v13199_v20  ;;  %v612_v20 = vld [vmem:[#allocation2 + $0x1158] sm:$0xff] }
 0x202   :  { %6800 = vmatprep.subr.bf16.mxu1 %v13216_v22  ;;  %v613_v22 = vld [vmem:[#allocation2 + $0x1160] sm:$0xff]  ;;  %v13328_v25 = vcombine.high %v604_v19, %v612_v20 }
 0x203   :  { %6963 = vmatpush1.bf16.msra.mxu0 %v13201_v21  ;;  %v605_v21 = vld [vmem:[#allocation2 + $0x1120] sm:$0xff] }
 0x204   :  { %6964 = vmatprep.subr.bf16.mxu0 %v13218_v23  ;;  %v13311_v23 = vcombine.low %v588_v11, %v596_v12  ;;  %v13330_v26 = vcombine.high %v605_v21, %v613_v22  ;;  %v13329_v0 = vcombine.low %v605_v21, %v613_v22  ;;  %v716_v22 = vld [vmem:[#allocation2 + $0x1498] sm:$0xff] }
 0x205   :  { %6801 = vmatpush1.bf16.msra.mxu1 %v13215_v28  ;;  %v628_v28 = vld [vmem:[#allocation2 + $0x11d8] sm:$0xff] }
 0x206   :  { %6802 = vmatprep.subr.bf16.mxu1 %v13232_v31  ;;  %v629_v31 = vld [vmem:[#allocation2 + $0x11e0] sm:$0xff]  ;;  %v13344_v33 = vcombine.high %v620_v27, %v628_v28 }
 0x207   :  { %6965 = vmatpush1.bf16.msra.mxu0 %v13217_v29  ;;  %v621_v29 = vld [vmem:[#allocation2 + $0x11a0] sm:$0xff] }
 0x208   :  { %6966 = vmatprep.subr.bf16.mxu0 %v13234_v59  ;;  %v13327_v59 = vcombine.low %v604_v19, %v612_v20  ;;  %v13346_v34 = vcombine.high %v621_v29, %v629_v31  ;;  %v13345_v41 = vcombine.low %v621_v29, %v629_v31  ;;  %v732_v31 = vld [vmem:[#allocation2 + $0x1518] sm:$0xff] }
 0x209   :  { %6803 = vmatpush1.bf16.msra.mxu1 %v13231_v36  ;;  %v644_v36 = vld [vmem:[#allocation2 + $0x1258] sm:$0xff] }
 0x20a   :  { %6804 = vmatprep.subr.bf16.mxu1 %v13248_v38  ;;  %v645_v38 = vld [vmem:[#allocation2 + $0x1260] sm:$0xff]  ;;  %v13360_v42 = vcombine.high %v636_v35, %v644_v36 }
 0x20b   :  { %6967 = vmatpush1.bf16.msra.mxu0 %v13233_v37  ;;  %v637_v37 = vld [vmem:[#allocation2 + $0x1220] sm:$0xff] }
 0x20c   :  { %6968 = vmatprep.subr.bf16.mxu0 %v13250_v39  ;;  %v13343_v39 = vcombine.low %v620_v27, %v628_v28  ;;  %v13362_v43 = vcombine.high %v637_v37, %v645_v38  ;;  %v13361_v52 = vcombine.low %v637_v37, %v645_v38  ;;  %v748_v38 = vld [vmem:[#allocation2 + $0x1598] sm:$0xff] }
 0x20d   :  { %6805 = vmatpush1.bf16.msra.mxu1 %v13247_v46  ;;  %v660_v46 = vld [vmem:[#allocation2 + $0x12d8] sm:$0xff] }
 0x20e   :  { %6806 = vmatprep.subr.bf16.mxu1 %v13264_v49  ;;  %v661_v49 = vld [vmem:[#allocation2 + $0x12e0] sm:$0xff]  ;;  %v13376_v54 = vcombine.high %v652_v45, %v660_v46 }
 0x20f   :  { %6969 = vmatpush1.bf16.msra.mxu0 %v13249_v48  ;;  %v653_v48 = vld [vmem:[#allocation2 + $0x12a0] sm:$0xff] }
 0x210   :  { %6970 = vmatprep.subr.bf16.mxu0 %v13266_v50  ;;  %v13359_v50 = vcombine.low %v636_v35, %v644_v36  ;;  %v13378_v55 = vcombine.high %v653_v48, %v661_v49  ;;  %v13377_v62 = vcombine.low %v653_v48, %v661_v49  ;;  %v764_v49 = vld [vmem:[#allocation2 + $0x1618] sm:$0xff] }
 0x211   :  { %6807 = vmatpush1.bf16.msra.mxu1 %v13263_v57  ;;  %v676_v57 = vld [vmem:[#allocation2 + $0x1358] sm:$0xff] }
 0x212   :  { %6808 = vmatprep.subr.bf16.mxu1 %v13280_v60  ;;  %v677_v60 = vld [vmem:[#allocation2 + $0x1360] sm:$0xff]  ;;  %v13392_v1 = vcombine.high %v668_v56, %v676_v57 }
 0x213   :  { %6971 = vmatpush1.bf16.msra.mxu0 %v13265_v58  ;;  %v669_v58 = vld [vmem:[#allocation2 + $0x1320] sm:$0xff] }
 0x214   :  { %6972 = vmatprep.subr.bf16.mxu0 %v13282_v61  ;;  %v13375_v61 = vcombine.low %v652_v45, %v660_v46  ;;  %v13394_v2 = vcombine.high %v669_v58, %v677_v60  ;;  %v13393_v11 = vcombine.low %v669_v58, %v677_v60  ;;  %v780_v60 = vld [vmem:[#allocation2 + $0x1698] sm:$0xff] }
 0x215   :  { %6809 = vmatpush1.bf16.msra.mxu1 %v13279_v6  ;;  %v692_v6 = vld [vmem:[#allocation2 + $0x13d8] sm:$0xff] }
 0x216   :  { %6819 = vmatprep.subr.bf16.mxu1 %v13296_v9  ;;  %v693_v9 = vld [vmem:[#allocation2 + $0x13e0] sm:$0xff]  ;;  %v13408_v12 = vcombine.high %v684_v4, %v692_v6 }
 0x217   :  { %6973 = vmatpush1.bf16.msra.mxu0 %v13281_v7  ;;  %v685_v7 = vld [vmem:[#allocation2 + $0x13a0] sm:$0xff] }
 0x218   :  { %6983 = vmatprep.subr.bf16.mxu0 %v13298_v10  ;;  %6811 = vmatmul.mubr.bf16.vlgmr.msra.gmra.mrb[8].mxu1 %v15333_v30  ;;  %v13391_v10 = vcombine.low %v668_v56, %v676_v57  ;;  %v13410_v13 = vcombine.high %v685_v7, %v693_v9  ;;  %v13409_v19 = vcombine.low %v685_v7, %v693_v9  ;;  %v796_v9 = vld [vmem:[#allocation2 + $0x1718] sm:$0xff] }
 0x219   :  { %6820 = vmatpush1.bf16.msra.mxu1 %v13295_v15  ;;  %6851 = vmatprep.mubr.bf16.mxu1 %v15324_v8  ;;  %v708_v15 = vld [vmem:[#allocation2 + $0x1458] sm:$0xff] }
 0x21a   :  { %6975 = vmatmul.mubr.bf16.vlgmr.msra.gmra.mrb[8].mxu0 %v15333_v30  ;;  %6821 = vmatprep.subr.bf16.mxu1 %v13312_v17  ;;  %v709_v17 = vld [vmem:[#allocation2 + $0x1460] sm:$0xff]  ;;  %v13424_v20 = vcombine.high %v700_v14, %v708_v15 }
 0x21b   :  { %6984 = vmatpush1.bf16.msra.mxu0 %v13297_v16  ;;  %7015 = vmatprep.mubr.bf16.mxu0 %v15324_v8  ;;  %v701_v16 = vld [vmem:[#allocation2 + $0x1420] sm:$0xff] }
 0x21c   :  { %6985 = vmatprep.subr.bf16.mxu0 %v13314_v18  ;;  %v13407_v18 = vcombine.low %v684_v4, %v692_v6  ;;  %v13426_v21 = vcombine.high %v701_v16, %v709_v17  ;;  %v13425_v27 = vcombine.low %v701_v16, %v709_v17  ;;  %v812_v17 = vld [vmem:[#allocation2 + $0x1798] sm:$0xff] }
 0x21d   :  { %6822 = vmatpush1.bf16.msra.mxu1 %v13311_v23  ;;  %v724_v23 = vld [vmem:[#allocation2 + $0x14d8] sm:$0xff] }
 0x21e   :  { %6823 = vmatprep.subr.bf16.mxu1 %v13328_v25  ;;  %v725_v25 = vld [vmem:[#allocation2 + $0x14e0] sm:$0xff]  ;;  %v13440_v28 = vcombine.high %v716_v22, %v724_v23 }
 0x21f   :  { %6986 = vmatpush1.bf16.msra.mxu0 %v13313_v24  ;;  %v717_v24 = vld [vmem:[#allocation2 + $0x14a0] sm:$0xff] }
 0x220   :  { %6987 = vmatprep.subr.bf16.mxu0 %v13330_v26  ;;  %v13423_v26 = vcombine.low %v700_v14, %v708_v15  ;;  %v13442_v29 = vcombine.high %v717_v24, %v725_v25  ;;  %v13441_v35 = vcombine.low %v717_v24, %v725_v25  ;;  %v828_v25 = vld [vmem:[#allocation2 + $0x1818] sm:$0xff] }
 0x221   :  { %6824 = vmatpush1.bf16.msra.mxu1 %v13327_v59  ;;  %v740_v59 = vld [vmem:[#allocation2 + $0x1558] sm:$0xff] }
 0x222   :  { %6825 = vmatprep.subr.bf16.mxu1 %v13344_v33  ;;  %v741_v33 = vld [vmem:[#allocation2 + $0x1560] sm:$0xff]  ;;  %v13456_v36 = vcombine.high %v732_v31, %v740_v59 }
 0x223   :  { %6988 = vmatpush1.bf16.msra.mxu0 %v13329_v0  ;;  %v733_v0 = vld [vmem:[#allocation2 + $0x1520] sm:$0xff] }
 0x224   :  { %6989 = vmatprep.subr.bf16.mxu0 %v13346_v34  ;;  %v13439_v34 = vcombine.low %v716_v22, %v724_v23  ;;  %v13458_v37 = vcombine.high %v733_v0, %v741_v33  ;;  %v13457_v45 = vcombine.low %v733_v0, %v741_v33  ;;  %v844_v33 = vld [vmem:[#allocation2 + $0x1898] sm:$0xff] }
 0x225   :  { %6826 = vmatpush1.bf16.msra.mxu1 %v13343_v39  ;;  %v756_v39 = vld [vmem:[#allocation2 + $0x15d8] sm:$0xff] }
 0x226   :  { %6827 = vmatprep.subr.bf16.mxu1 %v13360_v42  ;;  %v757_v42 = vld [vmem:[#allocation2 + $0x15e0] sm:$0xff]  ;;  %v13472_v46 = vcombine.high %v748_v38, %v756_v39 }
 0x227   :  { %6990 = vmatpush1.bf16.msra.mxu0 %v13345_v41  ;;  %v749_v41 = vld [vmem:[#allocation2 + $0x15a0] sm:$0xff] }
 0x228   :  { %6991 = vmatprep.subr.bf16.mxu0 %v13362_v43  ;;  %v13455_v43 = vcombine.low %v732_v31, %v740_v59  ;;  %v13474_v48 = vcombine.high %v749_v41, %v757_v42  ;;  %v13473_v56 = vcombine.low %v749_v41, %v757_v42  ;;  %v860_v42 = vld [vmem:[#allocation2 + $0x1918] sm:$0xff] }
 0x229   :  { %6828 = vmatpush1.bf16.msra.mxu1 %v13359_v50  ;;  %v772_v50 = vld [vmem:[#allocation2 + $0x1658] sm:$0xff] }
 0x22a   :  { %6829 = vmatprep.subr.bf16.mxu1 %v13376_v54  ;;  %v773_v54 = vld [vmem:[#allocation2 + $0x1660] sm:$0xff]  ;;  %v13488_v57 = vcombine.high %v764_v49, %v772_v50 }
 0x22b   :  { %6992 = vmatpush1.bf16.msra.mxu0 %v13361_v52  ;;  %v765_v52 = vld [vmem:[#allocation2 + $0x1620] sm:$0xff] }
 0x22c   :  { %6993 = vmatprep.subr.bf16.mxu0 %v13378_v55  ;;  %v13471_v55 = vcombine.low %v748_v38, %v756_v39  ;;  %v13490_v58 = vcombine.high %v765_v52, %v773_v54  ;;  %v13489_v4 = vcombine.low %v765_v52, %v773_v54  ;;  %v876_v54 = vld [vmem:[#allocation2 + $0x1998] sm:$0xff] }
 0x22d   :  { %6830 = vmatpush1.bf16.msra.mxu1 %v13375_v61  ;;  %v788_v61 = vld [vmem:[#allocation2 + $0x16d8] sm:$0xff] }
 0x22e   :  { %6831 = vmatprep.subr.bf16.mxu1 %v13392_v1  ;;  %v789_v1 = vld [vmem:[#allocation2 + $0x16e0] sm:$0xff]  ;;  %v13504_v6 = vcombine.high %v780_v60, %v788_v61 }
 0x22f   :  { %6994 = vmatpush1.bf16.msra.mxu0 %v13377_v62  ;;  %v781_v62 = vld [vmem:[#allocation2 + $0x16a0] sm:$0xff] }
 0x230   :  { %6995 = vmatprep.subr.bf16.mxu0 %v13394_v2  ;;  %v13487_v2 = vcombine.low %v764_v49, %v772_v50  ;;  %v13506_v7 = vcombine.high %v781_v62, %v789_v1  ;;  %v13505_v14 = vcombine.low %v781_v62, %v789_v1  ;;  %v892_v1 = vld [vmem:[#allocation2 + $0x1a18] sm:$0xff] }
 0x231   :  { %6832 = vmatpush1.bf16.msra.mxu1 %v13391_v10  ;;  %v804_v10 = vld [vmem:[#allocation2 + $0x1758] sm:$0xff] }
 0x232   :  { %6833 = vmatprep.subr.bf16.mxu1 %v13408_v12  ;;  %v805_v12 = vld [vmem:[#allocation2 + $0x1760] sm:$0xff]  ;;  %v13520_v15 = vcombine.high %v796_v9, %v804_v10 }
 0x233   :  { %6996 = vmatpush1.bf16.msra.mxu0 %v13393_v11  ;;  %v797_v11 = vld [vmem:[#allocation2 + $0x1720] sm:$0xff] }
 0x234   :  { %6997 = vmatprep.subr.bf16.mxu0 %v13410_v13  ;;  %v13503_v13 = vcombine.low %v780_v60, %v788_v61  ;;  %v13522_v16 = vcombine.high %v797_v11, %v805_v12  ;;  %v13521_v22 = vcombine.low %v797_v11, %v805_v12  ;;  %v908_v12 = vld [vmem:[#allocation2 + $0x1a98] sm:$0xff] }
 0x235   :  { %6834 = vmatpush1.bf16.msra.mxu1 %v13407_v18  ;;  %v820_v18 = vld [vmem:[#allocation2 + $0x17d8] sm:$0xff] }
 0x236   :  { %6835 = vmatprep.subr.bf16.mxu1 %v13424_v20  ;;  %v821_v20 = vld [vmem:[#allocation2 + $0x17e0] sm:$0xff]  ;;  %v13536_v23 = vcombine.high %v812_v17, %v820_v18 }
 0x237   :  { %6998 = vmatpush1.bf16.msra.mxu0 %v13409_v19  ;;  %v813_v19 = vld [vmem:[#allocation2 + $0x17a0] sm:$0xff] }
 0x238   :  { %6999 = vmatprep.subr.bf16.mxu0 %v13426_v21  ;;  %v13519_v21 = vcombine.low %v796_v9, %v804_v10  ;;  %v13538_v24 = vcombine.high %v813_v19, %v821_v20  ;;  %v13537_v31 = vcombine.low %v813_v19, %v821_v20  ;;  %v924_v20 = vld [vmem:[#allocation2 + $0x1b18] sm:$0xff] }
 0x239   :  { %6836 = vmatpush1.bf16.msra.mxu1 %v13423_v26  ;;  %v836_v26 = vld [vmem:[#allocation2 + $0x1858] sm:$0xff] }
 0x23a   :  { %6837 = vmatprep.subr.bf16.mxu1 %v13440_v28  ;;  %v837_v28 = vld [vmem:[#allocation2 + $0x1860] sm:$0xff]  ;;  %v13552_v59 = vcombine.high %v828_v25, %v836_v26 }
 0x23b   :  { %7000 = vmatpush1.bf16.msra.mxu0 %v13425_v27  ;;  %v829_v27 = vld [vmem:[#allocation2 + $0x1820] sm:$0xff] }
 0x23c   :  { %7001 = vmatprep.subr.bf16.mxu0 %v13442_v29  ;;  %v13535_v29 = vcombine.low %v812_v17, %v820_v18  ;;  %v13554_v0 = vcombine.high %v829_v27, %v837_v28  ;;  %v13553_v38 = vcombine.low %v829_v27, %v837_v28 }
 0x23d   :  { %6838 = vmatpush1.bf16.msra.mxu1 %v13439_v34  ;;  %v852_v34 = vld [vmem:[#allocation2 + $0x18d8] sm:$0xff] }
 0x23e   :  { %6839 = vmatprep.subr.bf16.mxu1 %v13456_v36  ;;  %v853_v36 = vld [vmem:[#allocation2 + $0x18e0] sm:$0xff]  ;;  %v13568_v39 = vcombine.high %v844_v33, %v852_v34 }
 0x23f   :  { %7002 = vmatpush1.bf16.msra.mxu0 %v13441_v35  ;;  %v845_v35 = vld [vmem:[#allocation2 + $0x18a0] sm:$0xff] }
 0x240   :  { %7003 = vmatprep.subr.bf16.mxu0 %v13458_v37  ;;  %v13551_v37 = vcombine.low %v828_v25, %v836_v26  ;;  %v13570_v41 = vcombine.high %v845_v35, %v853_v36  ;;  %v13569_v49 = vcombine.low %v845_v35, %v853_v36 }
 0x241   :  { %6840 = vmatpush1.bf16.msra.mxu1 %v13455_v43  ;;  %v868_v43 = vld [vmem:[#allocation2 + $0x1958] sm:$0xff] }
 0x242   :  { %6841 = vmatprep.subr.bf16.mxu1 %v13472_v46  ;;  %v869_v46 = vld [vmem:[#allocation2 + $0x1960] sm:$0xff]  ;;  %v13584_v50 = vcombine.high %v860_v42, %v868_v43 }
 0x243   :  { %7004 = vmatpush1.bf16.msra.mxu0 %v13457_v45  ;;  %v861_v45 = vld [vmem:[#allocation2 + $0x1920] sm:$0xff] }
 0x244   :  { %7005 = vmatprep.subr.bf16.mxu0 %v13474_v48  ;;  %v13567_v48 = vcombine.low %v844_v33, %v852_v34  ;;  %v13586_v52 = vcombine.high %v861_v45, %v869_v46  ;;  %v13585_v60 = vcombine.low %v861_v45, %v869_v46  ;;  %v941_v33 = vld [vmem:[#allocation2 + $0x1ba0] sm:$0xff]  ;;  %v956_v46 = vld [vmem:[#allocation2 + $0x1c18] sm:$0xff] }
 0x245   :  { %6842 = vmatpush1.bf16.msra.mxu1 %v13471_v55  ;;  %v884_v55 = vld [vmem:[#allocation2 + $0x19d8] sm:$0xff]  ;;  %v949_v34 = vld [vmem:[#allocation2 + $0x1be0] sm:$0xff] }
 0x246   :  { %6843 = vmatprep.subr.bf16.mxu1 %v13488_v57  ;;  %v885_v57 = vld [vmem:[#allocation2 + $0x19e0] sm:$0xff]  ;;  %v13600_v61 = vcombine.high %v876_v54, %v884_v55  ;;  %v13666_v45 = vcombine.high %v941_v33, %v949_v34 }
 0x247   :  { %7006 = vmatpush1.bf16.msra.mxu0 %v13473_v56  ;;  %v877_v56 = vld [vmem:[#allocation2 + $0x19a0] sm:$0xff] }
 0x248   :  { %7007 = vmatprep.subr.bf16.mxu0 %v13490_v58  ;;  %v13583_v58 = vcombine.low %v860_v42, %v868_v43  ;;  %v13602_v62 = vcombine.high %v877_v56, %v885_v57  ;;  %v13601_v9 = vcombine.low %v877_v56, %v885_v57  ;;  %v972_v57 = vld [vmem:[#allocation2 + $0x1c98] sm:$0xff] }
 0x249   :  { %6844 = vmatpush1.bf16.msra.mxu1 %v13487_v2  ;;  %v900_v2 = vld [vmem:[#allocation2 + $0x1a58] sm:$0xff] }
 0x24a   :  { %6845 = vmatprep.subr.bf16.mxu1 %v13504_v6  ;;  %v901_v6 = vld [vmem:[#allocation2 + $0x1a60] sm:$0xff]  ;;  %v13616_v10 = vcombine.high %v892_v1, %v900_v2 }
 0x24b   :  { %7008 = vmatpush1.bf16.msra.mxu0 %v13489_v4  ;;  %v893_v4 = vld [vmem:[#allocation2 + $0x1a20] sm:$0xff] }
 0x24c   :  { %7009 = vmatprep.subr.bf16.mxu0 %v13506_v7  ;;  %v13599_v7 = vcombine.low %v876_v54, %v884_v55  ;;  %v13618_v11 = vcombine.high %v893_v4, %v901_v6  ;;  %v13617_v17 = vcombine.low %v893_v4, %v901_v6  ;;  %v13665_v54 = vcombine.low %v941_v33, %v949_v34  ;;  %v988_v6 = vld [vmem:[#allocation2 + $0x1d18] sm:$0xff] }
 0x24d   :  { %6846 = vmatpush1.bf16.msra.mxu1 %v13503_v13  ;;  %v916_v13 = vld [vmem:[#allocation2 + $0x1ad8] sm:$0xff] }
 0x24e   :  { %6847 = vmatprep.subr.bf16.mxu1 %v13520_v15  ;;  %v917_v15 = vld [vmem:[#allocation2 + $0x1ae0] sm:$0xff]  ;;  %v13632_v18 = vcombine.high %v908_v12, %v916_v13  ;;  %v1036_v34 = vld [vmem:[#allocation2 + $0x1e98] sm:$0xff] }
 0x24f   :  { %7010 = vmatpush1.bf16.msra.mxu0 %v13505_v14  ;;  %v909_v14 = vld [vmem:[#allocation2 + $0x1aa0] sm:$0xff] }
 0x250   :  { %7011 = vmatprep.subr.bf16.mxu0 %v13522_v16  ;;  %v13615_v16 = vcombine.low %v892_v1, %v900_v2  ;;  %v13634_v19 = vcombine.high %v909_v14, %v917_v15  ;;  %v13633_v25 = vcombine.low %v909_v14, %v917_v15  ;;  %v1004_v15 = vld [vmem:[#allocation2 + $0x1d98] sm:$0xff] }
 0x251   :  { %6848 = vmatpush1.bf16.msra.mxu1 %v13519_v21  ;;  %v932_v21 = vld [vmem:[#allocation2 + $0x1b58] sm:$0xff] }
 0x252   :  { %6849 = vmatprep.subr.bf16.mxu1 %v13536_v23  ;;  %v933_v23 = vld [vmem:[#allocation2 + $0x1b60] sm:$0xff]  ;;  %v13648_v26 = vcombine.high %v924_v20, %v932_v21 }
 0x253   :  { %7012 = vmatpush1.bf16.msra.mxu0 %v13521_v22  ;;  %v925_v22 = vld [vmem:[#allocation2 + $0x1b20] sm:$0xff] }
 0x254   :  { %7013 = vmatprep.subr.bf16.mxu0 %v13538_v24  ;;  %v13631_v24 = vcombine.low %v908_v12, %v916_v13  ;;  %v13650_v28 = vcombine.high %v925_v22, %v933_v23 }
 0x255   :  { %6850 = vmatpush1.bf16.msra.mxu1 %v13535_v29  ;;  %v940_v29 = vld [vmem:[#allocation2 + $0x1b98] sm:$0xff] }
 0x256   :  { %6860 = vmatprep.subr.bf16.mxu1 %v13552_v59 }
 0x257   :  { %7014 = vmatpush1.bf16.msra.mxu0 %v13537_v31  ;;  %v948_v31 = vld [vmem:[#allocation2 + $0x1bd8] sm:$0xff] }
 0x258   :  { %7024 = vmatprep.subr.bf16.mxu0 %v13554_v0  ;;  %6852 = vmatmul.mubr.bf16.vlgmr.msra.gmra.mrb[8].mxu1 %v15316_v3  ;;  %v13664_v42 = vcombine.high %v940_v29, %v948_v31 }
 0x259   :  { %6861 = vmatpush1.bf16.msra.mxu1 %v13551_v37  ;;  %6892 = vmatprep.mubr.bf16.mxu1 %v15345_v53  ;;  %v13647_v37 = vcombine.low %v924_v20, %v932_v21 }
 0x25a   :  { %7016 = vmatmul.mubr.bf16.vlgmr.msra.gmra.mrb[8].mxu0 %v15316_v3  ;;  %6862 = vmatprep.subr.bf16.mxu1 %v13568_v39 }
 0x25b   :  { %7025 = vmatpush1.bf16.msra.mxu0 %v13553_v38  ;;  %7056 = vmatprep.mubr.bf16.mxu0 %v15345_v53 }
 0x25c   :  { %7026 = vmatprep.subr.bf16.mxu0 %v13570_v41  ;;  %v13649_v41 = vcombine.low %v925_v22, %v933_v23  ;;  %v1020_v23 = vld [vmem:[#allocation2 + $0x1e18] sm:$0xff] }
 0x25d   :  { %6863 = vmatpush1.bf16.msra.mxu1 %v13567_v48  ;;  %v964_v48 = vld [vmem:[#allocation2 + $0x1c58] sm:$0xff] }
 0x25e   :  { %6864 = vmatprep.subr.bf16.mxu1 %v13584_v50  ;;  %v965_v50 = vld [vmem:[#allocation2 + $0x1c60] sm:$0xff]  ;;  %v13680_v55 = vcombine.high %v956_v46, %v964_v48 }
 0x25f   :  { %7027 = vmatpush1.bf16.msra.mxu0 %v13569_v49  ;;  %v957_v49 = vld [vmem:[#allocation2 + $0x1c20] sm:$0xff] }
 0x260   :  { %7028 = vmatprep.subr.bf16.mxu0 %v13586_v52  ;;  %v13663_v52 = vcombine.low %v940_v29, %v948_v31  ;;  %v13682_v56 = vcombine.high %v957_v49, %v965_v50  ;;  %v13681_v1 = vcombine.low %v957_v49, %v965_v50  ;;  %v1061_v49 = vld [vmem:[#allocation2 + $0x1f60] sm:$0xff] }
 0x261   :  { %6865 = vmatpush1.bf16.msra.mxu1 %v13583_v58  ;;  %v980_v58 = vld [vmem:[#allocation2 + $0x1cd8] sm:$0xff] }
 0x262   :  { %6866 = vmatprep.subr.bf16.mxu1 %v13600_v61  ;;  %v981_v61 = vld [vmem:[#allocation2 + $0x1ce0] sm:$0xff]  ;;  %v13696_v2 = vcombine.high %v972_v57, %v980_v58 }
 0x263   :  { %7029 = vmatpush1.bf16.msra.mxu0 %v13585_v60  ;;  %v973_v60 = vld [vmem:[#allocation2 + $0x1ca0] sm:$0xff] }
 0x264   :  { %7030 = vmatprep.subr.bf16.mxu0 %v13602_v62  ;;  %v13679_v62 = vcombine.low %v956_v46, %v964_v48  ;;  %v13698_v4 = vcombine.high %v973_v60, %v981_v61  ;;  %v13697_v12 = vcombine.low %v973_v60, %v981_v61  ;;  %v1060_v46 = vld [vmem:[#allocation2 + $0x1f58] sm:$0xff]  ;;  %v1053_v48 = vld [vmem:[#allocation2 + $0x1f20] sm:$0xff] }
 0x265   :  { %6867 = vmatpush1.bf16.msra.mxu1 %v13599_v7  ;;  %v996_v7 = vld [vmem:[#allocation2 + $0x1d58] sm:$0xff]  ;;  %v1077_v60 = vld [vmem:[#allocation2 + $0x1fe0] sm:$0xff] }
 0x266   :  { %6868 = vmatprep.subr.bf16.mxu1 %v13616_v10  ;;  %v997_v10 = vld [vmem:[#allocation2 + $0x1d60] sm:$0xff]  ;;  %v13712_v13 = vcombine.high %v988_v6, %v996_v7 }
 0x267   :  { %7031 = vmatpush1.bf16.msra.mxu0 %v13601_v9  ;;  %v989_v9 = vld [vmem:[#allocation2 + $0x1d20] sm:$0xff] }
 0x268   :  { %7032 = vmatprep.subr.bf16.mxu0 %v13618_v11  ;;  %v13695_v11 = vcombine.low %v972_v57, %v980_v58  ;;  %v13714_v14 = vcombine.high %v989_v9, %v997_v10  ;;  %v13713_v20 = vcombine.low %v989_v9, %v997_v10  ;;  %v1076_v57 = vld [vmem:[#allocation2 + $0x1fd8] sm:$0xff]  ;;  %v1069_v58 = vld [vmem:[#allocation2 + $0x1fa0] sm:$0xff]  ;;  %v71_v9 = vld [vmem:[#allocation2 + $0x70] sm:$0xff] }
 0x269   :  { %6869 = vmatpush1.bf16.msra.mxu1 %v13615_v16  ;;  %v1012_v16 = vld [vmem:[#allocation2 + $0x1dd8] sm:$0xff] }
 0x26a   :  { %6870 = vmatprep.subr.bf16.mxu1 %v13632_v18  ;;  %v1013_v18 = vld [vmem:[#allocation2 + $0x1de0] sm:$0xff]  ;;  %v13728_v21 = vcombine.high %v1004_v15, %v1012_v16 }
 0x26b   :  { %7033 = vmatpush1.bf16.msra.mxu0 %v13617_v17  ;;  %v15386_v27 = vpop.f32.mrb[4].mxu1  ;;  %v1005_v17 = vld [vmem:[#allocation2 + $0x1da0] sm:$0xff] }
 0x26c   :  { %7034 = vmatprep.subr.bf16.mxu0 %v13634_v19  ;;  %v15390_v0 = vpop.f32.mrb[5].mxu1  ;;  %v13711_v19 = vcombine.low %v988_v6, %v996_v7  ;;  %v13730_v22 = vcombine.high %v1005_v17, %v1013_v18  ;;  %v13729_v29 = vcombine.low %v1005_v17, %v1013_v18  ;;  %v70_v6 = vld [vmem:[#allocation2 + $0x68] sm:$0xff]  ;;  %v63_v7 = vld [vmem:[#allocation2 + $0x30] sm:$0xff] }
 0x26d   :  { %v15388_v59 = vpop.f32.mrb[4].mxu0  ;;  %v6570_v36 = vpop.f32.mrb[6].mxu1  ;;  %6871 = vmatpush1.bf16.msra.mxu1 %v13631_v24  ;;  %v1028_v24 = vld [vmem:[#allocation2 + $0x1e58] sm:$0xff]  ;;  %v87_v17 = vld [vmem:[#allocation2 + $0xf0] sm:$0xff] }
 0x26e   :  { %v15392_v35 = vpop.f32.mrb[5].mxu0  ;;  %v6571_v39 = vpop.f32.mrb[7].mxu1  ;;  %6872 = vmatprep.subr.bf16.mxu1 %v13648_v26  ;;  %v1029_v26 = vld [vmem:[#allocation2 + $0x1e60] sm:$0xff]  ;;  %v13744_v31 = vcombine.high %v1020_v23, %v1028_v24  ;;  %v1044_v36 = vld [vmem:[#allocation2 + $0x1ed8] sm:$0xff] }
 0x26f   :  { %v6734_v38 = vpop.f32.mrb[6].mxu0  ;;  %7035 = vmatpush1.bf16.msra.mxu0 %v13633_v25  ;;  %v1021_v25 = vld [vmem:[#allocation2 + $0x1e20] sm:$0xff]  ;;  %v13743_v39 = vcombine.low %v1020_v23, %v1028_v24  ;;  %v13759_v50 = vcombine.low %v1036_v34, %v1044_v36  ;;  %v102_v23 = vld [vmem:[#allocation2 + $0x168] sm:$0xff]  ;;  %v95_v24 = vld [vmem:[#allocation2 + $0x130] sm:$0xff] }
 0x270   :  { %v6735_v43 = vpop.f32.mrb[7].mxu0  ;;  %7036 = vmatprep.subr.bf16.mxu0 %v13650_v28  ;;  %v13727_v28 = vcombine.low %v1004_v15, %v1012_v16  ;;  %v13746_v33 = vcombine.high %v1021_v25, %v1029_v26  ;;  %v1045_v38 = vld [vmem:[#allocation2 + $0x1ee0] sm:$0xff]  ;;  %v86_v15 = vld [vmem:[#allocation2 + $0xe8] sm:$0xff]  ;;  %v79_v16 = vld [vmem:[#allocation2 + $0xb0] sm:$0xff] }
 0x271   :  { %6873 = vmatpush1.bf16.msra.mxu1 %v13647_v37  ;;  %v1037_v37 = vld [vmem:[#allocation2 + $0x1ea0] sm:$0xff] }
 0x272   :  { %6874 = vmatprep.subr.bf16.mxu1 %v13664_v42  ;;  %v13760_v42 = vcombine.high %v1036_v34, %v1044_v36  ;;  %v13762_v43 = vcombine.high %v1037_v37, %v1045_v38  ;;  %v118_v34 = vld [vmem:[#allocation2 + $0x1e8] sm:$0xff]  ;;  %v111_v36 = vld [vmem:[#allocation2 + $0x1b0] sm:$0xff] }
 0x273   :  { %7037 = vmatpush1.bf16.msra.mxu0 %v13649_v41  ;;  %v13745_v41 = vcombine.low %v1021_v25, %v1029_v26  ;;  %v103_v25 = vld [vmem:[#allocation2 + $0x170] sm:$0xff] }
 0x274   :  { %7038 = vmatprep.subr.bf16.mxu0 %v13666_v45  ;;  %v1052_v45 = vld [vmem:[#allocation2 + $0x1f18] sm:$0xff] }
 0x275   :  { %6875 = vmatpush1.bf16.msra.mxu1 %v13663_v52  ;;  %v13761_v52 = vcombine.low %v1037_v37, %v1045_v38  ;;  %v13775_v61 = vcombine.low %v1052_v45, %v1060_v46  ;;  %v119_v37 = vld [vmem:[#allocation2 + $0x1f0] sm:$0xff] }
 0x276   :  { %6876 = vmatprep.subr.bf16.mxu1 %v13680_v55  ;;  %v13778_v55 = vcombine.high %v1053_v48, %v1061_v49 }
 0x277   :  { %7039 = vmatpush1.bf16.msra.mxu0 %v13665_v54  ;;  %v13776_v54 = vcombine.high %v1052_v45, %v1060_v46  ;;  %v134_v45 = vld [vmem:[#allocation2 + $0x268] sm:$0xff]  ;;  %v127_v46 = vld [vmem:[#allocation2 + $0x230] sm:$0xff] }
 0x278   :  { %7040 = vmatprep.subr.bf16.mxu0 %v13682_v56  ;;  %v1068_v56 = vld [vmem:[#allocation2 + $0x1f98] sm:$0xff] }
 0x279   :  { %6877 = vmatpush1.bf16.msra.mxu1 %v13679_v62  ;;  %v13777_v62 = vcombine.low %v1053_v48, %v1061_v49  ;;  %v13791_v10 = vcombine.low %v1068_v56, %v1076_v57  ;;  %v135_v48 = vld [vmem:[#allocation2 + $0x270] sm:$0xff] }
 0x27a   :  { %6878 = vmatprep.subr.bf16.mxu1 %v13696_v2  ;;  %v13794_v2 = vcombine.high %v1069_v58, %v1077_v60 }
 0x27b   :  { %7041 = vmatpush1.bf16.msra.mxu0 %v13681_v1  ;;  %v13792_v1 = vcombine.high %v1068_v56, %v1076_v57  ;;  %v150_v56 = vld [vmem:[#allocation2 + $0x2e8] sm:$0xff]  ;;  %v143_v57 = vld [vmem:[#allocation2 + $0x2b0] sm:$0xff] }
 0x27c   :  { %7042 = vmatprep.subr.bf16.mxu0 %v13698_v4  ;;  %v62_v4 = vld [vmem:[#allocation2 + $0x28] sm:$0xff] }
 0x27d   :  { %6879 = vmatpush1.bf16.msra.mxu1 %v13695_v11  ;;  %v13793_v11 = vcombine.low %v1069_v58, %v1077_v60  ;;  %v12787_v18 = vcombine.low %v62_v4, %v70_v6  ;;  %v151_v58 = vld [vmem:[#allocation2 + $0x2f0] sm:$0xff] }
 0x27e   :  { %6880 = vmatprep.subr.bf16.mxu1 %v13712_v13  ;;  %v12790_v13 = vcombine.high %v63_v7, %v71_v9 }
 0x27f   :  { %7043 = vmatpush1.bf16.msra.mxu0 %v13697_v12  ;;  %v12788_v12 = vcombine.high %v62_v4, %v70_v6  ;;  %v166_v4 = vld [vmem:[#allocation2 + $0x368] sm:$0xff]  ;;  %v159_v6 = vld [vmem:[#allocation2 + $0x330] sm:$0xff] }
 0x280   :  { %7044 = vmatprep.subr.bf16.mxu0 %v13714_v14  ;;  %v78_v14 = vld [vmem:[#allocation2 + $0xa8] sm:$0xff] }
 0x281   :  { %6881 = vmatpush1.bf16.msra.mxu1 %v13711_v19  ;;  %v12789_v19 = vcombine.low %v63_v7, %v71_v9  ;;  %v12803_v26 = vcombine.low %v78_v14, %v86_v15  ;;  %v167_v7 = vld [vmem:[#allocation2 + $0x370] sm:$0xff] }
 0x282   :  { %6882 = vmatprep.subr.bf16.mxu1 %v13728_v21  ;;  %v12806_v21 = vcombine.high %v79_v16, %v87_v17 }
 0x283   :  { %7045 = vmatpush1.bf16.msra.mxu0 %v13713_v20  ;;  %v12804_v20 = vcombine.high %v78_v14, %v86_v15  ;;  %v182_v14 = vld [vmem:[#allocation2 + $0x3e8] sm:$0xff]  ;;  %v175_v15 = vld [vmem:[#allocation2 + $0x3b0] sm:$0xff] }
 0x284   :  { %7046 = vmatprep.subr.bf16.mxu0 %v13730_v22  ;;  %v94_v22 = vld [vmem:[#allocation2 + $0x128] sm:$0xff] }
 0x285   :  { %6883 = vmatpush1.bf16.msra.mxu1 %v13727_v28  ;;  %v12805_v28 = vcombine.low %v79_v16, %v87_v17  ;;  %v12819_v38 = vcombine.low %v94_v22, %v102_v23  ;;  %v183_v16 = vld [vmem:[#allocation2 + $0x3f0] sm:$0xff] }
 0x286   :  { %6884 = vmatprep.subr.bf16.mxu1 %v13744_v31  ;;  %v12822_v31 = vcombine.high %v95_v24, %v103_v25 }
 0x287   :  { %7047 = vmatpush1.bf16.msra.mxu0 %v13729_v29  ;;  %v12820_v29 = vcombine.high %v94_v22, %v102_v23  ;;  %v198_v22 = vld [vmem:[#allocation2 + $0x468] sm:$0xff]  ;;  %v191_v23 = vld [vmem:[#allocation2 + $0x430] sm:$0xff] }
 0x288   :  { %7048 = vmatprep.subr.bf16.mxu0 %v13746_v33  ;;  %v110_v33 = vld [vmem:[#allocation2 + $0x1a8] sm:$0xff] }
 0x289   :  { %6885 = vmatpush1.bf16.msra.mxu1 %v13743_v39  ;;  %v12821_v39 = vcombine.low %v95_v24, %v103_v25  ;;  %v12835_v49 = vcombine.low %v110_v33, %v118_v34  ;;  %v199_v24 = vld [vmem:[#allocation2 + $0x470] sm:$0xff] }
 0x28a   :  { %6886 = vmatprep.subr.bf16.mxu1 %v13760_v42  ;;  %v12838_v42 = vcombine.high %v111_v36, %v119_v37 }
 0x28b   :  { %7049 = vmatpush1.bf16.msra.mxu0 %v13745_v41  ;;  %v12836_v41 = vcombine.high %v110_v33, %v118_v34  ;;  %v214_v33 = vld [vmem:[#allocation2 + $0x4e8] sm:$0xff]  ;;  %v207_v34 = vld [vmem:[#allocation2 + $0x4b0] sm:$0xff] }
 0x28c   :  { %7050 = vmatprep.subr.bf16.mxu0 %v13762_v43  ;;  %v126_v43 = vld [vmem:[#allocation2 + $0x228] sm:$0xff] }
 0x28d   :  { %6887 = vmatpush1.bf16.msra.mxu1 %v13759_v50  ;;  %v12837_v50 = vcombine.low %v111_v36, %v119_v37  ;;  %v12851_v60 = vcombine.low %v126_v43, %v134_v45  ;;  %v215_v36 = vld [vmem:[#allocation2 + $0x4f0] sm:$0xff] }
 0x28e   :  { %6888 = vmatprep.subr.bf16.mxu1 %v13776_v54  ;;  %v12854_v54 = vcombine.high %v127_v46, %v135_v48 }
 0x28f   :  { %7051 = vmatpush1.bf16.msra.mxu0 %v13761_v52  ;;  %v12852_v52 = vcombine.high %v126_v43, %v134_v45  ;;  %v230_v43 = vld [vmem:[#allocation2 + $0x568] sm:$0xff]  ;;  %v223_v45 = vld [vmem:[#allocation2 + $0x530] sm:$0xff] }
 0x290   :  { %7052 = vmatprep.subr.bf16.mxu0 %v13778_v55  ;;  %v142_v55 = vld [vmem:[#allocation2 + $0x2a8] sm:$0xff] }
 0x291   :  { %6889 = vmatpush1.bf16.msra.mxu1 %v13775_v61  ;;  %v12853_v61 = vcombine.low %v127_v46, %v135_v48  ;;  %v12867_v9 = vcombine.low %v142_v55, %v150_v56  ;;  %v231_v46 = vld [vmem:[#allocation2 + $0x570] sm:$0xff] }
 0x292   :  { %6890 = vmatprep.subr.bf16.mxu1 %v13792_v1  ;;  %v12870_v1 = vcombine.high %v143_v57, %v151_v58 }
 0x293   :  { %7053 = vmatpush1.bf16.msra.mxu0 %v13777_v62  ;;  %v12868_v62 = vcombine.high %v142_v55, %v150_v56  ;;  %v246_v55 = vld [vmem:[#allocation2 + $0x5e8] sm:$0xff]  ;;  %v239_v56 = vld [vmem:[#allocation2 + $0x5b0] sm:$0xff] }
 0x294   :  { %7054 = vmatprep.subr.bf16.mxu0 %v13794_v2  ;;  %v158_v2 = vld [vmem:[#allocation2 + $0x328] sm:$0xff] }
 0x295   :  { %6891 = vmatpush1.bf16.msra.mxu1 %v13791_v10  ;;  %v12869_v10 = vcombine.low %v143_v57, %v151_v58  ;;  %v12883_v17 = vcombine.low %v158_v2, %v166_v4  ;;  %v247_v57 = vld [vmem:[#allocation2 + $0x5f0] sm:$0xff] }
 0x296   :  { %7065 = vmatprep.subr.bf16.mxu1 %v12788_v12  ;;  %v12886_v12 = vcombine.high %v159_v6, %v167_v7 }
 0x297   :  { %7055 = vmatpush1.bf16.msra.mxu0 %v13793_v11  ;;  %v12884_v11 = vcombine.high %v158_v2, %v166_v4  ;;  %v262_v2 = vld [vmem:[#allocation2 + $0x668] sm:$0xff]  ;;  %v255_v4 = vld [vmem:[#allocation2 + $0x630] sm:$0xff] }
 0x298   :  { %7229 = vmatprep.subr.bf16.mxu0 %v12790_v13  ;;  %6893 = vmatmul.mubr.bf16.vlgmr.msra.gmra.mrb[8].mxu1 %v15336_v32  ;;  %v174_v13 = vld [vmem:[#allocation2 + $0x3a8] sm:$0xff] }
 0x299   :  { %7066 = vmatpush1.bf16.msra.mxu1 %v12787_v18  ;;  %7097 = vmatprep.mubr.bf16.mxu1 %v15320_v5  ;;  %v12885_v18 = vcombine.low %v159_v6, %v167_v7  ;;  %v12899_v25 = vcombine.low %v174_v13, %v182_v14  ;;  %v263_v6 = vld [vmem:[#allocation2 + $0x670] sm:$0xff] }
 0x29a   :  { %7057 = vmatmul.mubr.bf16.vlgmr.msra.gmra.mrb[8].mxu0 %v15336_v32  ;;  %7067 = vmatprep.subr.bf16.mxu1 %v12804_v20  ;;  %v12902_v20 = vcombine.high %v175_v15, %v183_v16 }
 0x29b   :  { %7230 = vmatpush1.bf16.msra.mxu0 %v12789_v19  ;;  %7261 = vmatprep.mubr.bf16.mxu0 %v15320_v5  ;;  %v12900_v19 = vcombine.high %v174_v13, %v182_v14  ;;  %v278_v13 = vld [vmem:[#allocation2 + $0x6e8] sm:$0xff]  ;;  %v271_v14 = vld [vmem:[#allocation2 + $0x6b0] sm:$0xff] }
 0x29c   :  { %7231 = vmatprep.subr.bf16.mxu0 %v12806_v21  ;;  %v190_v21 = vld [vmem:[#allocation2 + $0x428] sm:$0xff] }
 0x29d   :  { %7068 = vmatpush1.bf16.msra.mxu1 %v12803_v26  ;;  %v12901_v26 = vcombine.low %v175_v15, %v183_v16  ;;  %v12915_v37 = vcombine.low %v190_v21, %v198_v22  ;;  %v279_v15 = vld [vmem:[#allocation2 + $0x6f0] sm:$0xff] }
 0x29e   :  { %7069 = vmatprep.subr.bf16.mxu1 %v12820_v29  ;;  %v12918_v29 = vcombine.high %v191_v23, %v199_v24 }
 0x29f   :  { %7232 = vmatpush1.bf16.msra.mxu0 %v12805_v28  ;;  %v12916_v28 = vcombine.high %v190_v21, %v198_v22  ;;  %v294_v21 = vld [vmem:[#allocation2 + $0x768] sm:$0xff]  ;;  %v287_v22 = vld [vmem:[#allocation2 + $0x730] sm:$0xff] }
 0x2a0   :  { %7233 = vmatprep.subr.bf16.mxu0 %v12822_v31  ;;  %v206_v31 = vld [vmem:[#allocation2 + $0x4a8] sm:$0xff] }
 0x2a1   :  { %7070 = vmatpush1.bf16.msra.mxu1 %v12819_v38  ;;  %v12917_v38 = vcombine.low %v191_v23, %v199_v24  ;;  %v12931_v48 = vcombine.low %v206_v31, %v214_v33  ;;  %v295_v23 = vld [vmem:[#allocation2 + $0x770] sm:$0xff] }
 0x2a2   :  { %7071 = vmatprep.subr.bf16.mxu1 %v12836_v41  ;;  %v12934_v41 = vcombine.high %v207_v34, %v215_v36 }
 0x2a3   :  { %7234 = vmatpush1.bf16.msra.mxu0 %v12821_v39  ;;  %v12932_v39 = vcombine.high %v206_v31, %v214_v33  ;;  %v310_v31 = vld [vmem:[#allocation2 + $0x7e8] sm:$0xff]  ;;  %v303_v33 = vld [vmem:[#allocation2 + $0x7b0] sm:$0xff] }
 0x2a4   :  { %7235 = vmatprep.subr.bf16.mxu0 %v12838_v42  ;;  %v222_v42 = vld [vmem:[#allocation2 + $0x528] sm:$0xff] }
 0x2a5   :  { %7072 = vmatpush1.bf16.msra.mxu1 %v12835_v49  ;;  %v12933_v49 = vcombine.low %v207_v34, %v215_v36  ;;  %v12947_v58 = vcombine.low %v222_v42, %v230_v43  ;;  %v311_v34 = vld [vmem:[#allocation2 + $0x7f0] sm:$0xff] }
 0x2a6   :  { %7073 = vmatprep.subr.bf16.mxu1 %v12852_v52  ;;  %v12950_v52 = vcombine.high %v223_v45, %v231_v46 }
 0x2a7   :  { %7236 = vmatpush1.bf16.msra.mxu0 %v12837_v50  ;;  %v12948_v50 = vcombine.high %v222_v42, %v230_v43  ;;  %v326_v42 = vld [vmem:[#allocation2 + $0x868] sm:$0xff]  ;;  %v319_v43 = vld [vmem:[#allocation2 + $0x830] sm:$0xff] }
 0x2a8   :  { %7237 = vmatprep.subr.bf16.mxu0 %v12854_v54  ;;  %v238_v54 = vld [vmem:[#allocation2 + $0x5a8] sm:$0xff] }
 0x2a9   :  { %7074 = vmatpush1.bf16.msra.mxu1 %v12851_v60  ;;  %v12949_v60 = vcombine.low %v223_v45, %v231_v46  ;;  %v12963_v7 = vcombine.low %v238_v54, %v246_v55  ;;  %v327_v45 = vld [vmem:[#allocation2 + $0x870] sm:$0xff] }
 0x2aa   :  { %7075 = vmatprep.subr.bf16.mxu1 %v12868_v62  ;;  %v12966_v62 = vcombine.high %v239_v56, %v247_v57 }
 0x2ab   :  { %7238 = vmatpush1.bf16.msra.mxu0 %v12853_v61  ;;  %v12964_v61 = vcombine.high %v238_v54, %v246_v55  ;;  %v342_v54 = vld [vmem:[#allocation2 + $0x8e8] sm:$0xff]  ;;  %v335_v55 = vld [vmem:[#allocation2 + $0x8b0] sm:$0xff] }
 0x2ac   :  { %7239 = vmatprep.subr.bf16.mxu0 %v12870_v1  ;;  %v254_v1 = vld [vmem:[#allocation2 + $0x628] sm:$0xff] }
 0x2ad   :  { %7076 = vmatpush1.bf16.msra.mxu1 %v12867_v9  ;;  %v12965_v9 = vcombine.low %v239_v56, %v247_v57  ;;  %v12979_v16 = vcombine.low %v254_v1, %v262_v2  ;;  %v343_v56 = vld [vmem:[#allocation2 + $0x8f0] sm:$0xff] }
 0x2ae   :  { %7077 = vmatprep.subr.bf16.mxu1 %v12884_v11  ;;  %v12982_v11 = vcombine.high %v255_v4, %v263_v6 }
 0x2af   :  { %7240 = vmatpush1.bf16.msra.mxu0 %v12869_v10  ;;  %v12980_v10 = vcombine.high %v254_v1, %v262_v2  ;;  %v358_v1 = vld [vmem:[#allocation2 + $0x968] sm:$0xff]  ;;  %v351_v2 = vld [vmem:[#allocation2 + $0x930] sm:$0xff] }
 0x2b0   :  { %7241 = vmatprep.subr.bf16.mxu0 %v12886_v12  ;;  %v270_v12 = vld [vmem:[#allocation2 + $0x6a8] sm:$0xff] }
 0x2b1   :  { %7078 = vmatpush1.bf16.msra.mxu1 %v12883_v17  ;;  %v12981_v17 = vcombine.low %v255_v4, %v263_v6  ;;  %v12995_v24 = vcombine.low %v270_v12, %v278_v13  ;;  %v359_v4 = vld [vmem:[#allocation2 + $0x970] sm:$0xff] }
 0x2b2   :  { %7079 = vmatprep.subr.bf16.mxu1 %v12900_v19  ;;  %v12998_v19 = vcombine.high %v271_v14, %v279_v15 }
 0x2b3   :  { %7242 = vmatpush1.bf16.msra.mxu0 %v12885_v18  ;;  %v12996_v18 = vcombine.high %v270_v12, %v278_v13  ;;  %v374_v12 = vld [vmem:[#allocation2 + $0x9e8] sm:$0xff]  ;;  %v367_v13 = vld [vmem:[#allocation2 + $0x9b0] sm:$0xff] }
 0x2b4   :  { %7243 = vmatprep.subr.bf16.mxu0 %v12902_v20  ;;  %v286_v20 = vld [vmem:[#allocation2 + $0x728] sm:$0xff] }
 0x2b5   :  { %7080 = vmatpush1.bf16.msra.mxu1 %v12899_v25  ;;  %v12997_v25 = vcombine.low %v271_v14, %v279_v15  ;;  %v13011_v36 = vcombine.low %v286_v20, %v294_v21  ;;  %v375_v14 = vld [vmem:[#allocation2 + $0x9f0] sm:$0xff] }
 0x2b6   :  { %7081 = vmatprep.subr.bf16.mxu1 %v12916_v28  ;;  %v13014_v28 = vcombine.high %v287_v22, %v295_v23 }
 0x2b7   :  { %7244 = vmatpush1.bf16.msra.mxu0 %v12901_v26  ;;  %v13012_v26 = vcombine.high %v286_v20, %v294_v21  ;;  %v390_v20 = vld [vmem:[#allocation2 + $0xa68] sm:$0xff]  ;;  %v383_v21 = vld [vmem:[#allocation2 + $0xa30] sm:$0xff] }
 0x2b8   :  { %7245 = vmatprep.subr.bf16.mxu0 %v12918_v29  ;;  %v302_v29 = vld [vmem:[#allocation2 + $0x7a8] sm:$0xff] }
 0x2b9   :  { %7082 = vmatpush1.bf16.msra.mxu1 %v12915_v37  ;;  %v13013_v37 = vcombine.low %v287_v22, %v295_v23  ;;  %v13027_v46 = vcombine.low %v302_v29, %v310_v31  ;;  %v391_v22 = vld [vmem:[#allocation2 + $0xa70] sm:$0xff] }
 0x2ba   :  { %7083 = vmatprep.subr.bf16.mxu1 %v12932_v39  ;;  %v13030_v39 = vcombine.high %v303_v33, %v311_v34 }
 0x2bb   :  { %7246 = vmatpush1.bf16.msra.mxu0 %v12917_v38  ;;  %v13028_v38 = vcombine.high %v302_v29, %v310_v31  ;;  %v406_v29 = vld [vmem:[#allocation2 + $0xae8] sm:$0xff]  ;;  %v399_v31 = vld [vmem:[#allocation2 + $0xab0] sm:$0xff] }
 0x2bc   :  { %7247 = vmatprep.subr.bf16.mxu0 %v12934_v41  ;;  %v318_v41 = vld [vmem:[#allocation2 + $0x828] sm:$0xff] }
 0x2bd   :  { %7084 = vmatpush1.bf16.msra.mxu1 %v12931_v48  ;;  %v13029_v48 = vcombine.low %v303_v33, %v311_v34  ;;  %v13043_v57 = vcombine.low %v318_v41, %v326_v42  ;;  %v407_v33 = vld [vmem:[#allocation2 + $0xaf0] sm:$0xff] }
 0x2be   :  { %7085 = vmatprep.subr.bf16.mxu1 %v12948_v50  ;;  %v13046_v50 = vcombine.high %v319_v43, %v327_v45 }
 0x2bf   :  { %7248 = vmatpush1.bf16.msra.mxu0 %v12933_v49  ;;  %v13044_v49 = vcombine.high %v318_v41, %v326_v42  ;;  %v422_v41 = vld [vmem:[#allocation2 + $0xb68] sm:$0xff]  ;;  %v415_v42 = vld [vmem:[#allocation2 + $0xb30] sm:$0xff] }
 0x2c0   :  { %7249 = vmatprep.subr.bf16.mxu0 %v12950_v52  ;;  %v334_v52 = vld [vmem:[#allocation2 + $0x8a8] sm:$0xff] }
 0x2c1   :  { %7086 = vmatpush1.bf16.msra.mxu1 %v12947_v58  ;;  %v13045_v58 = vcombine.low %v319_v43, %v327_v45  ;;  %v13059_v6 = vcombine.low %v334_v52, %v342_v54  ;;  %v423_v43 = vld [vmem:[#allocation2 + $0xb70] sm:$0xff] }
 0x2c2   :  { %7087 = vmatprep.subr.bf16.mxu1 %v12964_v61  ;;  %v13062_v61 = vcombine.high %v335_v55, %v343_v56 }
 0x2c3   :  { %7250 = vmatpush1.bf16.msra.mxu0 %v12949_v60  ;;  %v13060_v60 = vcombine.high %v334_v52, %v342_v54  ;;  %v438_v52 = vld [vmem:[#allocation2 + $0xbe8] sm:$0xff]  ;;  %v431_v54 = vld [vmem:[#allocation2 + $0xbb0] sm:$0xff] }
 0x2c4   :  { %7251 = vmatprep.subr.bf16.mxu0 %v12966_v62  ;;  %v350_v62 = vld [vmem:[#allocation2 + $0x928] sm:$0xff] }
 0x2c5   :  { %7088 = vmatpush1.bf16.msra.mxu1 %v12963_v7  ;;  %v13061_v7 = vcombine.low %v335_v55, %v343_v56  ;;  %v13075_v15 = vcombine.low %v350_v62, %v358_v1  ;;  %v439_v55 = vld [vmem:[#allocation2 + $0xbf0] sm:$0xff] }
 0x2c6   :  { %7089 = vmatprep.subr.bf16.mxu1 %v12980_v10  ;;  %v13078_v10 = vcombine.high %v351_v2, %v359_v4 }
 0x2c7   :  { %7252 = vmatpush1.bf16.msra.mxu0 %v12965_v9  ;;  %v13076_v9 = vcombine.high %v350_v62, %v358_v1  ;;  %v454_v62 = vld [vmem:[#allocation2 + $0xc68] sm:$0xff]  ;;  %v447_v1 = vld [vmem:[#allocation2 + $0xc30] sm:$0xff] }
 0x2c8   :  { %7253 = vmatprep.subr.bf16.mxu0 %v12982_v11  ;;  %v366_v11 = vld [vmem:[#allocation2 + $0x9a8] sm:$0xff] }
 0x2c9   :  { %7090 = vmatpush1.bf16.msra.mxu1 %v12979_v16  ;;  %v13077_v16 = vcombine.low %v351_v2, %v359_v4  ;;  %v13091_v23 = vcombine.low %v366_v11, %v374_v12  ;;  %v455_v2 = vld [vmem:[#allocation2 + $0xc70] sm:$0xff] }
 0x2ca   :  { %7091 = vmatprep.subr.bf16.mxu1 %v12996_v18  ;;  %v13094_v18 = vcombine.high %v367_v13, %v375_v14 }
 0x2cb   :  { %7254 = vmatpush1.bf16.msra.mxu0 %v12981_v17  ;;  %v13092_v17 = vcombine.high %v366_v11, %v374_v12  ;;  %v470_v11 = vld [vmem:[#allocation2 + $0xce8] sm:$0xff]  ;;  %v463_v12 = vld [vmem:[#allocation2 + $0xcb0] sm:$0xff] }
 0x2cc   :  { %7255 = vmatprep.subr.bf16.mxu0 %v12998_v19  ;;  %v382_v19 = vld [vmem:[#allocation2 + $0xa28] sm:$0xff] }
 0x2cd   :  { %7092 = vmatpush1.bf16.msra.mxu1 %v12995_v24  ;;  %v13093_v24 = vcombine.low %v367_v13, %v375_v14  ;;  %v13107_v34 = vcombine.low %v382_v19, %v390_v20  ;;  %v471_v13 = vld [vmem:[#allocation2 + $0xcf0] sm:$0xff] }
 0x2ce   :  { %7093 = vmatprep.subr.bf16.mxu1 %v13012_v26  ;;  %v13110_v26 = vcombine.high %v383_v21, %v391_v22 }
 0x2cf   :  { %7256 = vmatpush1.bf16.msra.mxu0 %v12997_v25  ;;  %v13108_v25 = vcombine.high %v382_v19, %v390_v20  ;;  %v486_v19 = vld [vmem:[#allocation2 + $0xd68] sm:$0xff]  ;;  %v479_v20 = vld [vmem:[#allocation2 + $0xd30] sm:$0xff] }
 0x2d0   :  { %7257 = vmatprep.subr.bf16.mxu0 %v13014_v28  ;;  %v398_v28 = vld [vmem:[#allocation2 + $0xaa8] sm:$0xff] }
 0x2d1   :  { %7094 = vmatpush1.bf16.msra.mxu1 %v13011_v36  ;;  %v13109_v36 = vcombine.low %v383_v21, %v391_v22  ;;  %v13123_v45 = vcombine.low %v398_v28, %v406_v29  ;;  %v487_v21 = vld [vmem:[#allocation2 + $0xd70] sm:$0xff] }
 0x2d2   :  { %7095 = vmatprep.subr.bf16.mxu1 %v13028_v38  ;;  %v13126_v38 = vcombine.high %v399_v31, %v407_v33 }
 0x2d3   :  { %7258 = vmatpush1.bf16.msra.mxu0 %v13013_v37  ;;  %v13124_v37 = vcombine.high %v398_v28, %v406_v29  ;;  %v502_v28 = vld [vmem:[#allocation2 + $0xde8] sm:$0xff]  ;;  %v495_v29 = vld [vmem:[#allocation2 + $0xdb0] sm:$0xff] }
 0x2d4   :  { %7259 = vmatprep.subr.bf16.mxu0 %v13030_v39  ;;  %v414_v39 = vld [vmem:[#allocation2 + $0xb28] sm:$0xff] }
 0x2d5   :  { %7096 = vmatpush1.bf16.msra.mxu1 %v13027_v46  ;;  %v13125_v46 = vcombine.low %v399_v31, %v407_v33  ;;  %v13139_v56 = vcombine.low %v414_v39, %v422_v41  ;;  %v503_v31 = vld [vmem:[#allocation2 + $0xdf0] sm:$0xff] }
 0x2d6   :  { %7106 = vmatprep.subr.bf16.mxu1 %v13044_v49  ;;  %v13142_v49 = vcombine.high %v415_v42, %v423_v43 }
 0x2d7   :  { %7260 = vmatpush1.bf16.msra.mxu0 %v13029_v48  ;;  %v13140_v48 = vcombine.high %v414_v39, %v422_v41  ;;  %v518_v39 = vld [vmem:[#allocation2 + $0xe68] sm:$0xff]  ;;  %v511_v41 = vld [vmem:[#allocation2 + $0xe30] sm:$0xff] }
 0x2d8   :  { %7270 = vmatprep.subr.bf16.mxu0 %v13046_v50  ;;  %7098 = vmatmul.mubr.bf16.vlgmr.msra.gmra.mrb[12].mxu1 %v15307_v63  ;;  %v430_v50 = vld [vmem:[#allocation2 + $0xba8] sm:$0xff] }
 0x2d9   :  { %7107 = vmatpush1.bf16.msra.mxu1 %v13043_v57  ;;  %7138 = vmatprep.mubr.bf16.mxu1 %v15340_v40  ;;  %v13141_v57 = vcombine.low %v415_v42, %v423_v43  ;;  %v13155_v4 = vcombine.low %v430_v50, %v438_v52  ;;  %v519_v42 = vld [vmem:[#allocation2 + $0xe70] sm:$0xff] }
 0x2da   :  { %7262 = vmatmul.mubr.bf16.vlgmr.msra.gmra.mrb[12].mxu0 %v15307_v63  ;;  %7108 = vmatprep.subr.bf16.mxu1 %v13060_v60  ;;  %v13158_v60 = vcombine.high %v431_v54, %v439_v55 }
 0x2db   :  { %7271 = vmatpush1.bf16.msra.mxu0 %v13045_v58  ;;  %7302 = vmatprep.mubr.bf16.mxu0 %v15340_v40  ;;  %v13156_v58 = vcombine.high %v430_v50, %v438_v52  ;;  %v534_v50 = vld [vmem:[#allocation2 + $0xee8] sm:$0xff]  ;;  %v527_v52 = vld [vmem:[#allocation2 + $0xeb0] sm:$0xff] }
 0x2dc   :  { %7272 = vmatprep.subr.bf16.mxu0 %v13062_v61  ;;  %v446_v61 = vld [vmem:[#allocation2 + $0xc28] sm:$0xff] }
 0x2dd   :  { %7109 = vmatpush1.bf16.msra.mxu1 %v13059_v6  ;;  %v13157_v6 = vcombine.low %v431_v54, %v439_v55  ;;  %v13171_v14 = vcombine.low %v446_v61, %v454_v62  ;;  %v535_v54 = vld [vmem:[#allocation2 + $0xef0] sm:$0xff] }
 0x2de   :  { %7110 = vmatprep.subr.bf16.mxu1 %v13076_v9  ;;  %v13174_v9 = vcombine.high %v447_v1, %v455_v2 }
 0x2df   :  { %7273 = vmatpush1.bf16.msra.mxu0 %v13061_v7  ;;  %v13172_v7 = vcombine.high %v446_v61, %v454_v62  ;;  %v550_v61 = vld [vmem:[#allocation2 + $0xf68] sm:$0xff]  ;;  %v543_v62 = vld [vmem:[#allocation2 + $0xf30] sm:$0xff] }
 0x2e0   :  { %7274 = vmatprep.subr.bf16.mxu0 %v13078_v10  ;;  %v462_v10 = vld [vmem:[#allocation2 + $0xca8] sm:$0xff] }
 0x2e1   :  { %7111 = vmatpush1.bf16.msra.mxu1 %v13075_v15  ;;  %v13173_v15 = vcombine.low %v447_v1, %v455_v2  ;;  %v13187_v22 = vcombine.low %v462_v10, %v470_v11  ;;  %v551_v1 = vld [vmem:[#allocation2 + $0xf70] sm:$0xff] }
 0x2e2   :  { %7112 = vmatprep.subr.bf16.mxu1 %v13092_v17  ;;  %v13190_v17 = vcombine.high %v463_v12, %v471_v13 }
 0x2e3   :  { %7275 = vmatpush1.bf16.msra.mxu0 %v13077_v16  ;;  %v13188_v16 = vcombine.high %v462_v10, %v470_v11  ;;  %v566_v10 = vld [vmem:[#allocation2 + $0xfe8] sm:$0xff]  ;;  %v559_v11 = vld [vmem:[#allocation2 + $0xfb0] sm:$0xff] }
 0x2e4   :  { %7276 = vmatprep.subr.bf16.mxu0 %v13094_v18  ;;  %v478_v18 = vld [vmem:[#allocation2 + $0xd28] sm:$0xff] }
 0x2e5   :  { %7113 = vmatpush1.bf16.msra.mxu1 %v13091_v23  ;;  %v13189_v23 = vcombine.low %v463_v12, %v471_v13  ;;  %v13203_v33 = vcombine.low %v478_v18, %v486_v19  ;;  %v567_v12 = vld [vmem:[#allocation2 + $0xff0] sm:$0xff] }
 0x2e6   :  { %7114 = vmatprep.subr.bf16.mxu1 %v13108_v25  ;;  %v13206_v25 = vcombine.high %v479_v20, %v487_v21 }
 0x2e7   :  { %7277 = vmatpush1.bf16.msra.mxu0 %v13093_v24  ;;  %v13204_v24 = vcombine.high %v478_v18, %v486_v19  ;;  %v582_v18 = vld [vmem:[#allocation2 + $0x1068] sm:$0xff]  ;;  %v575_v19 = vld [vmem:[#allocation2 + $0x1030] sm:$0xff] }
 0x2e8   :  { %7278 = vmatprep.subr.bf16.mxu0 %v13110_v26  ;;  %v494_v26 = vld [vmem:[#allocation2 + $0xda8] sm:$0xff] }
 0x2e9   :  { %7115 = vmatpush1.bf16.msra.mxu1 %v13107_v34  ;;  %v13205_v34 = vcombine.low %v479_v20, %v487_v21  ;;  %v13219_v43 = vcombine.low %v494_v26, %v502_v28  ;;  %v583_v20 = vld [vmem:[#allocation2 + $0x1070] sm:$0xff] }
 0x2ea   :  { %7116 = vmatprep.subr.bf16.mxu1 %v13124_v37  ;;  %v13222_v37 = vcombine.high %v495_v29, %v503_v31 }
 0x2eb   :  { %7279 = vmatpush1.bf16.msra.mxu0 %v13109_v36  ;;  %v13220_v36 = vcombine.high %v494_v26, %v502_v28  ;;  %v598_v26 = vld [vmem:[#allocation2 + $0x10e8] sm:$0xff]  ;;  %v591_v28 = vld [vmem:[#allocation2 + $0x10b0] sm:$0xff] }
 0x2ec   :  { %7280 = vmatprep.subr.bf16.mxu0 %v13126_v38  ;;  %v510_v38 = vld [vmem:[#allocation2 + $0xe28] sm:$0xff] }
 0x2ed   :  { %7117 = vmatpush1.bf16.msra.mxu1 %v13123_v45  ;;  %v13221_v45 = vcombine.low %v495_v29, %v503_v31  ;;  %v13235_v55 = vcombine.low %v510_v38, %v518_v39  ;;  %v599_v29 = vld [vmem:[#allocation2 + $0x10f0] sm:$0xff] }
 0x2ee   :  { %7118 = vmatprep.subr.bf16.mxu1 %v13140_v48  ;;  %v13238_v48 = vcombine.high %v511_v41, %v519_v42 }
 0x2ef   :  { %7281 = vmatpush1.bf16.msra.mxu0 %v13125_v46  ;;  %v13236_v46 = vcombine.high %v510_v38, %v518_v39  ;;  %v614_v38 = vld [vmem:[#allocation2 + $0x1168] sm:$0xff]  ;;  %v607_v39 = vld [vmem:[#allocation2 + $0x1130] sm:$0xff] }
 0x2f0   :  { %7282 = vmatprep.subr.bf16.mxu0 %v13142_v49  ;;  %v526_v49 = vld [vmem:[#allocation2 + $0xea8] sm:$0xff] }
 0x2f1   :  { %7119 = vmatpush1.bf16.msra.mxu1 %v13139_v56  ;;  %v13237_v56 = vcombine.low %v511_v41, %v519_v42  ;;  %v13251_v2 = vcombine.low %v526_v49, %v534_v50  ;;  %v615_v41 = vld [vmem:[#allocation2 + $0x1170] sm:$0xff] }
 0x2f2   :  { %7120 = vmatprep.subr.bf16.mxu1 %v13156_v58  ;;  %v13254_v58 = vcombine.high %v527_v52, %v535_v54 }
 0x2f3   :  { %7283 = vmatpush1.bf16.msra.mxu0 %v13141_v57  ;;  %v13252_v57 = vcombine.high %v526_v49, %v534_v50  ;;  %v630_v49 = vld [vmem:[#allocation2 + $0x11e8] sm:$0xff]  ;;  %v623_v50 = vld [vmem:[#allocation2 + $0x11b0] sm:$0xff] }
 0x2f4   :  { %7284 = vmatprep.subr.bf16.mxu0 %v13158_v60  ;;  %v542_v60 = vld [vmem:[#allocation2 + $0xf28] sm:$0xff] }
 0x2f5   :  { %7121 = vmatpush1.bf16.msra.mxu1 %v13155_v4  ;;  %v13253_v4 = vcombine.low %v527_v52, %v535_v54  ;;  %v13267_v13 = vcombine.low %v542_v60, %v550_v61  ;;  %v631_v52 = vld [vmem:[#allocation2 + $0x11f0] sm:$0xff] }
 0x2f6   :  { %7122 = vmatprep.subr.bf16.mxu1 %v13172_v7  ;;  %v13270_v7 = vcombine.high %v543_v62, %v551_v1 }
 0x2f7   :  { %7285 = vmatpush1.bf16.msra.mxu0 %v13157_v6  ;;  %v13268_v6 = vcombine.high %v542_v60, %v550_v61  ;;  %v646_v60 = vld [vmem:[#allocation2 + $0x1268] sm:$0xff]  ;;  %v639_v61 = vld [vmem:[#allocation2 + $0x1230] sm:$0xff] }
 0x2f8   :  { %7286 = vmatprep.subr.bf16.mxu0 %v13174_v9  ;;  %v558_v9 = vld [vmem:[#allocation2 + $0xfa8] sm:$0xff] }
 0x2f9   :  { %7123 = vmatpush1.bf16.msra.mxu1 %v13171_v14  ;;  %v13269_v14 = vcombine.low %v543_v62, %v551_v1  ;;  %v13283_v21 = vcombine.low %v558_v9, %v566_v10  ;;  %v647_v62 = vld [vmem:[#allocation2 + $0x1270] sm:$0xff] }
 0x2fa   :  { %7124 = vmatprep.subr.bf16.mxu1 %v13188_v16  ;;  %v13286_v16 = vcombine.high %v559_v11, %v567_v12 }
 0x2fb   :  { %7287 = vmatpush1.bf16.msra.mxu0 %v13173_v15  ;;  %v13284_v15 = vcombine.high %v558_v9, %v566_v10  ;;  %v662_v9 = vld [vmem:[#allocation2 + $0x12e8] sm:$0xff]  ;;  %v655_v10 = vld [vmem:[#allocation2 + $0x12b0] sm:$0xff] }
 0x2fc   :  { %7288 = vmatprep.subr.bf16.mxu0 %v13190_v17  ;;  %v574_v17 = vld [vmem:[#allocation2 + $0x1028] sm:$0xff] }
 0x2fd   :  { %7125 = vmatpush1.bf16.msra.mxu1 %v13187_v22  ;;  %v13285_v22 = vcombine.low %v559_v11, %v567_v12  ;;  %v13299_v31 = vcombine.low %v574_v17, %v582_v18  ;;  %v663_v11 = vld [vmem:[#allocation2 + $0x12f0] sm:$0xff] }
 0x2fe   :  { %7126 = vmatprep.subr.bf16.mxu1 %v13204_v24  ;;  %v13302_v24 = vcombine.high %v575_v19, %v583_v20 }
 0x2ff   :  { %7289 = vmatpush1.bf16.msra.mxu0 %v13189_v23  ;;  %v13300_v23 = vcombine.high %v574_v17, %v582_v18  ;;  %v678_v17 = vld [vmem:[#allocation2 + $0x1368] sm:$0xff]  ;;  %v671_v18 = vld [vmem:[#allocation2 + $0x1330] sm:$0xff] }
 0x300   :  { %7290 = vmatprep.subr.bf16.mxu0 %v13206_v25  ;;  %v590_v25 = vld [vmem:[#allocation2 + $0x10a8] sm:$0xff] }
 0x301   :  { %7127 = vmatpush1.bf16.msra.mxu1 %v13203_v33  ;;  %v13301_v33 = vcombine.low %v575_v19, %v583_v20  ;;  %v13315_v42 = vcombine.low %v590_v25, %v598_v26  ;;  %v679_v19 = vld [vmem:[#allocation2 + $0x1370] sm:$0xff] }
 0x302   :  { %7128 = vmatprep.subr.bf16.mxu1 %v13220_v36  ;;  %v13318_v36 = vcombine.high %v591_v28, %v599_v29 }
 0x303   :  { %7291 = vmatpush1.bf16.msra.mxu0 %v13205_v34  ;;  %v13316_v34 = vcombine.high %v590_v25, %v598_v26  ;;  %v694_v25 = vld [vmem:[#allocation2 + $0x13e8] sm:$0xff]  ;;  %v687_v26 = vld [vmem:[#allocation2 + $0x13b0] sm:$0xff] }
 0x304   :  { %7292 = vmatprep.subr.bf16.mxu0 %v13222_v37  ;;  %v606_v37 = vld [vmem:[#allocation2 + $0x1128] sm:$0xff] }
 0x305   :  { %7129 = vmatpush1.bf16.msra.mxu1 %v13219_v43  ;;  %v13317_v43 = vcombine.low %v591_v28, %v599_v29  ;;  %v13331_v54 = vcombine.low %v606_v37, %v614_v38  ;;  %v695_v28 = vld [vmem:[#allocation2 + $0x13f0] sm:$0xff] }
 0x306   :  { %7130 = vmatprep.subr.bf16.mxu1 %v13236_v46  ;;  %v13334_v46 = vcombine.high %v607_v39, %v615_v41 }
 0x307   :  { %7293 = vmatpush1.bf16.msra.mxu0 %v13221_v45  ;;  %v13332_v45 = vcombine.high %v606_v37, %v614_v38  ;;  %v710_v37 = vld [vmem:[#allocation2 + $0x1468] sm:$0xff]  ;;  %v703_v38 = vld [vmem:[#allocation2 + $0x1430] sm:$0xff] }
 0x308   :  { %7294 = vmatprep.subr.bf16.mxu0 %v13238_v48  ;;  %v622_v48 = vld [vmem:[#allocation2 + $0x11a8] sm:$0xff] }
 0x309   :  { %7131 = vmatpush1.bf16.msra.mxu1 %v13235_v55  ;;  %v13333_v55 = vcombine.low %v607_v39, %v615_v41  ;;  %v13347_v1 = vcombine.low %v622_v48, %v630_v49  ;;  %v711_v39 = vld [vmem:[#allocation2 + $0x1470] sm:$0xff] }
 0x30a   :  { %7132 = vmatprep.subr.bf16.mxu1 %v13252_v57  ;;  %v13350_v57 = vcombine.high %v623_v50, %v631_v52 }
 0x30b   :  { %7295 = vmatpush1.bf16.msra.mxu0 %v13237_v56  ;;  %v13348_v56 = vcombine.high %v622_v48, %v630_v49  ;;  %v726_v48 = vld [vmem:[#allocation2 + $0x14e8] sm:$0xff]  ;;  %v719_v49 = vld [vmem:[#allocation2 + $0x14b0] sm:$0xff] }
 0x30c   :  { %7296 = vmatprep.subr.bf16.mxu0 %v13254_v58  ;;  %v638_v58 = vld [vmem:[#allocation2 + $0x1228] sm:$0xff] }
 0x30d   :  { %7133 = vmatpush1.bf16.msra.mxu1 %v13251_v2  ;;  %v13349_v2 = vcombine.low %v623_v50, %v631_v52  ;;  %v13363_v12 = vcombine.low %v638_v58, %v646_v60  ;;  %v727_v50 = vld [vmem:[#allocation2 + $0x14f0] sm:$0xff] }
 0x30e   :  { %7134 = vmatprep.subr.bf16.mxu1 %v13268_v6  ;;  %v13366_v6 = vcombine.high %v639_v61, %v647_v62 }
 0x30f   :  { %7297 = vmatpush1.bf16.msra.mxu0 %v13253_v4  ;;  %v13364_v4 = vcombine.high %v638_v58, %v646_v60  ;;  %v742_v58 = vld [vmem:[#allocation2 + $0x1568] sm:$0xff]  ;;  %v735_v60 = vld [vmem:[#allocation2 + $0x1530] sm:$0xff] }
 0x310   :  { %7298 = vmatprep.subr.bf16.mxu0 %v13270_v7  ;;  %v654_v7 = vld [vmem:[#allocation2 + $0x12a8] sm:$0xff] }
 0x311   :  { %7135 = vmatpush1.bf16.msra.mxu1 %v13267_v13  ;;  %v13365_v13 = vcombine.low %v639_v61, %v647_v62  ;;  %v13379_v20 = vcombine.low %v654_v7, %v662_v9  ;;  %v743_v61 = vld [vmem:[#allocation2 + $0x1570] sm:$0xff] }
 0x312   :  { %7136 = vmatprep.subr.bf16.mxu1 %v13284_v15  ;;  %v13382_v15 = vcombine.high %v655_v10, %v663_v11 }
 0x313   :  { %7299 = vmatpush1.bf16.msra.mxu0 %v13269_v14  ;;  %v13380_v14 = vcombine.high %v654_v7, %v662_v9  ;;  %v758_v7 = vld [vmem:[#allocation2 + $0x15e8] sm:$0xff]  ;;  %v751_v9 = vld [vmem:[#allocation2 + $0x15b0] sm:$0xff] }
 0x314   :  { %7300 = vmatprep.subr.bf16.mxu0 %v13286_v16  ;;  %v670_v16 = vld [vmem:[#allocation2 + $0x1328] sm:$0xff] }
 0x315   :  { %7137 = vmatpush1.bf16.msra.mxu1 %v13283_v21  ;;  %v13381_v21 = vcombine.low %v655_v10, %v663_v11  ;;  %v13395_v29 = vcombine.low %v670_v16, %v678_v17  ;;  %v759_v10 = vld [vmem:[#allocation2 + $0x15f0] sm:$0xff] }
 0x316   :  { %7147 = vmatprep.subr.bf16.mxu1 %v13300_v23  ;;  %v13398_v23 = vcombine.high %v671_v18, %v679_v19 }
 0x317   :  { %7301 = vmatpush1.bf16.msra.mxu0 %v13285_v22  ;;  %v13396_v22 = vcombine.high %v670_v16, %v678_v17  ;;  %v774_v16 = vld [vmem:[#allocation2 + $0x1668] sm:$0xff]  ;;  %v767_v17 = vld [vmem:[#allocation2 + $0x1630] sm:$0xff] }
 0x318   :  { %7311 = vmatprep.subr.bf16.mxu0 %v13302_v24  ;;  %7139 = vmatmul.mubr.bf16.vlgmr.msra.gmra.mrb[12].mxu1 %v15333_v30  ;;  %v686_v24 = vld [vmem:[#allocation2 + $0x13a8] sm:$0xff] }
 0x319   :  { %7148 = vmatpush1.bf16.msra.mxu1 %v13299_v31  ;;  %7179 = vmatprep.mubr.bf16.mxu1 %v15324_v8  ;;  %v13397_v31 = vcombine.low %v671_v18, %v679_v19  ;;  %v13411_v41 = vcombine.low %v686_v24, %v694_v25  ;;  %v775_v18 = vld [vmem:[#allocation2 + $0x1670] sm:$0xff] }
 0x31a   :  { %7303 = vmatmul.mubr.bf16.vlgmr.msra.gmra.mrb[12].mxu0 %v15333_v30  ;;  %7149 = vmatprep.subr.bf16.mxu1 %v13316_v34  ;;  %v13414_v34 = vcombine.high %v687_v26, %v695_v28 }
 0x31b   :  { %7312 = vmatpush1.bf16.msra.mxu0 %v13301_v33  ;;  %7343 = vmatprep.mubr.bf16.mxu0 %v15324_v8  ;;  %v13412_v33 = vcombine.high %v686_v24, %v694_v25  ;;  %v790_v24 = vld [vmem:[#allocation2 + $0x16e8] sm:$0xff]  ;;  %v783_v25 = vld [vmem:[#allocation2 + $0x16b0] sm:$0xff] }
 0x31c   :  { %7313 = vmatprep.subr.bf16.mxu0 %v13318_v36  ;;  %v702_v36 = vld [vmem:[#allocation2 + $0x1428] sm:$0xff] }
 0x31d   :  { %7150 = vmatpush1.bf16.msra.mxu1 %v13315_v42  ;;  %v13413_v42 = vcombine.low %v687_v26, %v695_v28  ;;  %v13427_v52 = vcombine.low %v702_v36, %v710_v37  ;;  %v791_v26 = vld [vmem:[#allocation2 + $0x16f0] sm:$0xff] }
 0x31e   :  { %7151 = vmatprep.subr.bf16.mxu1 %v13332_v45  ;;  %v13430_v45 = vcombine.high %v703_v38, %v711_v39 }
 0x31f   :  { %7314 = vmatpush1.bf16.msra.mxu0 %v13317_v43  ;;  %v13428_v43 = vcombine.high %v702_v36, %v710_v37  ;;  %v806_v36 = vld [vmem:[#allocation2 + $0x1768] sm:$0xff]  ;;  %v799_v37 = vld [vmem:[#allocation2 + $0x1730] sm:$0xff] }
 0x320   :  { %7315 = vmatprep.subr.bf16.mxu0 %v13334_v46  ;;  %v718_v46 = vld [vmem:[#allocation2 + $0x14a8] sm:$0xff] }
 0x321   :  { %7152 = vmatpush1.bf16.msra.mxu1 %v13331_v54  ;;  %v13429_v54 = vcombine.low %v703_v38, %v711_v39  ;;  %v13443_v62 = vcombine.low %v718_v46, %v726_v48  ;;  %v807_v38 = vld [vmem:[#allocation2 + $0x1770] sm:$0xff] }
 0x322   :  { %7153 = vmatprep.subr.bf16.mxu1 %v13348_v56  ;;  %v13446_v56 = vcombine.high %v719_v49, %v727_v50 }
 0x323   :  { %7316 = vmatpush1.bf16.msra.mxu0 %v13333_v55  ;;  %v13444_v55 = vcombine.high %v718_v46, %v726_v48  ;;  %v822_v46 = vld [vmem:[#allocation2 + $0x17e8] sm:$0xff]  ;;  %v815_v48 = vld [vmem:[#allocation2 + $0x17b0] sm:$0xff] }
 0x324   :  { %7317 = vmatprep.subr.bf16.mxu0 %v13350_v57  ;;  %v734_v57 = vld [vmem:[#allocation2 + $0x1528] sm:$0xff] }
 0x325   :  { %7154 = vmatpush1.bf16.msra.mxu1 %v13347_v1  ;;  %v13445_v1 = vcombine.low %v719_v49, %v727_v50  ;;  %v13459_v11 = vcombine.low %v734_v57, %v742_v58  ;;  %v823_v49 = vld [vmem:[#allocation2 + $0x17f0] sm:$0xff] }
 0x326   :  { %7155 = vmatprep.subr.bf16.mxu1 %v13364_v4  ;;  %v13462_v4 = vcombine.high %v735_v60, %v743_v61 }
 0x327   :  { %7318 = vmatpush1.bf16.msra.mxu0 %v13349_v2  ;;  %v13460_v2 = vcombine.high %v734_v57, %v742_v58  ;;  %v838_v57 = vld [vmem:[#allocation2 + $0x1868] sm:$0xff]  ;;  %v831_v58 = vld [vmem:[#allocation2 + $0x1830] sm:$0xff] }
 0x328   :  { %7319 = vmatprep.subr.bf16.mxu0 %v13366_v6  ;;  %v750_v6 = vld [vmem:[#allocation2 + $0x15a8] sm:$0xff] }
 0x329   :  { %7156 = vmatpush1.bf16.msra.mxu1 %v13363_v12  ;;  %v13461_v12 = vcombine.low %v735_v60, %v743_v61  ;;  %v13475_v19 = vcombine.low %v750_v6, %v758_v7  ;;  %v839_v60 = vld [vmem:[#allocation2 + $0x1870] sm:$0xff] }
 0x32a   :  { %7157 = vmatprep.subr.bf16.mxu1 %v13380_v14  ;;  %v13478_v14 = vcombine.high %v751_v9, %v759_v10 }
 0x32b   :  { %7320 = vmatpush1.bf16.msra.mxu0 %v13365_v13  ;;  %v13476_v13 = vcombine.high %v750_v6, %v758_v7  ;;  %v854_v6 = vld [vmem:[#allocation2 + $0x18e8] sm:$0xff]  ;;  %v847_v7 = vld [vmem:[#allocation2 + $0x18b0] sm:$0xff] }
 0x32c   :  { %7321 = vmatprep.subr.bf16.mxu0 %v13382_v15  ;;  %v766_v15 = vld [vmem:[#allocation2 + $0x1628] sm:$0xff] }
 0x32d   :  { %7158 = vmatpush1.bf16.msra.mxu1 %v13379_v20  ;;  %v13477_v20 = vcombine.low %v751_v9, %v759_v10  ;;  %v13491_v28 = vcombine.low %v766_v15, %v774_v16  ;;  %v855_v9 = vld [vmem:[#allocation2 + $0x18f0] sm:$0xff] }
 0x32e   :  { %7159 = vmatprep.subr.bf16.mxu1 %v13396_v22  ;;  %v13494_v22 = vcombine.high %v767_v17, %v775_v18 }
 0x32f   :  { %7322 = vmatpush1.bf16.msra.mxu0 %v13381_v21  ;;  %v13492_v21 = vcombine.high %v766_v15, %v774_v16  ;;  %v870_v15 = vld [vmem:[#allocation2 + $0x1968] sm:$0xff]  ;;  %v863_v16 = vld [vmem:[#allocation2 + $0x1930] sm:$0xff] }
 0x330   :  { %7323 = vmatprep.subr.bf16.mxu0 %v13398_v23  ;;  %v782_v23 = vld [vmem:[#allocation2 + $0x16a8] sm:$0xff] }
 0x331   :  { %7160 = vmatpush1.bf16.msra.mxu1 %v13395_v29  ;;  %v13493_v29 = vcombine.low %v767_v17, %v775_v18  ;;  %v13507_v39 = vcombine.low %v782_v23, %v790_v24  ;;  %v871_v17 = vld [vmem:[#allocation2 + $0x1970] sm:$0xff] }
 0x332   :  { %7161 = vmatprep.subr.bf16.mxu1 %v13412_v33  ;;  %v13510_v33 = vcombine.high %v783_v25, %v791_v26 }
 0x333   :  { %7324 = vmatpush1.bf16.msra.mxu0 %v13397_v31  ;;  %v13508_v31 = vcombine.high %v782_v23, %v790_v24  ;;  %v886_v23 = vld [vmem:[#allocation2 + $0x19e8] sm:$0xff]  ;;  %v879_v24 = vld [vmem:[#allocation2 + $0x19b0] sm:$0xff] }
 0x334   :  { %7325 = vmatprep.subr.bf16.mxu0 %v13414_v34  ;;  %v798_v34 = vld [vmem:[#allocation2 + $0x1728] sm:$0xff] }
 0x335   :  { %7162 = vmatpush1.bf16.msra.mxu1 %v13411_v41  ;;  %v13509_v41 = vcombine.low %v783_v25, %v791_v26  ;;  %v13523_v50 = vcombine.low %v798_v34, %v806_v36  ;;  %v887_v25 = vld [vmem:[#allocation2 + $0x19f0] sm:$0xff] }
 0x336   :  { %7163 = vmatprep.subr.bf16.mxu1 %v13428_v43  ;;  %v13526_v43 = vcombine.high %v799_v37, %v807_v38 }
 0x337   :  { %7326 = vmatpush1.bf16.msra.mxu0 %v13413_v42  ;;  %v13524_v42 = vcombine.high %v798_v34, %v806_v36  ;;  %v902_v34 = vld [vmem:[#allocation2 + $0x1a68] sm:$0xff]  ;;  %v895_v36 = vld [vmem:[#allocation2 + $0x1a30] sm:$0xff] }
 0x338   :  { %7327 = vmatprep.subr.bf16.mxu0 %v13430_v45  ;;  %v814_v45 = vld [vmem:[#allocation2 + $0x17a8] sm:$0xff] }
 0x339   :  { %7164 = vmatpush1.bf16.msra.mxu1 %v13427_v52  ;;  %v13525_v52 = vcombine.low %v799_v37, %v807_v38  ;;  %v13539_v61 = vcombine.low %v814_v45, %v822_v46  ;;  %v903_v37 = vld [vmem:[#allocation2 + $0x1a70] sm:$0xff] }
 0x33a   :  { %7165 = vmatprep.subr.bf16.mxu1 %v13444_v55  ;;  %v13542_v55 = vcombine.high %v815_v48, %v823_v49 }
 0x33b   :  { %7328 = vmatpush1.bf16.msra.mxu0 %v13429_v54  ;;  %v13540_v54 = vcombine.high %v814_v45, %v822_v46  ;;  %v918_v45 = vld [vmem:[#allocation2 + $0x1ae8] sm:$0xff]  ;;  %v911_v46 = vld [vmem:[#allocation2 + $0x1ab0] sm:$0xff] }
 0x33c   :  { %7329 = vmatprep.subr.bf16.mxu0 %v13446_v56  ;;  %v830_v56 = vld [vmem:[#allocation2 + $0x1828] sm:$0xff] }
 0x33d   :  { %7166 = vmatpush1.bf16.msra.mxu1 %v13443_v62  ;;  %v13541_v62 = vcombine.low %v815_v48, %v823_v49  ;;  %v13555_v10 = vcombine.low %v830_v56, %v838_v57  ;;  %v919_v48 = vld [vmem:[#allocation2 + $0x1af0] sm:$0xff] }
 0x33e   :  { %7167 = vmatprep.subr.bf16.mxu1 %v13460_v2  ;;  %v13558_v2 = vcombine.high %v831_v58, %v839_v60 }
 0x33f   :  { %7330 = vmatpush1.bf16.msra.mxu0 %v13445_v1  ;;  %v13556_v1 = vcombine.high %v830_v56, %v838_v57  ;;  %v934_v56 = vld [vmem:[#allocation2 + $0x1b68] sm:$0xff]  ;;  %v927_v57 = vld [vmem:[#allocation2 + $0x1b30] sm:$0xff] }
 0x340   :  { %7331 = vmatprep.subr.bf16.mxu0 %v13462_v4  ;;  %v846_v4 = vld [vmem:[#allocation2 + $0x18a8] sm:$0xff] }
 0x341   :  { %7168 = vmatpush1.bf16.msra.mxu1 %v13459_v11  ;;  %v13557_v11 = vcombine.low %v831_v58, %v839_v60  ;;  %v13571_v18 = vcombine.low %v846_v4, %v854_v6  ;;  %v935_v58 = vld [vmem:[#allocation2 + $0x1b70] sm:$0xff] }
 0x342   :  { %7169 = vmatprep.subr.bf16.mxu1 %v13476_v13  ;;  %v13574_v13 = vcombine.high %v847_v7, %v855_v9 }
 0x343   :  { %7332 = vmatpush1.bf16.msra.mxu0 %v13461_v12  ;;  %v13572_v12 = vcombine.high %v846_v4, %v854_v6  ;;  %v942_v4 = vld [vmem:[#allocation2 + $0x1ba8] sm:$0xff] }
 0x344   :  { %7333 = vmatprep.subr.bf16.mxu0 %v13478_v14  ;;  %v862_v14 = vld [vmem:[#allocation2 + $0x1928] sm:$0xff] }
 0x345   :  { %7170 = vmatpush1.bf16.msra.mxu1 %v13475_v19  ;;  %v13573_v19 = vcombine.low %v847_v7, %v855_v9  ;;  %v13587_v26 = vcombine.low %v862_v14, %v870_v15  ;;  %v950_v6 = vld [vmem:[#allocation2 + $0x1be8] sm:$0xff] }
 0x346   :  { %7171 = vmatprep.subr.bf16.mxu1 %v13492_v21  ;;  %v13590_v21 = vcombine.high %v863_v16, %v871_v17 }
 0x347   :  { %7334 = vmatpush1.bf16.msra.mxu0 %v13477_v20  ;;  %v13588_v20 = vcombine.high %v862_v14, %v870_v15 }
 0x348   :  { %7335 = vmatprep.subr.bf16.mxu0 %v13494_v22  ;;  %v878_v22 = vld [vmem:[#allocation2 + $0x19a8] sm:$0xff] }
 0x349   :  { %7172 = vmatpush1.bf16.msra.mxu1 %v13491_v28  ;;  %v13589_v28 = vcombine.low %v863_v16, %v871_v17  ;;  %v13603_v38 = vcombine.low %v878_v22, %v886_v23  ;;  %v13653_v17 = vcombine.low %v927_v57, %v935_v58 }
 0x34a   :  { %7173 = vmatprep.subr.bf16.mxu1 %v13508_v31  ;;  %v13606_v31 = vcombine.high %v879_v24, %v887_v25 }
 0x34b   :  { %7336 = vmatpush1.bf16.msra.mxu0 %v13493_v29  ;;  %v13604_v29 = vcombine.high %v878_v22, %v886_v23  ;;  %v966_v22 = vld [vmem:[#allocation2 + $0x1c68] sm:$0xff]  ;;  %v959_v23 = vld [vmem:[#allocation2 + $0x1c30] sm:$0xff] }
 0x34c   :  { %7337 = vmatprep.subr.bf16.mxu0 %v13510_v33  ;;  %v894_v33 = vld [vmem:[#allocation2 + $0x1a28] sm:$0xff] }
 0x34d   :  { %7174 = vmatpush1.bf16.msra.mxu1 %v13507_v39  ;;  %v13605_v39 = vcombine.low %v879_v24, %v887_v25  ;;  %v13619_v49 = vcombine.low %v894_v33, %v902_v34  ;;  %v967_v24 = vld [vmem:[#allocation2 + $0x1c70] sm:$0xff]  ;;  %v13667_v25 = vcombine.low %v942_v4, %v950_v6 }
 0x34e   :  { %7175 = vmatprep.subr.bf16.mxu1 %v13524_v42  ;;  %v13622_v42 = vcombine.high %v895_v36, %v903_v37 }
 0x34f   :  { %7338 = vmatpush1.bf16.msra.mxu0 %v13509_v41  ;;  %v13620_v41 = vcombine.high %v894_v33, %v902_v34  ;;  %v982_v33 = vld [vmem:[#allocation2 + $0x1ce8] sm:$0xff]  ;;  %v975_v34 = vld [vmem:[#allocation2 + $0x1cb0] sm:$0xff] }
 0x350   :  { %7339 = vmatprep.subr.bf16.mxu0 %v13526_v43  ;;  %v910_v43 = vld [vmem:[#allocation2 + $0x1aa8] sm:$0xff] }
 0x351   :  { %7176 = vmatpush1.bf16.msra.mxu1 %v13523_v50  ;;  %v13621_v50 = vcombine.low %v895_v36, %v903_v37  ;;  %v13635_v60 = vcombine.low %v910_v43, %v918_v45  ;;  %v983_v36 = vld [vmem:[#allocation2 + $0x1cf0] sm:$0xff] }
 0x352   :  { %7177 = vmatprep.subr.bf16.mxu1 %v13540_v54  ;;  %v13638_v54 = vcombine.high %v911_v46, %v919_v48 }
 0x353   :  { %7340 = vmatpush1.bf16.msra.mxu0 %v13525_v52  ;;  %v13636_v52 = vcombine.high %v910_v43, %v918_v45  ;;  %v998_v43 = vld [vmem:[#allocation2 + $0x1d68] sm:$0xff]  ;;  %v991_v45 = vld [vmem:[#allocation2 + $0x1d30] sm:$0xff] }
 0x354   :  { %7341 = vmatprep.subr.bf16.mxu0 %v13542_v55  ;;  %v926_v55 = vld [vmem:[#allocation2 + $0x1b28] sm:$0xff] }
 0x355   :  { %7178 = vmatpush1.bf16.msra.mxu1 %v13539_v61  ;;  %v13637_v61 = vcombine.low %v911_v46, %v919_v48  ;;  %v13651_v14 = vcombine.low %v926_v55, %v934_v56  ;;  %v999_v46 = vld [vmem:[#allocation2 + $0x1d70] sm:$0xff] }
 0x356   :  { %7188 = vmatprep.subr.bf16.mxu1 %v13556_v1 }
 0x357   :  { %7342 = vmatpush1.bf16.msra.mxu0 %v13541_v62  ;;  %v13652_v62 = vcombine.high %v926_v55, %v934_v56  ;;  %v1014_v55 = vld [vmem:[#allocation2 + $0x1de8] sm:$0xff]  ;;  %v1007_v56 = vld [vmem:[#allocation2 + $0x1db0] sm:$0xff] }
 0x358   :  { %7352 = vmatprep.subr.bf16.mxu0 %v13558_v2  ;;  %7180 = vmatmul.mubr.bf16.vlgmr.msra.gmra.mrb[12].mxu1 %v15316_v3  ;;  %v13654_v2 = vcombine.high %v927_v57, %v935_v58  ;;  %v1015_v57 = vld [vmem:[#allocation2 + $0x1df0] sm:$0xff] }
 0x359   :  { %7189 = vmatpush1.bf16.msra.mxu1 %v13555_v10  ;;  %7220 = vmatprep.mubr.bf16.mxu1 %v15345_v53  ;;  %v943_v10 = vld [vmem:[#allocation2 + $0x1bb0] sm:$0xff] }
 0x35a   :  { %7344 = vmatmul.mubr.bf16.vlgmr.msra.gmra.mrb[12].mxu0 %v15316_v3  ;;  %7190 = vmatprep.subr.bf16.mxu1 %v13572_v12 }
 0x35b   :  { %7353 = vmatpush1.bf16.msra.mxu0 %v13557_v11  ;;  %7384 = vmatprep.mubr.bf16.mxu0 %v15345_v53  ;;  %v951_v11 = vld [vmem:[#allocation2 + $0x1bf0] sm:$0xff] }
 0x35c   :  { %7354 = vmatprep.subr.bf16.mxu0 %v13574_v13 }
 0x35d   :  { %7191 = vmatpush1.bf16.msra.mxu1 %v13571_v18  ;;  %v13668_v18 = vcombine.high %v942_v4, %v950_v6  ;;  %v1030_v4 = vld [vmem:[#allocation2 + $0x1e68] sm:$0xff]  ;;  %v1023_v6 = vld [vmem:[#allocation2 + $0x1e30] sm:$0xff] }
 0x35e   :  { %7192 = vmatprep.subr.bf16.mxu1 %v13588_v20  ;;  %v13670_v20 = vcombine.high %v943_v10, %v951_v11 }
 0x35f   :  { %7355 = vmatpush1.bf16.msra.mxu0 %v13573_v19 }
 0x360   :  { %7356 = vmatprep.subr.bf16.mxu0 %v13590_v21  ;;  %v958_v21 = vld [vmem:[#allocation2 + $0x1c28] sm:$0xff] }
 0x361   :  { %7193 = vmatpush1.bf16.msra.mxu1 %v13587_v26  ;;  %v13669_v26 = vcombine.low %v943_v10, %v951_v11  ;;  %v13683_v37 = vcombine.low %v958_v21, %v966_v22  ;;  %v1031_v10 = vld [vmem:[#allocation2 + $0x1e70] sm:$0xff] }
 0x362   :  { %7194 = vmatprep.subr.bf16.mxu1 %v13604_v29  ;;  %v13686_v29 = vcombine.high %v959_v23, %v967_v24 }
 0x363   :  { %7357 = vmatpush1.bf16.msra.mxu0 %v13589_v28  ;;  %v13684_v28 = vcombine.high %v958_v21, %v966_v22  ;;  %v13749_v21 = vcombine.low %v1023_v6, %v1031_v10 }
 0x364   :  { %7358 = vmatprep.subr.bf16.mxu0 %v13606_v31  ;;  %v974_v31 = vld [vmem:[#allocation2 + $0x1ca8] sm:$0xff] }
 0x365   :  { %7195 = vmatpush1.bf16.msra.mxu1 %v13603_v38  ;;  %v13685_v38 = vcombine.low %v959_v23, %v967_v24  ;;  %v13699_v48 = vcombine.low %v974_v31, %v982_v33  ;;  %v1054_v24 = vld [vmem:[#allocation2 + $0x1f28] sm:$0xff] }
 0x366   :  { %7196 = vmatprep.subr.bf16.mxu1 %v13620_v41  ;;  %v13702_v41 = vcombine.high %v975_v34, %v983_v36 }
 0x367   :  { %7359 = vmatpush1.bf16.msra.mxu0 %v13605_v39  ;;  %v13700_v39 = vcombine.high %v974_v31, %v982_v33 }
 0x368   :  { %7360 = vmatprep.subr.bf16.mxu0 %v13622_v42  ;;  %v990_v42 = vld [vmem:[#allocation2 + $0x1d28] sm:$0xff] }
 0x369   :  { %7197 = vmatpush1.bf16.msra.mxu1 %v13619_v49  ;;  %v13701_v49 = vcombine.low %v975_v34, %v983_v36  ;;  %v13715_v58 = vcombine.low %v990_v42, %v998_v43  ;;  %v1070_v36 = vld [vmem:[#allocation2 + $0x1fa8] sm:$0xff] }
 0x36a   :  { %7198 = vmatprep.subr.bf16.mxu1 %v13636_v52  ;;  %v13718_v52 = vcombine.high %v991_v45, %v999_v46 }
 0x36b   :  { %7361 = vmatpush1.bf16.msra.mxu0 %v13621_v50  ;;  %v15410_v1 = vpop.f32.mrb[8].mxu1  ;;  %v13716_v50 = vcombine.high %v990_v42, %v998_v43 }
 0x36c   :  { %7362 = vmatprep.subr.bf16.mxu0 %v13638_v54  ;;  %v15414_v9 = vpop.f32.mrb[9].mxu1  ;;  %v1006_v54 = vld [vmem:[#allocation2 + $0x1da8] sm:$0xff] }
 0x36d   :  { %v15412_v7 = vpop.f32.mrb[8].mxu0  ;;  %v6898_v13 = vpop.f32.mrb[10].mxu1  ;;  %7199 = vmatpush1.bf16.msra.mxu1 %v13635_v60  ;;  %v13717_v60 = vcombine.low %v991_v45, %v999_v46  ;;  %v13731_v11 = vcombine.low %v1006_v54, %v1014_v55  ;;  %v64_v46 = vld [vmem:[#allocation2 + $0x38] sm:$0xff] }
 0x36e   :  { %v15416_v12 = vpop.f32.mrb[9].mxu0  ;;  %v6899_v16 = vpop.f32.mrb[11].mxu1  ;;  %7200 = vmatprep.subr.bf16.mxu1 %v13652_v62  ;;  %v13734_v62 = vcombine.high %v1007_v56, %v1015_v57  ;;  %v13733_v13 = vcombine.low %v1007_v56, %v1015_v57  ;;  %v80_v57 = vld [vmem:[#allocation2 + $0xb8] sm:$0xff] }
 0x36f   :  { %v7062_v15 = vpop.f32.mrb[10].mxu0  ;;  %7363 = vmatpush1.bf16.msra.mxu0 %v13637_v61  ;;  %v13732_v61 = vcombine.high %v1006_v54, %v1014_v55  ;;  %v1038_v16 = vld [vmem:[#allocation2 + $0x1ea8] sm:$0xff] }
 0x370   :  { %v7063_v19 = vpop.f32.mrb[11].mxu0  ;;  %7364 = vmatprep.subr.bf16.mxu0 %v13654_v2  ;;  %v1022_v2 = vld [vmem:[#allocation2 + $0x1e28] sm:$0xff]  ;;  %v13750_v15 = vcombine.high %v1023_v6, %v1031_v10  ;;  %v96_v10 = vld [vmem:[#allocation2 + $0x138] sm:$0xff] }
 0x371   :  { %7201 = vmatpush1.bf16.msra.mxu1 %v13651_v14  ;;  %v13748_v14 = vcombine.high %v1022_v2, %v1030_v4  ;;  %v1047_v19 = vld [vmem:[#allocation2 + $0x1ef0] sm:$0xff] }
 0x372   :  { %7202 = vmatprep.subr.bf16.mxu1 %v13668_v18  ;;  %v1039_v18 = vld [vmem:[#allocation2 + $0x1eb0] sm:$0xff] }
 0x373   :  { %7365 = vmatpush1.bf16.msra.mxu0 %v13653_v17  ;;  %v1046_v17 = vld [vmem:[#allocation2 + $0x1ee8] sm:$0xff]  ;;  %v13766_v23 = vcombine.high %v1039_v18, %v1047_v19  ;;  %v13765_v31 = vcombine.low %v1039_v18, %v1047_v19  ;;  %v112_v19 = vld [vmem:[#allocation2 + $0x1b8] sm:$0xff] }
 0x374   :  { %7366 = vmatprep.subr.bf16.mxu0 %v13670_v20  ;;  %v13747_v20 = vcombine.low %v1022_v2, %v1030_v4  ;;  %v13764_v22 = vcombine.high %v1038_v16, %v1046_v17 }
 0x375   :  { %7203 = vmatpush1.bf16.msra.mxu1 %v13667_v25  ;;  %v1062_v25 = vld [vmem:[#allocation2 + $0x1f68] sm:$0xff] }
 0x376   :  { %7204 = vmatprep.subr.bf16.mxu1 %v13684_v28  ;;  %v1063_v28 = vld [vmem:[#allocation2 + $0x1f70] sm:$0xff]  ;;  %v13780_v33 = vcombine.high %v1054_v24, %v1062_v25 }
 0x377   :  { %7367 = vmatpush1.bf16.msra.mxu0 %v13669_v26  ;;  %v1055_v26 = vld [vmem:[#allocation2 + $0x1f30] sm:$0xff] }
 0x378   :  { %7368 = vmatprep.subr.bf16.mxu0 %v13686_v29  ;;  %v13763_v29 = vcombine.low %v1038_v16, %v1046_v17  ;;  %v13782_v34 = vcombine.high %v1055_v26, %v1063_v28  ;;  %v13781_v42 = vcombine.low %v1055_v26, %v1063_v28 }
 0x379   :  { %7205 = vmatpush1.bf16.msra.mxu1 %v13683_v37  ;;  %v1078_v37 = vld [vmem:[#allocation2 + $0x1fe8] sm:$0xff] }
 0x37a   :  { %7206 = vmatprep.subr.bf16.mxu1 %v13700_v39  ;;  %v1079_v39 = vld [vmem:[#allocation2 + $0x1ff0] sm:$0xff]  ;;  %v13796_v43 = vcombine.high %v1070_v36, %v1078_v37 }
 0x37b   :  { %7369 = vmatpush1.bf16.msra.mxu0 %v13685_v38  ;;  %v1071_v38 = vld [vmem:[#allocation2 + $0x1fb0] sm:$0xff] }
 0x37c   :  { %7370 = vmatprep.subr.bf16.mxu0 %v13702_v41  ;;  %v13779_v41 = vcombine.low %v1054_v24, %v1062_v25  ;;  %v13798_v45 = vcombine.high %v1071_v38, %v1079_v39  ;;  %v13797_v54 = vcombine.low %v1071_v38, %v1079_v39  ;;  %v144_v39 = vld [vmem:[#allocation2 + $0x2b8] sm:$0xff] }
 0x37d   :  { %7207 = vmatpush1.bf16.msra.mxu1 %v13699_v48  ;;  %v72_v48 = vld [vmem:[#allocation2 + $0x78] sm:$0xff] }
 0x37e   :  { %7208 = vmatprep.subr.bf16.mxu1 %v13716_v50  ;;  %v7778_v50 = vld [vmem:[%s17232_s4 + $0x40] sm:$0xff]  ;;  %v12792_v55 = vcombine.high %v64_v46, %v72_v48 }
 0x37f   :  { %7371 = vmatpush1.bf16.msra.mxu0 %v13701_v49  ;;  %v7770_v49 = vld [vmem:[%s17232_s4] sm:$0xff] }
 0x380   :  { %7372 = vmatprep.subr.bf16.mxu0 %v13718_v52  ;;  %v13795_v52 = vcombine.low %v1070_v36, %v1078_v37  ;;  %v13802_v56 = vcombine.high %v7770_v49, %v7778_v50  ;;  %v13801_v2 = vcombine.low %v7770_v49, %v7778_v50 }
 0x381   :  { %7209 = vmatpush1.bf16.msra.mxu1 %v13715_v58  ;;  %v88_v58 = vld [vmem:[#allocation2 + $0xf8] sm:$0xff] }
 0x382   :  { %7210 = vmatprep.subr.bf16.mxu1 %v13732_v61  ;;  %v7794_v61 = vld [vmem:[%s17232_s4 + $0xc0] sm:$0xff]  ;;  %v12808_v4 = vcombine.high %v80_v57, %v88_v58 }
 0x383   :  { %7373 = vmatpush1.bf16.msra.mxu0 %v13717_v60  ;;  %v7786_v60 = vld [vmem:[%s17232_s4 + $0x80] sm:$0xff] }
 0x384   :  { %7374 = vmatprep.subr.bf16.mxu0 %v13734_v62  ;;  %v12791_v62 = vcombine.low %v64_v46, %v72_v48  ;;  %v13818_v6 = vcombine.high %v7786_v60, %v7794_v61  ;;  %v13817_v16 = vcombine.low %v7786_v60, %v7794_v61  ;;  %v15461_v46 = vld [vmem:[%s17229_s1] sm:$0xf] }
 0x385   :  { %7211 = vmatpush1.bf16.msra.mxu1 %v13731_v11  ;;  %v104_v11 = vld [vmem:[#allocation2 + $0x178] sm:$0xff] }
 0x386   :  { %7212 = vmatprep.subr.bf16.mxu1 %v13748_v14  ;;  %v7810_v14 = vld [vmem:[%s17232_s4 + $0x140] sm:$0xff]  ;;  %v12824_v17 = vcombine.high %v96_v10, %v104_v11  ;;  %v12823_v24 = vcombine.low %v96_v10, %v104_v11 }
 0x387   :  { %7375 = vmatpush1.bf16.msra.mxu0 %v13733_v13  ;;  %v7802_v13 = vld [vmem:[%s17232_s4 + $0x100] sm:$0xff] }
 0x388   :  { %7376 = vmatprep.subr.bf16.mxu0 %v13750_v15  ;;  %v12807_v15 = vcombine.low %v80_v57, %v88_v58  ;;  %v13834_v18 = vcombine.high %v7802_v13, %v7810_v14  ;;  %v13833_v25 = vcombine.low %v7802_v13, %v7810_v14 }
 0x389   :  { %7213 = vmatpush1.bf16.msra.mxu1 %v13747_v20  ;;  %v120_v20 = vld [vmem:[#allocation2 + $0x1f8] sm:$0xff] }
 0x38a   :  { %7214 = vmatprep.subr.bf16.mxu1 %v13764_v22  ;;  %v7818_v22 = vld [vmem:[%s17232_s4 + $0x180] sm:$0xff]  ;;  %v12840_v26 = vcombine.high %v112_v19, %v120_v20 }
 0x38b   :  { %7377 = vmatpush1.bf16.msra.mxu0 %v13749_v21  ;;  %v15234_v21 = vmov 0  }
 0x38c   :  { %7378 = vmatprep.subr.bf16.mxu0 %v13766_v23  ;;  %v7826_v23 = vld [vmem:[%s17232_s4 + $0x1c0] sm:$0xff] }
 0x38d   :  { %7215 = vmatpush1.bf16.msra.mxu1 %v13763_v29  ;;  %v13850_v28 = vcombine.high %v7818_v22, %v7826_v23  ;;  %v128_v29 = vld [vmem:[#allocation2 + $0x238] sm:$0xff]  ;;  %v13849_v36 = vcombine.low %v7818_v22, %v7826_v23 }
 0x38e   :  { %7216 = vmatprep.subr.bf16.mxu1 %v13780_v33  ;;  %v7771_v33 = vld [vmem:[%s17232_s4 + $0x8] sm:$0xff] }
 0x38f   :  { %7379 = vmatpush1.bf16.msra.mxu0 %v13765_v31  ;;  %v136_v31 = vld [vmem:[#allocation2 + $0x278] sm:$0xff] }
 0x390   :  { %7380 = vmatprep.subr.bf16.mxu0 %v13782_v34  ;;  %v7779_v34 = vld [vmem:[%s17232_s4 + $0x48] sm:$0xff]  ;;  %v12856_v37 = vcombine.high %v128_v29, %v136_v31 }
 0x391   :  { %7217 = vmatpush1.bf16.msra.mxu1 %v13779_v41  ;;  %v13804_v38 = vcombine.high %v7771_v33, %v7779_v34  ;;  %v152_v41 = vld [vmem:[#allocation2 + $0x2f8] sm:$0xff]  ;;  %v13803_v48 = vcombine.low %v7771_v33, %v7779_v34 }
 0x392   :  { %7218 = vmatprep.subr.bf16.mxu1 %v13796_v43  ;;  %v7795_v43 = vld [vmem:[%s17232_s4 + $0xc8] sm:$0xff]  ;;  %v12872_v49 = vcombine.high %v144_v39, %v152_v41  ;;  %v12871_v57 = vcombine.low %v144_v39, %v152_v41 }
 0x393   :  { %7381 = vmatpush1.bf16.msra.mxu0 %v13781_v42  ;;  %v7787_v42 = vld [vmem:[%s17232_s4 + $0x88] sm:$0xff] }
 0x394   :  { %7382 = vmatprep.subr.bf16.mxu0 %v13798_v45  ;;  %v12855_v45 = vcombine.low %v128_v29, %v136_v31  ;;  %v13820_v50 = vcombine.high %v7787_v42, %v7795_v43  ;;  %v13819_v58 = vcombine.low %v7787_v42, %v7795_v43 }
 0x395   :  { %7219 = vmatpush1.bf16.msra.mxu1 %v13795_v52  ;;  %v160_v52 = vld [vmem:[#allocation2 + $0x338] sm:$0xff] }
 0x396   :  { %7393 = vmatprep.subr.bf16.mxu1 %v12792_v55  ;;  %v7803_v55 = vld [vmem:[%s17232_s4 + $0x108] sm:$0xff] }
 0x397   :  { %7383 = vmatpush1.bf16.msra.mxu0 %v13797_v54  ;;  %v168_v54 = vld [vmem:[#allocation2 + $0x378] sm:$0xff] }
 0x398   :  { %8240 = vmatprep.subr.bf16.mxu0 %v13802_v56  ;;  %7221 = vmatmul.mubr.bf16.vlgmr.msra.gmra.mrb[12].mxu1 %v15336_v32  ;;  %v7811_v56 = vld [vmem:[%s17232_s4 + $0x148] sm:$0xff]  ;;  %v12888_v60 = vcombine.high %v160_v52, %v168_v54  ;;  %v12887_v10 = vcombine.low %v160_v52, %v168_v54 }
 0x399   :  { %7394 = vmatpush1.bf16.msra.mxu1 %v12791_v62  ;;  %7425 = vmatprep.mubr.bf16.mxu1 %v15320_v5  ;;  %v12839_v5 = vcombine.low %v112_v19, %v120_v20  ;;  %v13836_v61 = vcombine.high %v7803_v55, %v7811_v56  ;;  %v176_v62 = vld [vmem:[#allocation2 + $0x3b8] sm:$0xff]  ;;  %v13835_v11 = vcombine.low %v7803_v55, %v7811_v56 }
 0x39a   :  { %7385 = vmatmul.mubr.bf16.vlgmr.msra.gmra.mrb[12].mxu0 %v15336_v32  ;;  %7395 = vmatprep.subr.bf16.mxu1 %v12808_v4  ;;  %v7819_v4 = vld [vmem:[%s17232_s4 + $0x188] sm:$0xff] }
 0x39b   :  { %8241 = vmatpush1.bf16.msra.mxu0 %v13801_v2  ;;  %8272 = vmatprep.mubr.bf16.mxu0 %v15234_v21  ;;  %v184_v2 = vld [vmem:[#allocation2 + $0x3f8] sm:$0xff] }
 0x39c   :  { %8242 = vmatprep.subr.bf16.mxu0 %v13818_v6  ;;  %v7827_v6 = vld [vmem:[%s17232_s4 + $0x1c8] sm:$0xff]  ;;  %v12904_v13 = vcombine.high %v176_v62, %v184_v2  ;;  %v12903_v19 = vcombine.low %v176_v62, %v184_v2 }
 0x39d   :  { %7396 = vmatpush1.bf16.msra.mxu1 %v12807_v15  ;;  %v13852_v14 = vcombine.high %v7819_v4, %v7827_v6  ;;  %v192_v15 = vld [vmem:[#allocation2 + $0x438] sm:$0xff]  ;;  %v13851_v20 = vcombine.low %v7819_v4, %v7827_v6 }
 0x39e   :  { %7397 = vmatprep.subr.bf16.mxu1 %v12824_v17  ;;  %v7772_v17 = vld [vmem:[%s17232_s4 + $0x10] sm:$0xff] }
 0x39f   :  { %8243 = vmatpush1.bf16.msra.mxu0 %v13817_v16  ;;  %v200_v16 = vld [vmem:[#allocation2 + $0x478] sm:$0xff] }
 0x3a0   :  { %8244 = vmatprep.subr.bf16.mxu0 %v13834_v18  ;;  %v7780_v18 = vld [vmem:[%s17232_s4 + $0x50] sm:$0xff]  ;;  %v12920_v22 = vcombine.high %v192_v15, %v200_v16  ;;  %v12919_v29 = vcombine.low %v192_v15, %v200_v16 }
 0x3a1   :  { %7398 = vmatpush1.bf16.msra.mxu1 %v12823_v24  ;;  %v13806_v23 = vcombine.high %v7772_v17, %v7780_v18  ;;  %v208_v24 = vld [vmem:[#allocation2 + $0x4b8] sm:$0xff]  ;;  %v13805_v31 = vcombine.low %v7772_v17, %v7780_v18 }
 0x3a2   :  { %7399 = vmatprep.subr.bf16.mxu1 %v12840_v26  ;;  %v7788_v26 = vld [vmem:[%s17232_s4 + $0x90] sm:$0xff] }
 0x3a3   :  { %8245 = vmatpush1.bf16.msra.mxu0 %v13833_v25  ;;  %v216_v25 = vld [vmem:[#allocation2 + $0x4f8] sm:$0xff] }
 0x3a4   :  { %8246 = vmatprep.subr.bf16.mxu0 %v13850_v28  ;;  %v7796_v28 = vld [vmem:[%s17232_s4 + $0xd0] sm:$0xff]  ;;  %v12936_v33 = vcombine.high %v208_v24, %v216_v25  ;;  %v12935_v39 = vcombine.low %v208_v24, %v216_v25 }
 0x3a5   :  { %7400 = vmatpush1.bf16.msra.mxu1 %v12839_v5  ;;  %v13822_v34 = vcombine.high %v7788_v26, %v7796_v28  ;;  %v224_v5 = vld [vmem:[#allocation2 + $0x538] sm:$0xff]  ;;  %v13821_v41 = vcombine.low %v7788_v26, %v7796_v28 }
 0x3a6   :  { %7401 = vmatprep.subr.bf16.mxu1 %v12856_v37  ;;  %v7804_v37 = vld [vmem:[%s17232_s4 + $0x110] sm:$0xff] }
 0x3a7   :  { %8247 = vmatpush1.bf16.msra.mxu0 %v13849_v36  ;;  %v232_v36 = vld [vmem:[#allocation2 + $0x578] sm:$0xff] }
 0x3a8   :  { %8281 = vmatprep.subr.bf16.mxu0 %v13804_v38  ;;  %v7812_v38 = vld [vmem:[%s17232_s4 + $0x150] sm:$0xff]  ;;  %v12952_v42 = vcombine.high %v224_v5, %v232_v36  ;;  %v12951_v52 = vcombine.low %v224_v5, %v232_v36 }
 0x3a9   :  { %7402 = vmatpush1.bf16.msra.mxu1 %v12855_v45  ;;  %v13838_v43 = vcombine.high %v7804_v37, %v7812_v38  ;;  %v240_v45 = vld [vmem:[#allocation2 + $0x5b8] sm:$0xff]  ;;  %v13837_v54 = vcombine.low %v7804_v37, %v7812_v38 }
 0x3aa   :  { %13865 = vmatmul.mubr.msk.bf16.vlgmr.msra.gmra.mrb[16].mxu0 %vm8236_vm0, %v15461_v46  ;;  %7403 = vmatprep.subr.bf16.mxu1 %v12872_v49  ;;  %v7820_v49 = vld [vmem:[%s17232_s4 + $0x190] sm:$0xff] }
 0x3ab   :  { %8282 = vmatpush1.bf16.msra.mxu0 %v13803_v48  ;;  %8313 = vmatprep.mubr.bf16.mxu0 %v15234_v21  ;;  %v248_v48 = vld [vmem:[#allocation2 + $0x5f8] sm:$0xff] }
 0x3ac   :  { %8283 = vmatprep.subr.bf16.mxu0 %v13820_v50  ;;  %v7828_v50 = vld [vmem:[%s17232_s4 + $0x1d0] sm:$0xff]  ;;  %v12968_v55 = vcombine.high %v240_v45, %v248_v48  ;;  %v12967_v62 = vcombine.low %v240_v45, %v248_v48 }
 0x3ad   :  { %7404 = vmatpush1.bf16.msra.mxu1 %v12871_v57  ;;  %v13854_v56 = vcombine.high %v7820_v49, %v7828_v50  ;;  %v256_v57 = vld [vmem:[#allocation2 + $0x638] sm:$0xff]  ;;  %v13853_v2 = vcombine.low %v7820_v49, %v7828_v50 }
 0x3ae   :  { %7405 = vmatprep.subr.bf16.mxu1 %v12888_v60  ;;  %v7774_v60 = vld [vmem:[%s17232_s4 + $0x20] sm:$0xff] }
 0x3af   :  { %8284 = vmatpush1.bf16.msra.mxu0 %v13819_v58  ;;  %v264_v58 = vld [vmem:[#allocation2 + $0x678] sm:$0xff] }
 0x3b0   :  { %8285 = vmatprep.subr.bf16.mxu0 %v13836_v61  ;;  %v7782_v61 = vld [vmem:[%s17232_s4 + $0x60] sm:$0xff]  ;;  %v12984_v4 = vcombine.high %v256_v57, %v264_v58  ;;  %v12983_v15 = vcombine.low %v256_v57, %v264_v58 }
 0x3b1   :  { %7406 = vmatpush1.bf16.msra.mxu1 %v12887_v10  ;;  %v13810_v6 = vcombine.high %v7774_v60, %v7782_v61  ;;  %v272_v10 = vld [vmem:[#allocation2 + $0x6b8] sm:$0xff]  ;;  %v13809_v16 = vcombine.low %v7774_v60, %v7782_v61 }
 0x3b2   :  { %7407 = vmatprep.subr.bf16.mxu1 %v12904_v13  ;;  %v7790_v13 = vld [vmem:[%s17232_s4 + $0xa0] sm:$0xff] }
 0x3b3   :  { %8286 = vmatpush1.bf16.msra.mxu0 %v13835_v11  ;;  %v280_v11 = vld [vmem:[#allocation2 + $0x6f8] sm:$0xff] }
 0x3b4   :  { %8287 = vmatprep.subr.bf16.mxu0 %v13852_v14  ;;  %v7798_v14 = vld [vmem:[%s17232_s4 + $0xe0] sm:$0xff]  ;;  %v13000_v17 = vcombine.high %v272_v10, %v280_v11  ;;  %v12999_v24 = vcombine.low %v272_v10, %v280_v11 }
 0x3b5   :  { %7408 = vmatpush1.bf16.msra.mxu1 %v12903_v19  ;;  %v13826_v18 = vcombine.high %v7790_v13, %v7798_v14  ;;  %v288_v19 = vld [vmem:[#allocation2 + $0x738] sm:$0xff]  ;;  %v13825_v25 = vcombine.low %v7790_v13, %v7798_v14 }
 0x3b6   :  { %7409 = vmatprep.subr.bf16.mxu1 %v12920_v22  ;;  %v7806_v22 = vld [vmem:[%s17232_s4 + $0x120] sm:$0xff] }
 0x3b7   :  { %8288 = vmatpush1.bf16.msra.mxu0 %v13851_v20  ;;  %v296_v20 = vld [vmem:[#allocation2 + $0x778] sm:$0xff] }
 0x3b8   :  { %8322 = vmatprep.subr.bf16.mxu0 %v13806_v23  ;;  %v7814_v23 = vld [vmem:[%s17232_s4 + $0x160] sm:$0xff]  ;;  %v13016_v26 = vcombine.high %v288_v19, %v296_v20  ;;  %v13015_v5 = vcombine.low %v288_v19, %v296_v20 }
 0x3b9   :  { %7410 = vmatpush1.bf16.msra.mxu1 %v12919_v29  ;;  %v13842_v28 = vcombine.high %v7806_v22, %v7814_v23  ;;  %v304_v29 = vld [vmem:[#allocation2 + $0x7b8] sm:$0xff]  ;;  %v13841_v36 = vcombine.low %v7806_v22, %v7814_v23 }
 0x3ba   :  { %13866 = vmatmul.mubr.msk.bf16.vlgmr.msra.gmra.mrb[20].mxu0 %vm8236_vm0, %v15461_v46  ;;  %7411 = vmatprep.subr.bf16.mxu1 %v12936_v33  ;;  %v7822_v33 = vld [vmem:[%s17232_s4 + $0x1a0] sm:$0xff]  ;;  %v384_v23 = vld [vmem:[#allocation2 + $0xa38] sm:$0xff] }
 0x3bb   :  { %8323 = vmatpush1.bf16.msra.mxu0 %v13805_v31  ;;  %8354 = vmatprep.mubr.bf16.mxu0 %v15234_v21  ;;  %v312_v31 = vld [vmem:[#allocation2 + $0x7f8] sm:$0xff] }
 0x3bc   :  { %8324 = vmatprep.subr.bf16.mxu0 %v13822_v34  ;;  %v7830_v34 = vld [vmem:[%s17232_s4 + $0x1e0] sm:$0xff]  ;;  %v13032_v37 = vcombine.high %v304_v29, %v312_v31  ;;  %v13031_v45 = vcombine.low %v304_v29, %v312_v31  ;;  %v400_v29 = vld [vmem:[#allocation2 + $0xab8] sm:$0xff] }
 0x3bd   :  { %7412 = vmatpush1.bf16.msra.mxu1 %v12935_v39  ;;  %v13858_v38 = vcombine.high %v7822_v33, %v7830_v34  ;;  %v320_v39 = vld [vmem:[#allocation2 + $0x838] sm:$0xff]  ;;  %v13857_v48 = vcombine.low %v7822_v33, %v7830_v34 }
 0x3be   :  { %7413 = vmatprep.subr.bf16.mxu1 %v12952_v42  ;;  %v7776_v42 = vld [vmem:[%s17232_s4 + $0x30] sm:$0xff]  ;;  %v408_v31 = vld [vmem:[#allocation2 + $0xaf8] sm:$0xff] }
 0x3bf   :  { %8325 = vmatpush1.bf16.msra.mxu0 %v13821_v41  ;;  %v328_v41 = vld [vmem:[#allocation2 + $0x878] sm:$0xff]  ;;  %v13128_v33 = vcombine.high %v400_v29, %v408_v31 }
 0x3c0   :  { %8326 = vmatprep.subr.bf16.mxu0 %v13838_v43  ;;  %v7784_v43 = vld [vmem:[%s17232_s4 + $0x70] sm:$0xff]  ;;  %v13048_v49 = vcombine.high %v320_v39, %v328_v41  ;;  %v13047_v57 = vcombine.low %v320_v39, %v328_v41  ;;  %v416_v34 = vld [vmem:[#allocation2 + $0xb38] sm:$0xff] }
 0x3c1   :  { %7414 = vmatpush1.bf16.msra.mxu1 %v12951_v52  ;;  %v13814_v50 = vcombine.high %v7776_v42, %v7784_v43  ;;  %v336_v52 = vld [vmem:[#allocation2 + $0x8b8] sm:$0xff]  ;;  %v13813_v58 = vcombine.low %v7776_v42, %v7784_v43 }
 0x3c2   :  { %7415 = vmatprep.subr.bf16.mxu1 %v12968_v55  ;;  %v7792_v55 = vld [vmem:[%s17232_s4 + $0xb0] sm:$0xff]  ;;  %v440_v39 = vld [vmem:[#allocation2 + $0xbf8] sm:$0xff] }
 0x3c3   :  { %8327 = vmatpush1.bf16.msra.mxu0 %v13837_v54  ;;  %v344_v54 = vld [vmem:[#allocation2 + $0x8f8] sm:$0xff] }
 0x3c4   :  { %8328 = vmatprep.subr.bf16.mxu0 %v13854_v56  ;;  %v7800_v56 = vld [vmem:[%s17232_s4 + $0xf0] sm:$0xff]  ;;  %v13064_v60 = vcombine.high %v336_v52, %v344_v54  ;;  %v13063_v10 = vcombine.low %v336_v52, %v344_v54  ;;  %v448_v43 = vld [vmem:[#allocation2 + $0xc38] sm:$0xff] }
 0x3c5   :  { %7416 = vmatpush1.bf16.msra.mxu1 %v12967_v62  ;;  %v13830_v61 = vcombine.high %v7792_v55, %v7800_v56  ;;  %v352_v62 = vld [vmem:[#allocation2 + $0x938] sm:$0xff]  ;;  %v13829_v11 = vcombine.low %v7792_v55, %v7800_v56 }
 0x3c6   :  { %7417 = vmatprep.subr.bf16.mxu1 %v12984_v4  ;;  %v7808_v4 = vld [vmem:[%s17232_s4 + $0x130] sm:$0xff]  ;;  %v472_v52 = vld [vmem:[#allocation2 + $0xcf8] sm:$0xff] }
 0x3c7   :  { %8329 = vmatpush1.bf16.msra.mxu0 %v13853_v2  ;;  %v360_v2 = vld [vmem:[#allocation2 + $0x978] sm:$0xff] }
 0x3c8   :  { %8404 = vmatprep.subr.bf16.mxu0 %v13810_v6  ;;  %v7816_v6 = vld [vmem:[%s17232_s4 + $0x170] sm:$0xff]  ;;  %v13080_v13 = vcombine.high %v352_v62, %v360_v2  ;;  %v480_v55 = vld [vmem:[#allocation2 + $0xd38] sm:$0xff] }
 0x3c9   :  { %7418 = vmatpush1.bf16.msra.mxu1 %v12983_v15  ;;  %v13846_v14 = vcombine.high %v7808_v4, %v7816_v6  ;;  %v376_v15 = vld [vmem:[#allocation2 + $0x9f8] sm:$0xff]  ;;  %v13845_v19 = vcombine.low %v7808_v4, %v7816_v6 }
 0x3ca   :  { %13867 = vmatmul.mubr.msk.bf16.vlgmr.msra.gmra.mrb[24].mxu0 %vm8236_vm0, %v15461_v46  ;;  %7419 = vmatprep.subr.bf16.mxu1 %v13000_v17  ;;  %v7832_v17 = vld [vmem:[%s17232_s4 + $0x1f0] sm:$0xff]  ;;  %v488_v56 = vld [vmem:[#allocation2 + $0xd78] sm:$0xff] }
 0x3cb   :  { %8405 = vmatpush1.bf16.msra.mxu0 %v13809_v16  ;;  %8436 = vmatprep.mubr.bf16.mxu0 %v15234_v21  ;;  %v7824_v16 = vld [vmem:[%s17232_s4 + $0x1b0] sm:$0xff]  ;;  %v512_v4 = vld [vmem:[#allocation2 + $0xe38] sm:$0xff] }
 0x3cc   :  { %8406 = vmatprep.subr.bf16.mxu0 %v13826_v18  ;;  %v13079_v18 = vcombine.low %v352_v62, %v360_v2  ;;  %v13862_v22 = vcombine.high %v7824_v16, %v7832_v17  ;;  %v13207_v62 = vcombine.low %v480_v55, %v488_v56  ;;  %v520_v6 = vld [vmem:[#allocation2 + $0xe78] sm:$0xff] }
 0x3cd   :  { %7420 = vmatpush1.bf16.msra.mxu1 %v12999_v24  ;;  %v392_v24 = vld [vmem:[#allocation2 + $0xa78] sm:$0xff] }
 0x3ce   :  { %7421 = vmatprep.subr.bf16.mxu1 %v13016_v26  ;;  %v13861_v26 = vcombine.low %v7824_v16, %v7832_v17  ;;  %v544_v17 = vld [vmem:[#allocation2 + $0xf38] sm:$0xff] }
 0x3cf   :  { %8407 = vmatpush1.bf16.msra.mxu0 %v13825_v25 }
 0x3d0   :  { %8408 = vmatprep.subr.bf16.mxu0 %v13842_v28  ;;  %v13112_v28 = vcombine.high %v384_v23, %v392_v24 }
 0x3d1   :  { %7422 = vmatpush1.bf16.msra.mxu1 %v13015_v5  ;;  %v424_v5 = vld [vmem:[#allocation2 + $0xb78] sm:$0xff] }
 0x3d2   :  { %7423 = vmatprep.subr.bf16.mxu1 %v13032_v37  ;;  %v13144_v37 = vcombine.high %v416_v34, %v424_v5  ;;  %v13143_v41 = vcombine.low %v416_v34, %v424_v5 }
 0x3d3   :  { %8409 = vmatpush1.bf16.msra.mxu0 %v13841_v36  ;;  %v13127_v36 = vcombine.low %v400_v29, %v408_v31 }
 0x3d4   :  { %8410 = vmatprep.subr.bf16.mxu0 %v13858_v38  ;;  %v432_v38 = vld [vmem:[#allocation2 + $0xbb8] sm:$0xff] }
 0x3d5   :  { %7424 = vmatpush1.bf16.msra.mxu1 %v13031_v45  ;;  %v13160_v42 = vcombine.high %v432_v38, %v440_v39  ;;  %v456_v45 = vld [vmem:[#allocation2 + $0xc78] sm:$0xff] }
 0x3d6   :  { %7434 = vmatprep.subr.bf16.mxu1 %v13048_v49  ;;  %v13176_v49 = vcombine.high %v448_v43, %v456_v45 }
 0x3d7   :  { %8411 = vmatpush1.bf16.msra.mxu0 %v13857_v48  ;;  %v13159_v48 = vcombine.low %v432_v38, %v440_v39 }
 0x3d8   :  { %8486 = vmatprep.subr.bf16.mxu0 %v13814_v50  ;;  %7426 = vmatmul.mubr.bf16.vlgmr.msra.gmra.mrb[16].mxu1 %v15307_v63  ;;  %v368_v63 = vld [vmem:[#allocation2 + $0x9b8] sm:$0xff] }
 0x3d9   :  { %7435 = vmatpush1.bf16.msra.mxu1 %v13047_v57  ;;  %7466 = vmatprep.mubr.bf16.mxu1 %v15340_v40  ;;  %v13096_v20 = vcombine.high %v368_v63, %v376_v15  ;;  %v13095_v25 = vcombine.low %v368_v63, %v376_v15  ;;  %v13111_v40 = vcombine.low %v384_v23, %v392_v24  ;;  %v464_v50 = vld [vmem:[#allocation2 + $0xcb8] sm:$0xff]  ;;  %v15235_v63 = vmov 0.0  }
 0x3da   :  { %13869 = vmatmul.mubr.msk.bf16.vlgmr.msra.gmra.mrb[28].mxu0 %vm8236_vm0, %v15461_v46  ;;  %7436 = vmatprep.subr.bf16.mxu1 %v13064_v60  ;;  %v13192_v54 = vcombine.high %v464_v50, %v472_v52  ;;  %v13191_v57 = vcombine.low %v464_v50, %v472_v52  ;;  %v496_v60 = vld [vmem:[#allocation2 + $0xdb8] sm:$0xff]  ;;  %v13239_v15 = vcombine.low %v512_v4, %v520_v6 }
 0x3db   :  { %8487 = vmatpush1.bf16.msra.mxu0 %v13813_v58  ;;  %8518 = vmatprep.mubr.bf16.mxu0 %v15234_v21  ;;  %v13208_v58 = vcombine.high %v480_v55, %v488_v56  ;;  %v568_v23 = vld [vmem:[#allocation2 + $0xff8] sm:$0xff] }
 0x3dc   :  { %8488 = vmatprep.subr.bf16.mxu0 %v13830_v61  ;;  %v504_v61 = vld [vmem:[#allocation2 + $0xdf8] sm:$0xff] }
 0x3dd   :  { %7437 = vmatpush1.bf16.msra.mxu1 %v13063_v10  ;;  %v13224_v2 = vcombine.high %v496_v60, %v504_v61  ;;  %v13223_v10 = vcombine.low %v496_v60, %v504_v61  ;;  %v672_v55 = vld [vmem:[#allocation2 + $0x1338] sm:$0xff] }
 0x3de   :  { %7438 = vmatprep.subr.bf16.mxu1 %v13080_v13  ;;  %v528_v13 = vld [vmem:[#allocation2 + $0xeb8] sm:$0xff] }
 0x3df   :  { %8489 = vmatpush1.bf16.msra.mxu0 %v13829_v11  ;;  %v13240_v11 = vcombine.high %v512_v4, %v520_v6  ;;  %v680_v56 = vld [vmem:[#allocation2 + $0x1378] sm:$0xff] }
 0x3e0   :  { %8490 = vmatprep.subr.bf16.mxu0 %v13846_v14  ;;  %v536_v14 = vld [vmem:[#allocation2 + $0xef8] sm:$0xff] }
 0x3e1   :  { %7439 = vmatpush1.bf16.msra.mxu1 %v13079_v18  ;;  %v13256_v16 = vcombine.high %v528_v13, %v536_v14  ;;  %v552_v18 = vld [vmem:[#allocation2 + $0xf78] sm:$0xff] }
 0x3e2   :  { %7440 = vmatprep.subr.bf16.mxu1 %v13096_v20  ;;  %v13272_v20 = vcombine.high %v544_v17, %v552_v18  ;;  %v13271_v24 = vcombine.low %v544_v17, %v552_v18  ;;  %v688_v60 = vld [vmem:[#allocation2 + $0x13b8] sm:$0xff] }
 0x3e3   :  { %8491 = vmatpush1.bf16.msra.mxu0 %v13845_v19  ;;  %v13255_v19 = vcombine.low %v528_v13, %v536_v14  ;;  %v696_v61 = vld [vmem:[#allocation2 + $0x13f8] sm:$0xff] }
 0x3e4   :  { %8492 = vmatprep.subr.bf16.mxu0 %v13862_v22  ;;  %v560_v22 = vld [vmem:[#allocation2 + $0xfb8] sm:$0xff] }
 0x3e5   :  { %7441 = vmatpush1.bf16.msra.mxu1 %v13095_v25  ;;  %v13288_v25 = vcombine.high %v560_v22, %v568_v23  ;;  %v13287_v29 = vcombine.low %v560_v22, %v568_v23  ;;  %v704_v4 = vld [vmem:[#allocation2 + $0x1438] sm:$0xff] }
 0x3e6   :  { %7442 = vmatprep.subr.bf16.mxu1 %v13112_v28  ;;  %v584_v28 = vld [vmem:[#allocation2 + $0x1078] sm:$0xff] }
 0x3e7   :  { %8493 = vmatpush1.bf16.msra.mxu0 %v13861_v26  ;;  %v576_v26 = vld [vmem:[#allocation2 + $0x1038] sm:$0xff] }
 0x3e8   :  { %v13304_v31 = vcombine.high %v576_v26, %v584_v28  ;;  %v13303_v34 = vcombine.low %v576_v26, %v584_v28  ;;  %v712_v6 = vld [vmem:[#allocation2 + $0x1478] sm:$0xff] }
 0x3e9   :  { %7443 = vmatpush1.bf16.msra.mxu1 %v13111_v40  ;;  %v592_v40 = vld [vmem:[#allocation2 + $0x10b8] sm:$0xff] }
 0x3ea   :  { %13871 = vmatmul.mubr.msk.bf16.vlgmr.msra.gmra.mrb[32].mxu0 %vm8236_vm0, %v15461_v46  ;;  %7444 = vmatprep.subr.bf16.mxu1 %v13128_v33  ;;  %v13175_v46 = vcombine.low %v448_v43, %v456_v45  ;;  %v600_v33 = vld [vmem:[#allocation2 + $0x10f8] sm:$0xff] }
 0x3eb   :  { %8653 = vmatprep.mubr.f32.mxu0 %v15235_v63  ;;  %v13320_v5 = vcombine.high %v592_v40, %v600_v33  ;;  %v13319_v38 = vcombine.low %v592_v40, %v600_v33  ;;  %v720_v13 = vld [vmem:[#allocation2 + $0x14b8] sm:$0xff] }
 0x3ec   :  { %v728_v14 = vld [vmem:[#allocation2 + $0x14f8] sm:$0xff] }
 0x3ed   :  { %7445 = vmatpush1.bf16.msra.mxu1 %v13127_v36  ;;  %v608_v36 = vld [vmem:[#allocation2 + $0x1138] sm:$0xff] }
 0x3ee   :  { %7446 = vmatprep.subr.bf16.mxu1 %v13144_v37  ;;  %v616_v37 = vld [vmem:[#allocation2 + $0x1178] sm:$0xff] }
 0x3ef   :  { %v13336_v39 = vcombine.high %v608_v36, %v616_v37  ;;  %v13335_v43 = vcombine.low %v608_v36, %v616_v37  ;;  %v736_v17 = vld [vmem:[#allocation2 + $0x1538] sm:$0xff] }
 0x3f0   :  { %v744_v18 = vld [vmem:[#allocation2 + $0x1578] sm:$0xff] }
 0x3f1   :  { %7447 = vmatpush1.bf16.msra.mxu1 %v13143_v41  ;;  %v624_v41 = vld [vmem:[#allocation2 + $0x11b8] sm:$0xff] }
 0x3f2   :  { %7448 = vmatprep.subr.bf16.mxu1 %v13160_v42  ;;  %v632_v42 = vld [vmem:[#allocation2 + $0x11f8] sm:$0xff] }
 0x3f3   :  { %v13352_v45 = vcombine.high %v624_v41, %v632_v42  ;;  %v13351_v50 = vcombine.low %v624_v41, %v632_v42  ;;  %v752_v22 = vld [vmem:[#allocation2 + $0x15b8] sm:$0xff] }
 0x3f4   :  { %v760_v23 = vld [vmem:[#allocation2 + $0x15f8] sm:$0xff] }
 0x3f5   :  { %7449 = vmatpush1.bf16.msra.mxu1 %v13159_v48  ;;  %v640_v48 = vld [vmem:[#allocation2 + $0x1238] sm:$0xff] }
 0x3f6   :  { %7450 = vmatprep.subr.bf16.mxu1 %v13176_v49  ;;  %v648_v49 = vld [vmem:[#allocation2 + $0x1278] sm:$0xff] }
 0x3f7   :  { %v13368_v52 = vcombine.high %v640_v48, %v648_v49  ;;  %v768_v26 = vld [vmem:[#allocation2 + $0x1638] sm:$0xff] }
 0x3f8   :  { %v776_v28 = vld [vmem:[#allocation2 + $0x1678] sm:$0xff] }
 0x3f9   :  { %7451 = vmatpush1.bf16.msra.mxu1 %v13175_v46  ;;  %v656_v46 = vld [vmem:[#allocation2 + $0x12b8] sm:$0xff] }
 0x3fa   :  { %7452 = vmatprep.subr.bf16.mxu1 %v13192_v54  ;;  %v13367_v54 = vcombine.low %v640_v48, %v648_v49  ;;  %v784_v40 = vld [vmem:[#allocation2 + $0x16b8] sm:$0xff] }
 0x3fb   :  { %v792_v33 = vld [vmem:[#allocation2 + $0x16f8] sm:$0xff] }
 0x3fc   :  { %v800_v36 = vld [vmem:[#allocation2 + $0x1738] sm:$0xff] }
 0x3fd   :  { %7453 = vmatpush1.bf16.msra.mxu1 %v13191_v57  ;;  %v808_v37 = vld [vmem:[#allocation2 + $0x1778] sm:$0xff] }
 0x3fe   :  { %7454 = vmatprep.subr.bf16.mxu1 %v13208_v58  ;;  %v13400_v58 = vcombine.high %v672_v55, %v680_v56  ;;  %v816_v41 = vld [vmem:[#allocation2 + $0x17b8] sm:$0xff] }
 0x3ff   :  { %v824_v42 = vld [vmem:[#allocation2 + $0x17f8] sm:$0xff] }
 0x400   :  { %v832_v48 = vld [vmem:[#allocation2 + $0x1838] sm:$0xff] }
 0x401   :  { %7455 = vmatpush1.bf16.msra.mxu1 %v13207_v62  ;;  %v13399_v62 = vcombine.low %v672_v55, %v680_v56  ;;  %v840_v49 = vld [vmem:[#allocation2 + $0x1878] sm:$0xff] }
 0x402   :  { %7456 = vmatprep.subr.bf16.mxu1 %v13224_v2  ;;  %v13416_v2 = vcombine.high %v688_v60, %v696_v61  ;;  %v864_v55 = vld [vmem:[#allocation2 + $0x1938] sm:$0xff] }
 0x403   :  { %v872_v56 = vld [vmem:[#allocation2 + $0x1978] sm:$0xff] }
 0x405   :  { %7457 = vmatpush1.bf16.msra.mxu1 %v13223_v10  ;;  %v13415_v10 = vcombine.low %v688_v60, %v696_v61  ;;  %v880_v60 = vld [vmem:[#allocation2 + $0x19b8] sm:$0xff] }
 0x406   :  { %7458 = vmatprep.subr.bf16.mxu1 %v13240_v11  ;;  %v13432_v11 = vcombine.high %v704_v4, %v712_v6  ;;  %v888_v61 = vld [vmem:[#allocation2 + $0x19f8] sm:$0xff] }
 0x409   :  { %7459 = vmatpush1.bf16.msra.mxu1 %v13239_v15  ;;  %v13431_v15 = vcombine.low %v704_v4, %v712_v6  ;;  %v896_v4 = vld [vmem:[#allocation2 + $0x1a38] sm:$0xff] }
 0x40a   :  { %7460 = vmatprep.subr.bf16.mxu1 %v13256_v16  ;;  %v13448_v16 = vcombine.high %v720_v13, %v728_v14  ;;  %v904_v6 = vld [vmem:[#allocation2 + $0x1a78] sm:$0xff] }
 0x40d   :  { %7461 = vmatpush1.bf16.msra.mxu1 %v13255_v19  ;;  %v13447_v19 = vcombine.low %v720_v13, %v728_v14  ;;  %v912_v13 = vld [vmem:[#allocation2 + $0x1ab8] sm:$0xff]  ;;  %v13623_v14 = vcombine.low %v896_v4, %v904_v6 }
 0x40e   :  { %7462 = vmatprep.subr.bf16.mxu1 %v13272_v20  ;;  %v13464_v20 = vcombine.high %v736_v17, %v744_v18 }
 0x411   :  { %7463 = vmatpush1.bf16.msra.mxu1 %v13271_v24  ;;  %v13463_v24 = vcombine.low %v736_v17, %v744_v18 }
 0x412   :  { %7464 = vmatprep.subr.bf16.mxu1 %v13288_v25  ;;  %v13480_v25 = vcombine.high %v752_v22, %v760_v23 }
 0x415   :  { %7465 = vmatpush1.bf16.msra.mxu1 %v13287_v29  ;;  %v13479_v29 = vcombine.low %v752_v22, %v760_v23  ;;  %v952_v22 = vld [vmem:[#allocation2 + $0x1bf8] sm:$0xff] }
 0x416   :  { %7475 = vmatprep.subr.bf16.mxu1 %v13304_v31  ;;  %v13496_v31 = vcombine.high %v768_v26, %v776_v28 }
 0x418   :  { %7467 = vmatmul.mubr.bf16.vlgmr.msra.gmra.mrb[16].mxu1 %v15333_v30  ;;  %v664_v30 = vld [vmem:[#allocation2 + $0x12f8] sm:$0xff] }
 0x419   :  { %7476 = vmatpush1.bf16.msra.mxu1 %v13303_v34  ;;  %7507 = vmatprep.mubr.bf16.mxu1 %v15324_v8  ;;  %v13384_v8 = vcombine.high %v656_v46, %v664_v30  ;;  %v13383_v57 = vcombine.low %v656_v46, %v664_v30  ;;  %v13495_v34 = vcombine.low %v768_v26, %v776_v28  ;;  %v848_v46 = vld [vmem:[#allocation2 + $0x18b8] sm:$0xff] }
 0x41a   :  { %7477 = vmatprep.subr.bf16.mxu1 %v13320_v5  ;;  %v13512_v5 = vcombine.high %v784_v40, %v792_v33  ;;  %v856_v30 = vld [vmem:[#allocation2 + $0x18f8] sm:$0xff] }
 0x41d   :  { %7478 = vmatpush1.bf16.msra.mxu1 %v13319_v38  ;;  %v13511_v38 = vcombine.low %v784_v40, %v792_v33 }
 0x41e   :  { %7479 = vmatprep.subr.bf16.mxu1 %v13336_v39  ;;  %v13528_v39 = vcombine.high %v800_v36, %v808_v37 }
 0x421   :  { %7480 = vmatpush1.bf16.msra.mxu1 %v13335_v43  ;;  %v13527_v43 = vcombine.low %v800_v36, %v808_v37 }
 0x422   :  { %7481 = vmatprep.subr.bf16.mxu1 %v13352_v45  ;;  %v13544_v45 = vcombine.high %v816_v41, %v824_v42 }
 0x425   :  { %7482 = vmatpush1.bf16.msra.mxu1 %v13351_v50  ;;  %v13543_v50 = vcombine.low %v816_v41, %v824_v42  ;;  %v15579_v42 = vld [vmem:[%s17235_s7 + $0x20] sm:$0xff] }
 0x426   :  { %7483 = vmatprep.subr.bf16.mxu1 %v13368_v52  ;;  %v13560_v52 = vcombine.high %v832_v48, %v840_v49 }
 0x429   :  { %7484 = vmatpush1.bf16.msra.mxu1 %v13367_v54  ;;  %v13559_v54 = vcombine.low %v832_v48, %v840_v49  ;;  %v992_v48 = vld [vmem:[#allocation2 + $0x1d38] sm:$0xff] }
 0x42a   :  { %7485 = vmatprep.subr.bf16.mxu1 %v13384_v8  ;;  %v13576_v8 = vcombine.high %v848_v46, %v856_v30  ;;  %v1000_v49 = vld [vmem:[#allocation2 + $0x1d78] sm:$0xff] }
 0x42d   :  { %7486 = vmatpush1.bf16.msra.mxu1 %v13383_v57  ;;  %v13575_v57 = vcombine.low %v848_v46, %v856_v30 }
 0x42e   :  { %7487 = vmatprep.subr.bf16.mxu1 %v13400_v58  ;;  %v13592_v58 = vcombine.high %v864_v55, %v872_v56 }
 0x431   :  { %7488 = vmatpush1.bf16.msra.mxu1 %v13399_v62  ;;  %v13591_v62 = vcombine.low %v864_v55, %v872_v56  ;;  %v1016_v55 = vld [vmem:[#allocation2 + $0x1df8] sm:$0xff] }
 0x432   :  { %7489 = vmatprep.subr.bf16.mxu1 %v13416_v2  ;;  %v13608_v2 = vcombine.high %v880_v60, %v888_v61 }
 0x435   :  { %7490 = vmatpush1.bf16.msra.mxu1 %v13415_v10  ;;  %v13607_v10 = vcombine.low %v880_v60, %v888_v61  ;;  %v13719_v60 = vcombine.low %v992_v48, %v1000_v49 }
 0x436   :  { %7491 = vmatprep.subr.bf16.mxu1 %v13432_v11  ;;  %v13624_v11 = vcombine.high %v896_v4, %v904_v6  ;;  %v1024_v6 = vld [vmem:[#allocation2 + $0x1e38] sm:$0xff] }
 0x439   :  { %7492 = vmatpush1.bf16.msra.mxu1 %v13431_v15  ;;  %v928_v15 = vld [vmem:[#allocation2 + $0x1b38] sm:$0xff] }
 0x43a   :  { %7493 = vmatprep.subr.bf16.mxu1 %v13448_v16  ;;  %v936_v16 = vld [vmem:[#allocation2 + $0x1b78] sm:$0xff] }
 0x43b   :  { %v13656_v18 = vcombine.high %v928_v15, %v936_v16  ;;  %v13655_v28 = vcombine.low %v928_v15, %v936_v16  ;;  %v1040_v15 = vld [vmem:[#allocation2 + $0x1eb8] sm:$0xff] }
 0x43c   :  { %v1048_v16 = vld [vmem:[#allocation2 + $0x1ef8] sm:$0xff] }
 0x43d   :  { %7494 = vmatpush1.bf16.msra.mxu1 %v13447_v19 }
 0x43e   :  { %7495 = vmatprep.subr.bf16.mxu1 %v13464_v20  ;;  %v944_v20 = vld [vmem:[#allocation2 + $0x1bb8] sm:$0xff] }
 0x43f   :  { %v13672_v40 = vcombine.high %v944_v20, %v952_v22  ;;  %v13671_v36 = vcombine.low %v944_v20, %v952_v22  ;;  %v1056_v20 = vld [vmem:[#allocation2 + $0x1f38] sm:$0xff] }
 0x440   :  { %v1064_v22 = vld [vmem:[#allocation2 + $0x1f78] sm:$0xff] }
 0x441   :  { %7496 = vmatpush1.bf16.msra.mxu1 %v13463_v24 }
 0x442   :  { %7497 = vmatprep.subr.bf16.mxu1 %v13480_v25 }
 0x445   :  { %7498 = vmatpush1.bf16.msra.mxu1 %v13479_v29 }
 0x446   :  { %7499 = vmatprep.subr.bf16.mxu1 %v13496_v31 }
 0x449   :  { %7500 = vmatpush1.bf16.msra.mxu1 %v13495_v34  ;;  %v960_v34 = vld [vmem:[#allocation2 + $0x1c38] sm:$0xff] }
 0x44a   :  { %7501 = vmatprep.subr.bf16.mxu1 %v13512_v5  ;;  %v968_v5 = vld [vmem:[#allocation2 + $0x1c78] sm:$0xff] }
 0x44b   :  { %v13688_v37 = vcombine.high %v960_v34, %v968_v5  ;;  %v13687_v41 = vcombine.low %v960_v34, %v968_v5 }
 0x44d   :  { %7502 = vmatpush1.bf16.msra.mxu1 %v13511_v38  ;;  %v976_v38 = vld [vmem:[#allocation2 + $0x1cb8] sm:$0xff] }
 0x44e   :  { %7503 = vmatprep.subr.bf16.mxu1 %v13528_v39  ;;  %v984_v39 = vld [vmem:[#allocation2 + $0x1cf8] sm:$0xff] }
 0x44f   :  { %v13703_v46 = vcombine.low %v976_v38, %v984_v39 }
 0x451   :  { %7504 = vmatpush1.bf16.msra.mxu1 %v13527_v43  ;;  %v13704_v43 = vcombine.high %v976_v38, %v984_v39  ;;  %v7781_v38 = vld [vmem:[%s17232_s4 + $0x58] sm:$0xff] }
 0x452   :  { %7505 = vmatprep.subr.bf16.mxu1 %v13544_v45  ;;  %v15582_v45 = vsub.s32 0, %v15295_v44 }
 0x455   :  { %7506 = vmatpush1.bf16.msra.mxu1 %v13543_v50  ;;  %v15585_v50 = vsub.s32 1, %v15295_v44 }
 0x456   :  { %7516 = vmatprep.subr.bf16.mxu1 %v13560_v52  ;;  %v7839_v52 = vrot.slane %v15579_v42, %v15582_v45 }
 0x457   :  { %v7843_v30 = vrot.slane %v15579_v42, %v15585_v50 }
 0x458   :  { %7508 = vmatmul.mubr.bf16.vlgmr.msra.gmra.mrb[16].mxu1 %v15316_v3  ;;  %v920_v3 = vld [vmem:[#allocation2 + $0x1af8] sm:$0xff] }
 0x459   :  { %7517 = vmatpush1.bf16.msra.mxu1 %v13559_v54  ;;  %7548 = vmatprep.mubr.bf16.mxu1 %v15345_v53  ;;  %v13640_v53 = vcombine.high %v912_v13, %v920_v3  ;;  %v13639_v17 = vcombine.low %v912_v13, %v920_v3  ;;  %v13720_v54 = vcombine.high %v992_v48, %v1000_v49  ;;  %v15594_v3 = vld [vmem:[%s17230_s2] sm:$0xf]  ;;  %v7789_v48 = vld [vmem:[%s17232_s4 + $0x98] sm:$0xff] }
 0x45a   :  { %7518 = vmatprep.subr.bf16.mxu1 %v13576_v8  ;;  %v1008_v8 = vld [vmem:[#allocation2 + $0x1db8] sm:$0xff] }
 0x45b   :  { %v7797_v49 = vld [vmem:[%s17232_s4 + $0xd8] sm:$0xff] }
 0x45d   :  { %7519 = vmatpush1.bf16.msra.mxu1 %v13575_v57 }
 0x45e   :  { %7520 = vmatprep.subr.bf16.mxu1 %v13592_v58 }
 0x461   :  { %7521 = vmatpush1.bf16.msra.mxu1 %v13591_v62  ;;  %v13736_v62 = vcombine.high %v1008_v8, %v1016_v55 }
 0x462   :  { %7522 = vmatprep.subr.bf16.mxu1 %v13608_v2 }
 0x465   :  { %7523 = vmatpush1.bf16.msra.mxu1 %v13607_v10  ;;  %v1032_v10 = vld [vmem:[#allocation2 + $0x1e78] sm:$0xff] }
 0x466   :  { %7524 = vmatprep.subr.bf16.mxu1 %v13624_v11 }
 0x469   :  { %7525 = vmatpush1.bf16.msra.mxu1 %v13623_v14  ;;  %v13735_v14 = vcombine.low %v1008_v8, %v1016_v55  ;;  %v7813_v8 = vld [vmem:[%s17232_s4 + $0x158] sm:$0xff]  ;;  %v15625_v55 = vsub.s32 5, %v15295_v44 }
 0x46a   :  { %7526 = vmatprep.subr.bf16.mxu1 %v13640_v53  ;;  %v13752_v53 = vcombine.high %v1024_v6, %v1032_v10 }
 0x46b   :  { %v15568_v19 = vpop.f32.mrb[12].mxu1 }
 0x46c   :  { %v15572_v24 = vpop.f32.mrb[13].mxu1 }
 0x46d   :  { %v15570_v23 = vpop.f32.mrb[12].mxu0  ;;  %v7226_v26 = vpop.f32.mrb[14].mxu1  ;;  %7527 = vmatpush1.bf16.msra.mxu1 %v13639_v17  ;;  %v13751_v17 = vcombine.low %v1024_v6, %v1032_v10 }
 0x46e   :  { %v15574_v25 = vpop.f32.mrb[13].mxu0  ;;  %v7227_v31 = vpop.f32.mrb[15].mxu1  ;;  %7528 = vmatprep.subr.bf16.mxu1 %v13656_v18  ;;  %v13768_v18 = vcombine.high %v1040_v15, %v1048_v16  ;;  %v13767_v26 = vcombine.low %v1040_v15, %v1048_v16  ;;  %v7783_v15 = vld [vmem:[%s17232_s4 + $0x68] sm:$0xff] }
 0x46f   :  { %v7390_v29 = vpop.f32.mrb[14].mxu0  ;;  %v1080_v31 = vld [vmem:[#allocation2 + $0x1ff8] sm:$0xff] }
 0x470   :  { %v7391_v33 = vpop.f32.mrb[15].mxu0  ;;  %v1072_v29 = vld [vmem:[#allocation2 + $0x1fb8] sm:$0xff] }
 0x471   :  { %7529 = vmatpush1.bf16.msra.mxu1 %v13655_v28  ;;  %v13784_v28 = vcombine.high %v1056_v20, %v1064_v22  ;;  %v13783_v33 = vcombine.low %v1056_v20, %v1064_v22  ;;  %v13800_v5 = vcombine.high %v1072_v29, %v1080_v31  ;;  %v7791_v22 = vld [vmem:[%s17232_s4 + $0xa8] sm:$0xff] }
 0x472   :  { %7530 = vmatprep.subr.bf16.mxu1 %v13672_v40 }
 0x475   :  { %7531 = vmatpush1.bf16.msra.mxu1 %v13671_v36 }
 0x476   :  { %7532 = vmatprep.subr.bf16.mxu1 %v13688_v37  ;;  %v7773_v37 = vld [vmem:[%s17232_s4 + $0x18] sm:$0xff] }
 0x479   :  { %7533 = vmatpush1.bf16.msra.mxu1 %v13687_v41  ;;  %v13799_v41 = vcombine.low %v1072_v29, %v1080_v31  ;;  %v15657_v29 = vld [vmem:[%s17235_s7 + $0x28] sm:$0xff] }
 0x47a   :  { %7534 = vmatprep.subr.bf16.mxu1 %v13704_v43  ;;  %v13808_v43 = vcombine.high %v7773_v37, %v7781_v38 }
 0x47d   :  { %v8274_v56 = vpop.f32.mrb[16].mxu0  ;;  %7535 = vmatpush1.bf16.msra.mxu1 %v13703_v46  ;;  %v13824_v46 = vcombine.high %v7789_v48, %v7797_v49 }
 0x47e   :  { %v8275_v57 = vadd.f32 %v8274_v56, %v7839_v52  ;;  %v8276_v58 = vpop.f32.mrb[17].mxu0  ;;  %7536 = vmatprep.subr.bf16.mxu1 %v13720_v54  ;;  %v13807_v52 = vcombine.low %v7773_v37, %v7781_v38  ;;  %v7805_v54 = vld [vmem:[%s17232_s4 + $0x118] sm:$0xff]  ;;  %v7871_v37 = vrot.slane %v15657_v29, %v15582_v45 }
 0x47f   :  { %v8277_v61 = vadd.f32 %v8276_v58, %v7843_v30  ;;  %v8278_v2 = vpop.f32.mrb[18].mxu0  ;;  %v15616_v30 = vsub.s32 4, %v15295_v44  ;;  %v7859_v58 = vrot.slane %v15579_v42, %v15625_v55  ;;  %v13839_v6 = vcombine.low %v7805_v54, %v7813_v8 }
 0x480   :  { %v8568_v4 = vmax.f32 %v8275_v57, 0.0  ;;  %v8279_v11 = vpop.f32.mrb[19].mxu0  ;;  %v13823_v57 = vcombine.low %v7789_v48, %v7797_v49  ;;  %v7831_v48 = vld [vmem:[%s17232_s4 + $0x1e8] sm:$0xff] }
 0x481   :  { %v8569_v13 = vmax.f32 %v8277_v61, 0.0  ;;  %7537 = vmatpush1.bf16.msra.mxu1 %v13719_v60  ;;  %v7855_v56 = vrot.slane %v15579_v42, %v15616_v30  ;;  %v13840_v60 = vcombine.high %v7805_v54, %v7813_v8  ;;  %v7821_v61 = vld [vmem:[%s17232_s4 + $0x198] sm:$0xff] }
 0x482   :  { %7538 = vmatprep.subr.bf16.mxu1 %v13736_v62 }
 0x483   :  { %8589 = vmatprep.subr.mxu0 %v8569_v13 }
 0x484   :  { %8590 = vmatpush1.msra.mxu0 %v8568_v4 }
 0x485   :  { %13873 = vmatmul.mubr.msk.f32.vlgmr.msra.gmra.mrb[36].mxu0 %vm8585_vm1, %v15594_v3  ;;  %7539 = vmatpush1.bf16.msra.mxu1 %v13735_v14 }
 0x486   :  { %8795 = vmatprep.mubr.f32.mxu0 %v15235_v63  ;;  %7540 = vmatprep.subr.bf16.mxu1 %v13752_v53  ;;  %v7775_v53 = vld [vmem:[%s17232_s4 + $0x28] sm:$0xff] }
 0x487   :  { %v13812_v20 = vcombine.high %v7775_v53, %v7783_v15 }
 0x489   :  { %7541 = vmatpush1.bf16.msra.mxu1 %v13751_v17 }
 0x48a   :  { %7542 = vmatprep.subr.bf16.mxu1 %v13768_v18 }
 0x48d   :  { %v15599_v40 = vpop.f32.mrb[20].mxu0  ;;  %7543 = vmatpush1.bf16.msra.mxu1 %v13767_v26  ;;  %v7799_v26 = vld [vmem:[%s17232_s4 + $0xe8] sm:$0xff] }
 0x48e   :  { %v15601_v34 = vpop.f32.mrb[21].mxu0  ;;  %7544 = vmatprep.subr.bf16.mxu1 %v13784_v28  ;;  %v13811_v28 = vcombine.low %v7775_v53, %v7783_v15  ;;  %v13828_v31 = vcombine.high %v7791_v22, %v7799_v26  ;;  %v13827_v38 = vcombine.low %v7791_v22, %v7799_v26  ;;  %v7817_v53 = vld [vmem:[%s17232_s4 + $0x178] sm:$0xff]  ;;  %v15705_v15 = vsub.s32 3, %v15295_v44 }
 0x48f   :  { %v8319_v36 = vpop.f32.mrb[22].mxu0  ;;  %v15717_v26 = vsub.s32 2, %v15295_v44 }
 0x490   :  { %v8320_v39 = vpop.f32.mrb[23].mxu0  ;;  %v15668_v36 = vld [vmem:[%s17229_s1] sm:$0xf] }
 0x491   :  { %7545 = vmatpush1.bf16.msra.mxu1 %v13783_v33  ;;  %v7807_v33 = vld [vmem:[%s17232_s4 + $0x128] sm:$0xff]  ;;  %v7875_v39 = vrot.slane %v15657_v29, %v15585_v50 }
 0x492   :  { %7546 = vmatprep.subr.bf16.mxu1 %v13800_v5  ;;  %v7815_v5 = vld [vmem:[%s17232_s4 + $0x168] sm:$0xff] }
 0x493   :  { %v13843_v54 = vcombine.low %v7807_v33, %v7815_v5 }
 0x495   :  { %7547 = vmatpush1.bf16.msra.mxu1 %v13799_v41  ;;  %v13844_v41 = vcombine.high %v7807_v33, %v7815_v5  ;;  %v7847_v5 = vrot.slane %v15579_v42, %v15717_v26 }
 0x496   :  { %8363 = vmatprep.subr.bf16.mxu1 %v13808_v43  ;;  %v7823_v43 = vld [vmem:[%s17232_s4 + $0x1a8] sm:$0xff] }
 0x498   :  { %7549 = vmatmul.mubr.bf16.vlgmr.msra.gmra.mrb[16].mxu1 %v15336_v32  ;;  %v7829_v32 = vld [vmem:[%s17232_s4 + $0x1d8] sm:$0xff] }
 0x499   :  { %8364 = vmatpush1.bf16.msra.mxu1 %v13807_v52  ;;  %8395 = vmatprep.mubr.bf16.mxu1 %v15234_v21  ;;  %v13856_v11 = vcombine.high %v7821_v61, %v7829_v32  ;;  %v13855_v18 = vcombine.low %v7821_v61, %v7829_v32  ;;  %v7785_v61 = vld [vmem:[%s17232_s4 + $0x78] sm:$0xff] }
 0x49a   :  { %8365 = vmatprep.subr.bf16.mxu1 %v13824_v46 }
 0x49d   :  { %v8356_v62 = vpop.f32.mrb[24].mxu0  ;;  %8366 = vmatpush1.bf16.msra.mxu1 %v13823_v57 }
 0x49e   :  { %v8357_v2 = vadd.f32 %v8356_v62, %v7855_v56  ;;  %v8358_v4 = vpop.f32.mrb[25].mxu0  ;;  %8367 = vmatprep.subr.bf16.mxu1 %v13840_v60  ;;  %v13860_v56 = vcombine.high %v7823_v43, %v7831_v48  ;;  %v7777_v60 = vld [vmem:[%s17232_s4 + $0x38] sm:$0xff] }
 0x49f   :  { %v8359_v10 = vadd.f32 %v8358_v4, %v7859_v58  ;;  %v8360_v13 = vpop.f32.mrb[26].mxu0  ;;  %v13816_v4 = vcombine.high %v7777_v60, %v7785_v61 }
 0x4a0   :  { %v8572_v14 = vmax.f32 %v8357_v2, 0.0  ;;  %v8361_v16 = vpop.f32.mrb[27].mxu0  ;;  %v13859_v2 = vcombine.low %v7823_v43, %v7831_v48 }
 0x4a1   :  { %v8573_v17 = vmax.f32 %v8359_v10, 0.0  ;;  %8368 = vmatpush1.bf16.msra.mxu1 %v13839_v6  ;;  %v7793_v6 = vld [vmem:[%s17232_s4 + $0xb8] sm:$0xff]  ;;  %v7887_v16 = vrot.slane %v15657_v29, %v15616_v30 }
 0x4a2   :  { %8369 = vmatprep.subr.bf16.mxu1 %v13856_v11  ;;  %v7801_v10 = vld [vmem:[%s17232_s4 + $0xf8] sm:$0xff]  ;;  %v13815_v11 = vcombine.low %v7777_v60, %v7785_v61 }
 0x4a3   :  { %8731 = vmatprep.subr.mxu0 %v8573_v17  ;;  %v13832_v13 = vcombine.high %v7793_v6, %v7801_v10  ;;  %v13831_v17 = vcombine.low %v7793_v6, %v7801_v10  ;;  %v14647_v60 = vld [vmem:[%s17233_s5 + $0x1c] ss:$12 sps:$4 sm:$0xff]   ;;  %v14654_v6 = vld [vmem:[%s17233_s5 + $0x60] ss:$12 sps:$4 sm:$0xff]  }
 0x4a4   :  { %8732 = vmatpush1.msra.mxu0 %v8572_v14  ;;  %v7809_v14 = vld [vmem:[%s17232_s4 + $0x138] sm:$0xff] }
 0x4a5   :  { %13875 = vmatmul.mubr.msk.f32.vlgmr.msra.gmra.mrb[38].mxu0 %vm8585_vm1, %v15594_v3  ;;  %8370 = vmatpush1.bf16.msra.mxu1 %v13855_v18  ;;  %v7851_v18 = vrot.slane %v15579_v42, %v15705_v15  ;;  %v13848_v22 = vcombine.high %v7809_v14, %v7817_v53  ;;  %v14659_v10 = vld [vmem:[%s17233_s5 + $0x7c] ss:$12 sps:$4 sm:$0xff]  }
 0x4a6   :  { %8937 = vmatprep.mubr.f32.mxu0 %v15235_v63  ;;  %8445 = vmatprep.subr.bf16.mxu1 %v13812_v20  ;;  %v7891_v20 = vrot.slane %v15657_v29, %v15625_v55 }
 0x4a8   :  { %13868 = vmatmul.mubr.msk.bf16.vlgmr.msra.gmra.mrb[20].mxu1 %vm8236_vm0, %v15668_v36 }
 0x4a9   :  { %8446 = vmatpush1.bf16.msra.mxu1 %v13811_v28  ;;  %8477 = vmatprep.mubr.bf16.mxu1 %v15234_v21  ;;  %v7825_v28 = vld [vmem:[%s17232_s4 + $0x1b8] sm:$0xff] }
 0x4aa   :  { %8447 = vmatprep.subr.bf16.mxu1 %v13828_v31  ;;  %v7833_v31 = vld [vmem:[%s17232_s4 + $0x1f8] sm:$0xff] }
 0x4ab   :  { %v13864_v48 = vcombine.high %v7825_v28, %v7833_v31 }
 0x4ad   :  { %v8438_v49 = vpop.f32.mrb[28].mxu0  ;;  %8448 = vmatpush1.bf16.msra.mxu1 %v13827_v38 }
 0x4ae   :  { %v8439_v52 = vadd.f32 %v8438_v49, %v7871_v37  ;;  %v8440_v46 = vpop.f32.mrb[29].mxu0  ;;  %8449 = vmatprep.subr.bf16.mxu1 %v13844_v41  ;;  %v8318_v41 = vadd.f32 %v15601_v34, %v7851_v18  ;;  %v14666_v18 = vld [vmem:[%s17233_s5 + $0xc0] ss:$12 sps:$4 sm:$0xff]  }
 0x4af   :  { %v8441_v8 = vadd.f32 %v8440_v46, %v7875_v39  ;;  %v8442_v57 = vpop.f32.mrb[30].mxu0  ;;  %v13847_v39 = vcombine.low %v7809_v14, %v7817_v53  ;;  %v14660_v14 = vld [vmem:[%s17233_s5 + $0x90] ss:$12 sps:$4 sm:$0xff]   ;;  %v14665_v53 = vld [vmem:[%s17233_s5 + $0xac] ss:$12 sps:$4 sm:$0xff]  }
 0x4b0   :  { %v8576_v58 = vmax.f32 %v8439_v52, 0.0  ;;  %v8443_v32 = vpop.f32.mrb[31].mxu0  ;;  %v13863_v57 = vcombine.low %v7825_v28, %v7833_v31  ;;  %v8571_v34 = vmax.f32 %v8318_v41, 0.0  ;;  %v14674_v28 = vld [vmem:[%s17233_s5 + $0xf4] ss:$12 sps:$4 sm:$0xff]  }
 0x4b1   :  { %v8577_v62 = vmax.f32 %v8441_v8, 0.0  ;;  %8450 = vmatpush1.bf16.msra.mxu1 %v13843_v54  ;;  %v14644_v8 = vld [vmem:[%s17233_s5 + $0x4] ss:$12 sps:$4 sm:$0xff]   ;;  %v14650_v32 = vld [vmem:[%s17233_s5 + $0x34] ss:$12 sps:$4 sm:$0xff]  }
 0x4b2   :  { %8451 = vmatprep.subr.bf16.mxu1 %v13860_v56  ;;  %v8316_v56 = vadd.f32 %v15599_v40, %v7847_v5  ;;  %v14645_v40 = vld [vmem:[%s17233_s5 + $0x18] ss:$12 sps:$4 sm:$0xff]   ;;  %v14672_v31 = vld [vmem:[%s17233_s5 + $0xf0] ss:$12 sps:$4 sm:$0xff]   ;;  %v14675_v5 = vld [vmem:[%s17233_s5 + $0x108] ss:$12 sps:$4 sm:$0xff]  }
 0x4b3   :  { %8873 = vmatprep.subr.mxu0 %v8577_v62  ;;  %v14648_v62 = vld [vmem:[%s17233_s5 + $0x30] ss:$12 sps:$4 sm:$0xff]   ;;  %v14681_v41 = vld [vmem:[%s17233_s5 + $0x138] ss:$12 sps:$4 sm:$0xff]  }
 0x4b4   :  { %8874 = vmatpush1.msra.mxu0 %v8576_v58  ;;  %v14642_v58 = vld [vmem:[%s17233_s5] ss:$12 sps:$4 sm:$0xff]   ;;  %v8570_v61 = vmax.f32 %v8316_v56, 0.0 }
 0x4b5   :  { %13877 = vmatmul.mubr.msk.f32.vlgmr.msra.gmra.mrb[40].mxu0 %vm8585_vm1, %v15594_v3  ;;  %8452 = vmatpush1.bf16.msra.mxu1 %v13859_v2  ;;  %v14653_v2 = vld [vmem:[%s17233_s5 + $0x4c] ss:$12 sps:$4 sm:$0xff]  }
 0x4b6   :  { %9079 = vmatprep.mubr.f32.mxu0 %v15235_v63  ;;  %8527 = vmatprep.subr.bf16.mxu1 %v13816_v4  ;;  %v14651_v4 = vld [vmem:[%s17233_s5 + $0x48] ss:$12 sps:$4 sm:$0xff]  }
 0x4b8   :  { %13870 = vmatmul.mubr.msk.bf16.vlgmr.msra.gmra.mrb[24].mxu1 %vm8236_vm0, %v15668_v36 }
 0x4b9   :  { %8528 = vmatpush1.bf16.msra.mxu1 %v13815_v11  ;;  %8559 = vmatprep.mubr.bf16.mxu1 %v15234_v21  ;;  %v14657_v11 = vld [vmem:[%s17233_s5 + $0x78] ss:$12 sps:$4 sm:$0xff]  }
 0x4ba   :  { %8529 = vmatprep.subr.bf16.mxu1 %v13832_v13  ;;  %v14662_v13 = vld [vmem:[%s17233_s5 + $0x94] ss:$12 sps:$4 sm:$0xff]  }
 0x4bd   :  { %v8520_v33 = vpop.f32.mrb[32].mxu0  ;;  %8530 = vmatpush1.bf16.msra.mxu1 %v13831_v17  ;;  %v14668_v17 = vld [vmem:[%s17233_s5 + $0xc4] ss:$12 sps:$4 sm:$0xff]  }
 0x4be   :  { %v8521_v37 = vadd.f32 %v8520_v33, %v7887_v16  ;;  %v8522_v38 = vpop.f32.mrb[33].mxu0  ;;  %8531 = vmatprep.subr.bf16.mxu1 %v13848_v22  ;;  %v14663_v16 = vld [vmem:[%s17233_s5 + $0xa8] ss:$12 sps:$4 sm:$0xff]   ;;  %v14669_v22 = vld [vmem:[%s17233_s5 + $0xd8] ss:$12 sps:$4 sm:$0xff]  }
 0x4bf   :  { %v8523_v43 = vadd.f32 %v8522_v38, %v7891_v20  ;;  %v8524_v49 = vpop.f32.mrb[34].mxu0  ;;  %v14671_v20 = vld [vmem:[%s17233_s5 + $0xdc] ss:$12 sps:$4 sm:$0xff]   ;;  %v14677_v33 = vld [vmem:[%s17233_s5 + $0x10c] ss:$12 sps:$4 sm:$0xff]  }
 0x4c0   :  { %v8580_v52 = vmax.f32 %v8521_v37, 0.0  ;;  %v8525_v46 = vpop.f32.mrb[35].mxu0  ;;  %v14680_v37 = vld [vmem:[%s17233_s5 + $0x124] ss:$12 sps:$4 sm:$0xff]   ;;  %v14678_v38 = vld [vmem:[%s17233_s5 + $0x120] ss:$12 sps:$4 sm:$0xff]  }
 0x4c1   :  { %v8581_v54 = vmax.f32 %v8523_v43, 0.0  ;;  %8532 = vmatpush1.bf16.msra.mxu1 %v13847_v39  ;;  %v14683_v39 = vld [vmem:[%s17233_s5 + $0x13c] ss:$12 sps:$4 sm:$0xff]   ;;  %v14686_v43 = vld [vmem:[%s17233_s5 + $0x154] ss:$12 sps:$4 sm:$0xff]  }
 0x4c2   :  { %8533 = vmatprep.subr.bf16.mxu1 %v13864_v48  ;;  %v14684_v48 = vld [vmem:[%s17233_s5 + $0x150] ss:$12 sps:$4 sm:$0xff]   ;;  %v14689_v49 = vld [vmem:[%s17233_s5 + $0x16c] ss:$12 sps:$4 sm:$0xff]  }
 0x4c3   :  { %9015 = vmatprep.subr.mxu0 %v8581_v54  ;;  %v14692_v46 = vld [vmem:[%s17233_s5 + $0x184] ss:$12 sps:$4 sm:$0xff]  }
 0x4c4   :  { %9016 = vmatpush1.msra.mxu0 %v8580_v52  ;;  %v14687_v52 = vld [vmem:[%s17233_s5 + $0x168] ss:$12 sps:$4 sm:$0xff]  }
 0x4c5   :  { %13879 = vmatmul.mubr.msk.f32.vlgmr.msra.gmra.mrb[42].mxu0 %vm8585_vm1, %v15594_v3  ;;  %11813 = vmatprep.subr.bf16.mxu0 %v14644_v8  ;;  %v15839_v54 = vld [vmem:[%s17235_s7 + $0x10] sm:$0xff] }
 0x4c6   :  { %8534 = vmatpush1.bf16.msra.mxu1 %v13863_v57  ;;  %11814 = vmatpush1.bf16.msra.mxu0 %v14642_v58  ;;  %v7562_v8 = vrot.slane %v15839_v54, %v15582_v45  ;;  %v7566_v56 = vrot.slane %v15839_v54, %v15585_v50  ;;  %v15848_v57 = vld [vmem:[%s17235_s7] sm:$0xff] }
 0x4c7   :  { %8660 = vmatprep.subr.mxu1 %v8571_v34  ;;  %11815 = vmatprep.subr.bf16.mxu0 %v14647_v60  ;;  %v7660_v34 = vrot.slane %v15848_v57, %v15582_v45 }
 0x4c8   :  { %v7639_v58 = vmul.f32 %v15366_v47, %v7562_v8  ;;  %v7640_v60 = vmul.f32 %v15368_v51, %v7566_v56  ;;  %v14690_v47 = vld [vmem:[%s17233_s5 + $0x180] ss:$12 sps:$4 sm:$0xff]   ;;  %v14695_v51 = vld [vmem:[%s17233_s5 + $0x19c] ss:$12 sps:$4 sm:$0xff]  }
 0x4c9   :  { %13872 = vmatmul.mubr.msk.bf16.vlgmr.msra.gmra.mrb[28].mxu1 %vm8236_vm0, %v15668_v36  ;;  %v14656_v36 = vld [vmem:[%s17233_s5 + $0x64] ss:$12 sps:$4 sm:$0xff]   ;;  %v14713_v56 = vld [vmem:[%s17233_s5 + $0x22c] ss:$12 sps:$4 sm:$0xff]  }
 0x4ca   :  { %8661 = vmatpush1.msra.mxu1 %v8570_v61  ;;  %8724 = vmatprep.mubr.f32.mxu1 %v15235_v63  ;;  %v7664_v61 = vrot.slane %v15848_v57, %v15585_v50 }
 0x4cb   :  { %11816 = vmatpush1.bf16.msra.mxu0 %v14645_v40  ;;  %v7737_v40 = vadd.f32 %v7660_v34, %v7639_v58  ;;  %v15919_v58 = vsub.s32 6, %v15295_v44 }
 0x4cc   :  { %11817 = vmatprep.subr.bf16.mxu0 %v14650_v32  ;;  %v7738_v32 = vadd.f32 %v7664_v61, %v7640_v60  ;;  %v15924_v60 = vld [vmem:[%s17235_s7 + $0x18] sm:$0xff]  ;;  %v15927_v61 = vsub.s32 7, %v15295_v44 }
 0x4cf   :  { %11818 = vmatpush1.bf16.msra.mxu0 %v14648_v62  ;;  %v7753_v62 = vmax.f32 %v7737_v40, 0.0 }
 0x4d0   :  { %11819 = vmatprep.subr.bf16.mxu0 %v14653_v2 }
 0x4d1   :  { %13874 = vmatmul.mubr.msk.f32.vlgmr.msra.gmra.mrb[32].mxu1 %vm8585_vm1, %v15594_v3 }
 0x4d2   :  { %8866 = vmatprep.mubr.f32.mxu1 %v15235_v63 }
 0x4d3   :  { %11820 = vmatpush1.bf16.msra.mxu0 %v14651_v4  ;;  %v7754_v4 = vmax.f32 %v7738_v32, 0.0 }
 0x4d4   :  { %11821 = vmatprep.subr.bf16.mxu0 %v14656_v36 }
 0x4d7   :  { %11822 = vmatpush1.bf16.msra.mxu0 %v14654_v6 }
 0x4d8   :  { %11823 = vmatprep.subr.bf16.mxu0 %v14659_v10 }
 0x4db   :  { %11824 = vmatpush1.bf16.msra.mxu0 %v14657_v11 }
 0x4dc   :  { %11825 = vmatprep.subr.bf16.mxu0 %v14662_v13 }
 0x4df   :  { %11826 = vmatpush1.bf16.msra.mxu0 %v14660_v14  ;;  %v14693_v14 = vld [vmem:[%s17233_s5 + $0x198] ss:$12 sps:$4 sm:$0xff]  }
 0x4e0   :  { %11827 = vmatprep.subr.bf16.mxu0 %v14665_v53  ;;  %v14698_v53 = vld [vmem:[%s17233_s5 + $0x1b4] ss:$12 sps:$4 sm:$0xff]  }
 0x4e3   :  { %11828 = vmatpush1.bf16.msra.mxu0 %v14663_v16  ;;  %v14696_v16 = vld [vmem:[%s17233_s5 + $0x1b0] ss:$12 sps:$4 sm:$0xff]  }
 0x4e4   :  { %11829 = vmatprep.subr.bf16.mxu0 %v14668_v17  ;;  %v14701_v17 = vld [vmem:[%s17233_s5 + $0x1cc] ss:$12 sps:$4 sm:$0xff]  }
 0x4e7   :  { %11830 = vmatpush1.bf16.msra.mxu0 %v14666_v18  ;;  %v14699_v18 = vld [vmem:[%s17233_s5 + $0x1c8] ss:$12 sps:$4 sm:$0xff]  }
 0x4e8   :  { %11831 = vmatprep.subr.bf16.mxu0 %v14671_v20  ;;  %v14704_v20 = vld [vmem:[%s17233_s5 + $0x1e4] ss:$12 sps:$4 sm:$0xff]  }
 0x4eb   :  { %11832 = vmatpush1.bf16.msra.mxu0 %v14669_v22  ;;  %v7578_v22 = vrot.slane %v15839_v54, %v15616_v30 }
 0x4ec   :  { %11833 = vmatprep.subr.bf16.mxu0 %v14674_v28  ;;  %v7582_v28 = vrot.slane %v15839_v54, %v15625_v55 }
 0x4ef   :  { %11834 = vmatpush1.bf16.msra.mxu0 %v14672_v31 }
 0x4f0   :  { %11835 = vmatprep.subr.bf16.mxu0 %v14677_v33  ;;  %v14702_v33 = vld [vmem:[%s17233_s5 + $0x1e0] ss:$12 sps:$4 sm:$0xff]  }
 0x4f3   :  { %11836 = vmatpush1.bf16.msra.mxu0 %v14675_v5 }
 0x4f4   :  { %11837 = vmatprep.subr.bf16.mxu0 %v14680_v37  ;;  %v14707_v37 = vld [vmem:[%s17233_s5 + $0x1fc] ss:$12 sps:$4 sm:$0xff]  }
 0x4f7   :  { %11838 = vmatpush1.bf16.msra.mxu0 %v14678_v38 }
 0x4f8   :  { %11839 = vmatprep.subr.bf16.mxu0 %v14683_v39  ;;  %v7643_v39 = vmul.f32 %v7578_v22, %v15388_v59 }
 0x4fb   :  { %11840 = vmatpush1.bf16.msra.mxu0 %v14681_v41  ;;  %v7676_v41 = vrot.slane %v15848_v57, %v15616_v30 }
 0x4fc   :  { %11841 = vmatprep.subr.bf16.mxu0 %v14686_v43 }
 0x4fd   :  { %v7741_v59 = vadd.f32 %v7676_v41, %v7643_v39 }
 0x4ff   :  { %11842 = vmatpush1.bf16.msra.mxu0 %v14684_v48  ;;  %v7644_v48 = vmul.f32 %v7582_v28, %v15392_v35  ;;  %v14708_v35 = vld [vmem:[%s17233_s5 + $0x210] ss:$12 sps:$4 sm:$0xff]   ;;  %v7757_v34 = vmax.f32 %v7741_v59, 0.0 }
 0x500   :  { %11843 = vmatprep.subr.bf16.mxu0 %v14689_v49  ;;  %v7680_v49 = vrot.slane %v15848_v57, %v15625_v55 }
 0x502   :  { %v7742_v8 = vadd.f32 %v7680_v49, %v7644_v48 }
 0x503   :  { %11844 = vmatpush1.bf16.msra.mxu0 %v14687_v52  ;;  %v14705_v52 = vld [vmem:[%s17233_s5 + $0x1f8] ss:$12 sps:$4 sm:$0xff]  }
 0x504   :  { %11854 = vmatprep.subr.bf16.mxu0 %v14692_v46  ;;  %v14710_v46 = vld [vmem:[%s17233_s5 + $0x214] ss:$12 sps:$4 sm:$0xff]   ;;  %v7758_v32 = vmax.f32 %v7742_v8, 0.0 }
 0x558   :  { %v8655_v2 = vpop.f32.mrb[36].mxu0 }
 0x559   :  { %v9157_v36 = vadd.f32 %v8655_v2, %v7753_v62  ;;  %v8657_v6 = vpop.f32.mrb[37].mxu0  ;;  %v14711_v62 = vld [vmem:[%s17233_s5 + $0x228] ss:$12 sps:$4 sm:$0xff]  }
 0x55a   :  { %v9158_v10 = vadd.f32 %v8657_v6, %v7754_v4  ;;  %v14716_v6 = vld [vmem:[%s17233_s5 + $0x244] ss:$12 sps:$4 sm:$0xff]  }
 0x55b   :  { %v15861_v13 = vpack.c.bf16 %v9157_v36, %v9157_v36  ;;  %v7863_v36 = vrot.slane %v15579_v42, %v15919_v58 }
 0x55c   :  { %v15856_v11 = vpack.c.bf16 %v9158_v10, %v9158_v10  ;;  %v7867_v10 = vrot.slane %v15579_v42, %v15927_v61  ;;  %v14719_v42 = vld [vmem:[%s17233_s5 + $0x25c] ss:$12 sps:$4 sm:$0xff]  }
 0x55e   :  { %11845 = vmatprep.mubr.bf16.mxu0 %v15856_v11 }
 0x55f   :  { %11846 = vmatmul.mubr.bf16.vlgmr.msra.gmra.mrb[44].mxu0 %v15861_v13 }
 0x560   :  { %11855 = vmatpush1.bf16.msra.mxu0 %v14690_v47  ;;  %v7594_v47 = vrot.slane %v15924_v60, %v15582_v45 }
 0x561   :  { %11856 = vmatprep.subr.bf16.mxu0 %v14695_v51  ;;  %v15948_v51 = vld [vmem:[%s17235_s7 + $0x8] sm:$0xff] }
 0x562   :  { %v7647_v28 = vmul.f32 %v7594_v47, %v15412_v7  ;;  %v7696_v39 = vrot.slane %v15948_v51, %v15585_v50  ;;  %v14722_v7 = vld [vmem:[%s17233_s5 + $0x274] ss:$12 sps:$4 sm:$0xff]  }
 0x564   :  { %11857 = vmatpush1.bf16.msra.mxu0 %v14693_v14  ;;  %v7598_v14 = vrot.slane %v15924_v60, %v15585_v50 }
 0x565   :  { %11858 = vmatprep.subr.bf16.mxu0 %v14698_v53 }
 0x568   :  { %11859 = vmatpush1.bf16.msra.mxu0 %v14696_v16  ;;  %v14714_v16 = vld [vmem:[%s17233_s5 + $0x240] ss:$12 sps:$4 sm:$0xff]  }
 0x569   :  { %11860 = vmatprep.subr.bf16.mxu0 %v14701_v17 }
 0x56b   :  { %v15890_v31 = vpop.f32.mrb[16].mxu1 }
 0x56c   :  { %11861 = vmatpush1.bf16.msra.mxu0 %v14699_v18  ;;  %v15895_v5 = vpop.f32.mrb[17].mxu1 }
 0x56d   :  { %11862 = vmatprep.subr.bf16.mxu0 %v14704_v20  ;;  %v7554_v38 = vpop.f32.mrb[18].mxu1 }
 0x56e   :  { %v7555_v43 = vpop.f32.mrb[19].mxu1  ;;  %v7648_v38 = vmul.f32 %v7598_v14, %v15416_v12  ;;  %v14720_v12 = vld [vmem:[%s17233_s5 + $0x270] ss:$12 sps:$4 sm:$0xff]   ;;  %v14726_v14 = vld [vmem:[%s17233_s5 + $0x2a0] ss:$12 sps:$4 sm:$0xff]  }
 0x56f   :  { %v14717_v43 = vld [vmem:[%s17233_s5 + $0x258] ss:$12 sps:$4 sm:$0xff]  }
 0x570   :  { %11863 = vmatpush1.bf16.msra.mxu0 %v14702_v33  ;;  %v7692_v33 = vrot.slane %v15948_v51, %v15582_v45 }
 0x571   :  { %11864 = vmatprep.subr.bf16.mxu0 %v14707_v37 }
 0x572   :  { %v7745_v49 = vadd.f32 %v7692_v33, %v7647_v28 }
 0x574   :  { %11865 = vmatpush1.bf16.msra.mxu0 %v14705_v52  ;;  %v7746_v52 = vadd.f32 %v7696_v39, %v7648_v38  ;;  %v7761_v59 = vmax.f32 %v7745_v49, 0.0  ;;  %v7712_v38 = vrot.slane %v15948_v51, %v15625_v55  ;;  %v7574_v49 = vrot.slane %v15839_v54, %v15705_v15 }
 0x575   :  { %11866 = vmatprep.subr.bf16.mxu0 %v14710_v46  ;;  %v14725_v46 = vld [vmem:[%s17233_s5 + $0x28c] ss:$12 sps:$4 sm:$0xff]  }
 0x578   :  { %v8797_v40 = vpop.f32.mrb[38].mxu0  ;;  %11867 = vmatpush1.bf16.msra.mxu0 %v14708_v35  ;;  %v7762_v35 = vmax.f32 %v7746_v52, 0.0 }
 0x579   :  { %v15932_v2 = vadd.f32 %v8797_v40, %v7757_v34  ;;  %v8799_v4 = vpop.f32.mrb[39].mxu0  ;;  %11868 = vmatprep.subr.bf16.mxu0 %v14713_v56  ;;  %v14723_v56 = vld [vmem:[%s17233_s5 + $0x288] ss:$12 sps:$4 sm:$0xff]  }
 0x57a   :  { %v15939_v44 = vadd.f32 %v8799_v4, %v7758_v32  ;;  %v7879_v32 = vrot.slane %v15657_v29, %v15717_v26 }
 0x57b   :  { %v8397_v53 = vpop.f32.mrb[20].mxu1 }
 0x57c   :  { %11869 = vmatpush1.bf16.msra.mxu0 %v14711_v62  ;;  %v8398_v17 = vadd.f32 %v8397_v53, %v7863_v36  ;;  %v8399_v18 = vpop.f32.mrb[21].mxu1  ;;  %v14728_v62 = vld [vmem:[%s17233_s5 + $0x2a4] ss:$12 sps:$4 sm:$0xff]   ;;  %v7883_v36 = vrot.slane %v15657_v29, %v15705_v15 }
 0x57d   :  { %11870 = vmatprep.subr.bf16.mxu0 %v14716_v6  ;;  %v8400_v20 = vadd.f32 %v8399_v18, %v7867_v10  ;;  %v8401_v22 = vpop.f32.mrb[22].mxu1  ;;  %v7610_v6 = vrot.slane %v15924_v60, %v15616_v30  ;;  %v7614_v10 = vrot.slane %v15924_v60, %v15625_v55  ;;  %v14739_v55 = vld [vmem:[%s17233_s5 + $0x2ec] ss:$12 sps:$4 sm:$0xff]  }
 0x57e   :  { %v8402_v37 = vpop.f32.mrb[23].mxu1  ;;  %v8574_v48 = vmax.f32 %v8398_v17, 0.0  ;;  %v14731_v17 = vld [vmem:[%s17233_s5 + $0x2bc] ss:$12 sps:$4 sm:$0xff]   ;;  %v7708_v22 = vrot.slane %v15948_v51, %v15616_v30 }
 0x57f   :  { %v8575_v41 = vmax.f32 %v8400_v20, 0.0  ;;  %v7651_v20 = vmul.f32 %v7610_v6, %v15570_v23  ;;  %v7652_v37 = vmul.f32 %v7614_v10, %v15574_v25  ;;  %v14734_v23 = vld [vmem:[%s17233_s5 + $0x2d4] ss:$12 sps:$4 sm:$0xff]   ;;  %v14732_v25 = vld [vmem:[%s17233_s5 + $0x2d0] ss:$12 sps:$4 sm:$0xff]   ;;  %v7642_v6 = vmul.f32 %v7574_v49, %v15390_v0 }
 0x580   :  { %11871 = vmatpush1.bf16.msra.mxu0 %v14714_v16  ;;  %v7672_v10 = vrot.slane %v15848_v57, %v15705_v15  ;;  %v14736_v0 = vld [vmem:[%s17233_s5 + $0x8] ss:$12 sps:$4 sm:$0xff]   ;;  %v14750_v49 = vld [vmem:[%s17233_s5 + $0x110] ss:$12 sps:$4 sm:$0xff]  }
 0x581   :  { %11872 = vmatprep.subr.bf16.mxu0 %v14719_v42  ;;  %8802 = vmatprep.subr.mxu1 %v8575_v41  ;;  %v14729_v41 = vld [vmem:[%s17233_s5 + $0x2b8] ss:$12 sps:$4 sm:$0xff]   ;;  %v7749_v30 = vadd.f32 %v7708_v22, %v7651_v20  ;;  %v14735_v22 = vld [vmem:[%s17233_s5 + $0xc8] ss:$12 sps:$4 sm:$0xff]  }
 0x582   :  { %8803 = vmatpush1.msra.mxu1 %v8574_v48  ;;  %v7570_v48 = vrot.slane %v15839_v54, %v15717_v26  ;;  %v7740_v20 = vadd.f32 %v7672_v10, %v7642_v6  ;;  %v14764_v6 = vld [vmem:[%s17233_s5 + $0x364] ss:$12 sps:$4 sm:$0xff]  }
 0x583   :  { %13876 = vmatmul.mubr.msk.f32.vlgmr.msra.gmra.mrb[34].mxu1 %vm8585_vm1, %v15594_v3  ;;  %v14765_v10 = vld [vmem:[%s17233_s5 + $0x158] ss:$12 sps:$4 sm:$0xff]  }
 0x584   :  { %11873 = vmatpush1.bf16.msra.mxu0 %v14717_v43  ;;  %9008 = vmatprep.mubr.f32.mxu1 %v15235_v63  ;;  %v7750_v43 = vadd.f32 %v7712_v38, %v7652_v37  ;;  %v7756_v38 = vmax.f32 %v7740_v20, 0.0  ;;  %v14772_v20 = vld [vmem:[%s17233_s5 + $0x390] ss:$12 sps:$4 sm:$0xff]  }
 0x585   :  { %11874 = vmatprep.subr.bf16.mxu0 %v14722_v7  ;;  %v7765_v7 = vmax.f32 %v7749_v30, 0.0 }
 0x588   :  { %v8939_v8 = vpop.f32.mrb[40].mxu0  ;;  %11875 = vmatpush1.bf16.msra.mxu0 %v14720_v12  ;;  %v7766_v12 = vmax.f32 %v7750_v43, 0.0  ;;  %v14745_v43 = vld [vmem:[%s17233_s5 + $0xf8] ss:$12 sps:$4 sm:$0xff]  }
 0x589   :  { %v15982_v34 = vadd.f32 %v8939_v8, %v7761_v59  ;;  %v8941_v40 = vpop.f32.mrb[41].mxu0  ;;  %11876 = vmatprep.subr.bf16.mxu0 %v14725_v46  ;;  %v14737_v46 = vld [vmem:[%s17233_s5 + $0x2e8] ss:$12 sps:$4 sm:$0xff]  }
 0x58a   :  { %v15989_v4 = vadd.f32 %v8941_v40, %v7762_v35  ;;  %v7895_v35 = vrot.slane %v15657_v29, %v15919_v58 }
 0x58b   :  { %v8479_v47 = vpop.f32.mrb[24].mxu1 }
 0x58c   :  { %11877 = vmatpush1.bf16.msra.mxu0 %v14723_v56  ;;  %v8480_v53 = vadd.f32 %v8479_v47, %v7879_v32  ;;  %v8481_v16 = vpop.f32.mrb[25].mxu1  ;;  %v14744_v56 = vld [vmem:[%s17233_s5 + $0x304] ss:$12 sps:$4 sm:$0xff]   ;;  %v7899_v32 = vrot.slane %v15657_v29, %v15927_v61 }
 0x58d   :  { %11878 = vmatprep.subr.bf16.mxu0 %v14728_v62  ;;  %v8482_v18 = vadd.f32 %v8481_v16, %v7883_v36  ;;  %v8483_v42 = vpop.f32.mrb[26].mxu1  ;;  %v7641_v62 = vmul.f32 %v7570_v48, %v15386_v27  ;;  %v7668_v36 = vrot.slane %v15848_v57, %v15717_v26  ;;  %v14749_v48 = vld [vmem:[%s17233_s5 + $0x31c] ss:$12 sps:$4 sm:$0xff]  }
 0x58e   :  { %v8578_v28 = vmax.f32 %v8480_v53, 0.0  ;;  %v8484_v33 = vpop.f32.mrb[27].mxu1 }
 0x58f   :  { %v8579_v39 = vmax.f32 %v8482_v18, 0.0  ;;  %v7739_v18 = vadd.f32 %v7668_v36, %v7641_v62  ;;  %v14757_v62 = vld [vmem:[%s17233_s5 + $0x348] ss:$12 sps:$4 sm:$0xff]   ;;  %v14761_v36 = vld [vmem:[%s17233_s5 + $0x80] ss:$12 sps:$4 sm:$0xff]  }
 0x590   :  { %11879 = vmatpush1.bf16.msra.mxu0 %v14726_v14 }
 0x591   :  { %11880 = vmatprep.subr.bf16.mxu0 %v14731_v17  ;;  %8944 = vmatprep.subr.mxu1 %v8579_v39  ;;  %v7755_v33 = vmax.f32 %v7739_v18, 0.0  ;;  %v14771_v18 = vld [vmem:[%s17233_s5 + $0xb0] ss:$12 sps:$4 sm:$0xff]  }
 0x592   :  { %8945 = vmatpush1.msra.mxu1 %v8578_v28  ;;  %v14740_v28 = vld [vmem:[%s17233_s5 + $0xe0] ss:$12 sps:$4 sm:$0xff]  }
 0x593   :  { %13878 = vmatmul.mubr.msk.f32.vlgmr.msra.gmra.mrb[36].mxu1 %vm8585_vm1, %v15594_v3 }
 0x594   :  { %11881 = vmatpush1.bf16.msra.mxu0 %v14729_v41  ;;  %9150 = vmatprep.mubr.f32.mxu1 %v15235_v63 }
 0x595   :  { %11882 = vmatprep.subr.bf16.mxu0 %v14734_v23  ;;  %v14741_v23 = vld [vmem:[%s17233_s5 + $0x20] ss:$12 sps:$4 sm:$0xff]  }
 0x598   :  { %v9081_v52 = vpop.f32.mrb[42].mxu0  ;;  %11883 = vmatpush1.bf16.msra.mxu0 %v14732_v25 }
 0x599   :  { %v16031_v59 = vadd.f32 %v9081_v52, %v7765_v7  ;;  %v9083_v8 = vpop.f32.mrb[43].mxu0  ;;  %11884 = vmatprep.subr.bf16.mxu0 %v14739_v55  ;;  %v16081_v7 = vpack.c.bf16 %v15939_v44, %v15939_v44  ;;  %v14747_v52 = vld [vmem:[%s17233_s5 + $0x318] ss:$12 sps:$4 sm:$0xff]   ;;  %v14751_v44 = vld [vmem:[%s17233_s5 + $0x50] ss:$12 sps:$4 sm:$0xff]  }
 0x59a   :  { %v16038_v40 = vadd.f32 %v9083_v8, %v7766_v12  ;;  %v14754_v12 = vld [vmem:[%s17233_s5 + $0x334] ss:$12 sps:$4 sm:$0xff]   ;;  %v14752_v8 = vld [vmem:[%s17233_s5 + $0x330] ss:$12 sps:$4 sm:$0xff]  }
 0x59c   :  { %v8561_v47 = vpop.f32.mrb[28].mxu1  ;;  %11885 = vmatpush1.bf16.msra.mxu0 %v14737_v46  ;;  %v14755_v46 = vld [vmem:[%s17233_s5 + $0x128] ss:$12 sps:$4 sm:$0xff]  }
 0x59d   :  { %v8562_v14 = vadd.f32 %v8561_v47, %v7895_v35  ;;  %v8563_v53 = vpop.f32.mrb[29].mxu1  ;;  %11895 = vmatprep.subr.bf16.mxu0 %v14744_v56  ;;  %v14756_v35 = vld [vmem:[%s17233_s5 + $0x68] ss:$12 sps:$4 sm:$0xff]   ;;  %v14759_v56 = vld [vmem:[%s17233_s5 + $0x34c] ss:$12 sps:$4 sm:$0xff]  }
 0x59e   :  { %v8564_v16 = vadd.f32 %v8563_v53, %v7899_v32  ;;  %v8565_v17 = vpop.f32.mrb[30].mxu1  ;;  %v14760_v32 = vld [vmem:[%s17233_s5 + $0x140] ss:$12 sps:$4 sm:$0xff]   ;;  %v14769_v53 = vld [vmem:[%s17233_s5 + $0x37c] ss:$12 sps:$4 sm:$0xff]  }
 0x59f   :  { %v8582_v42 = vmax.f32 %v8562_v14, 0.0  ;;  %v8566_v29 = vpop.f32.mrb[31].mxu1  ;;  %v14762_v47 = vld [vmem:[%s17233_s5 + $0x360] ss:$12 sps:$4 sm:$0xff]   ;;  %v14766_v14 = vld [vmem:[%s17233_s5 + $0x98] ss:$12 sps:$4 sm:$0xff]  }
 0x5a0   :  { %v8583_v27 = vmax.f32 %v8564_v16, 0.0  ;;  %v14770_v16 = vld [vmem:[%s17233_s5 + $0x170] ss:$12 sps:$4 sm:$0xff]   ;;  %v14767_v17 = vld [vmem:[%s17233_s5 + $0x378] ss:$12 sps:$4 sm:$0xff]  }
 0x5a1   :  { %v14775_v29 = vld [vmem:[%s17233_s5 + $0x248] ss:$12 sps:$4 sm:$0xff]  }
 0x5a2   :  { %9086 = vmatprep.subr.mxu1 %v8583_v27  ;;  %v14776_v27 = vld [vmem:[%s17233_s5 + $0x188] ss:$12 sps:$4 sm:$0xff]  }
 0x5a3   :  { %9087 = vmatpush1.msra.mxu1 %v8582_v42  ;;  %v14774_v42 = vld [vmem:[%s17233_s5 + $0x394] ss:$12 sps:$4 sm:$0xff]  }
 0x5a4   :  { %v8726_v37 = vpop.f32.mrb[32].mxu1  ;;  %13880 = vmatmul.mubr.msk.f32.vlgmr.msra.gmra.mrb[38].mxu1 %vm8585_vm1, %v15594_v3  ;;  %14294 = vmatprep.subr.bf16.mxu1 %v14735_v22  ;;  %v14742_v3 = vld [vmem:[%s17233_s5 + $0x300] ss:$12 sps:$4 sm:$0xff]  }
 0x5a5   :  { %v9159_v39 = vadd.f32 %v8726_v37, %v7755_v33  ;;  %v8728_v41 = vpop.f32.mrb[33].mxu1  ;;  %14295 = vmatpush3.bf16.msra.mxu1 %v14736_v0  ;;  %12214 = vmatprep.mubr.bf16.mxu1 %v15856_v11  ;;  %v14746_v11 = vld [vmem:[%s17233_s5 + $0x38] ss:$12 sps:$4 sm:$0xff]   ;;  %v14780_v0 = vld [vmem:[%s17233_s5 + $0x260] ss:$12 sps:$4 sm:$0xff]  }
 0x5a6   :  { %v9160_v30 = vadd.f32 %v8728_v41, %v7756_v38  ;;  %14296 = vmatprep.subr.bf16.mxu1 %v14740_v28  ;;  %v14779_v22 = vld [vmem:[%s17233_s5 + $0x3ac] ss:$12 sps:$4 sm:$0xff]   ;;  %v14777_v28 = vld [vmem:[%s17233_s5 + $0x3a8] ss:$12 sps:$4 sm:$0xff]   ;;  %v14784_v37 = vld [vmem:[%s17233_s5 + $0x3c4] ss:$12 sps:$4 sm:$0xff]  }
 0x5a7   :  { %v16071_v55 = vpack.c.bf16 %v9159_v39, %v9159_v39  ;;  %v14781_v33 = vld [vmem:[%s17233_s5 + $0x1a0] ss:$12 sps:$4 sm:$0xff]   ;;  %v14786_v39 = vld [vmem:[%s17233_s5 + $0x1b8] ss:$12 sps:$4 sm:$0xff]   ;;  %v14789_v41 = vld [vmem:[%s17233_s5 + $0x3dc] ss:$12 sps:$4 sm:$0xff]  }
 0x5a8   :  { %v16066_v25 = vpack.c.bf16 %v9160_v30, %v9160_v30  ;;  %v14782_v38 = vld [vmem:[%s17233_s5 + $0x3c0] ss:$12 sps:$4 sm:$0xff]   ;;  %v14787_v30 = vld [vmem:[%s17233_s5 + $0x3d8] ss:$12 sps:$4 sm:$0xff]  }
 0x5a9   :  { %14297 = vmatpush3.bf16.msra.mxu1 %v14741_v23  ;;  %v14790_v23 = vld [vmem:[%s17233_s5 + $0x290] ss:$12 sps:$4 sm:$0xff]  }
 0x5aa   :  { %11886 = vmatprep.mubr.bf16.mxu0 %v16066_v25  ;;  %14298 = vmatprep.subr.bf16.mxu1 %v14745_v43  ;;  %v14791_v43 = vld [vmem:[%s17233_s5 + $0x1d0] ss:$12 sps:$4 sm:$0xff]  }
 0x5ab   :  { %11887 = vmatmul.mubr.bf16.vlgmr.msra.gmra.mrb[44].mxu0 %v16071_v55 }
 0x5ac   :  { %11896 = vmatpush1.bf16.msra.mxu0 %v14742_v3  ;;  %11927 = vmatprep.mubr.bf16.mxu0 %v16081_v7  ;;  %v14795_v3 = vld [vmem:[%s17233_s5 + $0x2a8] ss:$12 sps:$4 sm:$0xff]  }
 0x5ad   :  { %14299 = vmatpush3.bf16.msra.mxu1 %v14746_v11  ;;  %11897 = vmatprep.subr.bf16.mxu0 %v14749_v48  ;;  %v14792_v11 = vld [vmem:[%s17233_s5 + $0x3f0] ss:$12 sps:$4 sm:$0xff]   ;;  %v14796_v48 = vld [vmem:[%s17233_s5 + $0x1e8] ss:$12 sps:$4 sm:$0xff]  }
 0x5ae   :  { %14300 = vmatprep.subr.bf16.mxu1 %v14750_v49  ;;  %v14799_v49 = vld [vmem:[%s17233_s5 + $0x40c] ss:$12 sps:$4 sm:$0xff]  }
 0x5b0   :  { %11898 = vmatpush1.bf16.msra.mxu0 %v14747_v52  ;;  %v14800_v52 = vld [vmem:[%s17233_s5 + $0x2c0] ss:$12 sps:$4 sm:$0xff]  }
 0x5b1   :  { %14301 = vmatpush3.bf16.msra.mxu1 %v14751_v44  ;;  %11899 = vmatprep.subr.bf16.mxu0 %v14754_v12  ;;  %v14797_v44 = vld [vmem:[%s17233_s5 + $0x408] ss:$12 sps:$4 sm:$0xff]   ;;  %v14801_v12 = vld [vmem:[%s17233_s5 + $0x200] ss:$12 sps:$4 sm:$0xff]  }
 0x5b2   :  { %14302 = vmatprep.subr.bf16.mxu1 %v14755_v46  ;;  %v14804_v46 = vld [vmem:[%s17233_s5 + $0x424] ss:$12 sps:$4 sm:$0xff]  }
 0x5b4   :  { %11900 = vmatpush1.bf16.msra.mxu0 %v14752_v8  ;;  %v14805_v8 = vld [vmem:[%s17233_s5 + $0x2d8] ss:$12 sps:$4 sm:$0xff]  }
 0x5b5   :  { %14303 = vmatpush3.bf16.msra.mxu1 %v14756_v35  ;;  %11901 = vmatprep.subr.bf16.mxu0 %v14759_v56  ;;  %v14802_v35 = vld [vmem:[%s17233_s5 + $0x420] ss:$12 sps:$4 sm:$0xff]   ;;  %v14806_v56 = vld [vmem:[%s17233_s5 + $0x218] ss:$12 sps:$4 sm:$0xff]  }
 0x5b6   :  { %14304 = vmatprep.subr.bf16.mxu1 %v14760_v32  ;;  %v14809_v32 = vld [vmem:[%s17233_s5 + $0x43c] ss:$12 sps:$4 sm:$0xff]  }
 0x5b8   :  { %11902 = vmatpush1.bf16.msra.mxu0 %v14757_v62  ;;  %v14810_v62 = vld [vmem:[%s17233_s5 + $0x2f0] ss:$12 sps:$4 sm:$0xff]  }
 0x5b9   :  { %14305 = vmatpush3.bf16.msra.mxu1 %v14761_v36  ;;  %11903 = vmatprep.subr.bf16.mxu0 %v14764_v6  ;;  %v14807_v36 = vld [vmem:[%s17233_s5 + $0x438] ss:$12 sps:$4 sm:$0xff]   ;;  %v14811_v6 = vld [vmem:[%s17233_s5 + $0x230] ss:$12 sps:$4 sm:$0xff]  }
 0x5ba   :  { %14306 = vmatprep.subr.bf16.mxu1 %v14765_v10  ;;  %v14814_v10 = vld [vmem:[%s17233_s5 + $0x454] ss:$12 sps:$4 sm:$0xff]  }
 0x5bc   :  { %11904 = vmatpush1.bf16.msra.mxu0 %v14762_v47  ;;  %v14815_v47 = vld [vmem:[%s17233_s5 + $0x3c8] ss:$12 sps:$4 sm:$0xff]  }
 0x5bd   :  { %14307 = vmatpush3.bf16.msra.mxu1 %v14766_v14  ;;  %11905 = vmatprep.subr.bf16.mxu0 %v14769_v53  ;;  %v14812_v14 = vld [vmem:[%s17233_s5 + $0x450] ss:$12 sps:$4 sm:$0xff]   ;;  %v14816_v53 = vld [vmem:[%s17233_s5 + $0x308] ss:$12 sps:$4 sm:$0xff]  }
 0x5be   :  { %14308 = vmatprep.subr.bf16.mxu1 %v14770_v16  ;;  %v14819_v16 = vld [vmem:[%s17233_s5 + $0x46c] ss:$12 sps:$4 sm:$0xff]  }
 0x5c0   :  { %11906 = vmatpush1.bf16.msra.mxu0 %v14767_v17  ;;  %v14820_v17 = vld [vmem:[%s17233_s5 + $0x3e0] ss:$12 sps:$4 sm:$0xff]  }
 0x5c1   :  { %14309 = vmatpush3.bf16.msra.mxu1 %v14771_v18  ;;  %11907 = vmatprep.subr.bf16.mxu0 %v14774_v42  ;;  %v14817_v18 = vld [vmem:[%s17233_s5 + $0x468] ss:$12 sps:$4 sm:$0xff]   ;;  %v14821_v42 = vld [vmem:[%s17233_s5 + $0x320] ss:$12 sps:$4 sm:$0xff]  }
 0x5c2   :  { %14316 = vmatprep.subr.bf16.mxu1 %v14775_v29  ;;  %v14836_v29 = vld [vmem:[%s17233_s5 + $0x484] ss:$12 sps:$4 sm:$0xff]  }
 0x5c4   :  { %11908 = vmatpush1.bf16.msra.mxu0 %v14772_v20  ;;  %12215 = vmatmul.mubr.bf16.vlgmr.msra.gmra.mrb[40].mxu1 %v15861_v13  ;;  %v14785_v13 = vld [vmem:[%s17233_s5 + $0x278] ss:$12 sps:$4 sm:$0xff]   ;;  %v14834_v20 = vld [vmem:[%s17233_s5 + $0x480] ss:$12 sps:$4 sm:$0xff]  }
 0x5c5   :  { %14317 = vmatpush3.bf16.msra.mxu1 %v14776_v27  ;;  %12254 = vmatprep.mubr.bf16.mxu1 %v16066_v25  ;;  %v14794_v25 = vld [vmem:[%s17233_s5 + $0x3f4] ss:$12 sps:$4 sm:$0xff]   ;;  %v14823_v27 = vld [vmem:[%s17233_s5 + $0x338] ss:$12 sps:$4 sm:$0xff]  }
 0x5c6   :  { %11909 = vmatprep.subr.bf16.mxu0 %v14779_v22  ;;  %14318 = vmatprep.subr.bf16.mxu1 %v14780_v0  ;;  %v14839_v22 = vld [vmem:[%s17233_s5 + $0x49c] ss:$12 sps:$4 sm:$0xff]  }
 0x5c7   :  { %v14824_v0 = vld [vmem:[%s17233_s5 + $0x410] ss:$12 sps:$4 sm:$0xff]  }
 0x5c8   :  { %11910 = vmatpush1.bf16.msra.mxu0 %v14777_v28  ;;  %v14825_v28 = vld [vmem:[%s17233_s5 + $0x350] ss:$12 sps:$4 sm:$0xff]  }
 0x5c9   :  { %14319 = vmatpush3.bf16.msra.mxu1 %v14781_v33  ;;  %11911 = vmatprep.subr.bf16.mxu0 %v14784_v37  ;;  %v14842_v33 = vld [vmem:[%s17233_s5 + $0x4b4] ss:$12 sps:$4 sm:$0xff]  }
 0x5ca   :  { %14320 = vmatprep.subr.bf16.mxu1 %v14785_v13  ;;  %v14826_v37 = vld [vmem:[%s17233_s5 + $0x428] ss:$12 sps:$4 sm:$0xff]   ;;  %v14840_v13 = vld [vmem:[%s17233_s5 + $0x4b0] ss:$12 sps:$4 sm:$0xff]  }
 0x5cc   :  { %11912 = vmatpush1.bf16.msra.mxu0 %v14782_v38  ;;  %v14827_v38 = vld [vmem:[%s17233_s5 + $0x368] ss:$12 sps:$4 sm:$0xff]  }
 0x5cd   :  { %14321 = vmatpush3.bf16.msra.mxu1 %v14786_v39  ;;  %11913 = vmatprep.subr.bf16.mxu0 %v14789_v41  ;;  %v14845_v39 = vld [vmem:[%s17233_s5 + $0x4cc] ss:$12 sps:$4 sm:$0xff]  }
 0x5ce   :  { %14322 = vmatprep.subr.bf16.mxu1 %v14790_v23  ;;  %v14828_v41 = vld [vmem:[%s17233_s5 + $0x440] ss:$12 sps:$4 sm:$0xff]   ;;  %v14843_v23 = vld [vmem:[%s17233_s5 + $0x4c8] ss:$12 sps:$4 sm:$0xff]  }
 0x5d0   :  { %11914 = vmatpush1.bf16.msra.mxu0 %v14787_v30  ;;  %v14829_v30 = vld [vmem:[%s17233_s5 + $0x380] ss:$12 sps:$4 sm:$0xff]  }
 0x5d1   :  { %14323 = vmatpush3.bf16.msra.mxu1 %v14791_v43  ;;  %11915 = vmatprep.subr.bf16.mxu0 %v14794_v25  ;;  %v14848_v43 = vld [vmem:[%s17233_s5 + $0x4e4] ss:$12 sps:$4 sm:$0xff]  }
 0x5d2   :  { %14324 = vmatprep.subr.bf16.mxu1 %v14795_v3  ;;  %v14830_v25 = vld [vmem:[%s17233_s5 + $0x458] ss:$12 sps:$4 sm:$0xff]   ;;  %v14846_v3 = vld [vmem:[%s17233_s5 + $0x4e0] ss:$12 sps:$4 sm:$0xff]  }
 0x5d4   :  { %11916 = vmatpush1.bf16.msra.mxu0 %v14792_v11  ;;  %v14831_v11 = vld [vmem:[%s17233_s5 + $0x398] ss:$12 sps:$4 sm:$0xff]  }
 0x5d5   :  { %14325 = vmatpush3.bf16.msra.mxu1 %v14796_v48  ;;  %11917 = vmatprep.subr.bf16.mxu0 %v14799_v49  ;;  %v14851_v48 = vld [vmem:[%s17233_s5 + $0x4fc] ss:$12 sps:$4 sm:$0xff]  }
 0x5d6   :  { %14326 = vmatprep.subr.bf16.mxu1 %v14800_v52  ;;  %v14832_v49 = vld [vmem:[%s17233_s5 + $0x470] ss:$12 sps:$4 sm:$0xff]   ;;  %v14849_v52 = vld [vmem:[%s17233_s5 + $0x4f8] ss:$12 sps:$4 sm:$0xff]  }
 0x5d8   :  { %11918 = vmatpush1.bf16.msra.mxu0 %v14797_v44  ;;  %v14833_v44 = vld [vmem:[%s17233_s5 + $0x3b0] ss:$12 sps:$4 sm:$0xff]  }
 0x5d9   :  { %14327 = vmatpush3.bf16.msra.mxu1 %v14801_v12  ;;  %11919 = vmatprep.subr.bf16.mxu0 %v14804_v46  ;;  %v14854_v12 = vld [vmem:[%s17233_s5 + $0x514] ss:$12 sps:$4 sm:$0xff]  }
 0x5da   :  { %14328 = vmatprep.subr.bf16.mxu1 %v14805_v8  ;;  %v14861_v46 = vld [vmem:[%s17233_s5 + $0x548] ss:$12 sps:$4 sm:$0xff]   ;;  %v14852_v8 = vld [vmem:[%s17233_s5 + $0x510] ss:$12 sps:$4 sm:$0xff]  }
 0x5dc   :  { %11920 = vmatpush1.bf16.msra.mxu0 %v14802_v35  ;;  %v14857_v35 = vld [vmem:[%s17233_s5 + $0x52c] ss:$12 sps:$4 sm:$0xff]  }
 0x5dd   :  { %14329 = vmatpush3.bf16.msra.mxu1 %v14806_v56  ;;  %11921 = vmatprep.subr.bf16.mxu0 %v14809_v32  ;;  %v14862_v56 = vld [vmem:[%s17233_s5 + $0x488] ss:$12 sps:$4 sm:$0xff]   ;;  %v14866_v32 = vld [vmem:[%s17233_s5 + $0x560] ss:$12 sps:$4 sm:$0xff]  }
 0x5de   :  { %14330 = vmatprep.subr.bf16.mxu1 %v14810_v62  ;;  %v14855_v62 = vld [vmem:[%s17233_s5 + $0x528] ss:$12 sps:$4 sm:$0xff]  }
 0x5e0   :  { %11922 = vmatpush1.bf16.msra.mxu0 %v14807_v36  ;;  %v14860_v36 = vld [vmem:[%s17233_s5 + $0x544] ss:$12 sps:$4 sm:$0xff]  }
 0x5e1   :  { %14331 = vmatpush3.bf16.msra.mxu1 %v14811_v6  ;;  %11923 = vmatprep.subr.bf16.mxu0 %v14814_v10  ;;  %v14867_v6 = vld [vmem:[%s17233_s5 + $0x4a0] ss:$12 sps:$4 sm:$0xff]   ;;  %v14871_v10 = vld [vmem:[%s17233_s5 + $0x578] ss:$12 sps:$4 sm:$0xff]  }
 0x5e2   :  { %14338 = vmatprep.subr.bf16.mxu1 %v14815_v47  ;;  %v14858_v47 = vld [vmem:[%s17233_s5 + $0x540] ss:$12 sps:$4 sm:$0xff]  }
 0x5e4   :  { %11924 = vmatpush1.bf16.msra.mxu0 %v14812_v14  ;;  %12255 = vmatmul.mubr.bf16.vlgmr.msra.gmra.mrb[44].mxu1 %v16071_v55  ;;  %v14822_v55 = vld [vmem:[%s17233_s5 + $0x3f8] ss:$12 sps:$4 sm:$0xff]   ;;  %v14865_v14 = vld [vmem:[%s17233_s5 + $0x55c] ss:$12 sps:$4 sm:$0xff]  }
 0x5e5   :  { %14339 = vmatpush3.bf16.msra.mxu1 %v14816_v53  ;;  %12294 = vmatprep.mubr.bf16.mxu1 %v16081_v7  ;;  %v9177_v7 = vpack.c.bf16 %v15932_v2, %v15932_v2  ;;  %v14837_v2 = vld [vmem:[%s17233_s5 + $0x498] ss:$12 sps:$4 sm:$0xff]  }
 0x5e6   :  { %11925 = vmatprep.subr.bf16.mxu0 %v14819_v16  ;;  %14340 = vmatprep.subr.bf16.mxu1 %v14820_v17  ;;  %v14872_v53 = vld [vmem:[%s17233_s5 + $0x4b8] ss:$12 sps:$4 sm:$0xff]   ;;  %v14876_v16 = vld [vmem:[%s17233_s5 + $0x590] ss:$12 sps:$4 sm:$0xff]  }
 0x5e7   :  { %v14863_v17 = vld [vmem:[%s17233_s5 + $0x558] ss:$12 sps:$4 sm:$0xff]  }
 0x5e8   :  { %11926 = vmatpush1.bf16.msra.mxu0 %v14817_v18  ;;  %v14870_v18 = vld [vmem:[%s17233_s5 + $0x574] ss:$12 sps:$4 sm:$0xff]  }
 0x5e9   :  { %14341 = vmatpush3.bf16.msra.mxu1 %v14821_v42  ;;  %11936 = vmatprep.subr.bf16.mxu0 %v14836_v29  ;;  %v14877_v42 = vld [vmem:[%s17233_s5 + $0x4d0] ss:$12 sps:$4 sm:$0xff]   ;;  %v14881_v29 = vld [vmem:[%s17233_s5 + $0x5a8] ss:$12 sps:$4 sm:$0xff]  }
 0x5ea   :  { %14342 = vmatprep.subr.bf16.mxu1 %v14822_v55  ;;  %v14868_v55 = vld [vmem:[%s17233_s5 + $0x570] ss:$12 sps:$4 sm:$0xff]  }
 0x5eb   :  { %11928 = vmatmul.mubr.bf16.vlgmr.msra.gmra.mrb[44].mxu0 %v9177_v7 }
 0x5ec   :  { %11937 = vmatpush1.bf16.msra.mxu0 %v14834_v20  ;;  %v14875_v20 = vld [vmem:[%s17233_s5 + $0x58c] ss:$12 sps:$4 sm:$0xff]  }
 0x5ed   :  { %14343 = vmatpush3.bf16.msra.mxu1 %v14823_v27  ;;  %11938 = vmatprep.subr.bf16.mxu0 %v14839_v22  ;;  %v14886_v27 = vld [vmem:[%s17233_s5 + $0x5c0] ss:$12 sps:$4 sm:$0xff]   ;;  %v14873_v22 = vld [vmem:[%s17233_s5 + $0x588] ss:$12 sps:$4 sm:$0xff]  }
 0x5ee   :  { %14344 = vmatprep.subr.bf16.mxu1 %v14824_v0  ;;  %v14880_v0 = vld [vmem:[%s17233_s5 + $0x5a4] ss:$12 sps:$4 sm:$0xff]  }
 0x5f0   :  { %11939 = vmatpush1.bf16.msra.mxu0 %v14837_v2  ;;  %v14887_v2 = vld [vmem:[%s17233_s5 + $0x500] ss:$12 sps:$4 sm:$0xff]  }
 0x5f1   :  { %14345 = vmatpush3.bf16.msra.mxu1 %v14825_v28  ;;  %11940 = vmatprep.subr.bf16.mxu0 %v14842_v33  ;;  %v14891_v28 = vld [vmem:[%s17233_s5 + $0x5d8] ss:$12 sps:$4 sm:$0xff]   ;;  %v14878_v33 = vld [vmem:[%s17233_s5 + $0x5a0] ss:$12 sps:$4 sm:$0xff]  }
 0x5f2   :  { %14346 = vmatprep.subr.bf16.mxu1 %v14826_v37  ;;  %v14885_v37 = vld [vmem:[%s17233_s5 + $0x5bc] ss:$12 sps:$4 sm:$0xff]  }
 0x5f4   :  { %11941 = vmatpush1.bf16.msra.mxu0 %v14840_v13  ;;  %v14892_v13 = vld [vmem:[%s17233_s5 + $0x518] ss:$12 sps:$4 sm:$0xff]  }
 0x5f5   :  { %14347 = vmatpush3.bf16.msra.mxu1 %v14827_v38  ;;  %11942 = vmatprep.subr.bf16.mxu0 %v14845_v39  ;;  %v14896_v38 = vld [vmem:[%s17233_s5 + $0x5f0] ss:$12 sps:$4 sm:$0xff]   ;;  %v14883_v39 = vld [vmem:[%s17233_s5 + $0x5b8] ss:$12 sps:$4 sm:$0xff]  }
 0x5f6   :  { %14348 = vmatprep.subr.bf16.mxu1 %v14828_v41  ;;  %v14890_v41 = vld [vmem:[%s17233_s5 + $0x5d4] ss:$12 sps:$4 sm:$0xff]  }
 0x5f8   :  { %11943 = vmatpush1.bf16.msra.mxu0 %v14843_v23  ;;  %v14897_v23 = vld [vmem:[%s17233_s5 + $0x530] ss:$12 sps:$4 sm:$0xff]  }
 0x5f9   :  { %14349 = vmatpush3.bf16.msra.mxu1 %v14829_v30  ;;  %11944 = vmatprep.subr.bf16.mxu0 %v14848_v43  ;;  %v14901_v30 = vld [vmem:[%s17233_s5 + $0x6c8] ss:$12 sps:$4 sm:$0xff]   ;;  %v14888_v43 = vld [vmem:[%s17233_s5 + $0x5d0] ss:$12 sps:$4 sm:$0xff]  }
 0x5fa   :  { %14350 = vmatprep.subr.bf16.mxu1 %v14830_v25  ;;  %v14895_v25 = vld [vmem:[%s17233_s5 + $0x5ec] ss:$12 sps:$4 sm:$0xff]  }
 0x5fc   :  { %11945 = vmatpush1.bf16.msra.mxu0 %v14846_v3  ;;  %v14893_v3 = vld [vmem:[%s17233_s5 + $0x5e8] ss:$12 sps:$4 sm:$0xff]  }
 0x5fd   :  { %14351 = vmatpush3.bf16.msra.mxu1 %v14831_v11  ;;  %11946 = vmatprep.subr.bf16.mxu0 %v14851_v48  ;;  %v14900_v11 = vld [vmem:[%s17233_s5 + $0x604] ss:$12 sps:$4 sm:$0xff]   ;;  %v7586_v48 = vrot.slane %v15839_v54, %v15919_v58 }
 0x5fe   :  { %14352 = vmatprep.subr.bf16.mxu1 %v14832_v49  ;;  %v7590_v49 = vrot.slane %v15839_v54, %v15927_v61  ;;  %v7602_v54 = vrot.slane %v15924_v60, %v15717_v26 }
 0x600   :  { %11947 = vmatpush1.bf16.msra.mxu0 %v14849_v52  ;;  %v7645_v52 = vmul.f32 %v7586_v48, %v15410_v1  ;;  %v7606_v1 = vrot.slane %v15924_v60, %v15705_v15  ;;  %v14922_v48 = vld [vmem:[%s17233_s5 + $0x668] ss:$12 sps:$4 sm:$0xff]  }
 0x601   :  { %14353 = vmatpush3.bf16.msra.mxu1 %v14833_v44  ;;  %11948 = vmatprep.subr.bf16.mxu0 %v14854_v12  ;;  %v7684_v44 = vrot.slane %v15848_v57, %v15919_v58  ;;  %v7646_v12 = vmul.f32 %v7590_v49, %v15414_v9  ;;  %v14898_v9 = vld [vmem:[%s17233_s5 + $0x600] ss:$12 sps:$4 sm:$0xff]   ;;  %v14925_v49 = vld [vmem:[%s17233_s5 + $0x67c] ss:$12 sps:$4 sm:$0xff]  }
 0x602   :  { %14360 = vmatprep.subr.bf16.mxu1 %v14861_v46  ;;  %v7688_v46 = vrot.slane %v15848_v57, %v15927_v61  ;;  %v14902_v57 = vld [vmem:[%s17233_s5 + $0x608] ss:$12 sps:$4 sm:$0xff]  }
 0x604   :  { %12295 = vmatmul.mubr.bf16.vlgmr.msra.gmra.mrb[48].mxu1 %v9177_v7  ;;  %11949 = vmatpush1.bf16.msra.mxu0 %v14852_v8  ;;  %v14882_v7 = vld [vmem:[%s17233_s5 + $0x4e8] ss:$12 sps:$4 sm:$0xff]   ;;  %v7743_v8 = vadd.f32 %v7684_v44, %v7645_v52  ;;  %v7716_v44 = vrot.slane %v15948_v51, %v15919_v58 }
 0x605   :  { %11950 = vmatprep.subr.bf16.mxu0 %v14857_v35  ;;  %14361 = vmatpush3.bf16.msra.mxu1 %v14862_v56  ;;  %v7744_v35 = vadd.f32 %v7688_v46, %v7646_v12  ;;  %v7720_v46 = vrot.slane %v15948_v51, %v15927_v61 }
 0x606   :  { %14362 = vmatprep.subr.bf16.mxu1 %v14866_v32  ;;  %v7759_v56 = vmax.f32 %v7743_v8, 0.0  ;;  %v14923_v8 = vld [vmem:[%s17233_s5 + $0x678] ss:$12 sps:$4 sm:$0xff]  }
 0x608   :  { %11951 = vmatpush1.bf16.msra.mxu0 %v14855_v62  ;;  %v7760_v62 = vmax.f32 %v7744_v35, 0.0  ;;  %v14927_v35 = vld [vmem:[%s17233_s5 + $0x680] ss:$12 sps:$4 sm:$0xff]  }
 0x609   :  { %11952 = vmatprep.subr.bf16.mxu0 %v14860_v36  ;;  %14363 = vmatpush3.bf16.msra.mxu1 %v14867_v6 }
 0x60a   :  { %14364 = vmatprep.subr.bf16.mxu1 %v14871_v10 }
 0x60c   :  { %11953 = vmatpush1.bf16.msra.mxu0 %v14858_v47 }
 0x60d   :  { %11954 = vmatprep.subr.bf16.mxu0 %v14865_v14  ;;  %14365 = vmatpush3.bf16.msra.mxu1 %v14872_v53  ;;  %v14905_v53 = vld [vmem:[%s17233_s5 + $0x61c] ss:$12 sps:$4 sm:$0xff]  }
 0x60e   :  { %14366 = vmatprep.subr.bf16.mxu1 %v14876_v16  ;;  %v14906_v16 = vld [vmem:[%s17233_s5 + $0x6e0] ss:$12 sps:$4 sm:$0xff]  }
 0x610   :  { %11955 = vmatpush1.bf16.msra.mxu0 %v14863_v17  ;;  %v7649_v17 = vmul.f32 %v7602_v54, %v15568_v19  ;;  %v14907_v19 = vld [vmem:[%s17233_s5 + $0x620] ss:$12 sps:$4 sm:$0xff]   ;;  %v14933_v54 = vld [vmem:[%s17233_s5 + $0x6a8] ss:$12 sps:$4 sm:$0xff]  }
 0x611   :  { %11956 = vmatprep.subr.bf16.mxu0 %v14870_v18  ;;  %14367 = vmatpush3.bf16.msra.mxu1 %v14877_v42  ;;  %v7700_v18 = vrot.slane %v15948_v51, %v15717_v26  ;;  %v9182_v42 = vpack.c.bf16 %v15989_v4, %v15989_v4  ;;  %v14910_v4 = vld [vmem:[%s17233_s5 + $0x634] ss:$12 sps:$4 sm:$0xff]  }
 0x612   :  { %14368 = vmatprep.subr.bf16.mxu1 %v14881_v29  ;;  %v7650_v29 = vmul.f32 %v7606_v1, %v15572_v24  ;;  %v14911_v24 = vld [vmem:[%s17233_s5 + $0x6f8] ss:$12 sps:$4 sm:$0xff]   ;;  %v14937_v1 = vld [vmem:[%s17233_s5 + $0x6b0] ss:$12 sps:$4 sm:$0xff]  }
 0x614   :  { %11957 = vmatpush1.bf16.msra.mxu0 %v14868_v55  ;;  %v7704_v55 = vrot.slane %v15948_v51, %v15705_v15  ;;  %v7747_v15 = vadd.f32 %v7700_v18, %v7649_v17  ;;  %v14928_v51 = vld [vmem:[%s17233_s5 + $0x690] ss:$12 sps:$4 sm:$0xff]   ;;  %v14942_v17 = vld [vmem:[%s17233_s5 + $0x788] ss:$12 sps:$4 sm:$0xff]   ;;  %v16597_v18 = vpack.c.bf16 %v15982_v34, %v15982_v34  ;;  %v14943_v34 = vld [vmem:[%s17233_s5 + $0x6d8] ss:$12 sps:$4 sm:$0xff]  }
 0x615   :  { %11958 = vmatprep.subr.bf16.mxu0 %v14875_v20  ;;  %14369 = vmatpush3.bf16.msra.mxu1 %v14882_v7  ;;  %v14903_v20 = vld [vmem:[%s17233_s5 + $0x618] ss:$12 sps:$4 sm:$0xff]  }
 0x616   :  { %14370 = vmatprep.subr.bf16.mxu1 %v14886_v27  ;;  %v7748_v7 = vadd.f32 %v7704_v55, %v7650_v29  ;;  %v14908_v27 = vld [vmem:[%s17233_s5 + $0x630] ss:$12 sps:$4 sm:$0xff]   ;;  %v14946_v29 = vld [vmem:[%s17233_s5 + $0x860] ss:$12 sps:$4 sm:$0xff]  }
 0x618   :  { %11959 = vmatpush1.bf16.msra.mxu0 %v14873_v22  ;;  %v14912_v22 = vld [vmem:[%s17233_s5 + $0x638] ss:$12 sps:$4 sm:$0xff]  }
 0x619   :  { %11960 = vmatprep.subr.bf16.mxu0 %v14880_v0  ;;  %14371 = vmatpush3.bf16.msra.mxu1 %v14887_v2  ;;  %v14915_v0 = vld [vmem:[%s17233_s5 + $0x64c] ss:$12 sps:$4 sm:$0xff]   ;;  %v14916_v2 = vld [vmem:[%s17233_s5 + $0x710] ss:$12 sps:$4 sm:$0xff]  }
 0x61a   :  { %14372 = vmatprep.subr.bf16.mxu1 %v14891_v28  ;;  %v7763_v28 = vmax.f32 %v7747_v15, 0.0  ;;  %v14952_v15 = vld [vmem:[%s17233_s5 + $0x7b8] ss:$12 sps:$4 sm:$0xff]  }
 0x61c   :  { %11961 = vmatpush1.bf16.msra.mxu0 %v14878_v33 }
 0x61d   :  { %11962 = vmatprep.subr.bf16.mxu0 %v14885_v37  ;;  %14373 = vmatpush3.bf16.msra.mxu1 %v14892_v13  ;;  %v7764_v37 = vmax.f32 %v7748_v7, 0.0  ;;  %v14913_v13 = vld [vmem:[%s17233_s5 + $0x648] ss:$12 sps:$4 sm:$0xff]   ;;  %v14955_v7 = vld [vmem:[%s17233_s5 + $0x70c] ss:$12 sps:$4 sm:$0xff]  }
 0x61e   :  { %14374 = vmatprep.subr.bf16.mxu1 %v14896_v38  ;;  %v14917_v38 = vld [vmem:[%s17233_s5 + $0x650] ss:$12 sps:$4 sm:$0xff]  }
 0x620   :  { %11963 = vmatpush1.bf16.msra.mxu0 %v14883_v39 }
 0x621   :  { %11964 = vmatprep.subr.bf16.mxu0 %v14890_v41  ;;  %14375 = vmatpush3.bf16.msra.mxu1 %v14897_v23  ;;  %v14920_v23 = vld [vmem:[%s17233_s5 + $0x664] ss:$12 sps:$4 sm:$0xff]  }
 0x622   :  { %14382 = vmatprep.subr.bf16.mxu1 %v14901_v30  ;;  %v14921_v30 = vld [vmem:[%s17233_s5 + $0x728] ss:$12 sps:$4 sm:$0xff]  }
 0x624   :  { %11965 = vmatpush1.bf16.msra.mxu0 %v14888_v43 }
 0x625   :  { %11966 = vmatprep.subr.bf16.mxu0 %v14895_v25  ;;  %v7618_v25 = vrot.slane %v15924_v60, %v15919_v58 }
 0x627   :  { %v7653_v52 = vmul.f32 %v7618_v25, %v15890_v31  ;;  %v14930_v31 = vld [vmem:[%s17233_s5 + $0x694] ss:$12 sps:$4 sm:$0xff]   ;;  %v14968_v25 = vld [vmem:[%s17233_s5 + $0x750] ss:$12 sps:$4 sm:$0xff]  }
 0x628   :  { %11967 = vmatpush1.bf16.msra.mxu0 %v14893_v3  ;;  %v7622_v3 = vrot.slane %v15924_v60, %v15927_v61  ;;  %v14926_v60 = vld [vmem:[%s17233_s5 + $0x740] ss:$12 sps:$4 sm:$0xff]  }
 0x629   :  { %11977 = vmatprep.subr.bf16.mxu0 %v14900_v11  ;;  %v14918_v11 = vld [vmem:[%s17233_s5 + $0x660] ss:$12 sps:$4 sm:$0xff]   ;;  %v7751_v58 = vadd.f32 %v7716_v44, %v7653_v52  ;;  %v14977_v52 = vld [vmem:[%s17233_s5 + $0x830] ss:$12 sps:$4 sm:$0xff]  }
 0x62a   :  { %v7654_v12 = vmul.f32 %v7622_v3, %v15895_v5  ;;  %v14931_v5 = vld [vmem:[%s17233_s5 + $0x758] ss:$12 sps:$4 sm:$0xff]  }
 0x62b   :  { %v14972_v3 = vld [vmem:[%s17233_s5 + $0x818] ss:$12 sps:$4 sm:$0xff]  }
 0x62c   :  { %v7752_v61 = vadd.f32 %v7720_v46, %v7654_v12  ;;  %v14980_v12 = vld [vmem:[%s17233_s5 + $0x784] ss:$12 sps:$4 sm:$0xff]   ;;  %v14981_v46 = vld [vmem:[%s17233_s5 + $0x9c8] ss:$12 sps:$4 sm:$0xff]  }
 0x656   :  { %v8868_v32 = vpop.f32.mrb[34].mxu1 }
 0x657   :  { %v9163_v36 = vadd.f32 %v8868_v32, %v7759_v56  ;;  %v8870_v6 = vpop.f32.mrb[35].mxu1  ;;  %v14932_v56 = vld [vmem:[%s17233_s5 + $0x698] ss:$12 sps:$4 sm:$0xff]  }
 0x658   :  { %v9164_v10 = vadd.f32 %v8870_v6, %v7760_v62  ;;  %v14935_v32 = vld [vmem:[%s17233_s5 + $0x6ac] ss:$12 sps:$4 sm:$0xff]   ;;  %v14936_v62 = vld [vmem:[%s17233_s5 + $0x770] ss:$12 sps:$4 sm:$0xff]  }
 0x659   :  { %v9179_v14 = vpack.c.bf16 %v9163_v36, %v9163_v36  ;;  %v7767_v36 = vmax.f32 %v7751_v58, 0.0 }
 0x65a   :  { %v9180_v47 = vpack.c.bf16 %v9164_v10, %v9164_v10  ;;  %v7768_v10 = vmax.f32 %v7752_v61, 0.0  ;;  %v14982_v61 = vld [vmem:[%s17233_s5 + $0x908] ss:$12 sps:$4 sm:$0xff]  }
 0x65c   :  { %11968 = vmatprep.mubr.bf16.mxu0 %v9180_v47  ;;  %12334 = vmatprep.mubr.bf16.mxu1 %v9180_v47 }
 0x65d   :  { %11969 = vmatmul.mubr.bf16.vlgmr.msra.gmra.mrb[44].mxu0 %v9179_v14  ;;  %12335 = vmatmul.mubr.bf16.vlgmr.msra.gmra.mrb[52].mxu1 %v9179_v14  ;;  %v14941_v14 = vld [vmem:[%s17233_s5 + $0x848] ss:$12 sps:$4 sm:$0xff]  }
 0x65e   :  { %11978 = vmatpush1.bf16.msra.mxu0 %v14898_v9  ;;  %14383 = vmatpush3.bf16.msra.mxu1 %v14902_v57  ;;  %v14940_v57 = vld [vmem:[%s17233_s5 + $0x6c4] ss:$12 sps:$4 sm:$0xff]  }
 0x65f   :  { %12009 = vmatprep.mubr.bf16.mxu0 %v9182_v42  ;;  %12374 = vmatprep.mubr.bf16.mxu1 %v9182_v42  ;;  %v14945_v42 = vld [vmem:[%s17233_s5 + $0x6dc] ss:$12 sps:$4 sm:$0xff]  }
 0x660   :  { %11979 = vmatprep.subr.bf16.mxu0 %v14905_v53  ;;  %14384 = vmatprep.subr.bf16.mxu1 %v14906_v16  ;;  %v14938_v16 = vld [vmem:[%s17233_s5 + $0x6c0] ss:$12 sps:$4 sm:$0xff]  }
 0x662   :  { %11980 = vmatpush1.bf16.msra.mxu0 %v14903_v20  ;;  %14385 = vmatpush3.bf16.msra.mxu1 %v14907_v19  ;;  %v14947_v20 = vld [vmem:[%s17233_s5 + $0x7a0] ss:$12 sps:$4 sm:$0xff]  }
 0x663   :  { %11981 = vmatprep.subr.bf16.mxu0 %v14910_v4  ;;  %14386 = vmatprep.subr.bf16.mxu1 %v14911_v24  ;;  %v14950_v19 = vld [vmem:[%s17233_s5 + $0x6f4] ss:$12 sps:$4 sm:$0xff]   ;;  %v14951_v4 = vld [vmem:[%s17233_s5 + $0x878] ss:$12 sps:$4 sm:$0xff]   ;;  %v14948_v24 = vld [vmem:[%s17233_s5 + $0x6f0] ss:$12 sps:$4 sm:$0xff]  }
 0x666   :  { %11982 = vmatpush1.bf16.msra.mxu0 %v14908_v27  ;;  %14387 = vmatpush3.bf16.msra.mxu1 %v14912_v22  ;;  %v9010_v33 = vpop.f32.mrb[36].mxu1  ;;  %v14956_v27 = vld [vmem:[%s17233_s5 + $0x890] ss:$12 sps:$4 sm:$0xff]   ;;  %v14953_v22 = vld [vmem:[%s17233_s5 + $0x708] ss:$12 sps:$4 sm:$0xff]  }
 0x667   :  { %v16519_v39 = vadd.f32 %v9010_v33, %v7763_v28  ;;  %v9012_v41 = vpop.f32.mrb[37].mxu1  ;;  %11983 = vmatprep.subr.bf16.mxu0 %v14915_v0  ;;  %14388 = vmatprep.subr.bf16.mxu1 %v14916_v2  ;;  %v14957_v0 = vld [vmem:[%s17233_s5 + $0x7d0] ss:$12 sps:$4 sm:$0xff]   ;;  %v14961_v28 = vld [vmem:[%s17233_s5 + $0x8a8] ss:$12 sps:$4 sm:$0xff]  }
 0x668   :  { %v9168_v43 = vadd.f32 %v9012_v41, %v7764_v37  ;;  %v14960_v2 = vld [vmem:[%s17233_s5 + $0x724] ss:$12 sps:$4 sm:$0xff]   ;;  %v14958_v33 = vld [vmem:[%s17233_s5 + $0x720] ss:$12 sps:$4 sm:$0xff]   ;;  %v14962_v37 = vld [vmem:[%s17233_s5 + $0x7e8] ss:$12 sps:$4 sm:$0xff]  }
 0x669   :  { %v14963_v41 = vld [vmem:[%s17233_s5 + $0x738] ss:$12 sps:$4 sm:$0xff]   ;;  %v16700_v58 = vpack.c.bf16 %v16519_v39, %v16519_v39 }
 0x66a   :  { %11984 = vmatpush1.bf16.msra.mxu0 %v14913_v13  ;;  %14389 = vmatpush3.bf16.msra.mxu1 %v14917_v38  ;;  %v16605_v55 = vpack.c.bf16 %v9168_v43, %v9168_v43  ;;  %v14965_v13 = vld [vmem:[%s17233_s5 + $0x73c] ss:$12 sps:$4 sm:$0xff]   ;;  %v14966_v38 = vld [vmem:[%s17233_s5 + $0x8c0] ss:$12 sps:$4 sm:$0xff]   ;;  %v14971_v43 = vld [vmem:[%s17233_s5 + $0x8d8] ss:$12 sps:$4 sm:$0xff]  }
 0x66b   :  { %11985 = vmatprep.subr.bf16.mxu0 %v14920_v23  ;;  %14390 = vmatprep.subr.bf16.mxu1 %v14921_v30  ;;  %v14967_v23 = vld [vmem:[%s17233_s5 + $0x800] ss:$12 sps:$4 sm:$0xff]   ;;  %v14983_v39 = vld [vmem:[%s17233_s5 + $0x798] ss:$12 sps:$4 sm:$0xff]  }
 0x66c   :  { %v14970_v30 = vld [vmem:[%s17233_s5 + $0x754] ss:$12 sps:$4 sm:$0xff]  }
 0x66e   :  { %11986 = vmatpush1.bf16.msra.mxu0 %v14918_v11  ;;  %14391 = vmatpush3.bf16.msra.mxu1 %v14922_v48  ;;  %v14975_v11 = vld [vmem:[%s17233_s5 + $0x76c] ss:$12 sps:$4 sm:$0xff]   ;;  %v14976_v48 = vld [vmem:[%s17233_s5 + $0x8f0] ss:$12 sps:$4 sm:$0xff]  }
 0x66f   :  { %11987 = vmatprep.subr.bf16.mxu0 %v14925_v49  ;;  %14392 = vmatprep.subr.bf16.mxu1 %v14926_v60  ;;  %v14973_v60 = vld [vmem:[%s17233_s5 + $0x768] ss:$12 sps:$4 sm:$0xff]  }
 0x672   :  { %11988 = vmatpush1.bf16.msra.mxu0 %v14923_v8  ;;  %14393 = vmatpush3.bf16.msra.mxu1 %v14927_v35 }
 0x673   :  { %11989 = vmatprep.subr.bf16.mxu0 %v14930_v31  ;;  %14394 = vmatprep.subr.bf16.mxu1 %v14931_v5  ;;  %v14978_v5 = vld [vmem:[%s17233_s5 + $0x780] ss:$12 sps:$4 sm:$0xff]  }
 0x676   :  { %11990 = vmatpush1.bf16.msra.mxu0 %v14928_v51  ;;  %14395 = vmatpush3.bf16.msra.mxu1 %v14932_v56  ;;  %v14985_v51 = vld [vmem:[%s17233_s5 + $0x79c] ss:$12 sps:$4 sm:$0xff]   ;;  %v14986_v56 = vld [vmem:[%s17233_s5 + $0x9e0] ss:$12 sps:$4 sm:$0xff]  }
 0x677   :  { %v9152_v6 = vpop.f32.mrb[38].mxu1  ;;  %11991 = vmatprep.subr.bf16.mxu0 %v14935_v32  ;;  %14396 = vmatprep.subr.bf16.mxu1 %v14936_v62  ;;  %v16713_v32 = vpack.c.bf16 %v16038_v40, %v16038_v40  ;;  %v14987_v62 = vld [vmem:[%s17233_s5 + $0x920] ss:$12 sps:$4 sm:$0xff]  }
 0x678   :  { %v16579_v47 = vadd.f32 %v9152_v6, %v7767_v36  ;;  %v9154_v9 = vpop.f32.mrb[39].mxu1  ;;  %v14990_v40 = vld [vmem:[%s17233_s5 + $0x7b4] ss:$12 sps:$4 sm:$0xff]   ;;  %v14991_v36 = vld [vmem:[%s17233_s5 + $0x9f8] ss:$12 sps:$4 sm:$0xff]  }
 0x679   :  { %v16587_v53 = vadd.f32 %v9154_v9, %v7768_v10  ;;  %v14988_v6 = vld [vmem:[%s17233_s5 + $0x7b0] ss:$12 sps:$4 sm:$0xff]   ;;  %v14992_v10 = vld [vmem:[%s17233_s5 + $0x938] ss:$12 sps:$4 sm:$0xff]   ;;  %v14993_v9 = vld [vmem:[%s17233_s5 + $0x7c8] ss:$12 sps:$4 sm:$0xff]  }
 0x67a   :  { %11992 = vmatpush1.bf16.msra.mxu0 %v14933_v54  ;;  %14397 = vmatpush3.bf16.msra.mxu1 %v14937_v1  ;;  %v14995_v54 = vld [vmem:[%s17233_s5 + $0x7cc] ss:$12 sps:$4 sm:$0xff]   ;;  %v14996_v1 = vld [vmem:[%s17233_s5 + $0xa10] ss:$12 sps:$4 sm:$0xff]  }
 0x67b   :  { %11993 = vmatprep.subr.bf16.mxu0 %v14940_v57  ;;  %14404 = vmatprep.subr.bf16.mxu1 %v14941_v14  ;;  %v14997_v57 = vld [vmem:[%s17233_s5 + $0x950] ss:$12 sps:$4 sm:$0xff]  }
 0x67c   :  { %v15000_v14 = vld [vmem:[%s17233_s5 + $0x7e4] ss:$12 sps:$4 sm:$0xff]  }
 0x67d   :  { %12375 = vmatmul.mubr.bf16.vlgmr.msra.gmra.mrb[56].mxu1 %v16597_v18 }
 0x67e   :  { %11994 = vmatpush1.bf16.msra.mxu0 %v14938_v16  ;;  %14405 = vmatpush3.bf16.msra.mxu1 %v14942_v17  ;;  %v15001_v16 = vld [vmem:[%s17233_s5 + $0xa28] ss:$12 sps:$4 sm:$0xff]   ;;  %v14998_v17 = vld [vmem:[%s17233_s5 + $0x7e0] ss:$12 sps:$4 sm:$0xff]  }
 0x67f   :  { %12414 = vmatprep.mubr.bf16.mxu1 %v16605_v55  ;;  %11995 = vmatprep.subr.bf16.mxu0 %v14945_v42  ;;  %v15005_v42 = vld [vmem:[%s17233_s5 + $0x7fc] ss:$12 sps:$4 sm:$0xff]  }
 0x680   :  { %14406 = vmatprep.subr.bf16.mxu1 %v14946_v29  ;;  %v15006_v29 = vld [vmem:[%s17233_s5 + $0xa40] ss:$12 sps:$4 sm:$0xff]  }
 0x682   :  { %11996 = vmatpush1.bf16.msra.mxu0 %v14943_v34  ;;  %14407 = vmatpush3.bf16.msra.mxu1 %v14947_v20  ;;  %v15007_v34 = vld [vmem:[%s17233_s5 + $0x980] ss:$12 sps:$4 sm:$0xff]  }
 0x683   :  { %11997 = vmatprep.subr.bf16.mxu0 %v14950_v19  ;;  %14408 = vmatprep.subr.bf16.mxu1 %v14951_v4  ;;  %v15010_v20 = vld [vmem:[%s17233_s5 + $0x814] ss:$12 sps:$4 sm:$0xff]   ;;  %v15011_v19 = vld [vmem:[%s17233_s5 + $0xa58] ss:$12 sps:$4 sm:$0xff]   ;;  %v15008_v4 = vld [vmem:[%s17233_s5 + $0x810] ss:$12 sps:$4 sm:$0xff]  }
 0x686   :  { %11998 = vmatpush1.bf16.msra.mxu0 %v14948_v24  ;;  %14409 = vmatpush3.bf16.msra.mxu1 %v14952_v15  ;;  %v15012_v24 = vld [vmem:[%s17233_s5 + $0x998] ss:$12 sps:$4 sm:$0xff]  }
 0x687   :  { %11999 = vmatprep.subr.bf16.mxu0 %v14955_v7  ;;  %14410 = vmatprep.subr.bf16.mxu1 %v14956_v27  ;;  %v15015_v15 = vld [vmem:[%s17233_s5 + $0x82c] ss:$12 sps:$4 sm:$0xff]   ;;  %v15016_v7 = vld [vmem:[%s17233_s5 + $0xa70] ss:$12 sps:$4 sm:$0xff]  }
 0x68a   :  { %12000 = vmatpush1.bf16.msra.mxu0 %v14953_v22  ;;  %14411 = vmatpush3.bf16.msra.mxu1 %v14957_v0  ;;  %v15013_v22 = vld [vmem:[%s17233_s5 + $0x828] ss:$12 sps:$4 sm:$0xff]  }
 0x68b   :  { %12001 = vmatprep.subr.bf16.mxu0 %v14960_v2  ;;  %14412 = vmatprep.subr.bf16.mxu1 %v14961_v28  ;;  %v15017_v2 = vld [vmem:[%s17233_s5 + $0x9b0] ss:$12 sps:$4 sm:$0xff]  }
 0x68c   :  { %v15020_v28 = vld [vmem:[%s17233_s5 + $0x844] ss:$12 sps:$4 sm:$0xff]  }
 0x68e   :  { %12002 = vmatpush1.bf16.msra.mxu0 %v14958_v33  ;;  %14413 = vmatpush3.bf16.msra.mxu1 %v14962_v37 }
 0x68f   :  { %12003 = vmatprep.subr.bf16.mxu0 %v14965_v13  ;;  %14414 = vmatprep.subr.bf16.mxu1 %v14966_v38  ;;  %v15021_v13 = vld [vmem:[%s17233_s5 + $0xb48] ss:$12 sps:$4 sm:$0xff]  }
 0x692   :  { %12004 = vmatpush1.bf16.msra.mxu0 %v14963_v41  ;;  %14415 = vmatpush3.bf16.msra.mxu1 %v14967_v23  ;;  %v15018_v23 = vld [vmem:[%s17233_s5 + $0x840] ss:$12 sps:$4 sm:$0xff]  }
 0x693   :  { %12005 = vmatprep.subr.bf16.mxu0 %v14970_v30  ;;  %14416 = vmatprep.subr.bf16.mxu1 %v14971_v43  ;;  %v15022_v30 = vld [vmem:[%s17233_s5 + $0xa88] ss:$12 sps:$4 sm:$0xff]   ;;  %v16814_v43 = vpack.c.bf16 %v16031_v59, %v16031_v59  ;;  %v15023_v59 = vld [vmem:[%s17233_s5 + $0x858] ss:$12 sps:$4 sm:$0xff]  }
 0x696   :  { %12006 = vmatpush1.bf16.msra.mxu0 %v14968_v25  ;;  %14417 = vmatpush3.bf16.msra.mxu1 %v14972_v3  ;;  %v15025_v25 = vld [vmem:[%s17233_s5 + $0x85c] ss:$12 sps:$4 sm:$0xff]   ;;  %v15026_v3 = vld [vmem:[%s17233_s5 + $0xb60] ss:$12 sps:$4 sm:$0xff]  }
 0x697   :  { %v14310_v49 = vpop.f32.mrb[40].mxu1  ;;  %12007 = vmatprep.subr.bf16.mxu0 %v14975_v11  ;;  %14418 = vmatprep.subr.bf16.mxu1 %v14976_v48  ;;  %v16824_v11 = vpack.c.bf16 %v16587_v53, %v16587_v53  ;;  %v15027_v48 = vld [vmem:[%s17233_s5 + $0xaa0] ss:$12 sps:$4 sm:$0xff]   ;;  %v15031_v53 = vld [vmem:[%s17233_s5 + $0xb78] ss:$12 sps:$4 sm:$0xff]  }
 0x698   :  { %v14311_v44 = vpop.f32.mrb[41].mxu1 }
 0x699   :  { %v16693_v8 = vadd.f32 %v14311_v44, %v14310_v49  ;;  %v14313_v35 = vpop.f32.mrb[42].mxu1  ;;  %v15030_v49 = vld [vmem:[%s17233_s5 + $0x874] ss:$12 sps:$4 sm:$0xff]   ;;  %v15035_v44 = vld [vmem:[%s17233_s5 + $0x88c] ss:$12 sps:$4 sm:$0xff]  }
 0x69a   :  { %v14314_v31 = vpop.f32.mrb[43].mxu1  ;;  %12008 = vmatpush1.bf16.msra.mxu0 %v14973_v60  ;;  %14419 = vmatpush3.bf16.msra.mxu1 %v14977_v52  ;;  %v15028_v60 = vld [vmem:[%s17233_s5 + $0x870] ss:$12 sps:$4 sm:$0xff]   ;;  %v15032_v52 = vld [vmem:[%s17233_s5 + $0xab8] ss:$12 sps:$4 sm:$0xff]  }
 0x69b   :  { %12018 = vmatprep.subr.bf16.mxu0 %v14980_v12  ;;  %14426 = vmatprep.subr.bf16.mxu1 %v14981_v46  ;;  %v15036_v12 = vld [vmem:[%s17233_s5 + $0xb90] ss:$12 sps:$4 sm:$0xff]   ;;  %v15033_v46 = vld [vmem:[%s17233_s5 + $0x888] ss:$12 sps:$4 sm:$0xff]  }
 0x69c   :  { %v15040_v35 = vld [vmem:[%s17233_s5 + $0x8a4] ss:$12 sps:$4 sm:$0xff]   ;;  %v15041_v31 = vld [vmem:[%s17233_s5 + $0xba8] ss:$12 sps:$4 sm:$0xff]  }
 0x69d   :  { %12010 = vmatmul.mubr.bf16.vlgmr.msra.gmra.mrb[44].mxu0 %v16597_v18  ;;  %12415 = vmatmul.mubr.bf16.vlgmr.msra.gmra.mrb[60].mxu1 %v16700_v58  ;;  %v15002_v18 = vld [vmem:[%s17233_s5 + $0x968] ss:$12 sps:$4 sm:$0xff]  }
 0x69e   :  { %12019 = vmatpush1.bf16.msra.mxu0 %v14978_v5  ;;  %12050 = vmatprep.mubr.bf16.mxu0 %v16605_v55  ;;  %v15003_v55 = vld [vmem:[%s17233_s5 + $0x7f8] ss:$12 sps:$4 sm:$0xff]   ;;  %v15038_v5 = vld [vmem:[%s17233_s5 + $0x8a0] ss:$12 sps:$4 sm:$0xff]  }
 0x69f   :  { %14427 = vmatpush3.bf16.msra.mxu1 %v14982_v61  ;;  %12454 = vmatprep.mubr.bf16.mxu1 %v16713_v32  ;;  %v15042_v61 = vld [vmem:[%s17233_s5 + $0xae8] ss:$12 sps:$4 sm:$0xff]  }
 0x6a0   :  { %12020 = vmatprep.subr.bf16.mxu0 %v14985_v51  ;;  %14428 = vmatprep.subr.bf16.mxu1 %v14986_v56  ;;  %v15045_v51 = vld [vmem:[%s17233_s5 + $0x8bc] ss:$12 sps:$4 sm:$0xff]   ;;  %v15046_v56 = vld [vmem:[%s17233_s5 + $0xbc0] ss:$12 sps:$4 sm:$0xff]  }
 0x6a2   :  { %12021 = vmatpush1.bf16.msra.mxu0 %v14983_v39  ;;  %v15043_v39 = vld [vmem:[%s17233_s5 + $0x8b8] ss:$12 sps:$4 sm:$0xff]  }
 0x6a3   :  { %14429 = vmatpush3.bf16.msra.mxu1 %v14987_v62  ;;  %12022 = vmatprep.subr.bf16.mxu0 %v14990_v40  ;;  %v15047_v62 = vld [vmem:[%s17233_s5 + $0xb00] ss:$12 sps:$4 sm:$0xff]  }
 0x6a4   :  { %14430 = vmatprep.subr.bf16.mxu1 %v14991_v36  ;;  %v15050_v40 = vld [vmem:[%s17233_s5 + $0x8d4] ss:$12 sps:$4 sm:$0xff]   ;;  %v15051_v36 = vld [vmem:[%s17233_s5 + $0xbd8] ss:$12 sps:$4 sm:$0xff]  }
 0x6a6   :  { %12023 = vmatpush1.bf16.msra.mxu0 %v14988_v6  ;;  %v15048_v6 = vld [vmem:[%s17233_s5 + $0x8d0] ss:$12 sps:$4 sm:$0xff]  }
 0x6a7   :  { %14431 = vmatpush3.bf16.msra.mxu1 %v14992_v10  ;;  %12024 = vmatprep.subr.bf16.mxu0 %v14995_v54  ;;  %v15052_v10 = vld [vmem:[%s17233_s5 + $0xb18] ss:$12 sps:$4 sm:$0xff]  }
 0x6a8   :  { %14432 = vmatprep.subr.bf16.mxu1 %v14996_v1  ;;  %v15055_v54 = vld [vmem:[%s17233_s5 + $0x8ec] ss:$12 sps:$4 sm:$0xff]   ;;  %v15056_v1 = vld [vmem:[%s17233_s5 + $0xbf0] ss:$12 sps:$4 sm:$0xff]  }
 0x6aa   :  { %12025 = vmatpush1.bf16.msra.mxu0 %v14993_v9 }
 0x6ab   :  { %14433 = vmatpush3.bf16.msra.mxu1 %v14997_v57  ;;  %12026 = vmatprep.subr.bf16.mxu0 %v15000_v14  ;;  %v15053_v57 = vld [vmem:[%s17233_s5 + $0x8e8] ss:$12 sps:$4 sm:$0xff]  }
 0x6ac   :  { %14434 = vmatprep.subr.bf16.mxu1 %v15001_v16  ;;  %v15057_v16 = vld [vmem:[%s17233_s5 + $0xb30] ss:$12 sps:$4 sm:$0xff]  }
 0x6ae   :  { %12027 = vmatpush1.bf16.msra.mxu0 %v14998_v17  ;;  %v15060_v17 = vld [vmem:[%s17233_s5 + $0x904] ss:$12 sps:$4 sm:$0xff]  }
 0x6af   :  { %14435 = vmatpush3.bf16.msra.mxu1 %v15002_v18  ;;  %12028 = vmatprep.subr.bf16.mxu0 %v15005_v42 }
 0x6b0   :  { %14436 = vmatprep.subr.bf16.mxu1 %v15006_v29 }
 0x6b2   :  { %12029 = vmatpush1.bf16.msra.mxu0 %v15003_v55 }
 0x6b3   :  { %14437 = vmatpush3.bf16.msra.mxu1 %v15007_v34  ;;  %12030 = vmatprep.subr.bf16.mxu0 %v15010_v20  ;;  %v15058_v34 = vld [vmem:[%s17233_s5 + $0x900] ss:$12 sps:$4 sm:$0xff]   ;;  %v15061_v20 = vld [vmem:[%s17233_s5 + $0xc08] ss:$12 sps:$4 sm:$0xff]  }
 0x6b4   :  { %14438 = vmatprep.subr.bf16.mxu1 %v15011_v19  ;;  %v16920_v19 = vpack.c.bf16 %v16579_v47, %v16579_v47  ;;  %v15065_v47 = vld [vmem:[%s17233_s5 + $0xc20] ss:$12 sps:$4 sm:$0xff]  }
 0x6b6   :  { %12031 = vmatpush1.bf16.msra.mxu0 %v15008_v4  ;;  %v15064_v4 = vld [vmem:[%s17233_s5 + $0x91c] ss:$12 sps:$4 sm:$0xff]  }
 0x6b7   :  { %v14332_v27 = vpop.f32.mrb[44].mxu1  ;;  %14439 = vmatpush3.bf16.msra.mxu1 %v15012_v24  ;;  %12032 = vmatprep.subr.bf16.mxu0 %v15015_v15  ;;  %v15062_v24 = vld [vmem:[%s17233_s5 + $0x918] ss:$12 sps:$4 sm:$0xff]   ;;  %v15068_v15 = vld [vmem:[%s17233_s5 + $0x934] ss:$12 sps:$4 sm:$0xff]  }
 0x6b8   :  { %v14333_v0 = vpop.f32.mrb[45].mxu1  ;;  %14440 = vmatprep.subr.bf16.mxu1 %v15016_v7  ;;  %v15072_v7 = vld [vmem:[%s17233_s5 + $0x94c] ss:$12 sps:$4 sm:$0xff]  }
 0x6b9   :  { %v14334_v33 = vadd.f32 %v14333_v0, %v14332_v27  ;;  %v14335_v37 = vpop.f32.mrb[46].mxu1  ;;  %v16957_v0 = vld [vmem:[%s17228_s0 + $0x10] sm:$0x3] }
 0x6ba   :  { %v14336_v38 = vpop.f32.mrb[47].mxu1  ;;  %12033 = vmatpush1.bf16.msra.mxu0 %v15013_v22  ;;  %v15070_v22 = vld [vmem:[%s17233_s5 + $0x948] ss:$12 sps:$4 sm:$0xff]  }
 0x6bb   :  { %v16804_v41 = vadd.f32 %v14334_v33, %v16693_v8  ;;  %14441 = vmatpush3.bf16.msra.mxu1 %v15017_v2  ;;  %12034 = vmatprep.subr.bf16.mxu0 %v15020_v28  ;;  %v15037_v8 = vld [vmem:[%s17233_s5 + $0xad0] ss:$12 sps:$4 sm:$0xff]   ;;  %v15076_v33 = vld [vmem:[%s17233_s5 + $0x978] ss:$12 sps:$4 sm:$0xff]   ;;  %v15081_v37 = vld [vmem:[%s17233_s5 + $0x994] ss:$12 sps:$4 sm:$0xff]  }
 0x6bc   :  { %14448 = vmatprep.subr.bf16.mxu1 %v15021_v13  ;;  %v15075_v2 = vld [vmem:[%s17233_s5 + $0x964] ss:$12 sps:$4 sm:$0xff]   ;;  %v15078_v28 = vld [vmem:[%s17233_s5 + $0x97c] ss:$12 sps:$4 sm:$0xff]   ;;  %v15084_v38 = vld [vmem:[%s17233_s5 + $0x9ac] ss:$12 sps:$4 sm:$0xff]  }
 0x6bd   :  { %v15079_v13 = vld [vmem:[%s17233_s5 + $0x990] ss:$12 sps:$4 sm:$0xff]  }
 0x6be   :  { %12455 = vmatmul.mubr.bf16.vlgmr.msra.gmra.mrb[64].mxu1 %v16814_v43  ;;  %12035 = vmatpush1.bf16.msra.mxu0 %v15018_v23  ;;  %v15087_v23 = vld [vmem:[%s17233_s5 + $0x9c4] ss:$12 sps:$4 sm:$0xff]  }
 0x6bf   :  { %14449 = vmatpush3.bf16.msra.mxu1 %v15022_v30  ;;  %12494 = vmatprep.mubr.bf16.mxu1 %v16824_v11  ;;  %v15085_v30 = vld [vmem:[%s17233_s5 + $0x9c0] ss:$12 sps:$4 sm:$0xff]  }
 0x6c0   :  { %12036 = vmatprep.subr.bf16.mxu0 %v15025_v25  ;;  %14450 = vmatprep.subr.bf16.mxu1 %v15026_v3  ;;  %v15090_v25 = vld [vmem:[%s17233_s5 + $0x9dc] ss:$12 sps:$4 sm:$0xff]   ;;  %v15088_v3 = vld [vmem:[%s17233_s5 + $0x9d8] ss:$12 sps:$4 sm:$0xff]  }
 0x6c2   :  { %12037 = vmatpush1.bf16.msra.mxu0 %v15023_v59  ;;  %v15093_v59 = vld [vmem:[%s17233_s5 + $0x9f4] ss:$12 sps:$4 sm:$0xff]  }
 0x6c3   :  { %14451 = vmatpush3.bf16.msra.mxu1 %v15027_v48  ;;  %12038 = vmatprep.subr.bf16.mxu0 %v15030_v49  ;;  %v15091_v48 = vld [vmem:[%s17233_s5 + $0x9f0] ss:$12 sps:$4 sm:$0xff]   ;;  %v15096_v49 = vld [vmem:[%s17233_s5 + $0xa0c] ss:$12 sps:$4 sm:$0xff]  }
 0x6c4   :  { %14452 = vmatprep.subr.bf16.mxu1 %v15031_v53  ;;  %v15094_v53 = vld [vmem:[%s17233_s5 + $0xa08] ss:$12 sps:$4 sm:$0xff]  }
 0x6c6   :  { %12039 = vmatpush1.bf16.msra.mxu0 %v15028_v60  ;;  %v15099_v60 = vld [vmem:[%s17233_s5 + $0xa24] ss:$12 sps:$4 sm:$0xff]  }
 0x6c7   :  { %14453 = vmatpush3.bf16.msra.mxu1 %v15032_v52  ;;  %12040 = vmatprep.subr.bf16.mxu0 %v15035_v44  ;;  %v15097_v52 = vld [vmem:[%s17233_s5 + $0xa20] ss:$12 sps:$4 sm:$0xff]   ;;  %v15102_v44 = vld [vmem:[%s17233_s5 + $0xa3c] ss:$12 sps:$4 sm:$0xff]  }
 0x6c8   :  { %14454 = vmatprep.subr.bf16.mxu1 %v15036_v12  ;;  %v15100_v12 = vld [vmem:[%s17233_s5 + $0xa38] ss:$12 sps:$4 sm:$0xff]  }
 0x6ca   :  { %12041 = vmatpush1.bf16.msra.mxu0 %v15033_v46  ;;  %v15105_v46 = vld [vmem:[%s17233_s5 + $0xa54] ss:$12 sps:$4 sm:$0xff]  }
 0x6cb   :  { %14455 = vmatpush3.bf16.msra.mxu1 %v15037_v8  ;;  %12042 = vmatprep.subr.bf16.mxu0 %v15040_v35  ;;  %v15103_v8 = vld [vmem:[%s17233_s5 + $0xa50] ss:$12 sps:$4 sm:$0xff]   ;;  %v15108_v35 = vld [vmem:[%s17233_s5 + $0xa6c] ss:$12 sps:$4 sm:$0xff]  }
 0x6cc   :  { %14456 = vmatprep.subr.bf16.mxu1 %v15041_v31  ;;  %v15106_v31 = vld [vmem:[%s17233_s5 + $0xa68] ss:$12 sps:$4 sm:$0xff]  }
 0x6ce   :  { %12043 = vmatpush1.bf16.msra.mxu0 %v15038_v5  ;;  %v15111_v5 = vld [vmem:[%s17233_s5 + $0xa84] ss:$12 sps:$4 sm:$0xff]  }
 0x6cf   :  { %14457 = vmatpush3.bf16.msra.mxu1 %v15042_v61  ;;  %12044 = vmatprep.subr.bf16.mxu0 %v15045_v51  ;;  %v15109_v61 = vld [vmem:[%s17233_s5 + $0xa80] ss:$12 sps:$4 sm:$0xff]   ;;  %v15114_v51 = vld [vmem:[%s17233_s5 + $0xa9c] ss:$12 sps:$4 sm:$0xff]  }
 0x6d0   :  { %14458 = vmatprep.subr.bf16.mxu1 %v15046_v56  ;;  %v15112_v56 = vld [vmem:[%s17233_s5 + $0xa98] ss:$12 sps:$4 sm:$0xff]  }
 0x6d2   :  { %12045 = vmatpush1.bf16.msra.mxu0 %v15043_v39  ;;  %v15117_v39 = vld [vmem:[%s17233_s5 + $0xab4] ss:$12 sps:$4 sm:$0xff]  }
 0x6d3   :  { %14459 = vmatpush3.bf16.msra.mxu1 %v15047_v62  ;;  %12046 = vmatprep.subr.bf16.mxu0 %v15050_v40  ;;  %v15115_v62 = vld [vmem:[%s17233_s5 + $0xab0] ss:$12 sps:$4 sm:$0xff]  }
 0x6d4   :  { %14460 = vmatprep.subr.bf16.mxu1 %v15051_v36  ;;  %v15123_v40 = vld [vmem:[%s17233_s5 + $0xae4] ss:$12 sps:$4 sm:$0xff]   ;;  %v15121_v36 = vld [vmem:[%s17233_s5 + $0xae0] ss:$12 sps:$4 sm:$0xff]  }
 0x6d6   :  { %12047 = vmatpush1.bf16.msra.mxu0 %v15048_v6  ;;  %v15126_v6 = vld [vmem:[%s17233_s5 + $0xafc] ss:$12 sps:$4 sm:$0xff]  }
 0x6d7   :  { %v14354_v9 = vpop.f32.mrb[48].mxu1  ;;  %14461 = vmatpush3.bf16.msra.mxu1 %v15052_v10  ;;  %12048 = vmatprep.subr.bf16.mxu0 %v15055_v54  ;;  %v15124_v10 = vld [vmem:[%s17233_s5 + $0xaf8] ss:$12 sps:$4 sm:$0xff]   ;;  %v15129_v54 = vld [vmem:[%s17233_s5 + $0xb14] ss:$12 sps:$4 sm:$0xff]  }
 0x6d8   :  { %v14355_v14 = vpop.f32.mrb[49].mxu1  ;;  %14462 = vmatprep.subr.bf16.mxu1 %v15056_v1 }
 0x6d9   :  { %v14356_v18 = vadd.f32 %v14355_v14, %v14354_v9  ;;  %v14357_v42 = vpop.f32.mrb[50].mxu1 }
 0x6da   :  { %v14358_v29 = vpop.f32.mrb[51].mxu1  ;;  %12049 = vmatpush1.bf16.msra.mxu0 %v15053_v57 }
 0x6db   :  { %v16910_v55 = vadd.f32 %v14356_v18, %v16804_v41  ;;  %14463 = vmatpush3.bf16.msra.mxu1 %v15057_v16  ;;  %12059 = vmatprep.subr.bf16.mxu0 %v15060_v17  ;;  %v15082_v41 = vld [vmem:[%s17233_s5 + $0x9a8] ss:$12 sps:$4 sm:$0xff]   ;;  %v15127_v16 = vld [vmem:[%s17233_s5 + $0xb10] ss:$12 sps:$4 sm:$0xff]   ;;  %v15132_v18 = vld [vmem:[%s17233_s5 + $0xb2c] ss:$12 sps:$4 sm:$0xff]  }
 0x6dc   :  { %14496 = vmatprep.subr.bf16.mxu1 %v15235_v63  ;;  %v15130_v29 = vld [vmem:[%s17233_s5 + $0xb28] ss:$12 sps:$4 sm:$0xff]  }
 0x6dd   :  { %12051 = vmatmul.mubr.bf16.vlgmr.msra.gmra.mrb[44].mxu0 %v16700_v58  ;;  %v15069_v58 = vld [vmem:[%s17233_s5 + $0xc38] ss:$0 sps:$4 sm:$0xff]  }
 0x6de   :  { %12495 = vmatmul.mubr.bf16.vlgmr.msra.gmra.mrb[68].mxu1 %v16920_v19  ;;  %12060 = vmatpush1.bf16.msra.mxu0 %v15058_v34  ;;  %v11811_v27 = vsel %vm11803_vm2, %v15069_v58, 0  ;;  %v15135_v34 = vld [vmem:[%s17233_s5 + $0xb44] ss:$12 sps:$4 sm:$0xff]  }
 0x6df   :  { %12091 = vmatprep.mubr.bf16.mxu0 %v16713_v32  ;;  %14497 = vmatpush3.bf16.msra.mxu1 %v15061_v20  ;;  %v15066_v32 = vld [vmem:[%s17233_s5 + $0x930] ss:$12 sps:$4 sm:$0xff]   ;;  %v15133_v20 = vld [vmem:[%s17233_s5 + $0xb40] ss:$12 sps:$4 sm:$0xff]  }
 0x6e0   :  { %12061 = vmatprep.subr.bf16.mxu0 %v15064_v4  ;;  %14498 = vmatprep.subr.bf16.mxu1 %v15235_v63  ;;  %v15136_v4 = vld [vmem:[%s17233_s5 + $0xb58] ss:$12 sps:$4 sm:$0xff]  }
 0x6e1   :  { %14502 = vmatprep.mubr.msk.bf16.mxu1 %vm15236_vm3, %v15235_v63  ;;  %v15166_v58 = vld [vmem:[%s17234_s6] sm:$0xff]  }
 0x6e2   :  { %12062 = vmatpush1.bf16.msra.mxu0 %v15062_v24  ;;  %v15141_v24 = vld [vmem:[%s17233_s5 + $0xb74] ss:$12 sps:$4 sm:$0xff]  }
 0x6e3   :  { %14499 = vmatpush3.bf16.msra.mxu1 %v15065_v47  ;;  %12063 = vmatprep.subr.bf16.mxu0 %v15068_v15  ;;  %v15139_v47 = vld [vmem:[%s17233_s5 + $0xb70] ss:$12 sps:$4 sm:$0xff]   ;;  %v15165_v15 = vld [vmem:[%s17234_s6 + $0x40] sm:$0xff]  }
 0x6e4   :  { %14500 = vmatprep.subr.bf16.mxu1 %v15235_v63  ;;  %v15073_v63 = vld [vmem:[%s17233_s5 + $0x960] ss:$12 sps:$4 sm:$0xff]  }
 0x6e6   :  { %12064 = vmatpush1.bf16.msra.mxu0 %v15066_v32  ;;  %v15167_v32 = vld [vmem:[%s17234_s6 + $0x48] sm:$0xff]  }
 0x6e7   :  { %14501 = vmatpush3.bf16.msra.mxu1 %v11811_v27  ;;  %12065 = vmatprep.subr.bf16.mxu0 %v15072_v7  ;;  %v15144_v7 = vld [vmem:[%s17233_s5 + $0xb8c] ss:$12 sps:$4 sm:$0xff]  }
 0x6e8   :  { %14474 = vmatprep.subr.bf16.mxu1 %v15165_v15  ;;  %v15168_v27 = vld [vmem:[%s17234_s6 + $0x8] sm:$0xff]  }
 0x6ea   :  { %14503 = vmatmul.mubr.msk.bf16.vlgmr.msra.gmra.mrb[72].mxu1 %vm11799_vm4, %v16957_v0  ;;  %12066 = vmatpush1.bf16.msra.mxu0 %v15070_v22  ;;  %v15142_v22 = vld [vmem:[%s17233_s5 + $0xb88] ss:$12 sps:$4 sm:$0xff]  }
 0x6eb   :  { %12067 = vmatprep.subr.bf16.mxu0 %v15075_v2  ;;  %14475 = vmatpush3.bf16.msra.mxu1 %v15166_v58  ;;  %v15169_v2 = vld [vmem:[%s17234_s6 + $0x50] sm:$0xff]  }
 0x6ec   :  { %14476 = vmatprep.subr.bf16.mxu1 %v15167_v32  ;;  %v15178_v58 = vld [vmem:[%s17234_s6 + $0x30] sm:$0xff]  }
 0x6ee   :  { %12068 = vmatpush1.bf16.msra.mxu0 %v15073_v63  ;;  %v15147_v63 = vld [vmem:[%s17233_s5 + $0xba4] ss:$12 sps:$4 sm:$0xff]  }
 0x6ef   :  { %12069 = vmatprep.subr.bf16.mxu0 %v15078_v28  ;;  %14477 = vmatpush3.bf16.msra.mxu1 %v15168_v27  ;;  %v15170_v28 = vld [vmem:[%s17234_s6 + $0x10] sm:$0xff]  }
 0x6f0   :  { %14478 = vmatprep.subr.bf16.mxu1 %v15169_v2  ;;  %v15180_v2 = vld [vmem:[%s17234_s6 + $0x38] sm:$0xff]  }
 0x6f2   :  { %12070 = vmatpush1.bf16.msra.mxu0 %v15076_v33  ;;  %v15145_v33 = vld [vmem:[%s17233_s5 + $0xba0] ss:$12 sps:$4 sm:$0xff]  }
 0x6f3   :  { %12071 = vmatprep.subr.bf16.mxu0 %v15081_v37  ;;  %v15171_v37 = vld [vmem:[%s17234_s6 + $0x58] sm:$0xff]   ;;  %14479 = vmatpush3.bf16.msra.mxu1 %v15170_v28 }
 0x6f4   :  { %14480 = vmatprep.subr.bf16.mxu1 %v15171_v37 }
 0x6f6   :  { %12072 = vmatpush1.bf16.msra.mxu0 %v15079_v13  ;;  %v15150_v13 = vld [vmem:[%s17233_s5 + $0xbbc] ss:$12 sps:$4 sm:$0xff]  }
 0x6f7   :  { %12073 = vmatprep.subr.bf16.mxu0 %v15084_v38  ;;  %v15172_v38 = vld [vmem:[%s17234_s6 + $0x18] sm:$0xff]  }
 0x6f8   :  { %14481 = vmatpush3.bf16.msra.mxu1 %v15172_v38 }
 0x6fa   :  { %12074 = vmatpush1.bf16.msra.mxu0 %v15082_v41  ;;  %v15148_v41 = vld [vmem:[%s17233_s5 + $0xbb8] ss:$12 sps:$4 sm:$0xff]  }
 0x6fb   :  { %12075 = vmatprep.subr.bf16.mxu0 %v15087_v23  ;;  %v15173_v23 = vld [vmem:[%s17234_s6 + $0x60] sm:$0xff]  }
 0x6fc   :  { %14482 = vmatprep.subr.bf16.mxu1 %v15173_v23 }
 0x6fe   :  { %12076 = vmatpush1.bf16.msra.mxu0 %v15085_v30  ;;  %v15153_v30 = vld [vmem:[%s17233_s5 + $0xbd4] ss:$12 sps:$4 sm:$0xff]  }
 0x6ff   :  { %12077 = vmatprep.subr.bf16.mxu0 %v15090_v25 }
 0x702   :  { %12078 = vmatpush1.bf16.msra.mxu0 %v15088_v3 }
 0x703   :  { %12079 = vmatprep.subr.bf16.mxu0 %v15093_v59  ;;  %v15174_v59 = vld [vmem:[%s17234_s6 + $0x20] sm:$0xff]  }
 0x704   :  { %14483 = vmatpush3.bf16.msra.mxu1 %v15174_v59 }
 0x706   :  { %12080 = vmatpush1.bf16.msra.mxu0 %v15091_v48 }
 0x707   :  { %12081 = vmatprep.subr.bf16.mxu0 %v15096_v49 }
 0x70a   :  { %12082 = vmatpush1.bf16.msra.mxu0 %v15094_v53  ;;  %v15151_v53 = vld [vmem:[%s17233_s5 + $0xbd0] ss:$12 sps:$4 sm:$0xff]  }
 0x70b   :  { %12083 = vmatprep.subr.bf16.mxu0 %v15099_v60  ;;  %v15175_v60 = vld [vmem:[%s17234_s6 + $0x68] sm:$0xff]  }
 0x70c   :  { %14484 = vmatprep.subr.bf16.mxu1 %v15175_v60 }
 0x70e   :  { %12084 = vmatpush1.bf16.msra.mxu0 %v15097_v52 }
 0x70f   :  { %12085 = vmatprep.subr.bf16.mxu0 %v15102_v44  ;;  %v15156_v44 = vld [vmem:[%s17233_s5 + $0xbec] ss:$12 sps:$4 sm:$0xff]  }
 0x712   :  { %12086 = vmatpush1.bf16.msra.mxu0 %v15100_v12 }
 0x713   :  { %12087 = vmatprep.subr.bf16.mxu0 %v15105_v46  ;;  %v15154_v46 = vld [vmem:[%s17233_s5 + $0xbe8] ss:$12 sps:$4 sm:$0xff]  }
 0x716   :  { %12088 = vmatpush1.bf16.msra.mxu0 %v15103_v8  ;;  %v15159_v8 = vld [vmem:[%s17233_s5 + $0xc04] ss:$12 sps:$4 sm:$0xff]  }
 0x717   :  { %12089 = vmatprep.subr.bf16.mxu0 %v15108_v35  ;;  %v15157_v35 = vld [vmem:[%s17233_s5 + $0xc00] ss:$12 sps:$4 sm:$0xff]  }
 0x71a   :  { %12090 = vmatpush1.bf16.msra.mxu0 %v15106_v31  ;;  %v15162_v31 = vld [vmem:[%s17233_s5 + $0xc1c] ss:$12 sps:$4 sm:$0xff]  }
 0x71b   :  { %12100 = vmatprep.subr.bf16.mxu0 %v15111_v5  ;;  %v9709_v5 = vld [vmem:[%s17233_s5 + $0xc30] sm:$0xff] }
 0x71d   :  { %12092 = vmatmul.mubr.bf16.vlgmr.msra.gmra.mrb[44].mxu0 %v16814_v43  ;;  %v15120_v43 = vld [vmem:[%s17233_s5 + $0xacc] ss:$12 sps:$4 sm:$0xff]  }
 0x71e   :  { %12101 = vmatpush1.bf16.msra.mxu0 %v15109_v61  ;;  %12132 = vmatprep.mubr.bf16.mxu0 %v16824_v11  ;;  %v15118_v11 = vld [vmem:[%s17233_s5 + $0xac8] ss:$12 sps:$4 sm:$0xff]   ;;  %v15160_v61 = vld [vmem:[%s17233_s5 + $0xc18] ss:$12 sps:$4 sm:$0xff]  }
 0x71f   :  { %12102 = vmatprep.subr.bf16.mxu0 %v15114_v51  ;;  %v14272_v51 = vcombine.high %v9709_v5, %v9709_v5 }
 0x722   :  { %12103 = vmatpush1.bf16.msra.mxu0 %v15112_v56  ;;  %v14271_v56 = vcombine.low %v9709_v5, %v9709_v5 }
 0x723   :  { %12104 = vmatprep.subr.bf16.mxu0 %v15117_v39 }
 0x724   :  { %v11805_v39 = vsel %vm11803_vm2, %v14271_v56, 0 }
 0x726   :  { %12105 = vmatpush1.bf16.msra.mxu0 %v15115_v62 }
 0x727   :  { %12106 = vmatprep.subr.bf16.mxu0 %v15120_v43 }
 0x72a   :  { %12107 = vmatpush1.bf16.msra.mxu0 %v15118_v11 }
 0x72b   :  { %12108 = vmatprep.subr.bf16.mxu0 %v15123_v40 }
 0x72e   :  { %12109 = vmatpush1.bf16.msra.mxu0 %v15121_v36 }
 0x72f   :  { %12110 = vmatprep.subr.bf16.mxu0 %v15126_v6 }
 0x730   :  { %v14376_v1 = vpop.f32.mrb[52].mxu1 }
 0x731   :  { %v14377_v9 = vpop.f32.mrb[53].mxu1 }
 0x732   :  { %12111 = vmatpush1.bf16.msra.mxu0 %v15124_v10  ;;  %v14378_v57 = vadd.f32 %v14377_v9, %v14376_v1  ;;  %v14379_v14 = vpop.f32.mrb[54].mxu1 }
 0x733   :  { %v14380_v17 = vpop.f32.mrb[55].mxu1  ;;  %12112 = vmatprep.subr.bf16.mxu0 %v15129_v54 }
 0x734   :  { %v12337_v42 = vadd.f32 %v14378_v57, %v16910_v55  ;;  %v15138_v55 = vld [vmem:[%s17233_s5 + $0xb5c] ss:$12 sps:$4 sm:$0xff]  }
 0x736   :  { %12113 = vmatpush1.bf16.msra.mxu0 %v15127_v16 }
 0x737   :  { %12114 = vmatprep.subr.bf16.mxu0 %v15132_v18 }
 0x73a   :  { %12115 = vmatpush1.bf16.msra.mxu0 %v15130_v29  ;;  %v54_v29 = vld [vmem:[%s17235_s7 + $0x30] sm:$0x7] }
 0x73b   :  { %12116 = vmatprep.subr.bf16.mxu0 %v15135_v34  ;;  %v15176_v34 = vld [vmem:[%s17234_s6 + $0x28] sm:$0xff]  }
 0x73c   :  { %14485 = vmatpush3.bf16.msra.mxu1 %v15176_v34 }
 0x73e   :  { %12117 = vmatpush1.bf16.msra.mxu0 %v15133_v20 }
 0x73f   :  { %12118 = vmatprep.subr.bf16.mxu0 %v15138_v55 }
 0x742   :  { %12119 = vmatpush1.bf16.msra.mxu0 %v15136_v4 }
 0x743   :  { %12120 = vmatprep.subr.bf16.mxu0 %v15141_v24  ;;  %v12573_v24 = vrot.slane %v54_v29, %v15717_v26 }
 0x746   :  { %12121 = vmatpush1.bf16.msra.mxu0 %v15139_v47  ;;  %v15177_v47 = vld [vmem:[%s17234_s6 + $0x70] sm:$0xff]  }
 0x747   :  { %12122 = vmatprep.subr.bf16.mxu0 %v15144_v7  ;;  %14486 = vmatprep.subr.bf16.mxu1 %v15177_v47 }
 0x748   :  { %14487 = vmatpush3.bf16.msra.mxu1 %v15178_v58 }
 0x74a   :  { %12123 = vmatpush1.bf16.msra.mxu0 %v15142_v22 }
 0x74b   :  { %12124 = vmatprep.subr.bf16.mxu0 %v15147_v63 }
 0x74e   :  { %12125 = vmatpush1.bf16.msra.mxu0 %v15145_v33  ;;  %v12565_v33 = vrot.slane %v54_v29, %v15582_v45 }
 0x74f   :  { %12126 = vmatprep.subr.bf16.mxu0 %v15150_v13  ;;  %v12569_v13 = vrot.slane %v54_v29, %v15585_v50 }
 0x750   :  { %v14398_v25 = vpop.f32.mrb[56].mxu1 }
 0x751   :  { %v14399_v3 = vpop.f32.mrb[57].mxu1 }
 0x752   :  { %v14400_v48 = vadd.f32 %v14399_v3, %v14398_v25  ;;  %12127 = vmatpush1.bf16.msra.mxu0 %v15148_v41  ;;  %v14401_v49 = vpop.f32.mrb[58].mxu1 }
 0x753   :  { %v14402_v52 = vpop.f32.mrb[59].mxu1  ;;  %12128 = vmatprep.subr.bf16.mxu0 %v15153_v30 }
 0x754   :  { %v12377_v12 = vadd.f32 %v14400_v48, %v12337_v42 }
 0x756   :  { %12129 = vmatpush1.bf16.msra.mxu0 %v15151_v53 }
 0x757   :  { %12130 = vmatprep.subr.bf16.mxu0 %v15156_v44 }
 0x75a   :  { %12131 = vmatpush1.bf16.msra.mxu0 %v15154_v46 }
 0x75b   :  { %12141 = vmatprep.subr.bf16.mxu0 %v15159_v8 }
 0x75d   :  { %12133 = vmatmul.mubr.bf16.vlgmr.msra.gmra.mrb[44].mxu0 %v16920_v19 }
 0x75e   :  { %12142 = vmatpush1.bf16.msra.mxu0 %v15157_v35  ;;  %12173 = vmatprep.mubr.bf16.mxu0 %v15234_v21 }
 0x75f   :  { %12143 = vmatprep.subr.bf16.mxu0 %v15162_v31 }
 0x762   :  { %12144 = vmatpush1.bf16.msra.mxu0 %v15160_v61 }
 0x763   :  { %14274 = vmatprep.subr.msk.bf16.mxu0 %vm11803_vm2, %v14272_v51 }
 0x766   :  { %12146 = vmatpush1.bf16.msra.mxu0 %v11805_v39 }
 0x769   :  { %14275 = vmatmul.mubr.msk.bf16.vlgmr.msra.gmra.mrb[44].mxu0 %vm11799_vm4, %v16957_v0  ;;  %v55_v0 = vld [vmem:[%s17235_s7 + $0x33] sm:$0x7] }
 0x76a   :  { %v12554_v20 = vrot.slane %v55_v0, %v15717_v26  ;;  %v15179_v26 = vld [vmem:[%s17234_s6 + $0x78] sm:$0xff]   ;;  %v12546_v63 = vrot.slane %v55_v0, %v15582_v45  ;;  %v12550_v28 = vrot.slane %v55_v0, %v15585_v50  ;;  %v14277_v45 = vld [vmem:[%s17235_s7 + $0x36] ss:$0 sm:$0xff] }
 0x76b   :  { %14488 = vmatprep.subr.bf16.mxu1 %v15179_v26 }
 0x76c   :  { %14489 = vmatpush3.bf16.msra.mxu1 %v15180_v2 }
 0x770   :  { %v14420_v19 = vpop.f32.mrb[60].mxu1 }
 0x771   :  { %v14421_v62 = vpop.f32.mrb[61].mxu1 }
 0x772   :  { %v14422_v43 = vadd.f32 %v14421_v62, %v14420_v19  ;;  %v14423_v11 = vpop.f32.mrb[62].mxu1 }
 0x773   :  { %v14424_v40 = vpop.f32.mrb[63].mxu1 }
 0x774   :  { %v12417_v36 = vadd.f32 %v14422_v43, %v12377_v12 }
 0x791   :  { %v14442_v6 = vpop.f32.mrb[64].mxu1 }
 0x792   :  { %v14443_v21 = vpop.f32.mrb[65].mxu1 }
 0x793   :  { %v14444_v10 = vadd.f32 %v14443_v21, %v14442_v6  ;;  %v14445_v54 = vpop.f32.mrb[66].mxu1 }
 0x794   :  { %v14446_v1 = vpop.f32.mrb[67].mxu1 }
 0x795   :  { %v12457_v9 = vadd.f32 %v14444_v10, %v12417_v36 }
 0x7b1   :  { %v14464_v57 = vpop.f32.mrb[68].mxu1 }
 0x7b2   :  { %v14465_v14 = vpop.f32.mrb[69].mxu1 }
 0x7b3   :  { %v14466_v16 = vadd.f32 %v14465_v14, %v14464_v57  ;;  %v14467_v17 = vpop.f32.mrb[70].mxu1 }
 0x7b4   :  { %v14468_v18 = vpop.f32.mrb[71].mxu1 }
 0x7b5   :  { %v12497_v42 = vadd.f32 %v14466_v16, %v12457_v9 }
 0x7bd   :  { %v12536_v55 = vpop.f32.mrb[72].mxu1 }
 0x7be   :  { %v12537_v4 = vadd.f32 %v12536_v55, %v12497_v42  ;;  %v14504_v15 = vpop.f32.mrb[73].mxu1 }
 0x7bf   :  { %v12539_v32 = vpop.f32.mrb[74].mxu1 }
 0x7c0   :  { %v12560_v7 = vmul.f32 %v12554_v20, %v12537_v4  ;;  %v14505_v27 = vpop.f32.mrb[75].mxu1 }
 0x7c2   :  { %v12579_v22 = vadd.f32 %v12573_v24, %v12560_v7 }
 0x7c4   :  { %12761 = vst.msk [vmem:[#allocation5 + $0x8] sm:$0xf] %vm12760_vm5, %v12579_v22 }
 0x83c   :  { %v12175_v37 = vpop.f32.mrb[44].mxu0 }
 0x83d   :  { %v12558_v38 = vmul.f32 %v12546_v63, %v12175_v37  ;;  %v12177_v41 = vpop.f32.mrb[45].mxu0 }
 0x83e   :  { %v12559_v23 = vmul.f32 %v12550_v28, %v12177_v41  ;;  %v12179_v30 = vpop.f32.mrb[46].mxu0 }
 0x83f   :  { %v12577_v25 = vadd.f32 %v12565_v33, %v12558_v38  ;;  %v12180_v3 = vpop.f32.mrb[47].mxu0 }
 0x840   :  { %v12578_v59 = vadd.f32 %v12569_v13, %v12559_v23 }
 0x841   :  { %v12580_v48 = vmax.f32 %v12577_v25, 0.0  ;;  %12758 = vst [vmem:[#allocation5] sm:$0xf] %v12577_v25 }
 0x842   :  { %v12581_v49 = vmax.f32 %v12578_v59, 0.0 }
 0x843   :  { %v12582_v60 = vpack.c.bf16 %v12580_v48, %v12580_v48 }
 0x844   :  { %v12583_v53 = vpack.c.bf16 %v12581_v49, %v12581_v49 }
 0x846   :  { %12750 = vmatprep.mubr.bf16.mxu1 %v12583_v53 }
 0x847   :  { %12751 = vmatmul.mubr.bf16.vlgmr.msra.gmra.mrb[76].mxu1 %v12582_v60 }
 0x91a   :  { %v14490_v52 = vpop.f32.mrb[76].mxu1 }
 0x91b   :  { %v14491_v50 = vpop.f32.mrb[77].mxu1 }
 0x91c   :  { %v14492_v44 = vadd.f32 %v14491_v50, %v14490_v52  ;;  %v14493_v12 = vpop.f32.mrb[78].mxu1 }
 0x91d   :  { %v14494_v46 = vpop.f32.mrb[79].mxu1 }
 0x91e   :  { %v12753_v8 = vadd.f32 %v14492_v44, %v14277_v45 }
 0x920   :  { %12759 = vst [vmem:[#allocation5 + $0x4] sm:$0xf] %v12753_v8 }
 0x921   :  { %15215 = shalt.err (!%p15212_p12)
}
 0x922   :  { %s15216_s7 = scalar_lea.hbm %s17236_s8, 192 }
 0x923   :  { %p15217_p13 = scmp.ne.s32.totalorder %s17236_s8, %s15216_s7  ;;  %p15220_p0 = scmp.lt.u32.totalorder %s15216_s7, %s17236_s8 }
 0x925   :  { %p15222_p1 = pnand %p15220_p0, %p15217_p13 }
 0x927   :  { %15225 = shalt.err (!%p15222_p1)
}
 0x928   :  { %12771 = dma.vmem_to_hbm [thread:$0]  %s12769_s13, 192, %s17236_s8, [#allocation4]  }
 0x929   :  { %15228 = dma.done.wait [#allocation4], 192  }
 0x92a   :  { %15229 = vsyncadd [#allocation4], 4294967104 }
 0x92b   :  { %12775 = vsyncpa [#allocation3], 1 }
 0x92c   :  { %12776 = vsyncpa [#allocation4], 1 }

</bundles_post_ra>
